<compile_context>
chip_gen: v5e
topology: v5e:2x2
jax: 0.10.0
libtpu: 0.0.40
codegen_flags: <defaults>
</compile_context>

<pallas_src>
import jax
import jax.numpy as jnp
from jax import lax
from jax.experimental import pallas as pl
from jax.experimental.pallas import tpu as pltpu


def lstm_fc_kernel(x_ref,       # (Tc, Bc, D)   time-major input chunk (f32)
                   wih1_ref,    # (D, 4H)       layer-1 input weights, [i,f,o,g] order (bf16)
                   b1_ref,      # (1, 4H)       layer-1 combined bias b_ih + b_hh (f32)
                   wcat_ref,    # (H, 8H)       fused [whh1 | wih2] (bf16)
                   whh2_ref,    # (H, 4H)       layer-2 recurrent weights (bf16)
                   b2_ref,      # (1, 4H)       layer-2 combined bias (f32)
                   fcw_ref,     # (H, Opad)     fc weight transposed, padded to 128 lanes (bf16)
                   fcb_ref,     # (1, Opad)     fc bias, padded (f32)
                   out_ref,     # (Bc, Opad)    output, written on the final chunk only
                   xproj_ref,   # scratch (Tc, Bc, 4H) f32 : hoisted x @ wih1 + b1
                   h1p_ref,     # scratch (Bc, 4H) f32     : h1 @ whh1, carried across chunks
                   h2p_ref,     # scratch (Bc, 4H) f32     : h2 @ whh2 + b2, carried across chunks
                   c1_ref,      # scratch (Bc, H)  f32
                   h2_ref,      # scratch (Bc, H)  f32
                   c2_ref):     # scratch (Bc, H)  f32
    Tc, Bc, D = x_ref.shape
    H = whh2_ref.shape[0]
    H3, H4 = 3 * H, 4 * H

    chunk = pl.program_id(1)

    # ---- initialize recurrent state on the first T-chunk of this batch block -----------
    @pl.when(chunk == 0)
    def _():
        h1p_ref[...] = jnp.zeros_like(h1p_ref)
        # b2 is folded into the carried h2-projection (h2 = 0 at t = 0).
        h2p_ref[...] = jnp.broadcast_to(b2_ref[...], h2p_ref.shape)
        c1_ref[...] = jnp.zeros_like(c1_ref)
        h2_ref[...] = jnp.zeros_like(h2_ref)
        c2_ref[...] = jnp.zeros_like(c2_ref)

    # ---- hoisted layer-1 input projection: ONE flattened matmul for the whole chunk ----
    # (Tc*Bc, D) @ (D, 4H): wih1 streams through the MXU once per chunk; off the serial path.
    x_flat = x_ref[...].reshape(Tc * Bc, D).astype(jnp.bfloat16)
    xproj = jnp.dot(x_flat, wih1_ref[...],
                    preferred_element_type=jnp.float32) + b1_ref[...]
    xproj_ref[...] = xproj.reshape(Tc, Bc, H4)

    def sigmoid(z):
        # tanh form -> EUP transcendental, no f32 divide on the VALU, no inf intermediate
        return 0.5 * (jnp.tanh(0.5 * z) + 1.0)

    def activations(gates):
        # gate order is [i, f, o, g]: one contiguous sigmoid slab + one tanh slab
        sfo = sigmoid(gates[:, :H3])
        g = jnp.tanh(gates[:, H3:])
        return sfo[:, :H], sfo[:, H:2 * H], sfo[:, 2 * H:], g

    def step(t, carry):
        # h1p = h1_{t-1} @ whh1 ; h2p = h2_{t-1} @ whh2 + b2 (both issued a step early)
        h1p, h2p, c1, h2, c2 = carry
        # ----- layer 1: no matmul left on the critical path -----
        gates1 = xproj_ref[t] + h1p
        i1, f1, o1, g1 = activations(gates1)
        c1 = f1 * c1 + i1 * g1
        h1 = o1 * jnp.tanh(c1)
        # ----- single fused h1 @ [whh1 | wih2] feeds both consumers of h1 -----
        # (weights read from the ref per use: keeps vreg live ranges short.)
        cat = jnp.dot(h1.astype(jnp.bfloat16), wcat_ref[...],
                      preferred_element_type=jnp.float32)        # (Bc, 8H)
        h1p_next = cat[:, :H4]                                   # layer-1 gates at t+1
        # ----- layer 2: recurrent projection was pre-issued as h2p at step t-1 -----
        gates2 = cat[:, H4:] + h2p
        i2, f2, o2, g2 = activations(gates2)
        c2 = f2 * c2 + i2 * g2
        h2 = o2 * jnp.tanh(c2)
        # eagerly issue h2 @ whh2 for step t+1 (overlaps with next step's layer-1 work)
        h2p_next = jnp.dot(h2.astype(jnp.bfloat16), whh2_ref[...],
                           preferred_element_type=jnp.float32) + b2_ref[...]
        return (h1p_next, h2p_next, c1, h2, c2)

    carry0 = (h1p_ref[...], h2p_ref[...], c1_ref[...], h2_ref[...], c2_ref[...])
    # Partial unroll: enough cross-iteration visibility for the LLO scheduler without
    # blowing up code size / vreg pressure when Tc is large.
    h1p, h2p, c1, h2, c2 = lax.fori_loop(0, Tc, step, carry0, unroll=min(8, Tc))

    # carry recurrent state to the next T-chunk of this batch block
    h1p_ref[...] = h1p
    h2p_ref[...] = h2p
    c1_ref[...] = c1
    h2_ref[...] = h2
    c2_ref[...] = c2

    # ---- fc(out[:, -1, :]) on the final chunk only (lane-dense, Opad = 128) -------------
    @pl.when(chunk == pl.num_programs(1) - 1)
    def _():
        out_ref[...] = (jnp.dot(h2.astype(jnp.bfloat16), fcw_ref[...],
                                preferred_element_type=jnp.float32)
                        + fcb_ref[...]).astype(out_ref.dtype)


def audio_lstm_forward(x, kparams, *, output_size, t_chunk=None, b_block=None):
    """x: (B, T, D) float32 (batch_first). Returns fc(h_T) of shape (B, output_size) float32."""
    B, T, D = x.shape
    H = kparams["whh2"].shape[0]
    Opad = kparams["fcw"].shape[1]          # fc padded to a multiple of 128 lanes
    H4, H8 = 4 * H, 8 * H

    if t_chunk is None:
        t_chunk = T if T <= 64 else 64
    assert T % t_chunk == 0, "T must be divisible by t_chunk (pad the sequence)"
    n_chunks = T // t_chunk

    if b_block is None:
        b_block = B                          # split (e.g. B // 2) to use both v7x TensorCores
    assert B % b_block == 0, "B must be divisible by b_block"
    n_bblocks = B // b_block

    x_tm = jnp.transpose(x, (1, 0, 2))       # time-major (T, B, D)

    def full_spec(shape):
        # whole-array block; constant block index -> stays resident across grid steps
        return pl.BlockSpec(shape, lambda b, i: (0,) * len(shape))

    grid_spec = pltpu.PrefetchScalarGridSpec(
        num_scalar_prefetch=0,
        # leading batch-block axis is "parallel" (shards across v7x's 2 TCs); T-chunk axis is
        # the serial recurrence.
        grid=(n_bblocks, n_chunks),
        in_specs=[
            # x streamed chunk-by-chunk (Pallas double-buffers the DMA) so the kernel scales
            # to long audio without holding all of (T, B, D) in VMEM.
            pl.BlockSpec((t_chunk, b_block, D), lambda b, i: (i, b, 0)),
            full_spec((D, H4)),     # wih1 (bf16)
            full_spec((1, H4)),     # b1
            full_spec((H, H8)),     # wcat = [whh1 | wih2] (bf16)
            full_spec((H, H4)),     # whh2 (bf16)
            full_spec((1, H4)),     # b2
            full_spec((H, Opad)),   # fcw (bf16, lane-padded)
            full_spec((1, Opad)),   # fcb (lane-padded)
        ],
        out_specs=pl.BlockSpec((b_block, Opad), lambda b, i: (b, 0)),
        scratch_shapes=[
            # keep t_chunk*b_block modest on v7x (64 MiB VMEM) once batching is applied
            pltpu.VMEM((t_chunk, b_block, H4), jnp.float32),  # hoisted x @ wih1 + b1
            pltpu.VMEM((b_block, H4), jnp.float32),           # h1 @ whh1 carried across steps/chunks
            pltpu.VMEM((b_block, H4), jnp.float32),           # h2 @ whh2 + b2 carried across steps/chunks
            pltpu.VMEM((b_block, H), jnp.float32),            # c1
            pltpu.VMEM((b_block, H), jnp.float32),            # h2
            pltpu.VMEM((b_block, H), jnp.float32),            # c2
        ],
    )
    out_padded = pl.pallas_call(
        lstm_fc_kernel,
        out_shape=jax.ShapeDtypeStruct((B, Opad), jnp.float32),
        grid_spec=grid_spec,
        compiler_params=pltpu.CompilerParams(
            # batch blocks are independent; recurrence over T-chunks is inherently serial
            dimension_semantics=("parallel", "arbitrary"),
            # sized generously above the ~2-4 MiB weight + scratch footprint; scale with H/T/B
            vmem_limit_bytes=32 * 1024 * 1024,
        ),
    )(x_tm, kparams["wih1"], kparams["b1"], kparams["wcat"],
      kparams["whh2"], kparams["b2"], kparams["fcw"], kparams["fcb"])
    return out_padded[:, :output_size]


def init_params(key, input_size, hidden_size, output_size):
    """Deterministic init in PyTorch layout/shapes: U(-k, k), k = 1/sqrt(H), gates [i,f,g,o]."""
    H = hidden_size
    k = 1.0 / jnp.sqrt(jnp.float32(H))
    keys = jax.random.split(key, 10)

    def u(kk, shape):
        return jax.random.uniform(kk, shape, jnp.float32, -k, k)

    return dict(
        weight_ih_l0=u(keys[0], (4 * H, input_size)),
        weight_hh_l0=u(keys[1], (4 * H, H)),
        bias_ih_l0=u(keys[2], (4 * H,)),
        bias_hh_l0=u(keys[3], (4 * H,)),
        weight_ih_l1=u(keys[4], (4 * H, H)),
        weight_hh_l1=u(keys[5], (4 * H, H)),
        bias_ih_l1=u(keys[6], (4 * H,)),
        bias_hh_l1=u(keys[7], (4 * H,)),
        fc_weight=u(keys[8], (output_size, H)),
        fc_bias=u(keys[9], (output_size,)),
    )


def pack_params(p):
    """PyTorch-layout params -> kernel layout: gate reorder [i,f,g,o]->[i,f,o,g], transpose,
    combine biases, fuse whh1|wih2, pre-cast matmul weights to bf16 (state stays f32), and
    zero-pad the fc head to 128 output lanes (lane-dense final store)."""
    H4 = p["weight_hh_l0"].shape[0]
    H = H4 // 4
    O = p["fc_weight"].shape[0]
    Opad = max(128, ((O + 127) // 128) * 128)

    def reorder(w):
        i, f, g, o = jnp.split(w, 4, axis=0)
        return jnp.concatenate([i, f, o, g], axis=0)

    def wt(w):  # reorder + transpose + bf16 MXU operand
        return reorder(w).T.astype(jnp.bfloat16)

    def bias(b_ih, b_hh):
        return (reorder(b_ih) + reorder(b_hh)).reshape(1, H4).astype(jnp.float32)

    whh1 = wt(p["weight_hh_l0"])              # (H, 4H)
    wih2 = wt(p["weight_ih_l1"])              # (H, 4H)

    fcw = jnp.zeros((H, Opad), jnp.float32).at[:, :O].set(p["fc_weight"].T)
    fcb = jnp.zeros((1, Opad), jnp.float32).at[0, :O].set(p["fc_bias"])

    return dict(
        wih1=wt(p["weight_ih_l0"]),                           # (D, 4H) bf16
        b1=bias(p["bias_ih_l0"], p["bias_hh_l0"]),            # (1, 4H) f32
        wcat=jnp.concatenate([whh1, wih2], axis=1),           # (H, 8H) bf16 fused
        whh2=wt(p["weight_hh_l1"]),                           # (H, 4H) bf16
        b2=bias(p["bias_ih_l1"], p["bias_hh_l1"]),            # (1, 4H) f32
        fcw=fcw.astype(jnp.bfloat16),                         # (H, Opad) bf16
        fcb=fcb,                                              # (1, Opad) f32
    )


def reference_forward(x, p):
    """Pure-JAX reference in the original PyTorch layout ([i,f,g,o] gate order), mirroring
    the kernel's bf16-operand / f32-accumulate matmul numerics for a tight comparison."""
    B, T, D = x.shape
    H = p["weight_hh_l0"].shape[1]

    def bdot(a, b):
        return jnp.dot(a.astype(jnp.bfloat16), b.astype(jnp.bfloat16),
                       preferred_element_type=jnp.float32)

    def sigmoid(z):
        return 0.5 * (jnp.tanh(0.5 * z) + 1.0)

    def cell(x_t, h, c, w_ih, w_hh, b_ih, b_hh):
        g = bdot(x_t, w_ih.T) + bdot(h, w_hh.T) + b_ih + b_hh
        i = sigmoid(g[:, 0 * H:1 * H])
        f = sigmoid(g[:, 1 * H:2 * H])
        gg = jnp.tanh(g[:, 2 * H:3 * H])
        o = sigmoid(g[:, 3 * H:4 * H])
        c_new = f * c + i * gg
        return o * jnp.tanh(c_new), c_new

    h1 = c1 = h2 = c2 = jnp.zeros((B, H), jnp.float32)
    for t in range(T):
        h1, c1 = cell(x[:, t, :], h1, c1, p["weight_ih_l0"], p["weight_hh_l0"],
                      p["bias_ih_l0"], p["bias_hh_l0"])
        h2, c2 = cell(h1, h2, c2, p["weight_ih_l1"], p["weight_hh_l1"],
                      p["bias_ih_l1"], p["bias_hh_l1"])
    return bdot(h2, p["fc_weight"].T) + p["fc_bias"]


if __name__ == "__main__":
    # B=8 fills the 8-sublane VPU/EUP lanes and gives the MXU 8 LHS rows per recurrent step
    # (the recurrence is latency-bound, so larger B is essentially free throughput).
    B, T = 8, 8
    INPUT_SIZE, HIDDEN_SIZE, OUTPUT_SIZE = 128, 256, 2
    T_CHUNK = 4  # grid of 2 chunks -> exercises the streamed/carried-state path

    key = jax.random.PRNGKey(0)
    k_x, k_p = jax.random.split(key)
    x = jax.random.normal(k_x, (B, T, INPUT_SIZE), jnp.float32)
    torch_params = init_params(k_p, INPUT_SIZE, HIDDEN_SIZE, OUTPUT_SIZE)
    kparams = pack_params(torch_params)

    out = audio_lstm_forward(x, kparams, output_size=OUTPUT_SIZE, t_chunk=T_CHUNK)
    out = jax.block_until_ready(out)

    ref = reference_forward(x, torch_params)
    assert out.shape == (B, OUTPUT_SIZE)
    assert jnp.allclose(out, ref, rtol=1e-3, atol=1e-3), "mismatch vs reference"

    print("KERNEL_OK")
</pallas_src>

<mosaic_0001>
module attributes {stable_mosaic.version = 11 : i64} {
  func.func @lstm_fc_kernel(%arg0: i32, %arg1: i32, %arg2: memref<4x8x128xf32, #tpu.memory_space<vmem>>, %arg3: memref<128x1024xbf16, #tpu.memory_space<vmem>>, %arg4: memref<1x1024xf32, #tpu.memory_space<vmem>>, %arg5: memref<256x2048xbf16, #tpu.memory_space<vmem>>, %arg6: memref<256x1024xbf16, #tpu.memory_space<vmem>>, %arg7: memref<1x1024xf32, #tpu.memory_space<vmem>>, %arg8: memref<256x128xbf16, #tpu.memory_space<vmem>>, %arg9: memref<1x128xf32, #tpu.memory_space<vmem>>, %arg10: memref<8x128xf32, #tpu.memory_space<vmem>>, %arg11: memref<4x8x1024xf32, #tpu.memory_space<vmem>>, %arg12: memref<8x1024xf32, #tpu.memory_space<vmem>>, %arg13: memref<8x1024xf32, #tpu.memory_space<vmem>>, %arg14: memref<8x256xf32, #tpu.memory_space<vmem>>, %arg15: memref<8x256xf32, #tpu.memory_space<vmem>>, %arg16: memref<8x256xf32, #tpu.memory_space<vmem>>) attributes {dimension_semantics = [#tpu.dimension_semantics<parallel>, #tpu.dimension_semantics<arbitrary>], iteration_bounds = array<i64: 1, 2>, scalar_prefetch = 0 : i64, scratch_operands = 6 : i64, tpu.core_type = #tpu.core_type<tc>, window_params = [{transform_indices = @transform_0, window_bounds = array<i64: 4, 8, 128>}, {pipeline_mode = #tpu.pipeline_mode<synchronous>, transform_indices = @transform_1, window_bounds = array<i64: 128, 1024>}, {pipeline_mode = #tpu.pipeline_mode<synchronous>, transform_indices = @transform_2, window_bounds = array<i64: 1, 1024>}, {pipeline_mode = #tpu.pipeline_mode<synchronous>, transform_indices = @transform_3, window_bounds = array<i64: 256, 2048>}, {pipeline_mode = #tpu.pipeline_mode<synchronous>, transform_indices = @transform_4, window_bounds = array<i64: 256, 1024>}, {pipeline_mode = #tpu.pipeline_mode<synchronous>, transform_indices = @transform_5, window_bounds = array<i64: 1, 1024>}, {pipeline_mode = #tpu.pipeline_mode<synchronous>, transform_indices = @transform_6, window_bounds = array<i64: 256, 128>}, {pipeline_mode = #tpu.pipeline_mode<synchronous>, transform_indices = @transform_7, window_bounds = array<i64: 1, 128>}, {transform_indices = @transform_8, window_bounds = array<i64: 8, 128>}]} {
    %c0_i32 = arith.constant 0 : i32
    %0 = arith.cmpi eq, %arg1, %c0_i32 : i32
    %1 = arith.extui %0 : i1 to i32
    %c0_i32_0 = arith.constant 0 : i32
    %2 = arith.cmpi ne, %1, %c0_i32_0 : i32
    scf.if %2 {
      %cst_97 = arith.constant 0.000000e+00 : f32
      %234 = vector.broadcast %cst_97 : f32 to vector<8x1024xf32>
      %c0_98 = arith.constant 0 : index
      %c0_99 = arith.constant 0 : index
      %235 = vector.load %arg12[%c0_98, %c0_99] : memref<8x1024xf32, #tpu.memory_space<vmem>>, vector<8x1024xf32>
      tpu.vector_store %arg12[%c0_98, %c0_99], %234 {strides = array<i32>} : memref<8x1024xf32, #tpu.memory_space<vmem>>, vector<8x1024xf32>,
      %c0_100 = arith.constant 0 : index
      %c0_101 = arith.constant 0 : index
      %236 = vector.load %arg7[%c0_100, %c0_101] : memref<1x1024xf32, #tpu.memory_space<vmem>>, vector<1x1024xf32>
      %237 = vector.shape_cast %236 : vector<1x1024xf32> to vector<1x1024xf32>
      %238 = vector.broadcast %237 : vector<1x1024xf32> to vector<8x1024xf32>
      %c0_102 = arith.constant 0 : index
      %c0_103 = arith.constant 0 : index
      %239 = vector.load %arg13[%c0_102, %c0_103] : memref<8x1024xf32, #tpu.memory_space<vmem>>, vector<8x1024xf32>
      tpu.vector_store %arg13[%c0_102, %c0_103], %238 {strides = array<i32>} : memref<8x1024xf32, #tpu.memory_space<vmem>>, vector<8x1024xf32>,
      %cst_104 = arith.constant 0.000000e+00 : f32
      %240 = vector.broadcast %cst_104 : f32 to vector<8x256xf32>
      %c0_105 = arith.constant 0 : index
      %c0_106 = arith.constant 0 : index
      %241 = vector.load %arg14[%c0_105, %c0_106] : memref<8x256xf32, #tpu.memory_space<vmem>>, vector<8x256xf32>
      tpu.vector_store %arg14[%c0_105, %c0_106], %240 {strides = array<i32>} : memref<8x256xf32, #tpu.memory_space<vmem>>, vector<8x256xf32>,
      %cst_107 = arith.constant 0.000000e+00 : f32
      %242 = vector.broadcast %cst_107 : f32 to vector<8x256xf32>
      %c0_108 = arith.constant 0 : index
      %c0_109 = arith.constant 0 : index
      %243 = vector.load %arg15[%c0_108, %c0_109] : memref<8x256xf32, #tpu.memory_space<vmem>>, vector<8x256xf32>
      tpu.vector_store %arg15[%c0_108, %c0_109], %242 {strides = array<i32>} : memref<8x256xf32, #tpu.memory_space<vmem>>, vector<8x256xf32>,
      %cst_110 = arith.constant 0.000000e+00 : f32
      %244 = vector.broadcast %cst_110 : f32 to vector<8x256xf32>
      %c0_111 = arith.constant 0 : index
      %c0_112 = arith.constant 0 : index
      %245 = vector.load %arg16[%c0_111, %c0_112] : memref<8x256xf32, #tpu.memory_space<vmem>>, vector<8x256xf32>
      tpu.vector_store %arg16[%c0_111, %c0_112], %244 {strides = array<i32>} : memref<8x256xf32, #tpu.memory_space<vmem>>, vector<8x256xf32>,
    } else {
    }
    %c0 = arith.constant 0 : index
    %c0_1 = arith.constant 0 : index
    %c0_2 = arith.constant 0 : index
    %3 = vector.load %arg2[%c0, %c0_1, %c0_2] : memref<4x8x128xf32, #tpu.memory_space<vmem>>, vector<4x8x128xf32>
    %4 = vector.shape_cast %3 : vector<4x8x128xf32> to vector<32x128xf32>
    %5 = arith.truncf %4 : vector<32x128xf32> to vector<32x128xbf16>
    %c0_3 = arith.constant 0 : index
    %c0_4 = arith.constant 0 : index
    %6 = vector.load %arg3[%c0_3, %c0_4] : memref<128x1024xbf16, #tpu.memory_space<vmem>>, vector<128x1024xbf16>
    %cst = arith.constant dense<0.000000e+00> : vector<32x1024xf32>
    %7 = tpu.matmul %5, %6, %cst {dimension_numbers = #tpu.dot_dimension_numbers<[1], [0], [0], [1], [0, 0, 1, 1], [], []>} : vector<32x128xbf16>, vector<128x1024xbf16>, vector<32x1024xf32> -> vector<32x1024xf32>
    %c0_5 = arith.constant 0 : index
    %c0_6 = arith.constant 0 : index
    %8 = vector.load %arg4[%c0_5, %c0_6] : memref<1x1024xf32, #tpu.memory_space<vmem>>, vector<1x1024xf32>
    %9 = vector.broadcast %8 : vector<1x1024xf32> to vector<32x1024xf32>
    %10 = arith.addf %7, %9 : vector<32x1024xf32>
    %11 = vector.shape_cast %10 : vector<32x1024xf32> to vector<4x8x1024xf32>
    %c0_7 = arith.constant 0 : index
    %c0_8 = arith.constant 0 : index
    %c0_9 = arith.constant 0 : index
    %12 = vector.load %arg11[%c0_7, %c0_8, %c0_9] : memref<4x8x1024xf32, #tpu.memory_space<vmem>>, vector<4x8x1024xf32>
    tpu.vector_store %arg11[%c0_7, %c0_8, %c0_9], %11 {strides = array<i32>} : memref<4x8x1024xf32, #tpu.memory_space<vmem>>, vector<4x8x1024xf32>,
    %c0_10 = arith.constant 0 : index
    %c0_11 = arith.constant 0 : index
    %13 = vector.load %arg12[%c0_10, %c0_11] : memref<8x1024xf32, #tpu.memory_space<vmem>>, vector<8x1024xf32>
    %c0_12 = arith.constant 0 : index
    %c0_13 = arith.constant 0 : index
    %14 = vector.load %arg13[%c0_12, %c0_13] : memref<8x1024xf32, #tpu.memory_space<vmem>>, vector<8x1024xf32>
    %c0_14 = arith.constant 0 : index
    %c0_15 = arith.constant 0 : index
    %15 = vector.load %arg14[%c0_14, %c0_15] : memref<8x256xf32, #tpu.memory_space<vmem>>, vector<8x256xf32>
    %c0_16 = arith.constant 0 : index
    %c0_17 = arith.constant 0 : index
    %16 = vector.load %arg15[%c0_16, %c0_17] : memref<8x256xf32, #tpu.memory_space<vmem>>, vector<8x256xf32>
    %c0_18 = arith.constant 0 : index
    %c0_19 = arith.constant 0 : index
    %17 = vector.load %arg16[%c0_18, %c0_19] : memref<8x256xf32, #tpu.memory_space<vmem>>, vector<8x256xf32>
    %c0_i32_20 = arith.constant 0 : i32
    %18 = arith.index_cast %c0_i32_20 : i32 to index
    %c0_21 = arith.constant 0 : index
    %c0_22 = arith.constant 0 : index
    %19 = vector.load %arg11[%18, %c0_21, %c0_22] : memref<4x8x1024xf32, #tpu.memory_space<vmem>>, vector<1x8x1024xf32>
    %20 = vector.shape_cast %19 : vector<1x8x1024xf32> to vector<8x1024xf32>
    %21 = arith.addf %20, %13 : vector<8x1024xf32>
    %22 = vector.extract_strided_slice %21 {offsets = [0, 0], sizes = [8, 768], strides = [1, 1]} : vector<8x1024xf32> to vector<8x768xf32>
    %cst_23 = arith.constant 5.000000e-01 : f32
    %23 = vector.broadcast %cst_23 : f32 to vector<8x768xf32>
    %24 = arith.mulf %23, %22 : vector<8x768xf32>
    %25 = math.tanh %24 : vector<8x768xf32>
    %cst_24 = arith.constant 1.000000e+00 : f32
    %26 = vector.broadcast %cst_24 : f32 to vector<8x768xf32>
    %27 = arith.addf %25, %26 : vector<8x768xf32>
    %cst_25 = arith.constant 5.000000e-01 : f32
    %28 = vector.broadcast %cst_25 : f32 to vector<8x768xf32>
    %29 = arith.mulf %28, %27 : vector<8x768xf32>
    %30 = vector.extract_strided_slice %21 {offsets = [0, 768], sizes = [8, 256], strides = [1, 1]} : vector<8x1024xf32> to vector<8x256xf32>
    %31 = math.tanh %30 : vector<8x256xf32>
    %32 = vector.extract_strided_slice %29 {offsets = [0, 0], sizes = [8, 256], strides = [1, 1]} : vector<8x768xf32> to vector<8x256xf32>
    %33 = vector.extract_strided_slice %29 {offsets = [0, 256], sizes = [8, 256], strides = [1, 1]} : vector<8x768xf32> to vector<8x256xf32>
    %34 = vector.extract_strided_slice %29 {offsets = [0, 512], sizes = [8, 256], strides = [1, 1]} : vector<8x768xf32> to vector<8x256xf32>
    %35 = arith.mulf %33, %15 : vector<8x256xf32>
    %36 = arith.mulf %32, %31 : vector<8x256xf32>
    %37 = arith.addf %35, %36 : vector<8x256xf32>
    %38 = math.tanh %37 : vector<8x256xf32>
    %39 = arith.mulf %34, %38 : vector<8x256xf32>
    %40 = arith.truncf %39 : vector<8x256xf32> to vector<8x256xbf16>
    %c0_26 = arith.constant 0 : index
    %c0_27 = arith.constant 0 : index
    %41 = vector.load %arg5[%c0_26, %c0_27] : memref<256x2048xbf16, #tpu.memory_space<vmem>>, vector<256x2048xbf16>
    %cst_28 = arith.constant dense<0.000000e+00> : vector<8x2048xf32>
    %42 = tpu.matmul %40, %41, %cst_28 {dimension_numbers = #tpu.dot_dimension_numbers<[1], [0], [0], [1], [0, 0, 1, 1], [], []>} : vector<8x256xbf16>, vector<256x2048xbf16>, vector<8x2048xf32> -> vector<8x2048xf32>
    %43 = vector.extract_strided_slice %42 {offsets = [0, 0], sizes = [8, 1024], strides = [1, 1]} : vector<8x2048xf32> to vector<8x1024xf32>
    %44 = vector.extract_strided_slice %42 {offsets = [0, 1024], sizes = [8, 1024], strides = [1, 1]} : vector<8x2048xf32> to vector<8x1024xf32>
    %45 = arith.addf %44, %14 : vector<8x1024xf32>
    %46 = vector.extract_strided_slice %45 {offsets = [0, 0], sizes = [8, 768], strides = [1, 1]} : vector<8x1024xf32> to vector<8x768xf32>
    %cst_29 = arith.constant 5.000000e-01 : f32
    %47 = vector.broadcast %cst_29 : f32 to vector<8x768xf32>
    %48 = arith.mulf %47, %46 : vector<8x768xf32>
    %49 = math.tanh %48 : vector<8x768xf32>
    %cst_30 = arith.constant 1.000000e+00 : f32
    %50 = vector.broadcast %cst_30 : f32 to vector<8x768xf32>
    %51 = arith.addf %49, %50 : vector<8x768xf32>
    %cst_31 = arith.constant 5.000000e-01 : f32
    %52 = vector.broadcast %cst_31 : f32 to vector<8x768xf32>
    %53 = arith.mulf %52, %51 : vector<8x768xf32>
    %54 = vector.extract_strided_slice %45 {offsets = [0, 768], sizes = [8, 256], strides = [1, 1]} : vector<8x1024xf32> to vector<8x256xf32>
    %55 = math.tanh %54 : vector<8x256xf32>
    %56 = vector.extract_strided_slice %53 {offsets = [0, 0], sizes = [8, 256], strides = [1, 1]} : vector<8x768xf32> to vector<8x256xf32>
    %57 = vector.extract_strided_slice %53 {offsets = [0, 256], sizes = [8, 256], strides = [1, 1]} : vector<8x768xf32> to vector<8x256xf32>
    %58 = vector.extract_strided_slice %53 {offsets = [0, 512], sizes = [8, 256], strides = [1, 1]} : vector<8x768xf32> to vector<8x256xf32>
    %59 = arith.mulf %57, %17 : vector<8x256xf32>
    %60 = arith.mulf %56, %55 : vector<8x256xf32>
    %61 = arith.addf %59, %60 : vector<8x256xf32>
    %62 = math.tanh %61 : vector<8x256xf32>
    %63 = arith.mulf %58, %62 : vector<8x256xf32>
    %64 = arith.truncf %63 : vector<8x256xf32> to vector<8x256xbf16>
    %c0_32 = arith.constant 0 : index
    %c0_33 = arith.constant 0 : index
    %65 = vector.load %arg6[%c0_32, %c0_33] : memref<256x1024xbf16, #tpu.memory_space<vmem>>, vector<256x1024xbf16>
    %cst_34 = arith.constant dense<0.000000e+00> : vector<8x1024xf32>
    %66 = tpu.matmul %64, %65, %cst_34 {dimension_numbers = #tpu.dot_dimension_numbers<[1], [0], [0], [1], [0, 0, 1, 1], [], []>} : vector<8x256xbf16>, vector<256x1024xbf16>, vector<8x1024xf32> -> vector<8x1024xf32>
    %c0_35 = arith.constant 0 : index
    %c0_36 = arith.constant 0 : index
    %67 = vector.load %arg7[%c0_35, %c0_36] : memref<1x1024xf32, #tpu.memory_space<vmem>>, vector<1x1024xf32>
    %68 = vector.broadcast %67 : vector<1x1024xf32> to vector<8x1024xf32>
    %69 = arith.addf %66, %68 : vector<8x1024xf32>
    %c1_i32 = arith.constant 1 : i32
    %70 = arith.index_cast %c1_i32 : i32 to index
    %c0_37 = arith.constant 0 : index
    %c0_38 = arith.constant 0 : index
    %71 = vector.load %arg11[%70, %c0_37, %c0_38] : memref<4x8x1024xf32, #tpu.memory_space<vmem>>, vector<1x8x1024xf32>
    %72 = vector.shape_cast %71 : vector<1x8x1024xf32> to vector<8x1024xf32>
    %73 = arith.addf %72, %43 : vector<8x1024xf32>
    %74 = vector.extract_strided_slice %73 {offsets = [0, 0], sizes = [8, 768], strides = [1, 1]} : vector<8x1024xf32> to vector<8x768xf32>
    %cst_39 = arith.constant 5.000000e-01 : f32
    %75 = vector.broadcast %cst_39 : f32 to vector<8x768xf32>
    %76 = arith.mulf %75, %74 : vector<8x768xf32>
    %77 = math.tanh %76 : vector<8x768xf32>
    %cst_40 = arith.constant 1.000000e+00 : f32
    %78 = vector.broadcast %cst_40 : f32 to vector<8x768xf32>
    %79 = arith.addf %77, %78 : vector<8x768xf32>
    %cst_41 = arith.constant 5.000000e-01 : f32
    %80 = vector.broadcast %cst_41 : f32 to vector<8x768xf32>
    %81 = arith.mulf %80, %79 : vector<8x768xf32>
    %82 = vector.extract_strided_slice %73 {offsets = [0, 768], sizes = [8, 256], strides = [1, 1]} : vector<8x1024xf32> to vector<8x256xf32>
    %83 = math.tanh %82 : vector<8x256xf32>
    %84 = vector.extract_strided_slice %81 {offsets = [0, 0], sizes = [8, 256], strides = [1, 1]} : vector<8x768xf32> to vector<8x256xf32>
    %85 = vector.extract_strided_slice %81 {offsets = [0, 256], sizes = [8, 256], strides = [1, 1]} : vector<8x768xf32> to vector<8x256xf32>
    %86 = vector.extract_strided_slice %81 {offsets = [0, 512], sizes = [8, 256], strides = [1, 1]} : vector<8x768xf32> to vector<8x256xf32>
    %87 = arith.mulf %85, %37 : vector<8x256xf32>
    %88 = arith.mulf %84, %83 : vector<8x256xf32>
    %89 = arith.addf %87, %88 : vector<8x256xf32>
    %90 = math.tanh %89 : vector<8x256xf32>
    %91 = arith.mulf %86, %90 : vector<8x256xf32>
    %92 = arith.truncf %91 : vector<8x256xf32> to vector<8x256xbf16>
    %c0_42 = arith.constant 0 : index
    %c0_43 = arith.constant 0 : index
    %93 = vector.load %arg5[%c0_42, %c0_43] : memref<256x2048xbf16, #tpu.memory_space<vmem>>, vector<256x2048xbf16>
    %cst_44 = arith.constant dense<0.000000e+00> : vector<8x2048xf32>
    %94 = tpu.matmul %92, %93, %cst_44 {dimension_numbers = #tpu.dot_dimension_numbers<[1], [0], [0], [1], [0, 0, 1, 1], [], []>} : vector<8x256xbf16>, vector<256x2048xbf16>, vector<8x2048xf32> -> vector<8x2048xf32>
    %95 = vector.extract_strided_slice %94 {offsets = [0, 0], sizes = [8, 1024], strides = [1, 1]} : vector<8x2048xf32> to vector<8x1024xf32>
    %96 = vector.extract_strided_slice %94 {offsets = [0, 1024], sizes = [8, 1024], strides = [1, 1]} : vector<8x2048xf32> to vector<8x1024xf32>
    %97 = arith.addf %96, %69 : vector<8x1024xf32>
    %98 = vector.extract_strided_slice %97 {offsets = [0, 0], sizes = [8, 768], strides = [1, 1]} : vector<8x1024xf32> to vector<8x768xf32>
    %cst_45 = arith.constant 5.000000e-01 : f32
    %99 = vector.broadcast %cst_45 : f32 to vector<8x768xf32>
    %100 = arith.mulf %99, %98 : vector<8x768xf32>
    %101 = math.tanh %100 : vector<8x768xf32>
    %cst_46 = arith.constant 1.000000e+00 : f32
    %102 = vector.broadcast %cst_46 : f32 to vector<8x768xf32>
    %103 = arith.addf %101, %102 : vector<8x768xf32>
    %cst_47 = arith.constant 5.000000e-01 : f32
    %104 = vector.broadcast %cst_47 : f32 to vector<8x768xf32>
    %105 = arith.mulf %104, %103 : vector<8x768xf32>
    %106 = vector.extract_strided_slice %97 {offsets = [0, 768], sizes = [8, 256], strides = [1, 1]} : vector<8x1024xf32> to vector<8x256xf32>
    %107 = math.tanh %106 : vector<8x256xf32>
    %108 = vector.extract_strided_slice %105 {offsets = [0, 0], sizes = [8, 256], strides = [1, 1]} : vector<8x768xf32> to vector<8x256xf32>
    %109 = vector.extract_strided_slice %105 {offsets = [0, 256], sizes = [8, 256], strides = [1, 1]} : vector<8x768xf32> to vector<8x256xf32>
    %110 = vector.extract_strided_slice %105 {offsets = [0, 512], sizes = [8, 256], strides = [1, 1]} : vector<8x768xf32> to vector<8x256xf32>
    %111 = arith.mulf %109, %61 : vector<8x256xf32>
    %112 = arith.mulf %108, %107 : vector<8x256xf32>
    %113 = arith.addf %111, %112 : vector<8x256xf32>
    %114 = math.tanh %113 : vector<8x256xf32>
    %115 = arith.mulf %110, %114 : vector<8x256xf32>
    %116 = arith.truncf %115 : vector<8x256xf32> to vector<8x256xbf16>
    %c0_48 = arith.constant 0 : index
    %c0_49 = arith.constant 0 : index
    %117 = vector.load %arg6[%c0_48, %c0_49] : memref<256x1024xbf16, #tpu.memory_space<vmem>>, vector<256x1024xbf16>
    %cst_50 = arith.constant dense<0.000000e+00> : vector<8x1024xf32>
    %118 = tpu.matmul %116, %117, %cst_50 {dimension_numbers = #tpu.dot_dimension_numbers<[1], [0], [0], [1], [0, 0, 1, 1], [], []>} : vector<8x256xbf16>, vector<256x1024xbf16>, vector<8x1024xf32> -> vector<8x1024xf32>
    %c0_51 = arith.constant 0 : index
    %c0_52 = arith.constant 0 : index
    %119 = vector.load %arg7[%c0_51, %c0_52] : memref<1x1024xf32, #tpu.memory_space<vmem>>, vector<1x1024xf32>
    %120 = vector.broadcast %119 : vector<1x1024xf32> to vector<8x1024xf32>
    %121 = arith.addf %118, %120 : vector<8x1024xf32>
    %c2_i32 = arith.constant 2 : i32
    %122 = arith.index_cast %c2_i32 : i32 to index
    %c0_53 = arith.constant 0 : index
    %c0_54 = arith.constant 0 : index
    %123 = vector.load %arg11[%122, %c0_53, %c0_54] : memref<4x8x1024xf32, #tpu.memory_space<vmem>>, vector<1x8x1024xf32>
    %124 = vector.shape_cast %123 : vector<1x8x1024xf32> to vector<8x1024xf32>
    %125 = arith.addf %124, %95 : vector<8x1024xf32>
    %126 = vector.extract_strided_slice %125 {offsets = [0, 0], sizes = [8, 768], strides = [1, 1]} : vector<8x1024xf32> to vector<8x768xf32>
    %cst_55 = arith.constant 5.000000e-01 : f32
    %127 = vector.broadcast %cst_55 : f32 to vector<8x768xf32>
    %128 = arith.mulf %127, %126 : vector<8x768xf32>
    %129 = math.tanh %128 : vector<8x768xf32>
    %cst_56 = arith.constant 1.000000e+00 : f32
    %130 = vector.broadcast %cst_56 : f32 to vector<8x768xf32>
    %131 = arith.addf %129, %130 : vector<8x768xf32>
    %cst_57 = arith.constant 5.000000e-01 : f32
    %132 = vector.broadcast %cst_57 : f32 to vector<8x768xf32>
    %133 = arith.mulf %132, %131 : vector<8x768xf32>
    %134 = vector.extract_strided_slice %125 {offsets = [0, 768], sizes = [8, 256], strides = [1, 1]} : vector<8x1024xf32> to vector<8x256xf32>
    %135 = math.tanh %134 : vector<8x256xf32>
    %136 = vector.extract_strided_slice %133 {offsets = [0, 0], sizes = [8, 256], strides = [1, 1]} : vector<8x768xf32> to vector<8x256xf32>
    %137 = vector.extract_strided_slice %133 {offsets = [0, 256], sizes = [8, 256], strides = [1, 1]} : vector<8x768xf32> to vector<8x256xf32>
    %138 = vector.extract_strided_slice %133 {offsets = [0, 512], sizes = [8, 256], strides = [1, 1]} : vector<8x768xf32> to vector<8x256xf32>
    %139 = arith.mulf %137, %89 : vector<8x256xf32>
    %140 = arith.mulf %136, %135 : vector<8x256xf32>
    %141 = arith.addf %139, %140 : vector<8x256xf32>
    %142 = math.tanh %141 : vector<8x256xf32>
    %143 = arith.mulf %138, %142 : vector<8x256xf32>
    %144 = arith.truncf %143 : vector<8x256xf32> to vector<8x256xbf16>
    %c0_58 = arith.constant 0 : index
    %c0_59 = arith.constant 0 : index
    %145 = vector.load %arg5[%c0_58, %c0_59] : memref<256x2048xbf16, #tpu.memory_space<vmem>>, vector<256x2048xbf16>
    %cst_60 = arith.constant dense<0.000000e+00> : vector<8x2048xf32>
    %146 = tpu.matmul %144, %145, %cst_60 {dimension_numbers = #tpu.dot_dimension_numbers<[1], [0], [0], [1], [0, 0, 1, 1], [], []>} : vector<8x256xbf16>, vector<256x2048xbf16>, vector<8x2048xf32> -> vector<8x2048xf32>
    %147 = vector.extract_strided_slice %146 {offsets = [0, 0], sizes = [8, 1024], strides = [1, 1]} : vector<8x2048xf32> to vector<8x1024xf32>
    %148 = vector.extract_strided_slice %146 {offsets = [0, 1024], sizes = [8, 1024], strides = [1, 1]} : vector<8x2048xf32> to vector<8x1024xf32>
    %149 = arith.addf %148, %121 : vector<8x1024xf32>
    %150 = vector.extract_strided_slice %149 {offsets = [0, 0], sizes = [8, 768], strides = [1, 1]} : vector<8x1024xf32> to vector<8x768xf32>
    %cst_61 = arith.constant 5.000000e-01 : f32
    %151 = vector.broadcast %cst_61 : f32 to vector<8x768xf32>
    %152 = arith.mulf %151, %150 : vector<8x768xf32>
    %153 = math.tanh %152 : vector<8x768xf32>
    %cst_62 = arith.constant 1.000000e+00 : f32
    %154 = vector.broadcast %cst_62 : f32 to vector<8x768xf32>
    %155 = arith.addf %153, %154 : vector<8x768xf32>
    %cst_63 = arith.constant 5.000000e-01 : f32
    %156 = vector.broadcast %cst_63 : f32 to vector<8x768xf32>
    %157 = arith.mulf %156, %155 : vector<8x768xf32>
    %158 = vector.extract_strided_slice %149 {offsets = [0, 768], sizes = [8, 256], strides = [1, 1]} : vector<8x1024xf32> to vector<8x256xf32>
    %159 = math.tanh %158 : vector<8x256xf32>
    %160 = vector.extract_strided_slice %157 {offsets = [0, 0], sizes = [8, 256], strides = [1, 1]} : vector<8x768xf32> to vector<8x256xf32>
    %161 = vector.extract_strided_slice %157 {offsets = [0, 256], sizes = [8, 256], strides = [1, 1]} : vector<8x768xf32> to vector<8x256xf32>
    %162 = vector.extract_strided_slice %157 {offsets = [0, 512], sizes = [8, 256], strides = [1, 1]} : vector<8x768xf32> to vector<8x256xf32>
    %163 = arith.mulf %161, %113 : vector<8x256xf32>
    %164 = arith.mulf %160, %159 : vector<8x256xf32>
    %165 = arith.addf %163, %164 : vector<8x256xf32>
    %166 = math.tanh %165 : vector<8x256xf32>
    %167 = arith.mulf %162, %166 : vector<8x256xf32>
    %168 = arith.truncf %167 : vector<8x256xf32> to vector<8x256xbf16>
    %c0_64 = arith.constant 0 : index
    %c0_65 = arith.constant 0 : index
    %169 = vector.load %arg6[%c0_64, %c0_65] : memref<256x1024xbf16, #tpu.memory_space<vmem>>, vector<256x1024xbf16>
    %cst_66 = arith.constant dense<0.000000e+00> : vector<8x1024xf32>
    %170 = tpu.matmul %168, %169, %cst_66 {dimension_numbers = #tpu.dot_dimension_numbers<[1], [0], [0], [1], [0, 0, 1, 1], [], []>} : vector<8x256xbf16>, vector<256x1024xbf16>, vector<8x1024xf32> -> vector<8x1024xf32>
    %c0_67 = arith.constant 0 : index
    %c0_68 = arith.constant 0 : index
    %171 = vector.load %arg7[%c0_67, %c0_68] : memref<1x1024xf32, #tpu.memory_space<vmem>>, vector<1x1024xf32>
    %172 = vector.broadcast %171 : vector<1x1024xf32> to vector<8x1024xf32>
    %173 = arith.addf %170, %172 : vector<8x1024xf32>
    %c3_i32 = arith.constant 3 : i32
    %174 = arith.index_cast %c3_i32 : i32 to index
    %c0_69 = arith.constant 0 : index
    %c0_70 = arith.constant 0 : index
    %175 = vector.load %arg11[%174, %c0_69, %c0_70] : memref<4x8x1024xf32, #tpu.memory_space<vmem>>, vector<1x8x1024xf32>
    %176 = vector.shape_cast %175 : vector<1x8x1024xf32> to vector<8x1024xf32>
    %177 = arith.addf %176, %147 : vector<8x1024xf32>
    %178 = vector.extract_strided_slice %177 {offsets = [0, 0], sizes = [8, 768], strides = [1, 1]} : vector<8x1024xf32> to vector<8x768xf32>
    %cst_71 = arith.constant 5.000000e-01 : f32
    %179 = vector.broadcast %cst_71 : f32 to vector<8x768xf32>
    %180 = arith.mulf %179, %178 : vector<8x768xf32>
    %181 = math.tanh %180 : vector<8x768xf32>
    %cst_72 = arith.constant 1.000000e+00 : f32
    %182 = vector.broadcast %cst_72 : f32 to vector<8x768xf32>
    %183 = arith.addf %181, %182 : vector<8x768xf32>
    %cst_73 = arith.constant 5.000000e-01 : f32
    %184 = vector.broadcast %cst_73 : f32 to vector<8x768xf32>
    %185 = arith.mulf %184, %183 : vector<8x768xf32>
    %186 = vector.extract_strided_slice %177 {offsets = [0, 768], sizes = [8, 256], strides = [1, 1]} : vector<8x1024xf32> to vector<8x256xf32>
    %187 = math.tanh %186 : vector<8x256xf32>
    %188 = vector.extract_strided_slice %185 {offsets = [0, 0], sizes = [8, 256], strides = [1, 1]} : vector<8x768xf32> to vector<8x256xf32>
    %189 = vector.extract_strided_slice %185 {offsets = [0, 256], sizes = [8, 256], strides = [1, 1]} : vector<8x768xf32> to vector<8x256xf32>
    %190 = vector.extract_strided_slice %185 {offsets = [0, 512], sizes = [8, 256], strides = [1, 1]} : vector<8x768xf32> to vector<8x256xf32>
    %191 = arith.mulf %189, %141 : vector<8x256xf32>
    %192 = arith.mulf %188, %187 : vector<8x256xf32>
    %193 = arith.addf %191, %192 : vector<8x256xf32>
    %194 = math.tanh %193 : vector<8x256xf32>
    %195 = arith.mulf %190, %194 : vector<8x256xf32>
    %196 = arith.truncf %195 : vector<8x256xf32> to vector<8x256xbf16>
    %c0_74 = arith.constant 0 : index
    %c0_75 = arith.constant 0 : index
    %197 = vector.load %arg5[%c0_74, %c0_75] : memref<256x2048xbf16, #tpu.memory_space<vmem>>, vector<256x2048xbf16>
    %cst_76 = arith.constant dense<0.000000e+00> : vector<8x2048xf32>
    %198 = tpu.matmul %196, %197, %cst_76 {dimension_numbers = #tpu.dot_dimension_numbers<[1], [0], [0], [1], [0, 0, 1, 1], [], []>} : vector<8x256xbf16>, vector<256x2048xbf16>, vector<8x2048xf32> -> vector<8x2048xf32>
    %199 = vector.extract_strided_slice %198 {offsets = [0, 0], sizes = [8, 1024], strides = [1, 1]} : vector<8x2048xf32> to vector<8x1024xf32>
    %200 = vector.extract_strided_slice %198 {offsets = [0, 1024], sizes = [8, 1024], strides = [1, 1]} : vector<8x2048xf32> to vector<8x1024xf32>
    %201 = arith.addf %200, %173 : vector<8x1024xf32>
    %202 = vector.extract_strided_slice %201 {offsets = [0, 0], sizes = [8, 768], strides = [1, 1]} : vector<8x1024xf32> to vector<8x768xf32>
    %cst_77 = arith.constant 5.000000e-01 : f32
    %203 = vector.broadcast %cst_77 : f32 to vector<8x768xf32>
    %204 = arith.mulf %203, %202 : vector<8x768xf32>
    %205 = math.tanh %204 : vector<8x768xf32>
    %cst_78 = arith.constant 1.000000e+00 : f32
    %206 = vector.broadcast %cst_78 : f32 to vector<8x768xf32>
    %207 = arith.addf %205, %206 : vector<8x768xf32>
    %cst_79 = arith.constant 5.000000e-01 : f32
    %208 = vector.broadcast %cst_79 : f32 to vector<8x768xf32>
    %209 = arith.mulf %208, %207 : vector<8x768xf32>
    %210 = vector.extract_strided_slice %201 {offsets = [0, 768], sizes = [8, 256], strides = [1, 1]} : vector<8x1024xf32> to vector<8x256xf32>
    %211 = math.tanh %210 : vector<8x256xf32>
    %212 = vector.extract_strided_slice %209 {offsets = [0, 0], sizes = [8, 256], strides = [1, 1]} : vector<8x768xf32> to vector<8x256xf32>
    %213 = vector.extract_strided_slice %209 {offsets = [0, 256], sizes = [8, 256], strides = [1, 1]} : vector<8x768xf32> to vector<8x256xf32>
    %214 = vector.extract_strided_slice %209 {offsets = [0, 512], sizes = [8, 256], strides = [1, 1]} : vector<8x768xf32> to vector<8x256xf32>
    %215 = arith.mulf %213, %165 : vector<8x256xf32>
    %216 = arith.mulf %212, %211 : vector<8x256xf32>
    %217 = arith.addf %215, %216 : vector<8x256xf32>
    %218 = math.tanh %217 : vector<8x256xf32>
    %219 = arith.mulf %214, %218 : vector<8x256xf32>
    %220 = arith.truncf %219 : vector<8x256xf32> to vector<8x256xbf16>
    %c0_80 = arith.constant 0 : index
    %c0_81 = arith.constant 0 : index
    %221 = vector.load %arg6[%c0_80, %c0_81] : memref<256x1024xbf16, #tpu.memory_space<vmem>>, vector<256x1024xbf16>
    %cst_82 = arith.constant dense<0.000000e+00> : vector<8x1024xf32>
    %222 = tpu.matmul %220, %221, %cst_82 {dimension_numbers = #tpu.dot_dimension_numbers<[1], [0], [0], [1], [0, 0, 1, 1], [], []>} : vector<8x256xbf16>, vector<256x1024xbf16>, vector<8x1024xf32> -> vector<8x1024xf32>
    %c0_83 = arith.constant 0 : index
    %c0_84 = arith.constant 0 : index
    %223 = vector.load %arg7[%c0_83, %c0_84] : memref<1x1024xf32, #tpu.memory_space<vmem>>, vector<1x1024xf32>
    %224 = vector.broadcast %223 : vector<1x1024xf32> to vector<8x1024xf32>
    %225 = arith.addf %222, %224 : vector<8x1024xf32>
    %c4_i32 = arith.constant 4 : i32
    %c0_85 = arith.constant 0 : index
    %c0_86 = arith.constant 0 : index
    %226 = vector.load %arg12[%c0_85, %c0_86] : memref<8x1024xf32, #tpu.memory_space<vmem>>, vector<8x1024xf32>
    tpu.vector_store %arg12[%c0_85, %c0_86], %199 {strides = array<i32>} : memref<8x1024xf32, #tpu.memory_space<vmem>>, vector<8x1024xf32>,
    %c0_87 = arith.constant 0 : index
    %c0_88 = arith.constant 0 : index
    %227 = vector.load %arg13[%c0_87, %c0_88] : memref<8x1024xf32, #tpu.memory_space<vmem>>, vector<8x1024xf32>
    tpu.vector_store %arg13[%c0_87, %c0_88], %225 {strides = array<i32>} : memref<8x1024xf32, #tpu.memory_space<vmem>>, vector<8x1024xf32>,
    %c0_89 = arith.constant 0 : index
    %c0_90 = arith.constant 0 : index
    %228 = vector.load %arg14[%c0_89, %c0_90] : memref<8x256xf32, #tpu.memory_space<vmem>>, vector<8x256xf32>
    tpu.vector_store %arg14[%c0_89, %c0_90], %193 {strides = array<i32>} : memref<8x256xf32, #tpu.memory_space<vmem>>, vector<8x256xf32>,
    %c0_91 = arith.constant 0 : index
    %c0_92 = arith.constant 0 : index
    %229 = vector.load %arg15[%c0_91, %c0_92] : memref<8x256xf32, #tpu.memory_space<vmem>>, vector<8x256xf32>
    tpu.vector_store %arg15[%c0_91, %c0_92], %219 {strides = array<i32>} : memref<8x256xf32, #tpu.memory_space<vmem>>, vector<8x256xf32>,
    %c0_93 = arith.constant 0 : index
    %c0_94 = arith.constant 0 : index
    %230 = vector.load %arg16[%c0_93, %c0_94] : memref<8x256xf32, #tpu.memory_space<vmem>>, vector<8x256xf32>
    tpu.vector_store %arg16[%c0_93, %c0_94], %217 {strides = array<i32>} : memref<8x256xf32, #tpu.memory_space<vmem>>, vector<8x256xf32>,
    %c1_i32_95 = arith.constant 1 : i32
    %231 = arith.cmpi eq, %arg1, %c1_i32_95 : i32
    %232 = arith.extui %231 : i1 to i32
    %c0_i32_96 = arith.constant 0 : i32
    %233 = arith.cmpi ne, %232, %c0_i32_96 : i32
    scf.if %233 {
      %234 = arith.truncf %219 : vector<8x256xf32> to vector<8x256xbf16>
      %c0_97 = arith.constant 0 : index
      %c0_98 = arith.constant 0 : index
      %235 = vector.load %arg8[%c0_97, %c0_98] : memref<256x128xbf16, #tpu.memory_space<vmem>>, vector<256x128xbf16>
      %cst_99 = arith.constant dense<0.000000e+00> : vector<8x128xf32>
      %236 = tpu.matmul %234, %235, %cst_99 {dimension_numbers = #tpu.dot_dimension_numbers<[1], [0], [0], [1], [0, 0, 1, 1], [], []>} : vector<8x256xbf16>, vector<256x128xbf16>, vector<8x128xf32> -> vector<8x128xf32>
      %c0_100 = arith.constant 0 : index
      %c0_101 = arith.constant 0 : index
      %237 = vector.load %arg9[%c0_100, %c0_101] : memref<1x128xf32, #tpu.memory_space<vmem>>, vector<1x128xf32>
      %238 = vector.broadcast %237 : vector<1x128xf32> to vector<8x128xf32>
      %239 = arith.addf %236, %238 : vector<8x128xf32>
      %c0_102 = arith.constant 0 : index
      %c0_103 = arith.constant 0 : index
      %240 = vector.load %arg10[%c0_102, %c0_103] : memref<8x128xf32, #tpu.memory_space<vmem>>, vector<8x128xf32>
      tpu.vector_store %arg10[%c0_102, %c0_103], %239 {strides = array<i32>} : memref<8x128xf32, #tpu.memory_space<vmem>>, vector<8x128xf32>,
    } else {
    }
    return
  }
  func.func @transform_0(%arg0: i32, %arg1: i32) -> (i32, i32, i32) {
    %c0_i32 = arith.constant 0 : i32
    %c0_i32_0 = arith.constant 0 : i32
    return %arg1, %arg0, %c0_i32 : i32, i32, i32
  }
  func.func @transform_1(%arg0: i32, %arg1: i32) -> (i32, i32) {
    %c0_i32 = arith.constant 0 : i32
    %c0_i32_0 = arith.constant 0 : i32
    %c0_i32_1 = arith.constant 0 : i32
    return %c0_i32, %c0_i32_0 : i32, i32
  }
  func.func @transform_2(%arg0: i32, %arg1: i32) -> (i32, i32) {
    %c0_i32 = arith.constant 0 : i32
    %c0_i32_0 = arith.constant 0 : i32
    %c0_i32_1 = arith.constant 0 : i32
    return %c0_i32, %c0_i32_0 : i32, i32
  }
  func.func @transform_3(%arg0: i32, %arg1: i32) -> (i32, i32) {
    %c0_i32 = arith.constant 0 : i32
    %c0_i32_0 = arith.constant 0 : i32
    %c0_i32_1 = arith.constant 0 : i32
    return %c0_i32, %c0_i32_0 : i32, i32
  }
  func.func @transform_4(%arg0: i32, %arg1: i32) -> (i32, i32) {
    %c0_i32 = arith.constant 0 : i32
    %c0_i32_0 = arith.constant 0 : i32
    %c0_i32_1 = arith.constant 0 : i32
    return %c0_i32, %c0_i32_0 : i32, i32
  }
  func.func @transform_5(%arg0: i32, %arg1: i32) -> (i32, i32) {
    %c0_i32 = arith.constant 0 : i32
    %c0_i32_0 = arith.constant 0 : i32
    %c0_i32_1 = arith.constant 0 : i32
    return %c0_i32, %c0_i32_0 : i32, i32
  }
  func.func @transform_6(%arg0: i32, %arg1: i32) -> (i32, i32) {
    %c0_i32 = arith.constant 0 : i32
    %c0_i32_0 = arith.constant 0 : i32
    %c0_i32_1 = arith.constant 0 : i32
    return %c0_i32, %c0_i32_0 : i32, i32
  }
  func.func @transform_7(%arg0: i32, %arg1: i32) -> (i32, i32) {
    %c0_i32 = arith.constant 0 : i32
    %c0_i32_0 = arith.constant 0 : i32
    %c0_i32_1 = arith.constant 0 : i32
    return %c0_i32, %c0_i32_0 : i32, i32
  }
  func.func @transform_8(%arg0: i32, %arg1: i32) -> (i32, i32) {
    %c0_i32 = arith.constant 0 : i32
    %c0_i32_0 = arith.constant 0 : i32
    return %arg0, %c0_i32 : i32, i32
  }
}

</mosaic_0001>

<bundles_post_ra>
// kernel: tpu_custom_call.1
= control target key start
LH: loop header
LB: loop body
LE: loop exit
PB: predicated region body
PF: predicated region fallthrough
CT: control target
= control target key end

     0   :  { %s12767_s0 = inlined_call_operand.hbm [shape: f32[8,8,128], index: 0, kind: input, shape index: {}]   ;;  %s12768_s1 = inlined_call_operand.hbm [shape: bf16[128,1024], index: 1, kind: input, shape index: {}]   ;;  %s12769_s2 = inlined_call_operand.hbm [shape: f32[1,1024], index: 2, kind: input, shape index: {}]   ;;  %s12770_s3 = inlined_call_operand.hbm [shape: bf16[256,2048], index: 3, kind: input, shape index: {}]   ;;  %s12771_s4 = inlined_call_operand.hbm [shape: bf16[256,1024], index: 4, kind: input, shape index: {}]   ;;  %s12772_s5 = inlined_call_operand.hbm [shape: f32[1,1024], index: 5, kind: input, shape index: {}]   ;;  %s12773_s6 = inlined_call_operand.hbm [shape: bf16[256,128], index: 6, kind: input, shape index: {}]   ;;  %s12774_s7 = inlined_call_operand.vmem [shape: f32[1,128], index: 7, kind: input, shape index: {}]   ;;  %s12775_s8 = inlined_call_operand.hbm [shape: f32[8,128], index: 8, kind: output, shape index: {}]  }
   0x1   :  { %13579 = sst [smem:[#allocation444_spill]] %s12768_s1 }
   0x2   :  { %13580 = sst [smem:[#allocation445_spill]] %s12770_s3 }
   0x3   :  { %13581 = sst [smem:[#allocation446_spill]] %s12775_s8 }
   0x4   :  { %13 = vsyncpa [#allocation9], 0 }
   0x5   :  { %15 = vsyncpa [#allocation9 + $0x1], 0 }
   0x6   :  { %16 = vsyncpa [#allocation12], 0 }
   0x7   :  { %17 = vsyncpa [#allocation15], 0 }
   0x8   :  { %18 = vsyncpa [#allocation18], 0 }
   0x9   :  { %19 = vsyncpa [#allocation10], 0  ;;  %s9628_s27 = smov 0   ;;  %s9630_s28 = smov 0  }
   0xa   :  { %s9632_s29 = smov 0   ;;  %s9634_s30 = smov 0  }
   0xb   :  { %s9636_s9 = smov 0   ;;  %s9638_s10 = smov 0  }
   0xc LB: > { %s12776_s11 = sadd.s32 4294967295, %s9566_s10   ;;  %p6624_p0 = scmp.ge.s32.totalorder %s9566_s10, 1  ;;  %s9566_s10 = sphi %s9638_s10, %s25_s10   ;;  %s9562_s9 = sphi %s9636_s9, %s15098_s9   ;;  %s9558_s30 = sphi %s9634_s30, %s15097_s30   ;;  %s9554_s29 = sphi %s9632_s29, %s15096_s29   ;;  %s9550_s28 = sphi %s9630_s28, %s15095_s28   ;;  %s9546_s27 = sphi %s9628_s27, %s15094_s27  }
   0xd   : > { %p9662_p1 = scmp.eq.s32.totalorder %s12776_s11, 0  ;;  %p243_p2 = scmp.lt.s32.totalorder %s9566_s10, 3 }
   0xe   : > { %s13583_s1 = sld [smem:[#allocation444_spill]]  ;;  %s9568_s17 = smov [#allocation11]  }
   0xf   : > { %p9670_p3 = pnand %p6624_p0, %p243_p2  ;;  %s256_s18 = sshll.u32 %s9568_s17, 4  ;;  %s257_s18 = int_to_ptr.vmem [resolvable:$true] %s256_s18 }
  0x10   : > { %s13586_s3 = sld [smem:[#allocation445_spill]]  ;;  %s9569_s23 = smov 512  }
  0x11   : > { %p9000_p4 = pneg %p9670_p3  ;;  %s9570_s24 = smov 32  }
  0x12   : > { %s9571_s25 = smov [#allocation14]   ;;  %s9572_s13 = smov 1024  }
  0x13   : > { %p9678_p5 = pnand %p9000_p4, %p9662_p1  ;;  %s282_s26 = sshll.u32 %s9571_s25, 4  ;;  %s283_s26 = int_to_ptr.vmem [resolvable:$true] %s282_s26 }
  0x14   : > { %s254_s15 = sshll.u32 %s13583_s1, 4  ;;  %s9573_s14 = smov 64   ;;  %s255_s15 = int_to_ptr.hbm [resolvable:$true] %s254_s15 }
  0x15   : > { %9003 = dma.hbm_to_vmem [thread:$0]  (!%p9678_p5), %s255_s15, 8192, %s257_s18, [#allocation12], %s9569_s23, %s9569_s23, %s9570_s24  }
  0x16   : > { %s280_s22 = sshll.u32 %s13586_s3, 4  ;;  %s309_s21 = sshll.u32 %s12772_s5, 4  ;;  %s281_s22 = int_to_ptr.hbm [resolvable:$true] %s280_s22  ;;  %s310_s21 = int_to_ptr.hbm [resolvable:$true] %s309_s21 }
  0x17   : > { %9009 = dma.hbm_to_vmem [thread:$0]  (!%p9678_p5), %s281_s22, 32768, %s283_s26, [#allocation15], %s9572_s13, %s9572_s13, %s9573_s14  }
  0x18   : > { %s9574_s11 = smov [#allocation17]   ;;  %s269_s15 = sshll.u32 %s12769_s2, 4  ;;  %s270_s15 = int_to_ptr.hbm [resolvable:$true] %s269_s15 }
  0x19   : > { %s311_s1 = sshll.u32 %s9574_s11, 4  ;;  %s9575_s18 = smov [#allocation13]   ;;  %s312_s1 = int_to_ptr.vmem [resolvable:$true] %s311_s1 }
  0x1a   : > { %9015 = dma.hbm_to_vmem [thread:$0]  (!%p9678_p5), %s310_s21, 128, %s312_s1, [#allocation18]  }
  0x1b   : > { %s271_s25 = sshll.u32 %s9575_s18, 4  ;;  %s294_s13 = sshll.u32 %s12771_s4, 4  ;;  %s272_s25 = int_to_ptr.vmem [resolvable:$true] %s271_s25  ;;  %s295_s13 = int_to_ptr.hbm [resolvable:$true] %s294_s13 }
  0x1c   : > { %9006 = dma.hbm_to_vmem [thread:$0]  (!%p9678_p5), %s270_s15, 128, %s272_s25, [#allocation12]  }
  0x1d   : > { %s320_s1 = sshll.u32 %s12773_s6, 4  ;;  %s9576_s11 = smov [#allocation16]   ;;  %s321_s1 = int_to_ptr.hbm [resolvable:$true] %s320_s1 }
  0x1e   : > { %s296_s17 = sshll.u32 %s9576_s11, 4  ;;  %s9577_s20 = smov [#allocation19]   ;;  %s297_s17 = int_to_ptr.vmem [resolvable:$true] %s296_s17 }
  0x1f   : > { %9012 = dma.hbm_to_vmem [thread:$0]  (!%p9678_p5), %s295_s13, 16384, %s297_s17, [#allocation15], %s9569_s23, %s9569_s23, %s9570_s24  }
  0x20   : > { %s322_s21 = sshll.u32 %s9577_s20, 4  ;;  %s9578_s15 = smov 4   ;;  %s323_s21 = int_to_ptr.vmem [resolvable:$true] %s322_s21 }
  0x21   : > { %9018 = dma.hbm_to_vmem [thread:$0]  (!%p9678_p5), %s321_s1, 2048, %s323_s21, [#allocation18], %s9573_s14, %s9573_s14, %s9578_s15  }
  0x22   : > { %s34_s18 = sadd.s32 1, %s9562_s9  ;;  %s46_s25 = sadd.s32 1, %s9554_s29 }
  0x23   : > { %p35_p6 = scmp.ge.s32.totalorder %s34_s18, 2  ;;  %p53_p7 = scmp.ne.s32.totalorder %s9554_s29, %s9550_s28 }
  0x24   : > { %p54_p8 = scmp.eq.s32.totalorder %s9566_s10, 0  ;;  %p59_p10 = scmp.ne.s32.totalorder %s9550_s28, %s9546_s27 }
  0x25   : > { %s15100_s18 = smov (%p35_p6, %s34_s18), 0  ;;  %p9029_p11 = scmp.lt.s32.totalorder %s9566_s10, 2 }
  0x26   : > { %p9722_p9 = por %p54_p8, %p53_p7  ;;  %s41_s24 = ssub.s32 %s9562_s9, %s15100_s18 }
  0x27   : > { %p44_p12 = scmp.eq.s32.totalorder %s41_s24, 0  ;;  %p9733_p13 = por %p9662_p1, %p59_p10 }
  0x28   : > { %s339_s14 = sand.u32 1, %s9554_s29   ;;  %s8505_s22 = sshll.u32 %s9562_s9, 5 }
  0x29   : > { %s9740_s26 = scalar_select %p44_p12, %s9554_s29, %s46_s25  }
  0x2a   : > { %s6632_s13 = sshll.u32 %s339_s14, 5  ;;  %s349_s1 = scalar_lea.hbm %s12767_s0, %s8505_s22 }
  0x2b   : > { %s350_s11 = sshll.u32 %s349_s1, 4  ;;  %s343_s17 = scalar_lea.vmem [#allocation8], %s6632_s13  ;;  %s351_s11 = int_to_ptr.hbm [resolvable:$true] %s350_s11 }
  0x2c   : > { %s352_s27 = sshll.u32 %s343_s17, 4  ;;  %p9020_p0 = pnand %p9029_p11, %p9722_p9  ;;  %s353_s27 = int_to_ptr.vmem [resolvable:$true] %s352_s27 }
  0x2d   : > { %s340_s20 = scalar_lea.sflag [#allocation9], %s339_s14  ;;  %s9579_s21 = smov 128  }
  0x2e   : > { %s9580_s15 = smov 8   ;;  %364 = sbr.rel (%p9670_p3) target bundleno = 2484 (0x9b4), region = 52 }
  0x2f   : > { %9022 = dma.hbm_to_vmem [thread:$0]  (!%p9020_p0), %s351_s11, 512, %s353_s27, %s340_s20, %s9579_s21, %s9579_s21, %s9580_s15  }
  0x33   : > { %s366_s25 = sand.u32 1, %s9550_s28  }
  0x34   : > { %s6636_s24 = sshll.u32 %s366_s25, 5  ;;  %s367_s22 = scalar_lea.sflag [#allocation9], %s366_s25 }
  0x35   : > { %s9752_s3 = scalar_lea.vmem [#allocation8], %s6636_s24 }
  0x36   : > { %9525 = dma.done.wait (%p9733_p13), %s367_s22, 512  }
  0x37   : > { %9527 = vsyncadd (%p9733_p13), %s367_s22, 4294966784 }
  0x38   : > { %9529 = dma.done.wait (%p9662_p1), [#allocation12], 8320  }
  0x39   : > { %9531 = vsyncadd (%p9662_p1), [#allocation12], 4294958976 }
  0x3a   : > { %9533 = dma.done.wait (%p9662_p1), [#allocation15], 49152  }
  0x3b   : > { %9535 = vsyncadd (%p9662_p1), [#allocation15], 4294918144 }
  0x3c   : > { %9537 = dma.done.wait (%p9662_p1), [#allocation18], 2176  }
  0x3d   : > { %9539 = vsyncadd (%p9662_p1), [#allocation18], 4294965120  ;;  %p6643_p2 = scmp.ne.s32.totalorder %s9558_s30, 0 }
  0x3f   : > { %433 = sbr.rel (%p6643_p2) target bundleno = 89 (0x59), region = 84 }
  0x44   : > { %v9581_v0 = vmov 0.0   ;;  %v442_v1 = vld [vmem:[#allocation17] sm:$0xff] }
  0x45   : > { %434 = vst [vmem:[#allocation3 + $0x30] sm:$0xff] %v9581_v0  ;;  %v444_v2 = vperm.slane %v442_v1, 0  ;;  %v445_v3 = vperm.slane %v442_v1, 1  ;;  %v446_v4 = vperm.slane %v442_v1, 2  ;;  %v447_v5 = vperm.slane %v442_v1, 3 }
  0x46   : > { %435 = vst [vmem:[#allocation3] sm:$0xff] %v9581_v0  ;;  %v448_v6 = vperm.slane %v442_v1, 4  ;;  %v449_v7 = vperm.slane %v442_v1, 5  ;;  %v450_v8 = vperm.slane %v442_v1, 6  ;;  %v451_v9 = vperm.slane %v442_v1, 7 }
  0x47   : > { %436 = vst [vmem:[#allocation3 + $0x18] sm:$0xff] %v9581_v0 }
  0x48   : > { %437 = vst [vmem:[#allocation3 + $0x10] sm:$0xff] %v9581_v0 }
  0x49   : > { %438 = vst [vmem:[#allocation3 + $0x8] sm:$0xff] %v9581_v0 }
  0x4a   : > { %439 = vst [vmem:[#allocation3 + $0x20] sm:$0xff] %v9581_v0 }
  0x4b   : > { %440 = vst [vmem:[#allocation3 + $0x28] sm:$0xff] %v9581_v0 }
  0x4c   : > { %441 = vst [vmem:[#allocation3 + $0x38] sm:$0xff] %v9581_v0 }
  0x4d   : > { %468 = vst [vmem:[#allocation5 + $0x8] sm:$0xff] %v9581_v0 }
  0x4e   : > { %469 = vst [vmem:[#allocation5] sm:$0xff] %v9581_v0 }
  0x4f   : > { %472 = vst [vmem:[#allocation7 + $0x8] sm:$0xff] %v9581_v0 }
  0x50   : > { %473 = vst [vmem:[#allocation7] sm:$0xff] %v9581_v0 }
  0x51   : > { %460 = vst [vmem:[#allocation4] sm:$0xff] %v444_v2 }
  0x52   : > { %461 = vst [vmem:[#allocation4 + $0x18] sm:$0xff] %v445_v3 }
  0x53   : > { %462 = vst [vmem:[#allocation4 + $0x10] sm:$0xff] %v446_v4 }
  0x54   : > { %463 = vst [vmem:[#allocation4 + $0x20] sm:$0xff] %v447_v5 }
  0x55   : > { %464 = vst [vmem:[#allocation4 + $0x28] sm:$0xff] %v448_v6 }
  0x56   : > { %465 = vst [vmem:[#allocation4 + $0x8] sm:$0xff] %v449_v7 }
  0x57   : > { %466 = vst [vmem:[#allocation4 + $0x30] sm:$0xff] %v450_v8 }
  0x58   : > { %467 = vst [vmem:[#allocation4 + $0x38] sm:$0xff] %v451_v9 }
  0x59 PF: > { %v6878_v10 = vld [vmem:[#allocation11 + $0x1c8] sm:$0xf]  ;;  %v8563_v12 = vld [vmem:[#allocation11 + $0x1cc] sm:$0xf]  ;;  %v6870_v15 = vld [vmem:[#allocation11 + $0x1c0] sm:$0xf] }
  0x5a   : > { %v8567_v11 = vld [vmem:[#allocation11 + $0x1e4] sm:$0xf0]  ;;  %v6880_v14 = vld [vmem:[#allocation11 + $0x1e8] sm:$0xf0]  ;;  %v8566_v16 = vld [vmem:[#allocation11 + $0x1dc] sm:$0xf0] }
  0x5b   : > { %v6879_v13 = vor.u32 %v8567_v11, %v6878_v10  ;;  %v6883_v17 = vor.u32 %v8563_v12, %v6880_v14  ;;  %v6871_v18 = vor.u32 %v8566_v16, %v6870_v15  ;;  %v8562_v19 = vld [vmem:[#allocation11 + $0x1c4] sm:$0xf]  ;;  %v6846_v21 = vld [vmem:[#allocation11 + $0x188] sm:$0xf]  ;;  %v8555_v24 = vld [vmem:[#allocation11 + $0x18c] sm:$0xf] }
  0x5c   : > { %v6872_v20 = vld [vmem:[#allocation11 + $0x1e0] sm:$0xf0]  ;;  %v8559_v23 = vld [vmem:[#allocation11 + $0x1a4] sm:$0xf0]  ;;  %v6848_v25 = vld [vmem:[#allocation11 + $0x1a8] sm:$0xf0] }
  0x5d   : > { %920 = vmatpush.bf16.msra.mxu2 %v6879_v13  ;;  %v6875_v22 = vor.u32 %v8562_v19, %v6872_v20  ;;  %939 = vmatpush.bf16.msra.mxu3 %v6883_v17  ;;  %v6847_v26 = vor.u32 %v8559_v23, %v6846_v21  ;;  %v6851_v27 = vor.u32 %v8555_v24, %v6848_v25  ;;  %v6838_v28 = vld [vmem:[#allocation11 + $0x180] sm:$0xf]  ;;  %v8554_v30 = vld [vmem:[#allocation11 + $0x184] sm:$0xf]  ;;  %v6814_v33 = vld [vmem:[#allocation11 + $0x148] sm:$0xf] }
  0x5e   : > { %882 = vmatpush.bf16.msra.mxu0 %v6871_v18  ;;  %v8558_v29 = vld [vmem:[#allocation11 + $0x19c] sm:$0xf0]  ;;  %v6840_v32 = vld [vmem:[#allocation11 + $0x1a0] sm:$0xf0]  ;;  %v8551_v34 = vld [vmem:[#allocation11 + $0x164] sm:$0xf0] }
  0x5f   : > { %901 = vmatpush.bf16.msra.mxu1 %v6875_v22  ;;  %v6839_v31 = vor.u32 %v8558_v29, %v6838_v28  ;;  %v6843_v35 = vor.u32 %v8554_v30, %v6840_v32  ;;  %v8547_v36 = vld [vmem:[#allocation11 + $0x14c] sm:$0xf]  ;;  %v6806_v38 = vld [vmem:[#allocation11 + $0x140] sm:$0xf]  ;;  %v6815_v39 = vor.u32 %v8551_v34, %v6814_v33  ;;  %v8546_v41 = vld [vmem:[#allocation11 + $0x144] sm:$0xf] }
  0x60   : > { %v6816_v37 = vld [vmem:[#allocation11 + $0x168] sm:$0xf0]  ;;  %v8550_v40 = vld [vmem:[#allocation11 + $0x15c] sm:$0xf0]  ;;  %v6808_v42 = vld [vmem:[#allocation11 + $0x160] sm:$0xf0] }
  0x61   : > { %921 = vmatpush.bf16.msra.mxu2 %v6847_v26  ;;  %940 = vmatpush.bf16.msra.mxu3 %v6851_v27  ;;  %v6819_v43 = vor.u32 %v8547_v36, %v6816_v37  ;;  %v6807_v44 = vor.u32 %v8550_v40, %v6806_v38  ;;  %v6782_v45 = vld [vmem:[#allocation11 + $0x108] sm:$0xf]  ;;  %v8539_v47 = vld [vmem:[#allocation11 + $0x10c] sm:$0xf]  ;;  %v6811_v48 = vor.u32 %v8546_v41, %v6808_v42  ;;  %v6774_v50 = vld [vmem:[#allocation11 + $0x100] sm:$0xf] }
  0x62   : > { %883 = vmatpush.bf16.msra.mxu0 %v6839_v31  ;;  %v8543_v46 = vld [vmem:[#allocation11 + $0x124] sm:$0xf0]  ;;  %v6784_v49 = vld [vmem:[#allocation11 + $0x128] sm:$0xf0]  ;;  %v8542_v51 = vld [vmem:[#allocation11 + $0x11c] sm:$0xf0] }
  0x63   : > { %902 = vmatpush.bf16.msra.mxu1 %v6843_v35  ;;  %v8538_v52 = vld [vmem:[#allocation11 + $0x104] sm:$0xf]  ;;  %v6783_v54 = vor.u32 %v8543_v46, %v6782_v45  ;;  %v6787_v55 = vor.u32 %v8539_v47, %v6784_v49  ;;  %v6775_v56 = vor.u32 %v8542_v51, %v6774_v50  ;;  %v6750_v57 = vld [vmem:[#allocation11 + $0xc8] sm:$0xf]  ;;  %v8531_v59 = vld [vmem:[#allocation11 + $0xcc] sm:$0xf] }
  0x64   : > { %v6776_v53 = vld [vmem:[#allocation11 + $0x120] sm:$0xf0]  ;;  %v8535_v58 = vld [vmem:[#allocation11 + $0xe4] sm:$0xf0]  ;;  %v6752_v61 = vld [vmem:[#allocation11 + $0xe8] sm:$0xf0] }
  0x65   : > { %922 = vmatpush.bf16.msra.mxu2 %v6815_v39  ;;  %941 = vmatpush.bf16.msra.mxu3 %v6819_v43  ;;  %v6779_v60 = vor.u32 %v8538_v52, %v6776_v53  ;;  %v6742_v62 = vld [vmem:[#allocation11 + $0xc0] sm:$0xf]  ;;  %v8530_v0 = vld [vmem:[#allocation11 + $0xc4] sm:$0xf]  ;;  %v6751_v2 = vor.u32 %v8535_v58, %v6750_v57  ;;  %v6755_v3 = vor.u32 %v8531_v59, %v6752_v61  ;;  %v6718_v5 = vld [vmem:[#allocation11 + $0x88] sm:$0xf] }
  0x66   : > { %884 = vmatpush.bf16.msra.mxu0 %v6807_v44  ;;  %v8534_v63 = vld [vmem:[#allocation11 + $0xdc] sm:$0xf0]  ;;  %v6744_v1 = vld [vmem:[#allocation11 + $0xe0] sm:$0xf0]  ;;  %v8527_v6 = vld [vmem:[#allocation11 + $0xa4] sm:$0xf0] }
  0x67   : > { %903 = vmatpush.bf16.msra.mxu1 %v6811_v48  ;;  %v6743_v4 = vor.u32 %v8534_v63, %v6742_v62  ;;  %v8523_v7 = vld [vmem:[#allocation11 + $0x8c] sm:$0xf]  ;;  %v6747_v8 = vor.u32 %v8530_v0, %v6744_v1  ;;  %v6710_v10 = vld [vmem:[#allocation11 + $0x80] sm:$0xf]  ;;  %v8522_v12 = vld [vmem:[#allocation11 + $0x84] sm:$0xf]  ;;  %v6719_v14 = vor.u32 %v8527_v6, %v6718_v5 }
  0x68   : > { %v6720_v9 = vld [vmem:[#allocation11 + $0xa8] sm:$0xf0]  ;;  %v8526_v11 = vld [vmem:[#allocation11 + $0x9c] sm:$0xf0]  ;;  %v6712_v13 = vld [vmem:[#allocation11 + $0xa0] sm:$0xf0] }
  0x69   : > { %923 = vmatpush.bf16.msra.mxu2 %v6783_v54  ;;  %942 = vmatpush.bf16.msra.mxu3 %v6787_v55  ;;  %v6723_v15 = vor.u32 %v8523_v7, %v6720_v9  ;;  %v6711_v16 = vor.u32 %v8526_v11, %v6710_v10  ;;  %v6686_v17 = vld [vmem:[#allocation11 + $0x48] sm:$0xf]  ;;  %v8515_v19 = vld [vmem:[#allocation11 + $0x4c] sm:$0xf]  ;;  %v6715_v20 = vor.u32 %v8522_v12, %v6712_v13  ;;  %v6678_v22 = vld [vmem:[#allocation11 + $0x40] sm:$0xf] }
  0x6a   : > { %885 = vmatpush.bf16.msra.mxu0 %v6775_v56  ;;  %v8519_v18 = vld [vmem:[#allocation11 + $0x64] sm:$0xf0]  ;;  %v6688_v21 = vld [vmem:[#allocation11 + $0x68] sm:$0xf0]  ;;  %v8518_v23 = vld [vmem:[#allocation11 + $0x5c] sm:$0xf0] }
  0x6b   : > { %904 = vmatpush.bf16.msra.mxu1 %v6779_v60  ;;  %v8514_v24 = vld [vmem:[#allocation11 + $0x44] sm:$0xf]  ;;  %v6687_v26 = vor.u32 %v8519_v18, %v6686_v17  ;;  %v6654_v27 = vld [vmem:[#allocation11 + $0x8] sm:$0xf]  ;;  %v6691_v29 = vor.u32 %v8515_v19, %v6688_v21  ;;  %v6679_v30 = vor.u32 %v8518_v23, %v6678_v22  ;;  %v8507_v31 = vld [vmem:[#allocation11 + $0xc] sm:$0xf] }
  0x6c   : > { %v6680_v25 = vld [vmem:[#allocation11 + $0x60] sm:$0xf0]  ;;  %v8511_v28 = vld [vmem:[#allocation11 + $0x24] sm:$0xf0]  ;;  %v6656_v32 = vld [vmem:[#allocation11 + $0x28] sm:$0xf0] }
  0x6d   : > { %924 = vmatpush.bf16.msra.mxu2 %v6751_v2  ;;  %943 = vmatpush.bf16.msra.mxu3 %v6755_v3  ;;  %v6646_v33 = vld [vmem:[#allocation11] sm:$0xf]  ;;  %v6683_v34 = vor.u32 %v8514_v24, %v6680_v25  ;;  %v8506_v36 = vld [vmem:[#allocation11 + $0x4] sm:$0xf]  ;;  %v6894_v39 = vld [vmem:[#allocation11 + $0x1d8] sm:$0xf]  ;;  %v6655_v41 = vor.u32 %v8511_v28, %v6654_v27  ;;  %v6659_v45 = vor.u32 %v8507_v31, %v6656_v32 }
  0x6e   : > { %886 = vmatpush.bf16.msra.mxu0 %v6743_v4  ;;  %v8510_v35 = vld [vmem:[#allocation11 + $0x1c] sm:$0xf0]  ;;  %v6648_v37 = vld [vmem:[#allocation11 + $0x20] sm:$0xf0]  ;;  %v8569_v40 = vld [vmem:[#allocation11 + $0x1f4] sm:$0xf0] }
  0x6f   : > { %905 = vmatpush.bf16.msra.mxu1 %v6747_v8  ;;  %v474_v38 = vld [vmem:[%s9752_s3] sm:$0xff]  ;;  %v475_v42 = vld [vmem:[%s9752_s3 + $0x8] sm:$0xff]  ;;  %v8565_v43 = vld [vmem:[#allocation11 + $0x1dc] sm:$0xf]  ;;  %v6647_v46 = vor.u32 %v8510_v35, %v6646_v33  ;;  %v6651_v47 = vor.u32 %v8506_v36, %v6648_v37  ;;  %v6895_v48 = vor.u32 %v8569_v40, %v6894_v39  ;;  %p8436_p1 = scmp.ne.s32.totalorder %s9558_s30, 1 }
  0x70   : > { %v6896_v44 = vld [vmem:[#allocation11 + $0x1f8] sm:$0xf0]  ;;  %v6886_v49 = vld [vmem:[#allocation11 + $0x1d0] sm:$0xf]  ;;  %v8564_v51 = vld [vmem:[#allocation11 + $0x1d4] sm:$0xf]  ;;  %v9773_v52 = vpack.c.bf16 %v475_v42, %v474_v38 }
  0x71   : > { %925 = vmatpush.bf16.msra.mxu2 %v6719_v14  ;;  %944 = vmatpush.bf16.msra.mxu3 %v6723_v15  ;;  %v8568_v50 = vld [vmem:[#allocation11 + $0x1ec] sm:$0xf0]  ;;  %v6899_v53 = vor.u32 %v8565_v43, %v6896_v44  ;;  %v6888_v54 = vld [vmem:[#allocation11 + $0x1f0] sm:$0xf0]  ;;  %v6862_v55 = vld [vmem:[#allocation11 + $0x198] sm:$0xf] }
  0x72   : > { %887 = vmatpush.bf16.msra.mxu0 %v6711_v16  ;;  %v8561_v56 = vld [vmem:[#allocation11 + $0x1b4] sm:$0xf0]  ;;  %v8557_v57 = vld [vmem:[#allocation11 + $0x19c] sm:$0xf]  ;;  %v6887_v59 = vor.u32 %v8568_v50, %v6886_v49  ;;  %v6891_v60 = vor.u32 %v8564_v51, %v6888_v54  ;;  %v6854_v62 = vld [vmem:[#allocation11 + $0x190] sm:$0xf] }
  0x73   : > { %906 = vmatpush.bf16.msra.mxu1 %v6715_v20  ;;  %v6864_v58 = vld [vmem:[#allocation11 + $0x1b8] sm:$0xf0]  ;;  %v6863_v61 = vor.u32 %v8561_v56, %v6862_v55  ;;  %v8560_v63 = vld [vmem:[#allocation11 + $0x1ac] sm:$0xf0]  ;;  %v8556_v0 = vld [vmem:[#allocation11 + $0x194] sm:$0xf] }
  0x74   : > { %v6867_v1 = vor.u32 %v8557_v57, %v6864_v58  ;;  %v6856_v2 = vld [vmem:[#allocation11 + $0x1b0] sm:$0xf0]  ;;  %v6830_v3 = vld [vmem:[#allocation11 + $0x158] sm:$0xf]  ;;  %v8549_v5 = vld [vmem:[#allocation11 + $0x15c] sm:$0xf]  ;;  %v6855_v7 = vor.u32 %v8560_v63, %v6854_v62 }
  0x75   : > { %926 = vmatpush.bf16.msra.mxu2 %v6687_v26  ;;  %945 = vmatpush.bf16.msra.mxu3 %v6691_v29  ;;  %v8553_v4 = vld [vmem:[#allocation11 + $0x174] sm:$0xf0]  ;;  %v6832_v6 = vld [vmem:[#allocation11 + $0x178] sm:$0xf0]  ;;  %v6859_v8 = vor.u32 %v8556_v0, %v6856_v2  ;;  %v6822_v10 = vld [vmem:[#allocation11 + $0x150] sm:$0xf] }
  0x76   : > { %888 = vmatpush.bf16.msra.mxu0 %v6679_v30  ;;  %v6831_v9 = vor.u32 %v8553_v4, %v6830_v3  ;;  %v8552_v11 = vld [vmem:[#allocation11 + $0x16c] sm:$0xf0]  ;;  %v8548_v12 = vld [vmem:[#allocation11 + $0x154] sm:$0xf]  ;;  %v6835_v13 = vor.u32 %v8549_v5, %v6832_v6  ;;  %v6798_v15 = vld [vmem:[#allocation11 + $0x118] sm:$0xf] }
  0x77   : > { %907 = vmatpush.bf16.msra.mxu1 %v6683_v34  ;;  %v6824_v14 = vld [vmem:[#allocation11 + $0x170] sm:$0xf0]  ;;  %v8545_v16 = vld [vmem:[#allocation11 + $0x134] sm:$0xf0]  ;;  %v8541_v17 = vld [vmem:[#allocation11 + $0x11c] sm:$0xf]  ;;  %v6823_v19 = vor.u32 %v8552_v11, %v6822_v10 }
  0x78   : > { %v6800_v18 = vld [vmem:[#allocation11 + $0x138] sm:$0xf0]  ;;  %v6827_v20 = vor.u32 %v8548_v12, %v6824_v14  ;;  %v6799_v21 = vor.u32 %v8545_v16, %v6798_v15  ;;  %v476_v22 = vld [vmem:[%s9752_s3 + $0x10] sm:$0xff]  ;;  %v6766_v28 = vld [vmem:[#allocation11 + $0xd8] sm:$0xf] }
  0x79   : > { %927 = vmatpush.bf16.msra.mxu2 %v6655_v41  ;;  %946 = vmatpush.bf16.msra.mxu3 %v6659_v45  ;;  %v6790_v23 = vld [vmem:[#allocation11 + $0x110] sm:$0xf]  ;;  %v8540_v25 = vld [vmem:[#allocation11 + $0x114] sm:$0xf]  ;;  %v6803_v26 = vor.u32 %v8541_v17, %v6800_v18  ;;  %v8537_v29 = vld [vmem:[#allocation11 + $0xf4] sm:$0xf0] }
  0x7a   : > { %889 = vmatpush.bf16.msra.mxu0 %v6647_v46  ;;  %v8544_v24 = vld [vmem:[#allocation11 + $0x12c] sm:$0xf0]  ;;  %v6792_v27 = vld [vmem:[#allocation11 + $0x130] sm:$0xf0]  ;;  %v477_v30 = vld [vmem:[%s9752_s3 + $0x18] sm:$0xff]  ;;  %v6767_v35 = vor.u32 %v8537_v29, %v6766_v28 }
  0x7b   : > { %908 = vmatpush.bf16.msra.mxu1 %v6651_v47  ;;  %v8533_v31 = vld [vmem:[#allocation11 + $0xdc] sm:$0xf]  ;;  %v6791_v33 = vor.u32 %v8544_v24, %v6790_v23  ;;  %v6795_v34 = vor.u32 %v8540_v25, %v6792_v27  ;;  %v6758_v36 = vld [vmem:[#allocation11 + $0xd0] sm:$0xf]  ;;  %v8532_v38 = vld [vmem:[#allocation11 + $0xd4] sm:$0xf]  ;;  %v9781_v39 = vpack.c.bf16 %v477_v30, %v476_v22 }
  0x7c   : > { %928 = vmatmul.bf16.vlgmr.msra.gmra.mxu2 %v9773_v52  ;;  %947 = vmatmul.bf16.vlgmr.msra.gmra.mxu3 %v9773_v52  ;;  %v6768_v32 = vld [vmem:[#allocation11 + $0xf8] sm:$0xf0]  ;;  %v8536_v37 = vld [vmem:[#allocation11 + $0xec] sm:$0xf0]  ;;  %v6760_v41 = vld [vmem:[#allocation11 + $0xf0] sm:$0xf0] }
  0x7d   : > { %996 = vmatpush.bf16.msrb.mxu2 %v6895_v48  ;;  %1015 = vmatpush.bf16.msrb.mxu3 %v6899_v53  ;;  %v6771_v40 = vor.u32 %v8533_v31, %v6768_v32  ;;  %v6734_v42 = vld [vmem:[#allocation11 + $0x98] sm:$0xf]  ;;  %v8525_v44 = vld [vmem:[#allocation11 + $0x9c] sm:$0xf]  ;;  %v6759_v46 = vor.u32 %v8536_v37, %v6758_v36  ;;  %v6763_v47 = vor.u32 %v8532_v38, %v6760_v41  ;;  %v6726_v49 = vld [vmem:[#allocation11 + $0x90] sm:$0xf] }
  0x7e   : > { %890 = vmatmul.bf16.vlgmr.msra.gmra.mxu0 %v9773_v52  ;;  %909 = vmatmul.bf16.vlgmr.msra.gmra.mxu1 %v9773_v52  ;;  %v8529_v43 = vld [vmem:[#allocation11 + $0xb4] sm:$0xf0]  ;;  %v6736_v45 = vld [vmem:[#allocation11 + $0xb8] sm:$0xf0]  ;;  %v8528_v50 = vld [vmem:[#allocation11 + $0xac] sm:$0xf0] }
  0x7f   : > { %958 = vmatpush.bf16.msrb.mxu0 %v6887_v59  ;;  %977 = vmatpush.bf16.msrb.mxu1 %v6891_v60  ;;  %v6735_v48 = vor.u32 %v8529_v43, %v6734_v42  ;;  %v8524_v51 = vld [vmem:[#allocation11 + $0x94] sm:$0xf]  ;;  %v6739_v53 = vor.u32 %v8525_v44, %v6736_v45  ;;  %v6702_v55 = vld [vmem:[#allocation11 + $0x58] sm:$0xf]  ;;  %v8517_v57 = vld [vmem:[#allocation11 + $0x5c] sm:$0xf]  ;;  %v6727_v59 = vor.u32 %v8528_v50, %v6726_v49 }
  0x80   : > { %v6728_v54 = vld [vmem:[#allocation11 + $0xb0] sm:$0xf0]  ;;  %v8521_v56 = vld [vmem:[#allocation11 + $0x74] sm:$0xf0]  ;;  %v6704_v58 = vld [vmem:[#allocation11 + $0x78] sm:$0xf0] }
  0x81   : > { %997 = vmatpush.bf16.msrb.mxu2 %v6863_v61  ;;  %1016 = vmatpush.bf16.msrb.mxu3 %v6867_v1  ;;  %v6731_v60 = vor.u32 %v8524_v51, %v6728_v54  ;;  %v6703_v61 = vor.u32 %v8521_v56, %v6702_v55  ;;  %v6694_v62 = vld [vmem:[#allocation11 + $0x50] sm:$0xf]  ;;  %v8516_v0 = vld [vmem:[#allocation11 + $0x54] sm:$0xf]  ;;  %v6707_v1 = vor.u32 %v8517_v57, %v6704_v58  ;;  %v6670_v3 = vld [vmem:[#allocation11 + $0x18] sm:$0xf] }
  0x82   : > { %v8520_v63 = vld [vmem:[#allocation11 + $0x6c] sm:$0xf0]  ;;  %v6696_v2 = vld [vmem:[#allocation11 + $0x70] sm:$0xf0]  ;;  %v8513_v4 = vld [vmem:[#allocation11 + $0x34] sm:$0xf0] }
  0x83   : > { %959 = vmatpush.bf16.msrb.mxu0 %v6855_v7  ;;  %978 = vmatpush.bf16.msrb.mxu1 %v6859_v8  ;;  %v8509_v5 = vld [vmem:[#allocation11 + $0x1c] sm:$0xf]  ;;  %v6695_v7 = vor.u32 %v8520_v63, %v6694_v62  ;;  %v6699_v8 = vor.u32 %v8516_v0, %v6696_v2  ;;  %v6662_v10 = vld [vmem:[#allocation11 + $0x10] sm:$0xf]  ;;  %v6664_v14 = vld [vmem:[#allocation11 + $0x30] sm:$0xf0] }
  0x84   : > { %v6672_v6 = vld [vmem:[#allocation11 + $0x38] sm:$0xf0]  ;;  %v8512_v11 = vld [vmem:[#allocation11 + $0x2c] sm:$0xf0]  ;;  %v7350_v17 = vld [vmem:[#allocation14 + $0x380] sm:$0xf] }
  0x85   : > { %998 = vmatpush.bf16.msrb.mxu2 %v6831_v9  ;;  %1017 = vmatpush.bf16.msrb.mxu3 %v6835_v13  ;;  %v6671_v9 = vor.u32 %v8513_v4, %v6670_v3  ;;  %v6675_v12 = vor.u32 %v8509_v5, %v6672_v6  ;;  %v8508_v13 = vld [vmem:[#allocation11 + $0x14] sm:$0xf]  ;;  %v6663_v15 = vor.u32 %v8512_v11, %v6662_v10  ;;  %v8690_v18 = vld [vmem:[#allocation14 + $0x3bc] sm:$0xf0]  ;;  %v8682_v22 = vld [vmem:[#allocation14 + $0x384] sm:$0xf] }
  0x86   : > { %v6667_v16 = vor.u32 %v8508_v13, %v6664_v14  ;;  %v7352_v24 = vld [vmem:[#allocation14 + $0x3c0] sm:$0xf0]  ;;  %v7286_v28 = vld [vmem:[#allocation14 + $0x300] sm:$0xf] }
  0x87   : > { %960 = vmatpush.bf16.msrb.mxu0 %v6823_v19  ;;  %979 = vmatpush.bf16.msrb.mxu1 %v6827_v20  ;;  %v7862_v19 = vld [vmem:[#allocation14 + $0x780] sm:$0xf]  ;;  %v9795_v20 = vor.u32 %v8690_v18, %v7350_v17  ;;  %v8810_v25 = vld [vmem:[#allocation14 + $0x784] sm:$0xf] }
  0x88   : > { %v8674_v29 = vld [vmem:[#allocation14 + $0x33c] sm:$0xf0]  ;;  %v8794_v37 = vld [vmem:[#allocation14 + $0x704] sm:$0xf] }
  0x89   : > { %999 = vmatpush.bf16.msrb.mxu2 %v6799_v21  ;;  %1018 = vmatpush.bf16.msrb.mxu3 %v6803_v26  ;;  %13589 = vst [vmem:[#allocation26_spill] sm:$0xff] %v9795_v20  ;;  %v8818_v21 = vld [vmem:[#allocation14 + $0x7bc] sm:$0xf0]  ;;  %v9800_v26 = vor.u32 %v8682_v22, %v7352_v24  ;;  %v9807_v32 = vor.u32 %v8674_v29, %v7286_v28  ;;  %v7800_v38 = vld [vmem:[#allocation14 + $0x740] sm:$0xf0] }
  0x8a   : > { %v9797_v23 = vor.u32 %v8818_v21, %v7862_v19  ;;  %v7798_v30 = vld [vmem:[#allocation14 + $0x700] sm:$0xf]  ;;  %v8650_v45 = vld [vmem:[#allocation14 + $0x284] sm:$0xf] }
  0x8b   : > { %961 = vmatpush.bf16.msrb.mxu0 %v6791_v33  ;;  %980 = vmatpush.bf16.msrb.mxu1 %v6795_v34  ;;  %13591 = vst [vmem:[#allocation28_spill] sm:$0xff] %v9800_v26  ;;  %v8802_v31 = vld [vmem:[#allocation14 + $0x73c] sm:$0xf0]  ;;  %v8666_v34 = vld [vmem:[#allocation14 + $0x304] sm:$0xf] }
  0x8c   : > { %933 = vmatmul.bf16.gmra.mxu2 %v9781_v39  ;;  %952 = vmatmul.bf16.gmra.mxu3 %v9781_v39  ;;  %13590 = vst [vmem:[#allocation27_spill] sm:$0xff] %v9797_v23  ;;  %v9809_v33 = vor.u32 %v8802_v31, %v7798_v30  ;;  %v8658_v41 = vld [vmem:[#allocation14 + $0x2bc] sm:$0xf0]  ;;  %v7736_v49 = vld [vmem:[#allocation14 + $0x6c0] sm:$0xf0] }
  0x8d   : > { %1000 = vmatpush.bf16.msrb.mxu2 %v6767_v35  ;;  %1019 = vmatpush.bf16.msrb.mxu3 %v6771_v40  ;;  %13593 = vst [vmem:[#allocation30_spill] sm:$0xff] %v9807_v32  ;;  %v7288_v35 = vld [vmem:[#allocation14 + $0x340] sm:$0xf0]  ;;  %v7222_v40 = vld [vmem:[#allocation14 + $0x280] sm:$0xf] }
  0x8e   : > { %895 = vmatmul.bf16.gmra.mxu0 %v9781_v39  ;;  %914 = vmatmul.bf16.gmra.mxu1 %v9781_v39  ;;  %13594 = vst [vmem:[#allocation31_spill] sm:$0xff] %v9809_v33  ;;  %v9811_v36 = vor.u32 %v8666_v34, %v7288_v35  ;;  %v7734_v42 = vld [vmem:[#allocation14 + $0x680] sm:$0xf]  ;;  %v9818_v43 = vor.u32 %v8658_v41, %v7222_v40  ;;  %v8634_v58 = vld [vmem:[#allocation14 + $0x204] sm:$0xf] }
  0x8f   : > { %962 = vmatpush.bf16.msrb.mxu0 %v6759_v46  ;;  %981 = vmatpush.bf16.msrb.mxu1 %v6763_v47  ;;  %v8786_v44 = vld [vmem:[#allocation14 + $0x6bc] sm:$0xf0]  ;;  %v7224_v47 = vld [vmem:[#allocation14 + $0x2c0] sm:$0xf0] }
  0x90   : > { %13595 = vst [vmem:[#allocation32_spill] sm:$0xff] %v9811_v36  ;;  %v9821_v46 = vor.u32 %v8786_v44, %v7734_v42  ;;  %v9823_v50 = vor.u32 %v8650_v45, %v7224_v47  ;;  %v8642_v54 = vld [vmem:[#allocation14 + $0x23c] sm:$0xf0]  ;;  %v7672_v62 = vld [vmem:[#allocation14 + $0x640] sm:$0xf0] }
  0x91   : > { %1001 = vmatpush.bf16.msrb.mxu2 %v6735_v48  ;;  %1020 = vmatpush.bf16.msrb.mxu3 %v6739_v53  ;;  %13597 = vst [vmem:[#allocation34_spill] sm:$0xff] %v9818_v43  ;;  %v8778_v48 = vld [vmem:[#allocation14 + $0x684] sm:$0xf]  ;;  %v7158_v53 = vld [vmem:[#allocation14 + $0x200] sm:$0xf] }
  0x92   : > { %13598 = vst [vmem:[#allocation35_spill] sm:$0xff] %v9821_v46  ;;  %v9825_v51 = vor.u32 %v8778_v48, %v7736_v49  ;;  %v7670_v55 = vld [vmem:[#allocation14 + $0x600] sm:$0xf]  ;;  %v9830_v56 = vor.u32 %v8642_v54, %v7158_v53  ;;  %v8618_v6 = vld [vmem:[#allocation14 + $0x184] sm:$0xf] }
  0x93   : > { %963 = vmatpush.bf16.msrb.mxu0 %v6727_v59  ;;  %982 = vmatpush.bf16.msrb.mxu1 %v6731_v60  ;;  %13599 = vst [vmem:[#allocation36_spill] sm:$0xff] %v9823_v50  ;;  %v8770_v57 = vld [vmem:[#allocation14 + $0x63c] sm:$0xf0]  ;;  %v7160_v60 = vld [vmem:[#allocation14 + $0x240] sm:$0xf0] }
  0x94   : > { %13600 = vst [vmem:[#allocation37_spill] sm:$0xff] %v9825_v51  ;;  %v9833_v59 = vor.u32 %v8770_v57, %v7670_v55  ;;  %v9835_v63 = vor.u32 %v8634_v58, %v7160_v60  ;;  %v8626_v2 = vld [vmem:[#allocation14 + $0x1bc] sm:$0xf0]  ;;  %v8746_v10 = vld [vmem:[#allocation14 + $0x584] sm:$0xf] }
  0x95   : > { %1002 = vmatpush.bf16.msrb.mxu2 %v6703_v61  ;;  %1021 = vmatpush.bf16.msrb.mxu3 %v6707_v1  ;;  %13601 = vst [vmem:[#allocation38_spill] sm:$0xff] %v9830_v56  ;;  %v8762_v61 = vld [vmem:[#allocation14 + $0x604] sm:$0xf]  ;;  %v7094_v1 = vld [vmem:[#allocation14 + $0x180] sm:$0xf] }
  0x96   : > { %13602 = vst [vmem:[#allocation39_spill] sm:$0xff] %v9833_v59  ;;  %v9837_v0 = vor.u32 %v8762_v61, %v7672_v62  ;;  %v7606_v3 = vld [vmem:[#allocation14 + $0x580] sm:$0xf]  ;;  %v9842_v4 = vor.u32 %v8626_v2, %v7094_v1  ;;  %v7608_v11 = vld [vmem:[#allocation14 + $0x5c0] sm:$0xf0] }
  0x97   : > { %964 = vmatpush.bf16.msrb.mxu0 %v6695_v7  ;;  %983 = vmatpush.bf16.msrb.mxu1 %v6699_v8  ;;  %13603 = vst [vmem:[#allocation40_spill] sm:$0xff] %v9835_v63  ;;  %v8754_v5 = vld [vmem:[#allocation14 + $0x5bc] sm:$0xf0]  ;;  %v7096_v7 = vld [vmem:[#allocation14 + $0x1c0] sm:$0xf0] }
  0x98   : > { %13604 = vst [vmem:[#allocation41_spill] sm:$0xff] %v9837_v0  ;;  %v9845_v8 = vor.u32 %v8754_v5, %v7606_v3  ;;  %v7030_v13 = vld [vmem:[#allocation14 + $0x100] sm:$0xf]  ;;  %v8602_v18 = vld [vmem:[#allocation14 + $0x104] sm:$0xf] }
  0x99   : > { %1003 = vmatpush.bf16.msrb.mxu2 %v6671_v9  ;;  %1022 = vmatpush.bf16.msrb.mxu3 %v6675_v12  ;;  %13605 = vst [vmem:[#allocation42_spill] sm:$0xff] %v9842_v4  ;;  %v9847_v9 = vor.u32 %v8618_v6, %v7096_v7  ;;  %v9849_v12 = vor.u32 %v8746_v10, %v7608_v11  ;;  %v8610_v14 = vld [vmem:[#allocation14 + $0x13c] sm:$0xf0]  ;;  %v7032_v19 = vld [vmem:[#allocation14 + $0x140] sm:$0xf0] }
  0x9a   : > { %13606 = vst [vmem:[#allocation43_spill] sm:$0xff] %v9845_v8  ;;  %v8738_v17 = vld [vmem:[#allocation14 + $0x53c] sm:$0xf0]  ;;  %v9859_v22 = vor.u32 %v8602_v18, %v7032_v19  ;;  %v8730_v24 = vld [vmem:[#allocation14 + $0x504] sm:$0xf] }
  0x9b   : > { %965 = vmatpush.bf16.msrb.mxu0 %v6663_v15  ;;  %984 = vmatpush.bf16.msrb.mxu1 %v6667_v16  ;;  %13607 = vst [vmem:[#allocation44_spill] sm:$0xff] %v9847_v9  ;;  %v7542_v15 = vld [vmem:[#allocation14 + $0x500] sm:$0xf]  ;;  %v9854_v16 = vor.u32 %v8610_v14, %v7030_v13  ;;  %v8586_v35 = vld [vmem:[#allocation14 + $0x84] sm:$0xf] }
  0x9c   : > { %1004 = vmatmul.bf16.vlgmr.msrb.gmra.mxu2 %v9773_v52  ;;  %1023 = vmatmul.bf16.vlgmr.msrb.gmra.mxu3 %v9773_v52  ;;  %13608 = vst [vmem:[#allocation45_spill] sm:$0xff] %v9849_v12  ;;  %v9857_v21 = vor.u32 %v8738_v17, %v7542_v15  ;;  %v6966_v28 = vld [vmem:[#allocation14 + $0x80] sm:$0xf]  ;;  %v8714_v41 = vld [vmem:[#allocation14 + $0x484] sm:$0xf] }
  0x9d   : > { %2702 = vmatpush.bf16.msra.mxu2 %v9800_v26  ;;  %13609 = vst [vmem:[#allocation46_spill] sm:$0xff] %v9854_v16  ;;  %v8594_v29 = vld [vmem:[#allocation14 + $0xbc] sm:$0xf0]  ;;  %v7480_v42 = vld [vmem:[#allocation14 + $0x4c0] sm:$0xf0] }
  0x9e   : > { %966 = vmatmul.bf16.vlgmr.msrb.gmra.mxu0 %v9773_v52  ;;  %985 = vmatmul.bf16.vlgmr.msrb.gmra.mxu1 %v9773_v52  ;;  %v7864_v52 = vld [vmem:[#allocation14 + $0x7c0] sm:$0xf0]  ;;  %13610 = vst [vmem:[#allocation47_spill] sm:$0xff] %v9857_v21  ;;  %v7478_v30 = vld [vmem:[#allocation14 + $0x480] sm:$0xf]  ;;  %v9866_v31 = vor.u32 %v8594_v29, %v6966_v28  ;;  %v9873_v44 = vor.u32 %v8714_v41, %v7480_v42 }
  0x9f   : > { %2676 = vmatpush.bf16.msra.mxu0 %v9795_v20  ;;  %v9802_v27 = vor.u32 %v8810_v25, %v7864_v52  ;;  %2689 = vmatpush.bf16.msra.mxu1 %v9797_v23  ;;  %13611 = vst [vmem:[#allocation48_spill] sm:$0xff] %v9859_v22  ;;  %v7544_v25 = vld [vmem:[#allocation14 + $0x540] sm:$0xf0]  ;;  %v8722_v34 = vld [vmem:[#allocation14 + $0x4bc] sm:$0xf0] }
  0xa0   : > { %v9861_v52 = vor.u32 %v8730_v24, %v7544_v25  ;;  %13613 = vst [vmem:[#allocation50_spill] sm:$0xff] %v9866_v31  ;;  %v6902_v47 = vld [vmem:[#allocation14] sm:$0xf]  ;;  %v8570_v57 = vld [vmem:[#allocation14 + $0x4] sm:$0xf] }
  0xa1   : > { %13592 = vst [vmem:[#allocation29_spill] sm:$0xff] %v9802_v27  ;;  %2715 = vmatpush.bf16.msra.mxu3 %v9802_v27  ;;  %2703 = vmatpush.bf16.msra.mxu2 %v9811_v36  ;;  %v8578_v48 = vld [vmem:[#allocation14 + $0x3c] sm:$0xf0]  ;;  %v6904_v60 = vld [vmem:[#allocation14 + $0x40] sm:$0xf0] }
  0xa2   : > { %13612 = vst [vmem:[#allocation49_spill] sm:$0xff] %v9861_v52  ;;  %v7414_v49 = vld [vmem:[#allocation14 + $0x400] sm:$0xf]  ;;  %v9882_v54 = vor.u32 %v8578_v48, %v6902_v47  ;;  %v8698_v61 = vld [vmem:[#allocation14 + $0x404] sm:$0xf]  ;;  %v9887_v1 = vor.u32 %v8570_v57, %v6904_v60 }
  0xa3   : > { %2677 = vmatpush.bf16.msra.mxu0 %v9807_v32  ;;  %2690 = vmatpush.bf16.msra.mxu1 %v9809_v33  ;;  %13616 = vst [vmem:[#allocation53_spill] sm:$0xff] %v9873_v44  ;;  %v8706_v55 = vld [vmem:[#allocation14 + $0x43c] sm:$0xf0]  ;;  %v7416_v62 = vld [vmem:[#allocation14 + $0x440] sm:$0xf0] }
  0xa4   : > { %13617 = vst [vmem:[#allocation54_spill] sm:$0xff] %v9882_v54  ;;  %v9885_v58 = vor.u32 %v8706_v55, %v7414_v49  ;;  %v9889_v2 = vor.u32 %v8698_v61, %v7416_v62  ;;  %v7358_v3 = vld [vmem:[#allocation14 + $0x388] sm:$0xf]  ;;  %v8683_v11 = vld [vmem:[#allocation14 + $0x38c] sm:$0xf] }
  0xa5   : > { %2704 = vmatpush.bf16.msra.mxu2 %v9823_v50  ;;  %13619 = vst [vmem:[#allocation56_spill] sm:$0xff] %v9887_v1  ;;  %v8691_v5 = vld [vmem:[#allocation14 + $0x3c4] sm:$0xf0]  ;;  %v7360_v13 = vld [vmem:[#allocation14 + $0x3c8] sm:$0xf0] }
  0xa6   : > { %13618 = vst [vmem:[#allocation55_spill] sm:$0xff] %v9885_v58  ;;  %v7870_v6 = vld [vmem:[#allocation14 + $0x788] sm:$0xf]  ;;  %v9893_v7 = vor.u32 %v8691_v5, %v7358_v3  ;;  %v9900_v17 = vor.u32 %v8683_v11, %v7360_v13  ;;  %v8811_v18 = vld [vmem:[#allocation14 + $0x78c] sm:$0xf]  ;;  %v9924_v5 = vld [vmem:[#allocation13] sm:$0xff] }
  0xa7   : > { %2678 = vmatpush.bf16.msra.mxu0 %v9818_v43  ;;  %2691 = vmatpush.bf16.msra.mxu1 %v9821_v46  ;;  %13620 = vst [vmem:[#allocation57_spill] sm:$0xff] %v9889_v2  ;;  %v8819_v10 = vld [vmem:[#allocation14 + $0x7c4] sm:$0xf0]  ;;  %v7872_v19 = vld [vmem:[#allocation14 + $0x7c8] sm:$0xf0] }
  0xa8   : > { %13621 = vst [vmem:[#allocation58_spill] sm:$0xff] %v9893_v7  ;;  %v9898_v15 = vor.u32 %v8819_v10, %v7870_v6  ;;  %v9906_v25 = vor.u32 %v8811_v18, %v7872_v19  ;;  %v7294_v28 = vld [vmem:[#allocation14 + $0x308] sm:$0xf]  ;;  %v7296_v47 = vld [vmem:[#allocation14 + $0x348] sm:$0xf0] }
  0xa9   : > { %2705 = vmatpush.bf16.msra.mxu2 %v9835_v63  ;;  %13623 = vst [vmem:[#allocation60_spill] sm:$0xff] %v9900_v17  ;;  %v8675_v29 = vld [vmem:[#allocation14 + $0x344] sm:$0xf0]  ;;  %v8795_v55 = vld [vmem:[#allocation14 + $0x70c] sm:$0xf] }
  0xaa   : > { %13622 = vst [vmem:[#allocation59_spill] sm:$0xff] %v9898_v15  ;;  %v7808_v57 = vld [vmem:[#allocation14 + $0x748] sm:$0xf0]  ;;  %v7230_v60 = vld [vmem:[#allocation14 + $0x288] sm:$0xf] }
  0xab   : > { %2679 = vmatpush.bf16.msra.mxu0 %v9830_v56  ;;  %2692 = vmatpush.bf16.msra.mxu1 %v9833_v59  ;;  %13624 = vst [vmem:[#allocation61_spill] sm:$0xff] %v9906_v25  ;;  %v9922_v61 = vor.u32 %v8795_v55, %v7808_v57  ;;  %v8659_v62 = vld [vmem:[#allocation14 + $0x2c4] sm:$0xf0]  ;;  %v8651_v11 = vld [vmem:[#allocation14 + $0x28c] sm:$0xf] }
  0xac   : > { %1009 = vmatmul.bf16.gmra.mxu2 %v9781_v39  ;;  %1028 = vmatmul.bf16.gmra.mxu3 %v9781_v39  ;;  %v7742_v3 = vld [vmem:[#allocation14 + $0x688] sm:$0xf]  ;;  %v9928_v6 = vor.u32 %v8659_v62, %v7230_v60  ;;  %v7232_v18 = vld [vmem:[#allocation14 + $0x2c8] sm:$0xf0] }
  0xad   : > { %2706 = vmatpush.bf16.msra.mxu2 %v9847_v9  ;;  %13628 = vst [vmem:[#allocation65_spill] sm:$0xff] %v9922_v61  ;;  %v8787_v10 = vld [vmem:[#allocation14 + $0x6c4] sm:$0xf0]  ;;  %v8779_v19 = vld [vmem:[#allocation14 + $0x68c] sm:$0xf] }
  0xae   : > { %971 = vmatmul.bf16.gmra.mxu0 %v9781_v39  ;;  %990 = vmatmul.bf16.gmra.mxu1 %v9781_v39  ;;  %v9815_v39 = vor.u32 %v8794_v37, %v7800_v38  ;;  %v6968_v37 = vld [vmem:[#allocation14 + $0xc0] sm:$0xf0]  ;;  %v9869_v38 = vor.u32 %v8722_v34, %v7478_v30  ;;  %v9910_v30 = vor.u32 %v8675_v29, %v7294_v28  ;;  %v7806_v34 = vld [vmem:[#allocation14 + $0x708] sm:$0xf]  ;;  %v7744_v28 = vld [vmem:[#allocation14 + $0x6c8] sm:$0xf0] }
  0xaf   : > { %2680 = vmatpush.bf16.msra.mxu0 %v9842_v4  ;;  %2693 = vmatpush.bf16.msra.mxu1 %v9845_v8  ;;  %v9871_v40 = vor.u32 %v8586_v35, %v6968_v37  ;;  %v8803_v35 = vld [vmem:[#allocation14 + $0x744] sm:$0xf0]  ;;  %v8667_v37 = vld [vmem:[#allocation14 + $0x30c] sm:$0xf]  ;;  %13629 = vst [vmem:[#allocation66_spill] sm:$0xff] %v9928_v6  ;;  %v9931_v13 = vor.u32 %v8787_v10, %v7742_v3  ;;  %v9945_v3 = vperm.slane %v9924_v5, 0 }
  0xb0   : > { %13596 = vst [vmem:[#allocation33_spill] sm:$0xff] %v9815_v39  ;;  %2716 = vmatpush.bf16.msra.mxu3 %v9815_v39  ;;  %v9915_v42 = vor.u32 %v8803_v35, %v7806_v34  ;;  %v9919_v49 = vor.u32 %v8667_v37, %v7296_v47  ;;  %v9935_v34 = vor.u32 %v8651_v11, %v7232_v18  ;;  %v7166_v37 = vld [vmem:[#allocation14 + $0x208] sm:$0xf]  ;;  %v9948_v10 = vperm.slane %v9924_v5, 2  ;;  %v8635_v18 = vld [vmem:[#allocation14 + $0x20c] sm:$0xf] }
  0xb1   : > { %2707 = vmatpush.bf16.msra.mxu2 %v9859_v22  ;;  %13614 = vst [vmem:[#allocation51_spill] sm:$0xff] %v9869_v38  ;;  %v9937_v35 = vor.u32 %v8779_v19, %v7744_v28  ;;  %v8643_v47 = vld [vmem:[#allocation14 + $0x244] sm:$0xf0]  ;;  %v7168_v19 = vld [vmem:[#allocation14 + $0x248] sm:$0xf0]  ;;  %v9955_v28 = vperm.slane %v9924_v5, 1 }
  0xb2   : > { %13615 = vst [vmem:[#allocation52_spill] sm:$0xff] %v9871_v40  ;;  %v9942_v57 = vor.u32 %v8643_v47, %v7166_v37  ;;  %v7678_v60 = vld [vmem:[#allocation14 + $0x608] sm:$0xf]  ;;  %v9958_v37 = vperm.slane %v9924_v5, 3  ;;  %v8824_v8 = vld [vmem:[#allocation14 + $0x7ec] sm:$0xf0] }
  0xb3   : > { %2681 = vmatpush.bf16.msra.mxu0 %v9854_v16  ;;  %2694 = vmatpush.bf16.msra.mxu1 %v9857_v21  ;;  %13625 = vst [vmem:[#allocation62_spill] sm:$0xff] %v9910_v30  ;;  %v8771_v62 = vld [vmem:[#allocation14 + $0x644] sm:$0xf0]  ;;  %v8688_v22 = vld [vmem:[#allocation14 + $0x3b4] sm:$0xf] }
  0xb4   : > { %2717 = vmatpush.bf16.msra.mxu3 %v9825_v51  ;;  %13626 = vst [vmem:[#allocation63_spill] sm:$0xff] %v9915_v42  ;;  %v9952_v11 = vor.u32 %v8771_v62, %v7678_v60 }
  0xb5   : > { %2708 = vmatpush.bf16.msra.mxu2 %v9871_v40  ;;  %13627 = vst [vmem:[#allocation64_spill] sm:$0xff] %v9919_v49 }
  0xb6   : > { %13630 = vst [vmem:[#allocation67_spill] sm:$0xff] %v9931_v13 }
  0xb7   : > { %2682 = vmatpush.bf16.msra.mxu0 %v9866_v31  ;;  %2695 = vmatpush.bf16.msra.mxu1 %v9869_v38  ;;  %13631 = vst [vmem:[#allocation68_spill] sm:$0xff] %v9935_v34  ;;  %v8805_v31 = vld [vmem:[#allocation14 + $0x754] sm:$0xf0] }
  0xb8   : > { %2718 = vmatpush.bf16.msra.mxu3 %v9837_v0  ;;  %13632 = vst [vmem:[#allocation69_spill] sm:$0xff] %v9937_v35  ;;  %v8672_v0 = vld [vmem:[#allocation14 + $0x334] sm:$0xf] }
  0xb9   : > { %2709 = vmatpush.bf16.msra.mxu2 %v9887_v1  ;;  %13633 = vst [vmem:[#allocation70_spill] sm:$0xff] %v9942_v57 }
  0xba   : > { %13634 = vst [vmem:[#allocation71_spill] sm:$0xff] %v9945_v3 }
  0xbb   : > { %2683 = vmatpush.bf16.msra.mxu0 %v9882_v54  ;;  %2696 = vmatpush.bf16.msra.mxu1 %v9885_v58  ;;  %13635 = vst [vmem:[#allocation72_spill] sm:$0xff] %v9948_v10  ;;  %v8780_v54 = vld [vmem:[#allocation14 + $0x694] sm:$0xf] }
  0xbc   : > { %2719 = vmatpush.bf16.msra.mxu3 %v9849_v12  ;;  %13636 = vst [vmem:[#allocation73_spill] sm:$0xff] %v9952_v11  ;;  %v8669_v12 = vld [vmem:[#allocation14 + $0x31c] sm:$0xf] }
  0xbd   : > { %2754 = vmatpush.bf16.msrb.mxu2 %v9900_v17  ;;  %13637 = vst [vmem:[#allocation74_spill] sm:$0xff] %v9955_v28 }
  0xbe   : > { %13638 = vst [vmem:[#allocation75_spill] sm:$0xff] %v9958_v37 }
  0xbf   : > { %2728 = vmatpush.bf16.msrb.mxu0 %v9893_v7  ;;  %2741 = vmatpush.bf16.msrb.mxu1 %v9898_v15  ;;  %v1083_v7 = vld [vmem:[#allocation5] sm:$0xff] }
  0xc0   : > { %2720 = vmatpush.bf16.msra.mxu3 %v9861_v52  ;;  %v7432_v52 = vld [vmem:[#allocation14 + $0x450] sm:$0xf0] }
  0xc1   : > { %2755 = vmatpush.bf16.msrb.mxu2 %v9919_v49 }
  0xc3   : > { %2729 = vmatpush.bf16.msrb.mxu0 %v9910_v30  ;;  %2742 = vmatpush.bf16.msrb.mxu1 %v9915_v42  ;;  %v8763_v42 = vld [vmem:[#allocation14 + $0x60c] sm:$0xf] }
  0xc4   : > { %2721 = vmatpush.bf16.msra.mxu3 %v9873_v44 }
  0xc5   : > { %2756 = vmatpush.bf16.msrb.mxu2 %v9935_v34  ;;  %v7102_v34 = vld [vmem:[#allocation14 + $0x188] sm:$0xf] }
  0xc7   : > { %2730 = vmatpush.bf16.msrb.mxu0 %v9928_v6  ;;  %2743 = vmatpush.bf16.msrb.mxu1 %v9931_v13  ;;  %v7680_v6 = vld [vmem:[#allocation14 + $0x648] sm:$0xf0] }
  0xc8   : > { %2722 = vmatpush.bf16.msra.mxu3 %v9889_v2  ;;  %v9966_v62 = vor.u32 %v8763_v42, %v7680_v6  ;;  %v7104_v6 = vld [vmem:[#allocation14 + $0x1c8] sm:$0xf0] }
  0xca   : > { %13641 = vst [vmem:[#allocation78_spill] sm:$0xff] %v9966_v62 }
  0xcb   : > { %2731 = vmatpush.bf16.msrb.mxu0 %v9942_v57  ;;  %2744 = vmatpush.bf16.msrb.mxu1 %v9952_v11  ;;  %v1069_v11 = vld [vmem:[#allocation3 + $0x10] sm:$0xff] }
  0xcc   : > { %2767 = vmatpush.bf16.msrb.mxu3 %v9906_v25  ;;  %v8627_v25 = vld [vmem:[#allocation14 + $0x1c4] sm:$0xf0] }
  0xcd   : > { %v9972_v2 = vor.u32 %v8627_v25, %v7102_v34  ;;  %v1068_v25 = vld [vmem:[#allocation3 + $0x18] sm:$0xff] }
  0xcf   : > { %13643 = vst [vmem:[#allocation80_spill] sm:$0xff] %v9972_v2  ;;  %2732 = vmatpush.bf16.msrb.mxu0 %v9972_v2 }
  0xd0   : > { %2768 = vmatpush.bf16.msrb.mxu3 %v9922_v61  ;;  %v9961_v61 = vor.u32 %v8635_v18, %v7168_v19  ;;  %v8755_v18 = vld [vmem:[#allocation14 + $0x5c4] sm:$0xf0]  ;;  %v8619_v19 = vld [vmem:[#allocation14 + $0x18c] sm:$0xf] }
  0xd2   : > { %13639 = vst [vmem:[#allocation76_spill] sm:$0xff] %v9961_v61  ;;  %2757 = vmatpush.bf16.msrb.mxu2 %v9961_v61 }
  0xd4   : > { %2769 = vmatpush.bf16.msrb.mxu3 %v9937_v35  ;;  %v7614_v35 = vld [vmem:[#allocation14 + $0x588] sm:$0xf] }
  0xd5   : > { %v9978_v42 = vor.u32 %v8755_v18, %v7614_v35  ;;  %v7038_v35 = vld [vmem:[#allocation14 + $0x108] sm:$0xf] }
  0xd6   : > { %v8611_v18 = vld [vmem:[#allocation14 + $0x144] sm:$0xf0] }
  0xd7   : > { %13644 = vst [vmem:[#allocation81_spill] sm:$0xff] %v9978_v42  ;;  %2745 = vmatpush.bf16.msrb.mxu1 %v9978_v42  ;;  %v7486_v42 = vld [vmem:[#allocation14 + $0x488] sm:$0xf] }
  0xd8   : > { %2770 = vmatpush.bf16.msrb.mxu3 %v9966_v62 }
  0xfb   : > { %v9875_v45 = vpop.f32.mrf.mxu0  ;;  %v9879_v53 = vpop.f32.mrf.mxu1 }
  0xfc   : > { %v892_v58 = vadd.f32 %v9875_v45, %v9945_v3  ;;  %v7616_v45 = vld [vmem:[#allocation14 + $0x5c8] sm:$0xf0]  ;;  %v911_v49 = vadd.f32 %v9879_v53, %v9955_v28 }
  0xfd   : > { %v8603_v53 = vld [vmem:[#allocation14 + $0x10c] sm:$0xf] }
  0xff   : > { %v9895_v14 = vpop.f32.mrf.mxu2  ;;  %v9902_v24 = vpop.f32.mrf.mxu3 }
 0x100   : > { %v949_v34 = vadd.f32 %v9902_v24, %v9958_v37  ;;  %v9995_v24 = vor.u32 %v8611_v18, %v7038_v35  ;;  %v10007_v18 = vperm.slane %v9924_v5, 4 }
 0x102   : > { %13648 = vst [vmem:[#allocation85_spill] sm:$0xff] %v9995_v24  ;;  %v1097_v2 = vadd.f32 %v1069_v11, %v949_v34  ;;  %2733 = vmatpush.bf16.msrb.mxu0 %v9995_v24  ;;  %v8723_v11 = vld [vmem:[#allocation14 + $0x4c4] sm:$0xf0]  ;;  %v6976_v34 = vld [vmem:[#allocation14 + $0xc8] sm:$0xf0] }
 0x103   : > { %v9912_v41 = vpop.f32.mrf.mxu0  ;;  %v9917_v48 = vpop.f32.mrf.mxu1  ;;  %13652 = vst [vmem:[#allocation89_spill] sm:$0xff] %v10007_v18 }
 0x107   : > { %v9933_v29 = vpop.f32.mrf.mxu2  ;;  %v9939_v55 = vpop.f32.mrf.mxu3 }
 0x10b   : > { %v896_v47 = vpop.f32.mrf.mxu0  ;;  %v915_v60 = vpop.f32.mrf.mxu1 }
 0x10c   : > { %v9964_v13 = vadd.f32 %v896_v47, %v9945_v3  ;;  %v9969_v15 = vadd.f32 %v915_v60, %v9955_v28  ;;  %v8747_v47 = vld [vmem:[#allocation14 + $0x58c] sm:$0xf] }
 0x10d   : > { %v1066_v60 = vld [vmem:[#allocation3 + $0x30] sm:$0xff]  ;;  %v9987_v61 = vor.u32 %v8747_v47, %v7616_v45 }
 0x10e   : > { %13640 = vst [vmem:[#allocation77_spill] sm:$0xff] %v9964_v13  ;;  %v9985_v13 = vor.u32 %v8619_v19, %v7104_v6  ;;  %v7550_v19 = vld [vmem:[#allocation14 + $0x508] sm:$0xf]  ;;  %v1094_v62 = vadd.f32 %v1066_v60, %v892_v58  ;;  %v8731_v45 = vld [vmem:[#allocation14 + $0x50c] sm:$0xf] }
 0x10f   : > { %13642 = vst [vmem:[#allocation79_spill] sm:$0xff] %v9969_v15  ;;  %v930_v15 = vadd.f32 %v9895_v14, %v9948_v10  ;;  %v934_v57 = vpop.f32.mrf.mxu2  ;;  %v953_v30 = vpop.f32.mrf.mxu3  ;;  %v8739_v6 = vld [vmem:[#allocation14 + $0x544] sm:$0xf0]  ;;  %2771 = vmatpush.bf16.msrb.mxu3 %v9987_v61 }
 0x110   : > { %13645 = vst [vmem:[#allocation82_spill] sm:$0xff] %v9985_v13  ;;  %v9992_v14 = vadd.f32 %v934_v57, %v9948_v10  ;;  %v9998_v44 = vadd.f32 %v953_v30, %v9958_v37  ;;  %2758 = vmatpush.bf16.msrb.mxu2 %v9985_v13  ;;  %v10002_v47 = vor.u32 %v8739_v6, %v7550_v19  ;;  %v7040_v57 = vld [vmem:[#allocation14 + $0x148] sm:$0xf0]  ;;  %v6974_v6 = vld [vmem:[#allocation14 + $0x88] sm:$0xf] }
 0x111   : > { %13646 = vst [vmem:[#allocation83_spill] sm:$0xff] %v9987_v61  ;;  %v1096_v38 = vadd.f32 %v1068_v25, %v930_v15  ;;  %v10010_v58 = vor.u32 %v8603_v53, %v7040_v57  ;;  %v7552_v30 = vld [vmem:[#allocation14 + $0x548] sm:$0xf0]  ;;  %v10021_v53 = vor.u32 %v8723_v11, %v7486_v42  ;;  %v1105_v61 = vmul.f32 0.5, %v1097_v2 }
 0x112   : > { %13647 = vst [vmem:[#allocation84_spill] sm:$0xff] %v9992_v14  ;;  %v1067_v14 = vld [vmem:[#allocation3] sm:$0xff]  ;;  %v10014_v19 = vor.u32 %v8731_v45, %v7552_v30  ;;  %v8587_v25 = vld [vmem:[#allocation14 + $0x8c] sm:$0xf]  ;;  %2746 = vmatpush.bf16.msrb.mxu1 %v10002_v47 }
 0x113   : > { %13649 = vst [vmem:[#allocation86_spill] sm:$0xff] %v9998_v44  ;;  %v10004_v35 = vpop.f32.mrf.mxu0  ;;  %v10012_v60 = vpop.f32.mrf.mxu1  ;;  %v8595_v44 = vld [vmem:[#allocation14 + $0xc4] sm:$0xf0]  ;;  %v1095_v13 = vadd.f32 %v1067_v14, %v911_v49  ;;  %v10023_v57 = vor.u32 %v8587_v25, %v6976_v34  ;;  %v8715_v45 = vld [vmem:[#allocation14 + $0x48c] sm:$0xf] }
 0x114   : > { %13650 = vst [vmem:[#allocation87_spill] sm:$0xff] %v10002_v47  ;;  %v10017_v15 = vor.u32 %v8595_v44, %v6974_v6  ;;  %2759 = vmatpush.bf16.msrb.mxu2 %v10010_v58  ;;  %v7488_v30 = vld [vmem:[#allocation14 + $0x4c8] sm:$0xf0]  ;;  %v10026_v44 = vperm.slane %v9924_v5, 5  ;;  %2772 = vmatpush.bf16.msrb.mxu3 %v10014_v19  ;;  %v8579_v14 = vld [vmem:[#allocation14 + $0x44] sm:$0xf0] }
 0x115   : > { %13651 = vst [vmem:[#allocation88_spill] sm:$0xff] %v10004_v35  ;;  %v1102_v35 = vmul.f32 0.5, %v1094_v62  ;;  %v10029_v6 = vor.u32 %v8715_v45, %v7488_v30  ;;  %v6910_v62 = vld [vmem:[#allocation14 + $0x8] sm:$0xf]  ;;  %v8571_v2 = vld [vmem:[#allocation14 + $0xc] sm:$0xf] }
 0x116   : > { %13653 = vst [vmem:[#allocation90_spill] sm:$0xff] %v10010_v58  ;;  %v7422_v47 = vld [vmem:[#allocation14 + $0x408] sm:$0xf]  ;;  %2734 = vmatpush.bf16.msrb.mxu0 %v10017_v15  ;;  %v10036_v11 = vor.u32 %v8579_v14, %v6910_v62  ;;  %v6912_v25 = vld [vmem:[#allocation14 + $0x48] sm:$0xf0]  ;;  %v1103_v34 = vmul.f32 0.5, %v1095_v13  ;;  %2747 = vmatpush.bf16.msrb.mxu1 %v10021_v53 }
 0x117   : > { %13654 = vst [vmem:[#allocation91_spill] sm:$0xff] %v10012_v60  ;;  %v1104_v60 = vmul.f32 0.5, %v1096_v38  ;;  %v10031_v49 = vpop.f32.mrf.mxu2  ;;  %v10033_v42 = vpop.f32.mrf.mxu3  ;;  %v8707_v38 = vld [vmem:[#allocation14 + $0x444] sm:$0xf0]  ;;  %v10042_v30 = vor.u32 %v8571_v2, %v6912_v25  ;;  %v1070_v58 = vld [vmem:[#allocation3 + $0x8] sm:$0xff]  ;;  %v10054_v2 = vperm.slane %v9924_v5, 7 }
 0x118   : > { %13655 = vst [vmem:[#allocation92_spill] sm:$0xff] %v10014_v19  ;;  %2760 = vmatpush.bf16.msrb.mxu2 %v10023_v57  ;;  %v10040_v45 = vor.u32 %v8707_v38, %v7422_v47  ;;  %v7424_v19 = vld [vmem:[#allocation14 + $0x448] sm:$0xf0]  ;;  %2773 = vmatpush.bf16.msrb.mxu3 %v10029_v6  ;;  %v10050_v38 = vperm.slane %v9924_v5, 6 }
 0x119   : > { %13656 = vst [vmem:[#allocation93_spill] sm:$0xff] %v10017_v15  ;;  %9101 = vtanh.f32 %v1104_v60 }
 0x11a   : > { %13657 = vst [vmem:[#allocation94_spill] sm:$0xff] %v10021_v53  ;;  %9103 = vtanh.f32 %v1105_v61  ;;  %v1071_v53 = vld [vmem:[#allocation3 + $0x20] sm:$0xff]  ;;  %2735 = vmatpush.bf16.msrb.mxu0 %v10036_v11  ;;  %2748 = vmatpush.bf16.msrb.mxu1 %v10040_v45 }
 0x11b   : > { %13658 = vst [vmem:[#allocation95_spill] sm:$0xff] %v10023_v57  ;;  %v986_v14 = vpop.f32.mrf.mxu1  ;;  %9105 = vtanh.f32 %v1102_v35 }
 0x11c   : > { %13659 = vst [vmem:[#allocation96_spill] sm:$0xff] %v10026_v44  ;;  %v987_v47 = vadd.f32 %v986_v14, %v10026_v44  ;;  %9107 = vtanh.f32 %v1103_v34  ;;  %2761 = vmatpush.bf16.msrb.mxu2 %v10042_v30 }
 0x11d   : > { %13660 = vst [vmem:[#allocation97_spill] sm:$0xff] %v10029_v6  ;;  %v1073_v6 = vld [vmem:[#allocation3 + $0x38] sm:$0xff] }
 0x11e   : > { %13661 = vst [vmem:[#allocation98_spill] sm:$0xff] %v10031_v49  ;;  %v8699_v49 = vld [vmem:[#allocation14 + $0x40c] sm:$0xf]  ;;  %v1099_v61 = vadd.f32 %v1071_v53, %v987_v47 }
 0x11f   : > { %13662 = vst [vmem:[#allocation99_spill] sm:$0xff] %v10033_v42  ;;  %v967_v42 = vpop.f32.mrf.mxu0  ;;  %v10045_v62 = vor.u32 %v8699_v49, %v7424_v19  ;;  %v1005_v19 = vpop.f32.mrf.mxu2  ;;  %v1072_v49 = vld [vmem:[#allocation3 + $0x28] sm:$0xff] }
 0x120   : > { %13663 = vst [vmem:[#allocation100_spill] sm:$0xff] %v10036_v11  ;;  %v968_v13 = vadd.f32 %v967_v42, %v10007_v18  ;;  %v9102_v42 = vpop.eup %9101  ;;  %v1006_v25 = vadd.f32 %v1005_v19, %v10050_v38  ;;  %v1024_v14 = vpop.f32.mrf.mxu3  ;;  %v1082_v19 = vld [vmem:[#allocation5 + $0x8] sm:$0xff] }
 0x121   : > { %13664 = vst [vmem:[#allocation101_spill] sm:$0xff] %v10040_v45  ;;  %2774 = vmatpush.bf16.msrb.mxu3 %v10045_v62  ;;  %v9104_v34 = vpop.eup %9103  ;;  %v1116_v57 = vadd.f32 1.0, %v9102_v42 }
 0x122   : > { %13665 = vst [vmem:[#allocation102_spill] sm:$0xff] %v10042_v30  ;;  %v1098_v60 = vadd.f32 %v1070_v58, %v968_v13  ;;  %v1025_v58 = vadd.f32 %v1024_v14, %v10054_v2  ;;  %v9106_v5 = vpop.eup %9105  ;;  %v1107_v13 = vmul.f32 0.5, %v1099_v61  ;;  %v1100_v11 = vadd.f32 %v1072_v49, %v1006_v25 }
 0x123   : > { %13666 = vst [vmem:[#allocation103_spill] sm:$0xff] %v10045_v62  ;;  %v9108_v45 = vpop.eup %9107  ;;  %v1117_v47 = vadd.f32 1.0, %v9104_v34  ;;  %v1122_v30 = vmul.f32 0.5, %v1116_v57 }
 0x124   : > { %13667 = vst [vmem:[#allocation104_spill] sm:$0xff] %v10050_v38  ;;  %v1106_v35 = vmul.f32 0.5, %v1098_v60  ;;  %v1101_v53 = vadd.f32 %v1073_v6, %v1025_v58  ;;  %v1114_v60 = vadd.f32 1.0, %v9106_v5  ;;  %v1115_v62 = vadd.f32 1.0, %v9108_v45 }
 0x125   : > { %13668 = vst [vmem:[#allocation105_spill] sm:$0xff] %v10054_v2  ;;  %v1123_v15 = vmul.f32 0.5, %v1117_v47  ;;  %v1128_v49 = vmul.f32 %v1122_v30, %v1082_v19  ;;  %v7878_v30 = vld [vmem:[#allocation14 + $0x790] sm:$0xf]  ;;  %v8684_v47 = vld [vmem:[#allocation14 + $0x394] sm:$0xf] }
 0x126   : > { %9109 = vtanh.f32 %v1106_v35  ;;  %v1120_v17 = vmul.f32 0.5, %v1114_v60  ;;  %v1121_v1 = vmul.f32 0.5, %v1115_v62  ;;  %v8692_v62 = vld [vmem:[#allocation14 + $0x3cc] sm:$0xf0]  ;;  %v8812_v60 = vld [vmem:[#allocation14 + $0x794] sm:$0xf] }
 0x127   : > { %9111 = vtanh.f32 %v1100_v11  ;;  %v1129_v35 = vmul.f32 %v1123_v15, %v1083_v7  ;;  %v7368_v15 = vld [vmem:[#allocation14 + $0x3d0] sm:$0xf0] }
 0x128   : > { %9113 = vtanh.f32 %v1101_v53 }
 0x129   : > { %9115 = vtanh.f32 %v1107_v13  ;;  %v7366_v13 = vld [vmem:[#allocation14 + $0x390] sm:$0xf] }
 0x12c   : > { %v9110_v24 = vpop.eup %9109 }
 0x12d   : > { %v9112_v14 = vpop.eup %9111  ;;  %v1118_v11 = vadd.f32 1.0, %v9110_v24  ;;  %v7880_v24 = vld [vmem:[#allocation14 + $0x7d0] sm:$0xf0] }
 0x12e   : > { %v9114_v61 = vpop.eup %9113  ;;  %v1130_v25 = vmul.f32 %v9112_v14, %v1120_v17  ;;  %v8820_v17 = vld [vmem:[#allocation14 + $0x7cc] sm:$0xf0] }
 0x12f   : > { %v9116_v42 = vpop.eup %9115  ;;  %v1131_v6 = vmul.f32 %v9114_v61, %v1121_v1  ;;  %v1124_v57 = vmul.f32 0.5, %v1118_v11  ;;  %v10069_v61 = vor.u32 %v8692_v62, %v7366_v13  ;;  %v10077_v11 = vor.u32 %v8812_v60, %v7880_v24  ;;  %v8796_v13 = vld [vmem:[#allocation14 + $0x714] sm:$0xf]  ;;  %v7750_v60 = vld [vmem:[#allocation14 + $0x690] sm:$0xf] }
 0x130   : > { %v10061_v34 = vadd.f32 %v1130_v25, %v1128_v49  ;;  %v1119_v45 = vadd.f32 1.0, %v9116_v42  ;;  %v10071_v49 = vor.u32 %v8820_v17, %v7878_v30  ;;  %v7302_v25 = vld [vmem:[#allocation14 + $0x310] sm:$0xf]  ;;  %v7816_v62 = vld [vmem:[#allocation14 + $0x750] sm:$0xf0] }
 0x131   : > { %v10063_v58 = vadd.f32 %v1131_v6, %v1129_v35  ;;  %13669 = vst [vmem:[#allocation106_spill] sm:$0xff] %v10069_v61  ;;  %v8676_v42 = vld [vmem:[#allocation14 + $0x34c] sm:$0xf0]  ;;  %v10075_v6 = vor.u32 %v8684_v47, %v7368_v15  ;;  %v10093_v15 = vor.u32 %v8796_v13, %v7816_v62 }
 0x132   : > { %9117 = vtanh.f32 %v10061_v34  ;;  %v1125_v5 = vmul.f32 0.5, %v1119_v45  ;;  %13670 = vst [vmem:[#allocation107_spill] sm:$0xff] %v10071_v49  ;;  %v7814_v45 = vld [vmem:[#allocation14 + $0x710] sm:$0xf]  ;;  %v10085_v30 = vor.u32 %v8676_v42, %v7302_v25 }
 0x133   : > { %9119 = vtanh.f32 %v10063_v58  ;;  %13671 = vst [vmem:[#allocation108_spill] sm:$0xff] %v10075_v6  ;;  %v7238_v47 = vld [vmem:[#allocation14 + $0x290] sm:$0xf] }
 0x134   : > { %13672 = vst [vmem:[#allocation109_spill] sm:$0xff] %v10077_v11  ;;  %v8788_v24 = vld [vmem:[#allocation14 + $0x6cc] sm:$0xf0] }
 0x135   : > { %13673 = vst [vmem:[#allocation110_spill] sm:$0xff] %v10085_v30  ;;  %v10099_v42 = vor.u32 %v8788_v24, %v7750_v60  ;;  %v7686_v13 = vld [vmem:[#allocation14 + $0x610] sm:$0xf] }
 0x136   : > { %13676 = vst [vmem:[#allocation113_spill] sm:$0xff] %v10093_v15  ;;  %v8772_v62 = vld [vmem:[#allocation14 + $0x64c] sm:$0xf0] }
 0x137   : > { %13678 = vst [vmem:[#allocation115_spill] sm:$0xff] %v10099_v42  ;;  %v7110_v60 = vld [vmem:[#allocation14 + $0x190] sm:$0xf] }
 0x138   : > { %v9118_v53 = vpop.eup %9117  ;;  %v8628_v24 = vld [vmem:[#allocation14 + $0x1cc] sm:$0xf0] }
 0x139   : > { %v9120_v7 = vpop.eup %9119  ;;  %v1136_v1 = vmul.f32 %v9118_v53, %v1124_v57  ;;  %v8804_v57 = vld [vmem:[#allocation14 + $0x74c] sm:$0xf0]  ;;  %v8668_v53 = vld [vmem:[#allocation14 + $0x314] sm:$0xf] }
 0x13a   : > { %v1137_v19 = vmul.f32 %v9120_v7, %v1125_v5  ;;  %v7304_v5 = vld [vmem:[#allocation14 + $0x350] sm:$0xf0]  ;;  %v10087_v17 = vor.u32 %v8804_v57, %v7814_v45  ;;  %v8660_v7 = vld [vmem:[#allocation14 + $0x2cc] sm:$0xf0] }
 0x13b   : > { %v10067_v14 = vpack.c.bf16 %v1136_v1, %v1136_v1  ;;  %v10091_v1 = vor.u32 %v8668_v53, %v7304_v5  ;;  %v10097_v25 = vor.u32 %v8660_v7, %v7238_v47  ;;  %v7174_v45 = vld [vmem:[#allocation14 + $0x210] sm:$0xf]  ;;  %v10111_v7 = vor.u32 %v8772_v62, %v7686_v13 }
 0x13c   : > { %v10073_v35 = vpack.c.bf16 %v1137_v19, %v1137_v19  ;;  %13674 = vst [vmem:[#allocation111_spill] sm:$0xff] %v10087_v17  ;;  %v8652_v19 = vld [vmem:[#allocation14 + $0x294] sm:$0xf]  ;;  %v8644_v57 = vld [vmem:[#allocation14 + $0x24c] sm:$0xf0] }
 0x13d   : > { %2684 = vmatmul.bf16.vlgmr.msra.gmra.mxu0 %v10067_v14  ;;  %2710 = vmatmul.bf16.vlgmr.msra.gmra.mxu2 %v10067_v14  ;;  %13675 = vst [vmem:[#allocation112_spill] sm:$0xff] %v10091_v1  ;;  %v10109_v47 = vor.u32 %v8644_v57, %v7174_v45  ;;  %v10121_v45 = vor.u32 %v8628_v24, %v7110_v60  ;;  %v7046_v13 = vld [vmem:[#allocation14 + $0x110] sm:$0xf]  ;;  %v7048_v60 = vld [vmem:[#allocation14 + $0x150] sm:$0xf0] }
 0x13e   : > { %2697 = vmatmul.bf16.vlgmr.msra.gmra.mxu1 %v10073_v35  ;;  %2723 = vmatmul.bf16.vlgmr.msra.gmra.mxu3 %v10073_v35  ;;  %13677 = vst [vmem:[#allocation114_spill] sm:$0xff] %v10097_v25  ;;  %v8612_v62 = vld [vmem:[#allocation14 + $0x14c] sm:$0xf0]  ;;  %v8732_v24 = vld [vmem:[#allocation14 + $0x514] sm:$0xf] }
 0x13f   : > { %2780 = vmatpush.bf16.msra.mxu0 %v10069_v61  ;;  %2793 = vmatpush.bf16.msra.mxu1 %v10071_v49  ;;  %v7240_v61 = vld [vmem:[#allocation14 + $0x2d0] sm:$0xf0]  ;;  %13681 = vst [vmem:[#allocation118_spill] sm:$0xff] %v10109_v47 }
 0x140   : > { %2806 = vmatpush.bf16.msra.mxu2 %v10075_v6  ;;  %2819 = vmatpush.bf16.msra.mxu3 %v10077_v11  ;;  %v7752_v49 = vld [vmem:[#allocation14 + $0x6d0] sm:$0xf0]  ;;  %v10103_v53 = vor.u32 %v8652_v19, %v7240_v61  ;;  %13682 = vst [vmem:[#allocation119_spill] sm:$0xff] %v10111_v7  ;;  %v8756_v19 = vld [vmem:[#allocation14 + $0x5cc] sm:$0xf0] }
 0x141   : > { %v10105_v5 = vor.u32 %v8780_v54, %v7752_v49  ;;  %v8636_v11 = vld [vmem:[#allocation14 + $0x214] sm:$0xf]  ;;  %v7622_v49 = vld [vmem:[#allocation14 + $0x590] sm:$0xf]  ;;  %13685 = vst [vmem:[#allocation122_spill] sm:$0xff] %v10121_v45 }
 0x142   : > { %13679 = vst [vmem:[#allocation116_spill] sm:$0xff] %v10103_v53  ;;  %v8764_v6 = vld [vmem:[#allocation14 + $0x614] sm:$0xf]  ;;  %v10123_v57 = vor.u32 %v8756_v19, %v7622_v49 }
 0x143   : > { %2781 = vmatpush.bf16.msra.mxu0 %v10085_v30  ;;  %2794 = vmatpush.bf16.msra.mxu1 %v10087_v17  ;;  %13680 = vst [vmem:[#allocation117_spill] sm:$0xff] %v10105_v5  ;;  %v7176_v30 = vld [vmem:[#allocation14 + $0x250] sm:$0xf0] }
 0x144   : > { %2807 = vmatpush.bf16.msra.mxu2 %v10091_v1  ;;  %2820 = vmatpush.bf16.msra.mxu3 %v10093_v15  ;;  %v7688_v17 = vld [vmem:[#allocation14 + $0x650] sm:$0xf0]  ;;  %v10115_v54 = vor.u32 %v8636_v11, %v7176_v30  ;;  %13686 = vst [vmem:[#allocation123_spill] sm:$0xff] %v10123_v57  ;;  %v7558_v30 = vld [vmem:[#allocation14 + $0x510] sm:$0xf] }
 0x145   : > { %v10117_v61 = vor.u32 %v8764_v6, %v7688_v17  ;;  %v8620_v15 = vld [vmem:[#allocation14 + $0x194] sm:$0xf]  ;;  %v8740_v17 = vld [vmem:[#allocation14 + $0x54c] sm:$0xf0] }
 0x146   : > { %13683 = vst [vmem:[#allocation120_spill] sm:$0xff] %v10115_v54  ;;  %v8748_v1 = vld [vmem:[#allocation14 + $0x594] sm:$0xf] }
 0x147   : > { %2782 = vmatpush.bf16.msra.mxu0 %v10097_v25  ;;  %2795 = vmatpush.bf16.msra.mxu1 %v10099_v42  ;;  %13684 = vst [vmem:[#allocation121_spill] sm:$0xff] %v10117_v61  ;;  %v7112_v25 = vld [vmem:[#allocation14 + $0x1d0] sm:$0xf0] }
 0x148   : > { %2808 = vmatpush.bf16.msra.mxu2 %v10103_v53  ;;  %2821 = vmatpush.bf16.msra.mxu3 %v10105_v5  ;;  %v7624_v42 = vld [vmem:[#allocation14 + $0x5d0] sm:$0xf0]  ;;  %v10127_v6 = vor.u32 %v8620_v15, %v7112_v25  ;;  %v10139_v15 = vor.u32 %v8740_v17, %v7558_v30  ;;  %v6982_v25 = vld [vmem:[#allocation14 + $0x90] sm:$0xf] }
 0x149   : > { %v10129_v11 = vor.u32 %v8748_v1, %v7624_v42  ;;  %v8604_v5 = vld [vmem:[#allocation14 + $0x114] sm:$0xf]  ;;  %v10137_v1 = vor.u32 %v8612_v62, %v7046_v13  ;;  %v8596_v42 = vld [vmem:[#allocation14 + $0xcc] sm:$0xf0] }
 0x14a   : > { %13687 = vst [vmem:[#allocation124_spill] sm:$0xff] %v10127_v6  ;;  %v7560_v49 = vld [vmem:[#allocation14 + $0x550] sm:$0xf0]  ;;  %v10143_v19 = vor.u32 %v8604_v5, %v7048_v60  ;;  %v6918_v13 = vld [vmem:[#allocation14 + $0x10] sm:$0xf]  ;;  %v10149_v62 = vor.u32 %v8596_v42, %v6982_v25 }
 0x14b   : > { %2783 = vmatpush.bf16.msra.mxu0 %v10109_v47  ;;  %2796 = vmatpush.bf16.msra.mxu1 %v10111_v7  ;;  %13688 = vst [vmem:[#allocation125_spill] sm:$0xff] %v10129_v11  ;;  %v7494_v7 = vld [vmem:[#allocation14 + $0x490] sm:$0xf]  ;;  %v8588_v47 = vld [vmem:[#allocation14 + $0x94] sm:$0xf] }
 0x14c   : > { %2809 = vmatpush.bf16.msra.mxu2 %v10115_v54  ;;  %2822 = vmatpush.bf16.msra.mxu3 %v10117_v61  ;;  %13689 = vst [vmem:[#allocation126_spill] sm:$0xff] %v10137_v1  ;;  %v10145_v61 = vor.u32 %v8732_v24, %v7560_v49  ;;  %v8724_v54 = vld [vmem:[#allocation14 + $0x4cc] sm:$0xf0]  ;;  %v8716_v53 = vld [vmem:[#allocation14 + $0x494] sm:$0xf] }
 0x14d   : > { %2736 = vmatmul.bf16.vlgmr.msrb.gmra.mxu0 %v10067_v14  ;;  %2762 = vmatmul.bf16.vlgmr.msrb.gmra.mxu2 %v10067_v14  ;;  %13690 = vst [vmem:[#allocation127_spill] sm:$0xff] %v10139_v15  ;;  %v10151_v30 = vor.u32 %v8724_v54, %v7494_v7  ;;  %v8580_v17 = vld [vmem:[#allocation14 + $0x4c] sm:$0xf0]  ;;  %v8693_v25 = vld [vmem:[#allocation14 + $0x3d4] sm:$0xf0] }
 0x14e   : > { %2749 = vmatmul.bf16.vlgmr.msrb.gmra.mxu1 %v10073_v35  ;;  %2775 = vmatmul.bf16.vlgmr.msrb.gmra.mxu3 %v10073_v35  ;;  %13691 = vst [vmem:[#allocation128_spill] sm:$0xff] %v10143_v19  ;;  %v7430_v5 = vld [vmem:[#allocation14 + $0x410] sm:$0xf]  ;;  %v7886_v42 = vld [vmem:[#allocation14 + $0x798] sm:$0xf] }
 0x14f   : > { %2784 = vmatpush.bf16.msra.mxu0 %v10121_v45  ;;  %2797 = vmatpush.bf16.msra.mxu1 %v10123_v57  ;;  %13692 = vst [vmem:[#allocation129_spill] sm:$0xff] %v10145_v61  ;;  %v6984_v45 = vld [vmem:[#allocation14 + $0xd0] sm:$0xf0]  ;;  %v8708_v60 = vld [vmem:[#allocation14 + $0x44c] sm:$0xf0] }
 0x150   : > { %2810 = vmatpush.bf16.msra.mxu2 %v10127_v6  ;;  %2823 = vmatpush.bf16.msra.mxu3 %v10129_v11  ;;  %v7496_v57 = vld [vmem:[#allocation14 + $0x4d0] sm:$0xf0]  ;;  %13693 = vst [vmem:[#allocation130_spill] sm:$0xff] %v10149_v62  ;;  %v10155_v24 = vor.u32 %v8588_v47, %v6984_v45  ;;  %v8821_v7 = vld [vmem:[#allocation14 + $0x7d4] sm:$0xf0] }
 0x151   : > { %13694 = vst [vmem:[#allocation131_spill] sm:$0xff] %v10151_v30  ;;  %v10157_v49 = vor.u32 %v8716_v53, %v7496_v57  ;;  %v8572_v11 = vld [vmem:[#allocation14 + $0x14] sm:$0xf]  ;;  %v8685_v54 = vld [vmem:[#allocation14 + $0x39c] sm:$0xf] }
 0x152   : > { %13695 = vst [vmem:[#allocation132_spill] sm:$0xff] %v10155_v24  ;;  %v6920_v6 = vld [vmem:[#allocation14 + $0x50] sm:$0xf0]  ;;  %v7376_v47 = vld [vmem:[#allocation14 + $0x3d8] sm:$0xf0] }
 0x153   : > { %2785 = vmatpush.bf16.msra.mxu0 %v10137_v1  ;;  %2798 = vmatpush.bf16.msra.mxu1 %v10139_v15  ;;  %13696 = vst [vmem:[#allocation133_spill] sm:$0xff] %v10157_v49  ;;  %v8700_v1 = vld [vmem:[#allocation14 + $0x414] sm:$0xf]  ;;  %v7374_v15 = vld [vmem:[#allocation14 + $0x398] sm:$0xf]  ;;  %v10167_v57 = vor.u32 %v8572_v11, %v6920_v6 }
 0x154   : > { %2811 = vmatpush.bf16.msra.mxu2 %v10143_v19  ;;  %2824 = vmatpush.bf16.msra.mxu3 %v10145_v61  ;;  %v10161_v19 = vor.u32 %v8580_v17, %v6918_v13  ;;  %v10163_v61 = vor.u32 %v8708_v60, %v7430_v5  ;;  %v8813_v53 = vld [vmem:[#allocation14 + $0x79c] sm:$0xf]  ;;  %v10169_v21 = vor.u32 %v8700_v1, %v7432_v52  ;;  %v8677_v13 = vld [vmem:[#allocation14 + $0x354] sm:$0xf0] }
 0x155   : > { %v7888_v45 = vld [vmem:[#allocation14 + $0x7d8] sm:$0xf0]  ;;  %13699 = vst [vmem:[#allocation136_spill] sm:$0xff] %v10167_v57  ;;  %v10171_v40 = vor.u32 %v8693_v25, %v7374_v15  ;;  %v10175_v17 = vor.u32 %v8685_v54, %v7376_v47  ;;  %v7822_v60 = vld [vmem:[#allocation14 + $0x718] sm:$0xf] }
 0x156   : > { %13697 = vst [vmem:[#allocation134_spill] sm:$0xff] %v10161_v19  ;;  %v10177_v5 = vor.u32 %v8813_v53, %v7888_v45  ;;  %v7312_v6 = vld [vmem:[#allocation14 + $0x358] sm:$0xf0]  ;;  %v10187_v15 = vor.u32 %v8805_v31, %v7822_v60  ;;  %v7246_v25 = vld [vmem:[#allocation14 + $0x298] sm:$0xf] }
 0x157   : > { %2786 = vmatpush.bf16.msra.mxu0 %v10149_v62  ;;  %2799 = vmatpush.bf16.msra.mxu1 %v10151_v30  ;;  %13698 = vst [vmem:[#allocation135_spill] sm:$0xff] %v10163_v61  ;;  %v10173_v62 = vor.u32 %v8821_v7, %v7886_v42  ;;  %v7310_v30 = vld [vmem:[#allocation14 + $0x318] sm:$0xf]  ;;  %v8797_v52 = vld [vmem:[#allocation14 + $0x71c] sm:$0xf]  ;;  %v10191_v7 = vor.u32 %v8669_v12, %v7312_v6 }
 0x158   : > { %2812 = vmatpush.bf16.msra.mxu2 %v10155_v24  ;;  %2825 = vmatpush.bf16.msra.mxu3 %v10157_v49  ;;  %13700 = vst [vmem:[#allocation137_spill] sm:$0xff] %v10169_v21  ;;  %v7824_v11 = vld [vmem:[#allocation14 + $0x758] sm:$0xf0]  ;;  %v10185_v1 = vor.u32 %v8677_v13, %v7310_v30  ;;  %v8661_v42 = vld [vmem:[#allocation14 + $0x2d4] sm:$0xf0] }
 0x159   : > { %13701 = vst [vmem:[#allocation138_spill] sm:$0xff] %v10171_v40  ;;  %v10193_v54 = vor.u32 %v8797_v52, %v7824_v11  ;;  %v7758_v47 = vld [vmem:[#allocation14 + $0x698] sm:$0xf]  ;;  %v8653_v45 = vld [vmem:[#allocation14 + $0x29c] sm:$0xf]  ;;  %v10201_v12 = vor.u32 %v8661_v42, %v7246_v25 }
 0x15a   : > { %13702 = vst [vmem:[#allocation139_spill] sm:$0xff] %v10173_v62  ;;  %v8789_v53 = vld [vmem:[#allocation14 + $0x6d4] sm:$0xf0]  ;;  %v7248_v30 = vld [vmem:[#allocation14 + $0x2d8] sm:$0xf0] }
 0x15b   : > { %13703 = vst [vmem:[#allocation140_spill] sm:$0xff] %v10175_v17  ;;  %2787 = vmatpush.bf16.msra.mxu0 %v10161_v19  ;;  %2800 = vmatpush.bf16.msra.mxu1 %v10163_v61  ;;  %v8781_v31 = vld [vmem:[#allocation14 + $0x69c] sm:$0xf]  ;;  %v10203_v60 = vor.u32 %v8789_v53, %v7758_v47  ;;  %v7182_v6 = vld [vmem:[#allocation14 + $0x218] sm:$0xf]  ;;  %v10207_v11 = vor.u32 %v8653_v45, %v7248_v30 }
 0x15c   : > { %13704 = vst [vmem:[#allocation141_spill] sm:$0xff] %v10177_v5  ;;  %2813 = vmatpush.bf16.msra.mxu2 %v10167_v57  ;;  %2826 = vmatpush.bf16.msra.mxu3 %v10169_v21  ;;  %v7760_v13 = vld [vmem:[#allocation14 + $0x6d8] sm:$0xf0]  ;;  %v8645_v52 = vld [vmem:[#allocation14 + $0x254] sm:$0xf0] }
 0x15d   : > { %13705 = vst [vmem:[#allocation142_spill] sm:$0xff] %v10185_v1  ;;  %v8773_v21 = vld [vmem:[#allocation14 + $0x654] sm:$0xf0]  ;;  %v8637_v61 = vld [vmem:[#allocation14 + $0x21c] sm:$0xf]  ;;  %v10213_v25 = vor.u32 %v8645_v52, %v7182_v6 }
 0x15e   : > { %13706 = vst [vmem:[#allocation143_spill] sm:$0xff] %v10187_v15  ;;  %2788 = vmatmul.bf16.vlgmr.msra.gmra.mxu0 %v10067_v14  ;;  %2801 = vmatmul.bf16.vlgmr.msra.gmra.mxu1 %v10073_v35  ;;  %v8765_v49 = vld [vmem:[#allocation14 + $0x61c] sm:$0xf]  ;;  %v7118_v47 = vld [vmem:[#allocation14 + $0x198] sm:$0xf] }
 0x15f   : > { %2832 = vmatpush.bf16.msrb.mxu0 %v10171_v40  ;;  %2845 = vmatpush.bf16.msrb.mxu1 %v10173_v62  ;;  %13707 = vst [vmem:[#allocation144_spill] sm:$0xff] %v10191_v7  ;;  %v7694_v62 = vld [vmem:[#allocation14 + $0x618] sm:$0xf]  ;;  %v8806_v19 = vld [vmem:[#allocation14 + $0x75c] sm:$0xf0] }
 0x160   : > { %2858 = vmatpush.bf16.msrb.mxu2 %v10175_v17  ;;  %2871 = vmatpush.bf16.msrb.mxu3 %v10177_v5  ;;  %13708 = vst [vmem:[#allocation145_spill] sm:$0xff] %v10193_v54  ;;  %v10209_v5 = vor.u32 %v8781_v31, %v7760_v13  ;;  %v10215_v42 = vor.u32 %v8773_v21, %v7694_v62  ;;  %v8629_v53 = vld [vmem:[#allocation14 + $0x1d4] sm:$0xf0]  ;;  %v7440_v17 = vld [vmem:[#allocation14 + $0x458] sm:$0xf0] }
 0x161   : > { %2814 = vmatmul.bf16.vlgmr.msra.gmra.mxu2 %v10067_v14  ;;  %2827 = vmatmul.bf16.vlgmr.msra.gmra.mxu3 %v10073_v35  ;;  %13709 = vst [vmem:[#allocation146_spill] sm:$0xff] %v10201_v12  ;;  %v7630_v31 = vld [vmem:[#allocation14 + $0x598] sm:$0xf]  ;;  %v10225_v21 = vor.u32 %v8629_v53, %v7118_v47  ;;  %v8670_v24 = vld [vmem:[#allocation14 + $0x324] sm:$0xf] }
 0x162   : > { %13710 = vst [vmem:[#allocation147_spill] sm:$0xff] %v10203_v60  ;;  %v8757_v13 = vld [vmem:[#allocation14 + $0x5d4] sm:$0xf0] }
 0x163   : > { %2833 = vmatpush.bf16.msrb.mxu0 %v10185_v1  ;;  %2846 = vmatpush.bf16.msrb.mxu1 %v10187_v15  ;;  %13711 = vst [vmem:[#allocation148_spill] sm:$0xff] %v10207_v11  ;;  %v7184_v1 = vld [vmem:[#allocation14 + $0x258] sm:$0xf0]  ;;  %v10227_v62 = vor.u32 %v8757_v13, %v7630_v31  ;;  %v7054_v6 = vld [vmem:[#allocation14 + $0x118] sm:$0xf] }
 0x164   : > { %2859 = vmatpush.bf16.msrb.mxu2 %v10191_v7  ;;  %2872 = vmatpush.bf16.msrb.mxu3 %v10193_v54  ;;  %13712 = vst [vmem:[#allocation149_spill] sm:$0xff] %v10209_v5  ;;  %v7696_v15 = vld [vmem:[#allocation14 + $0x658] sm:$0xf0]  ;;  %v10219_v45 = vor.u32 %v8637_v61, %v7184_v1  ;;  %v8613_v52 = vld [vmem:[#allocation14 + $0x154] sm:$0xf0] }
 0x165   : > { %13713 = vst [vmem:[#allocation150_spill] sm:$0xff] %v10213_v25  ;;  %v10221_v30 = vor.u32 %v8765_v49, %v7696_v15  ;;  %v8621_v54 = vld [vmem:[#allocation14 + $0x19c] sm:$0xf]  ;;  %v7566_v1 = vld [vmem:[#allocation14 + $0x518] sm:$0xf]  ;;  %v10237_v47 = vor.u32 %v8613_v52, %v7054_v6 }
 0x166   : > { %13714 = vst [vmem:[#allocation151_spill] sm:$0xff] %v10215_v42  ;;  %v8749_v7 = vld [vmem:[#allocation14 + $0x59c] sm:$0xf]  ;;  %v8741_v15 = vld [vmem:[#allocation14 + $0x554] sm:$0xf0] }
 0x167   : > { %2834 = vmatpush.bf16.msrb.mxu0 %v10201_v12  ;;  %2847 = vmatpush.bf16.msrb.mxu1 %v10203_v60  ;;  %13715 = vst [vmem:[#allocation152_spill] sm:$0xff] %v10219_v45  ;;  %v7120_v12 = vld [vmem:[#allocation14 + $0x1d8] sm:$0xf0]  ;;  %v10239_v53 = vor.u32 %v8741_v15, %v7566_v1  ;;  %v6990_v31 = vld [vmem:[#allocation14 + $0x98] sm:$0xf] }
 0x168   : > { %2860 = vmatpush.bf16.msrb.mxu2 %v10207_v11  ;;  %2873 = vmatpush.bf16.msrb.mxu3 %v10209_v5  ;;  %13716 = vst [vmem:[#allocation153_spill] sm:$0xff] %v10221_v30  ;;  %v7632_v60 = vld [vmem:[#allocation14 + $0x5d8] sm:$0xf0]  ;;  %v10231_v61 = vor.u32 %v8621_v54, %v7120_v12  ;;  %v8597_v13 = vld [vmem:[#allocation14 + $0xd4] sm:$0xf0] }
 0x169   : > { %13717 = vst [vmem:[#allocation154_spill] sm:$0xff] %v10225_v21  ;;  %v10233_v49 = vor.u32 %v8749_v7, %v7632_v60  ;;  %v8605_v5 = vld [vmem:[#allocation14 + $0x11c] sm:$0xf]  ;;  %v7502_v12 = vld [vmem:[#allocation14 + $0x498] sm:$0xf]  ;;  %v10249_v52 = vor.u32 %v8597_v13, %v6990_v31 }
 0x16a   : > { %13718 = vst [vmem:[#allocation155_spill] sm:$0xff] %v10227_v62  ;;  %v8733_v11 = vld [vmem:[#allocation14 + $0x51c] sm:$0xf]  ;;  %v8725_v60 = vld [vmem:[#allocation14 + $0x4d4] sm:$0xf0] }
 0x16b   : > { %2835 = vmatpush.bf16.msrb.mxu0 %v10213_v25  ;;  %2848 = vmatpush.bf16.msrb.mxu1 %v10215_v42  ;;  %13719 = vst [vmem:[#allocation156_spill] sm:$0xff] %v10231_v61  ;;  %v7056_v25 = vld [vmem:[#allocation14 + $0x158] sm:$0xf0]  ;;  %v6926_v6 = vld [vmem:[#allocation14 + $0x18] sm:$0xf]  ;;  %v10251_v1 = vor.u32 %v8725_v60, %v7502_v12 }
 0x16c   : > { %2861 = vmatpush.bf16.msrb.mxu2 %v10219_v45  ;;  %2874 = vmatpush.bf16.msrb.mxu3 %v10221_v30  ;;  %13720 = vst [vmem:[#allocation157_spill] sm:$0xff] %v10233_v49  ;;  %v7568_v42 = vld [vmem:[#allocation14 + $0x558] sm:$0xf0]  ;;  %v10243_v7 = vor.u32 %v8605_v5, %v7056_v25  ;;  %v8581_v15 = vld [vmem:[#allocation14 + $0x54] sm:$0xf0] }
 0x16d   : > { %13721 = vst [vmem:[#allocation158_spill] sm:$0xff] %v10237_v47  ;;  %v10245_v54 = vor.u32 %v8733_v11, %v7568_v42  ;;  %v8589_v30 = vld [vmem:[#allocation14 + $0x9c] sm:$0xf]  ;;  %v7438_v5 = vld [vmem:[#allocation14 + $0x418] sm:$0xf] }
 0x16e   : > { %13722 = vst [vmem:[#allocation159_spill] sm:$0xff] %v10239_v53  ;;  %v8717_v45 = vld [vmem:[#allocation14 + $0x49c] sm:$0xf]  ;;  %v8709_v25 = vld [vmem:[#allocation14 + $0x454] sm:$0xf0] }
 0x16f   : > { %2836 = vmatpush.bf16.msrb.mxu0 %v10225_v21  ;;  %2849 = vmatpush.bf16.msrb.mxu1 %v10227_v62  ;;  %13723 = vst [vmem:[#allocation160_spill] sm:$0xff] %v10243_v7  ;;  %v6992_v21 = vld [vmem:[#allocation14 + $0xd8] sm:$0xf0]  ;;  %v8694_v31 = vld [vmem:[#allocation14 + $0x3dc] sm:$0xf0] }
 0x170   : > { %2862 = vmatpush.bf16.msrb.mxu2 %v10231_v61  ;;  %2875 = vmatpush.bf16.msrb.mxu3 %v10233_v49  ;;  %13724 = vst [vmem:[#allocation161_spill] sm:$0xff] %v10245_v54  ;;  %v7504_v62 = vld [vmem:[#allocation14 + $0x4d8] sm:$0xf0]  ;;  %v10255_v11 = vor.u32 %v8589_v30, %v6992_v21  ;;  %v7894_v13 = vld [vmem:[#allocation14 + $0x7a0] sm:$0xf] }
 0x171   : > { %13725 = vst [vmem:[#allocation162_spill] sm:$0xff] %v10249_v52  ;;  %v10257_v42 = vor.u32 %v8717_v45, %v7504_v62  ;;  %v8573_v49 = vld [vmem:[#allocation14 + $0x1c] sm:$0xf]  ;;  %v8822_v12 = vld [vmem:[#allocation14 + $0x7dc] sm:$0xf0] }
 0x172   : > { %13726 = vst [vmem:[#allocation163_spill] sm:$0xff] %v10251_v1  ;;  %v6928_v61 = vld [vmem:[#allocation14 + $0x58] sm:$0xf0]  ;;  %v8686_v60 = vld [vmem:[#allocation14 + $0x3a4] sm:$0xf] }
 0x173   : > { %2837 = vmatpush.bf16.msrb.mxu0 %v10237_v47  ;;  %2850 = vmatpush.bf16.msrb.mxu1 %v10239_v53  ;;  %13727 = vst [vmem:[#allocation164_spill] sm:$0xff] %v10255_v11  ;;  %v8701_v47 = vld [vmem:[#allocation14 + $0x41c] sm:$0xf]  ;;  %v7382_v53 = vld [vmem:[#allocation14 + $0x3a0] sm:$0xf]  ;;  %v10267_v62 = vor.u32 %v8573_v49, %v6928_v61 }
 0x174   : > { %2863 = vmatpush.bf16.msrb.mxu2 %v10243_v7  ;;  %2876 = vmatpush.bf16.msrb.mxu3 %v10245_v54  ;;  %13728 = vst [vmem:[#allocation165_spill] sm:$0xff] %v10257_v42  ;;  %v10261_v7 = vor.u32 %v8581_v15, %v6926_v6  ;;  %v10263_v54 = vor.u32 %v8709_v25, %v7438_v5  ;;  %v7384_v30 = vld [vmem:[#allocation14 + $0x3e0] sm:$0xf0]  ;;  %v8678_v6 = vld [vmem:[#allocation14 + $0x35c] sm:$0xf0] }
 0x175   : > { %v8814_v45 = vld [vmem:[#allocation14 + $0x7a4] sm:$0xf]  ;;  %13731 = vst [vmem:[#allocation168_spill] sm:$0xff] %v10267_v62  ;;  %v10269_v40 = vor.u32 %v8701_v47, %v7440_v17  ;;  %v10271_v57 = vor.u32 %v8694_v31, %v7382_v53  ;;  %v10275_v15 = vor.u32 %v8686_v60, %v7384_v30  ;;  %v7830_v25 = vld [vmem:[#allocation14 + $0x720] sm:$0xf] }
 0x176   : > { %13729 = vst [vmem:[#allocation166_spill] sm:$0xff] %v10261_v7  ;;  %v7896_v21 = vld [vmem:[#allocation14 + $0x7e0] sm:$0xf0]  ;;  %v10287_v53 = vor.u32 %v8806_v19, %v7830_v25  ;;  %v7254_v31 = vld [vmem:[#allocation14 + $0x2a0] sm:$0xf] }
 0x177   : > { %2838 = vmatpush.bf16.msrb.mxu0 %v10249_v52  ;;  %2851 = vmatpush.bf16.msrb.mxu1 %v10251_v1  ;;  %13730 = vst [vmem:[#allocation167_spill] sm:$0xff] %v10263_v54  ;;  %v10273_v52 = vor.u32 %v8822_v12, %v7894_v13  ;;  %v7318_v1 = vld [vmem:[#allocation14 + $0x320] sm:$0xf]  ;;  %v10277_v5 = vor.u32 %v8814_v45, %v7896_v21  ;;  %v7320_v61 = vld [vmem:[#allocation14 + $0x360] sm:$0xf0] }
 0x178   : > { %2864 = vmatpush.bf16.msrb.mxu2 %v10255_v11  ;;  %2877 = vmatpush.bf16.msrb.mxu3 %v10257_v42  ;;  %13732 = vst [vmem:[#allocation169_spill] sm:$0xff] %v10269_v40  ;;  %v8798_v17 = vld [vmem:[#allocation14 + $0x724] sm:$0xf]  ;;  %v10285_v47 = vor.u32 %v8678_v6, %v7318_v1  ;;  %v8662_v13 = vld [vmem:[#allocation14 + $0x2dc] sm:$0xf0]  ;;  %v10291_v12 = vor.u32 %v8670_v24, %v7320_v61 }
 0x179   : > { %13733 = vst [vmem:[#allocation170_spill] sm:$0xff] %v10271_v57  ;;  %v7832_v49 = vld [vmem:[#allocation14 + $0x760] sm:$0xf0]  ;;  %v7766_v30 = vld [vmem:[#allocation14 + $0x6a0] sm:$0xf]  ;;  %v10301_v24 = vor.u32 %v8662_v13, %v7254_v31 }
 0x17a   : > { %13734 = vst [vmem:[#allocation171_spill] sm:$0xff] %v10273_v52  ;;  %v10293_v60 = vor.u32 %v8798_v17, %v7832_v49  ;;  %v8790_v45 = vld [vmem:[#allocation14 + $0x6dc] sm:$0xf0]  ;;  %v8654_v21 = vld [vmem:[#allocation14 + $0x2a4] sm:$0xf] }
 0x17b   : > { %13735 = vst [vmem:[#allocation172_spill] sm:$0xff] %v10275_v15  ;;  %2839 = vmatpush.bf16.msrb.mxu0 %v10261_v7  ;;  %2852 = vmatpush.bf16.msrb.mxu1 %v10263_v54  ;;  %v7256_v1 = vld [vmem:[#allocation14 + $0x2e0] sm:$0xf0]  ;;  %v10303_v25 = vor.u32 %v8790_v45, %v7766_v30  ;;  %v7190_v61 = vld [vmem:[#allocation14 + $0x220] sm:$0xf] }
 0x17c   : > { %13736 = vst [vmem:[#allocation173_spill] sm:$0xff] %v10277_v5  ;;  %2865 = vmatpush.bf16.msrb.mxu2 %v10267_v62  ;;  %2878 = vmatpush.bf16.msrb.mxu3 %v10269_v40  ;;  %v8782_v19 = vld [vmem:[#allocation14 + $0x6a4] sm:$0xf]  ;;  %v8646_v17 = vld [vmem:[#allocation14 + $0x25c] sm:$0xf0]  ;;  %v10307_v49 = vor.u32 %v8654_v21, %v7256_v1 }
 0x17d   : > { %13737 = vst [vmem:[#allocation174_spill] sm:$0xff] %v10285_v47  ;;  %v7768_v6 = vld [vmem:[#allocation14 + $0x6e0] sm:$0xf0]  ;;  %v8774_v40 = vld [vmem:[#allocation14 + $0x65c] sm:$0xf0]  ;;  %v10313_v31 = vor.u32 %v8646_v17, %v7190_v61 }
 0x17e   : > { %13738 = vst [vmem:[#allocation175_spill] sm:$0xff] %v10287_v53  ;;  %2840 = vmatmul.bf16.vlgmr.msrb.gmra.mxu0 %v10067_v14  ;;  %2853 = vmatmul.bf16.vlgmr.msrb.gmra.mxu1 %v10073_v35  ;;  %v8638_v54 = vld [vmem:[#allocation14 + $0x224] sm:$0xf]  ;;  %v7126_v30 = vld [vmem:[#allocation14 + $0x1a0] sm:$0xf] }
 0x17f   : > { %2884 = vmatpush.bf16.msra.mxu0 %v10271_v57  ;;  %2897 = vmatpush.bf16.msra.mxu1 %v10273_v52  ;;  %13739 = vst [vmem:[#allocation176_spill] sm:$0xff] %v10291_v12  ;;  %v7702_v52 = vld [vmem:[#allocation14 + $0x620] sm:$0xf]  ;;  %v8766_v42 = vld [vmem:[#allocation14 + $0x624] sm:$0xf] }
 0x180   : > { %2910 = vmatpush.bf16.msra.mxu2 %v10275_v15  ;;  %2923 = vmatpush.bf16.msra.mxu3 %v10277_v5  ;;  %13740 = vst [vmem:[#allocation177_spill] sm:$0xff] %v10293_v60  ;;  %v10309_v5 = vor.u32 %v8782_v19, %v7768_v6  ;;  %v10315_v13 = vor.u32 %v8774_v40, %v7702_v52  ;;  %v8630_v45 = vld [vmem:[#allocation14 + $0x1dc] sm:$0xf0]  ;;  %v7448_v15 = vld [vmem:[#allocation14 + $0x460] sm:$0xf0] }
 0x181   : > { %2866 = vmatmul.bf16.vlgmr.msrb.gmra.mxu2 %v10067_v14  ;;  %2879 = vmatmul.bf16.vlgmr.msrb.gmra.mxu3 %v10073_v35  ;;  %13741 = vst [vmem:[#allocation178_spill] sm:$0xff] %v10301_v24  ;;  %v7638_v19 = vld [vmem:[#allocation14 + $0x5a0] sm:$0xf]  ;;  %v10325_v40 = vor.u32 %v8630_v45, %v7126_v30  ;;  %v8807_v7 = vld [vmem:[#allocation14 + $0x764] sm:$0xf0] }
 0x182   : > { %13742 = vst [vmem:[#allocation179_spill] sm:$0xff] %v10303_v25  ;;  %v8758_v6 = vld [vmem:[#allocation14 + $0x5dc] sm:$0xf0]  ;;  %v8671_v11 = vld [vmem:[#allocation14 + $0x32c] sm:$0xf] }
 0x183   : > { %2885 = vmatpush.bf16.msra.mxu0 %v10285_v47  ;;  %2898 = vmatpush.bf16.msra.mxu1 %v10287_v53  ;;  %13743 = vst [vmem:[#allocation180_spill] sm:$0xff] %v10307_v49  ;;  %v7192_v47 = vld [vmem:[#allocation14 + $0x260] sm:$0xf0]  ;;  %v10327_v52 = vor.u32 %v8758_v6, %v7638_v19  ;;  %v7062_v61 = vld [vmem:[#allocation14 + $0x120] sm:$0xf] }
 0x184   : > { %2911 = vmatpush.bf16.msra.mxu2 %v10291_v12  ;;  %2924 = vmatpush.bf16.msra.mxu3 %v10293_v60  ;;  %13744 = vst [vmem:[#allocation181_spill] sm:$0xff] %v10309_v5  ;;  %v7704_v53 = vld [vmem:[#allocation14 + $0x660] sm:$0xf0]  ;;  %v10319_v21 = vor.u32 %v8638_v54, %v7192_v47  ;;  %v8614_v17 = vld [vmem:[#allocation14 + $0x15c] sm:$0xf0] }
 0x185   : > { %13745 = vst [vmem:[#allocation182_spill] sm:$0xff] %v10313_v31  ;;  %v10321_v1 = vor.u32 %v8766_v42, %v7704_v53  ;;  %v8622_v60 = vld [vmem:[#allocation14 + $0x1a4] sm:$0xf]  ;;  %v7574_v47 = vld [vmem:[#allocation14 + $0x520] sm:$0xf]  ;;  %v10337_v30 = vor.u32 %v8614_v17, %v7062_v61 }
 0x186   : > { %13746 = vst [vmem:[#allocation183_spill] sm:$0xff] %v10315_v13  ;;  %v8750_v12 = vld [vmem:[#allocation14 + $0x5a4] sm:$0xf]  ;;  %v8742_v53 = vld [vmem:[#allocation14 + $0x55c] sm:$0xf0] }
 0x187   : > { %2886 = vmatpush.bf16.msra.mxu0 %v10301_v24  ;;  %2899 = vmatpush.bf16.msra.mxu1 %v10303_v25  ;;  %13747 = vst [vmem:[#allocation184_spill] sm:$0xff] %v10319_v21  ;;  %v7128_v24 = vld [vmem:[#allocation14 + $0x1e0] sm:$0xf0]  ;;  %v10339_v45 = vor.u32 %v8742_v53, %v7574_v47  ;;  %v6998_v19 = vld [vmem:[#allocation14 + $0xa0] sm:$0xf] }
 0x188   : > { %2912 = vmatpush.bf16.msra.mxu2 %v10307_v49  ;;  %2925 = vmatpush.bf16.msra.mxu3 %v10309_v5  ;;  %13748 = vst [vmem:[#allocation185_spill] sm:$0xff] %v10321_v1  ;;  %v7640_v25 = vld [vmem:[#allocation14 + $0x5e0] sm:$0xf0]  ;;  %v10331_v54 = vor.u32 %v8622_v60, %v7128_v24  ;;  %v8598_v6 = vld [vmem:[#allocation14 + $0xdc] sm:$0xf0] }
 0x189   : > { %13749 = vst [vmem:[#allocation186_spill] sm:$0xff] %v10325_v40  ;;  %v10333_v42 = vor.u32 %v8750_v12, %v7640_v25  ;;  %v8606_v5 = vld [vmem:[#allocation14 + $0x124] sm:$0xf]  ;;  %v7510_v24 = vld [vmem:[#allocation14 + $0x4a0] sm:$0xf]  ;;  %v10349_v17 = vor.u32 %v8598_v6, %v6998_v19 }
 0x18a   : > { %13750 = vst [vmem:[#allocation187_spill] sm:$0xff] %v10327_v52  ;;  %v8734_v49 = vld [vmem:[#allocation14 + $0x524] sm:$0xf]  ;;  %v8726_v25 = vld [vmem:[#allocation14 + $0x4dc] sm:$0xf0] }
 0x18b   : > { %2887 = vmatpush.bf16.msra.mxu0 %v10313_v31  ;;  %2900 = vmatpush.bf16.msra.mxu1 %v10315_v13  ;;  %13751 = vst [vmem:[#allocation188_spill] sm:$0xff] %v10331_v54  ;;  %v7064_v31 = vld [vmem:[#allocation14 + $0x160] sm:$0xf0]  ;;  %v6934_v61 = vld [vmem:[#allocation14 + $0x20] sm:$0xf]  ;;  %v10351_v47 = vor.u32 %v8726_v25, %v7510_v24 }
 0x18c   : > { %2913 = vmatpush.bf16.msra.mxu2 %v10319_v21  ;;  %2926 = vmatpush.bf16.msra.mxu3 %v10321_v1  ;;  %13752 = vst [vmem:[#allocation189_spill] sm:$0xff] %v10333_v42  ;;  %v7576_v13 = vld [vmem:[#allocation14 + $0x560] sm:$0xf0]  ;;  %v10343_v12 = vor.u32 %v8606_v5, %v7064_v31  ;;  %v8582_v53 = vld [vmem:[#allocation14 + $0x5c] sm:$0xf0] }
 0x18d   : > { %13753 = vst [vmem:[#allocation190_spill] sm:$0xff] %v10337_v30  ;;  %v10345_v60 = vor.u32 %v8734_v49, %v7576_v13  ;;  %v8590_v1 = vld [vmem:[#allocation14 + $0xa4] sm:$0xf]  ;;  %v7446_v5 = vld [vmem:[#allocation14 + $0x420] sm:$0xf] }
 0x18e   : > { %13754 = vst [vmem:[#allocation191_spill] sm:$0xff] %v10339_v45  ;;  %v8718_v21 = vld [vmem:[#allocation14 + $0x4a4] sm:$0xf]  ;;  %v8710_v31 = vld [vmem:[#allocation14 + $0x45c] sm:$0xf0] }
 0x18f   : > { %2888 = vmatpush.bf16.msra.mxu0 %v10325_v40  ;;  %2901 = vmatpush.bf16.msra.mxu1 %v10327_v52  ;;  %13755 = vst [vmem:[#allocation192_spill] sm:$0xff] %v10343_v12  ;;  %v7000_v40 = vld [vmem:[#allocation14 + $0xe0] sm:$0xf0]  ;;  %v8695_v19 = vld [vmem:[#allocation14 + $0x3e4] sm:$0xf0] }
 0x190   : > { %2914 = vmatpush.bf16.msra.mxu2 %v10331_v54  ;;  %2927 = vmatpush.bf16.msra.mxu3 %v10333_v42  ;;  %13756 = vst [vmem:[#allocation193_spill] sm:$0xff] %v10345_v60  ;;  %v7512_v52 = vld [vmem:[#allocation14 + $0x4e0] sm:$0xf0]  ;;  %v10355_v49 = vor.u32 %v8590_v1, %v7000_v40  ;;  %v7902_v6 = vld [vmem:[#allocation14 + $0x7a8] sm:$0xf] }
 0x191   : > { %13757 = vst [vmem:[#allocation194_spill] sm:$0xff] %v10349_v17  ;;  %v10357_v13 = vor.u32 %v8718_v21, %v7512_v52  ;;  %v8574_v42 = vld [vmem:[#allocation14 + $0x24] sm:$0xf]  ;;  %v8823_v24 = vld [vmem:[#allocation14 + $0x7e4] sm:$0xf0] }
 0x192   : > { %13758 = vst [vmem:[#allocation195_spill] sm:$0xff] %v10351_v47  ;;  %v6936_v54 = vld [vmem:[#allocation14 + $0x60] sm:$0xf0]  ;;  %v8687_v25 = vld [vmem:[#allocation14 + $0x3ac] sm:$0xf] }
 0x193   : > { %2889 = vmatpush.bf16.msra.mxu0 %v10337_v30  ;;  %2902 = vmatpush.bf16.msra.mxu1 %v10339_v45  ;;  %13759 = vst [vmem:[#allocation196_spill] sm:$0xff] %v10355_v49  ;;  %v8702_v30 = vld [vmem:[#allocation14 + $0x424] sm:$0xf]  ;;  %v7390_v45 = vld [vmem:[#allocation14 + $0x3a8] sm:$0xf]  ;;  %v10367_v52 = vor.u32 %v8574_v42, %v6936_v54 }
 0x194   : > { %2915 = vmatpush.bf16.msra.mxu2 %v10343_v12  ;;  %2928 = vmatpush.bf16.msra.mxu3 %v10345_v60  ;;  %13760 = vst [vmem:[#allocation197_spill] sm:$0xff] %v10357_v13  ;;  %v10361_v12 = vor.u32 %v8582_v53, %v6934_v61  ;;  %v10363_v60 = vor.u32 %v8710_v31, %v7446_v5  ;;  %v7392_v1 = vld [vmem:[#allocation14 + $0x3e8] sm:$0xf0]  ;;  %v8679_v61 = vld [vmem:[#allocation14 + $0x364] sm:$0xf0] }
 0x195   : > { %v8815_v21 = vld [vmem:[#allocation14 + $0x7ac] sm:$0xf]  ;;  %13763 = vst [vmem:[#allocation200_spill] sm:$0xff] %v10367_v52  ;;  %v10369_v57 = vor.u32 %v8702_v30, %v7448_v15  ;;  %v10371_v62 = vor.u32 %v8695_v19, %v7390_v45  ;;  %v10375_v53 = vor.u32 %v8687_v25, %v7392_v1  ;;  %v7838_v31 = vld [vmem:[#allocation14 + $0x728] sm:$0xf] }
 0x196   : > { %13761 = vst [vmem:[#allocation198_spill] sm:$0xff] %v10361_v12  ;;  %v7904_v40 = vld [vmem:[#allocation14 + $0x7e8] sm:$0xf0]  ;;  %v10387_v45 = vor.u32 %v8807_v7, %v7838_v31  ;;  %v7262_v19 = vld [vmem:[#allocation14 + $0x2a8] sm:$0xf] }
 0x197   : > { %2890 = vmatpush.bf16.msra.mxu0 %v10349_v17  ;;  %2903 = vmatpush.bf16.msra.mxu1 %v10351_v47  ;;  %13762 = vst [vmem:[#allocation199_spill] sm:$0xff] %v10363_v60  ;;  %v10373_v17 = vor.u32 %v8823_v24, %v7902_v6  ;;  %v7326_v47 = vld [vmem:[#allocation14 + $0x328] sm:$0xf]  ;;  %v10377_v5 = vor.u32 %v8815_v21, %v7904_v40  ;;  %v7328_v54 = vld [vmem:[#allocation14 + $0x368] sm:$0xf0] }
 0x198   : > { %2916 = vmatpush.bf16.msra.mxu2 %v10355_v49  ;;  %2929 = vmatpush.bf16.msra.mxu3 %v10357_v13  ;;  %13764 = vst [vmem:[#allocation201_spill] sm:$0xff] %v10369_v57  ;;  %v8799_v15 = vld [vmem:[#allocation14 + $0x72c] sm:$0xf]  ;;  %v10385_v30 = vor.u32 %v8679_v61, %v7326_v47  ;;  %v8663_v6 = vld [vmem:[#allocation14 + $0x2e4] sm:$0xf0]  ;;  %v10391_v24 = vor.u32 %v8671_v11, %v7328_v54 }
 0x199   : > { %13765 = vst [vmem:[#allocation202_spill] sm:$0xff] %v10371_v62  ;;  %v7840_v42 = vld [vmem:[#allocation14 + $0x768] sm:$0xf0]  ;;  %v7774_v1 = vld [vmem:[#allocation14 + $0x6a8] sm:$0xf]  ;;  %v10401_v11 = vor.u32 %v8663_v6, %v7262_v19  ;;  %v10411_v19 = vpop.f32.mrf.mxu0  ;;  %v10413_v6 = vpop.f32.mrf.mxu1 }
 0x19a   : > { %13766 = vst [vmem:[#allocation203_spill] sm:$0xff] %v10373_v17  ;;  %v10393_v25 = vor.u32 %v8799_v15, %v7840_v42  ;;  %v8791_v21 = vld [vmem:[#allocation14 + $0x6e4] sm:$0xf0]  ;;  %v8655_v40 = vld [vmem:[#allocation14 + $0x2ac] sm:$0xf] }
 0x19b   : > { %13767 = vst [vmem:[#allocation204_spill] sm:$0xff] %v10375_v53  ;;  %2891 = vmatpush.bf16.msra.mxu0 %v10361_v12  ;;  %2904 = vmatpush.bf16.msra.mxu1 %v10363_v60  ;;  %v7264_v47 = vld [vmem:[#allocation14 + $0x2e8] sm:$0xf0]  ;;  %v10403_v31 = vor.u32 %v8791_v21, %v7774_v1  ;;  %v7198_v54 = vld [vmem:[#allocation14 + $0x228] sm:$0xf] }
 0x19c   : > { %13768 = vst [vmem:[#allocation205_spill] sm:$0xff] %v10377_v5  ;;  %2917 = vmatpush.bf16.msra.mxu2 %v10367_v52  ;;  %2930 = vmatpush.bf16.msra.mxu3 %v10369_v57  ;;  %v8783_v7 = vld [vmem:[#allocation14 + $0x6ac] sm:$0xf]  ;;  %v8647_v15 = vld [vmem:[#allocation14 + $0x264] sm:$0xf0]  ;;  %v10407_v42 = vor.u32 %v8655_v40, %v7264_v47 }
 0x19d   : > { %13769 = vst [vmem:[#allocation206_spill] sm:$0xff] %v10385_v30  ;;  %v7776_v61 = vld [vmem:[#allocation14 + $0x6e8] sm:$0xf0]  ;;  %v8775_v57 = vld [vmem:[#allocation14 + $0x664] sm:$0xf0]  ;;  %v10417_v1 = vor.u32 %v8647_v15, %v7198_v54 }
 0x19e   : > { %13770 = vst [vmem:[#allocation207_spill] sm:$0xff] %v10387_v45  ;;  %2892 = vmatmul.bf16.vlgmr.msra.gmra.mxu0 %v10067_v14  ;;  %2905 = vmatmul.bf16.vlgmr.msra.gmra.mxu1 %v10073_v35  ;;  %v8639_v60 = vld [vmem:[#allocation14 + $0x22c] sm:$0xf]  ;;  %v7134_v40 = vld [vmem:[#allocation14 + $0x1a8] sm:$0xf] }
 0x19f   : > { %2936 = vmatpush.bf16.msrb.mxu0 %v10371_v62  ;;  %2949 = vmatpush.bf16.msrb.mxu1 %v10373_v17  ;;  %13771 = vst [vmem:[#allocation208_spill] sm:$0xff] %v10391_v24  ;;  %v7710_v17 = vld [vmem:[#allocation14 + $0x628] sm:$0xf]  ;;  %v8767_v13 = vld [vmem:[#allocation14 + $0x62c] sm:$0xf] }
 0x1a0   : > { %2962 = vmatpush.bf16.msrb.mxu2 %v10375_v53  ;;  %2975 = vmatpush.bf16.msrb.mxu3 %v10377_v5  ;;  %13772 = vst [vmem:[#allocation209_spill] sm:$0xff] %v10393_v25  ;;  %v10409_v5 = vor.u32 %v8783_v7, %v7776_v61  ;;  %v10419_v21 = vor.u32 %v8775_v57, %v7710_v17  ;;  %v8631_v47 = vld [vmem:[#allocation14 + $0x1e4] sm:$0xf0]  ;;  %v8623_v53 = vld [vmem:[#allocation14 + $0x1ac] sm:$0xf] }
 0x1a1   : > { %2918 = vmatmul.bf16.vlgmr.msra.gmra.mxu2 %v10067_v14  ;;  %2931 = vmatmul.bf16.vlgmr.msra.gmra.mxu3 %v10073_v35  ;;  %13773 = vst [vmem:[#allocation210_spill] sm:$0xff] %v10401_v11  ;;  %v8751_v62 = vld [vmem:[#allocation14 + $0x5ac] sm:$0xf]  ;;  %v10429_v57 = vor.u32 %v8631_v47, %v7134_v40  ;;  %v7070_v54 = vld [vmem:[#allocation14 + $0x128] sm:$0xf]  ;;  %v10443_v47 = vpop.f32.mrf.mxu0 }
 0x1a2   : > { %13774 = vst [vmem:[#allocation211_spill] sm:$0xff] %v10403_v31  ;;  %v8615_v15 = vld [vmem:[#allocation14 + $0x164] sm:$0xf0]  ;;  %v7072_v40 = vld [vmem:[#allocation14 + $0x168] sm:$0xf0] }
 0x1a3   : > { %2937 = vmatpush.bf16.msrb.mxu0 %v10385_v30  ;;  %2950 = vmatpush.bf16.msrb.mxu1 %v10387_v45  ;;  %13775 = vst [vmem:[#allocation212_spill] sm:$0xff] %v10407_v42  ;;  %v7200_v30 = vld [vmem:[#allocation14 + $0x268] sm:$0xf0]  ;;  %v7910_v49 = vld [vmem:[#allocation14 + $0x7b0] sm:$0xf] }
 0x1a4   : > { %2963 = vmatpush.bf16.msrb.mxu2 %v10391_v24  ;;  %2976 = vmatpush.bf16.msrb.mxu3 %v10393_v25  ;;  %13776 = vst [vmem:[#allocation213_spill] sm:$0xff] %v10409_v5  ;;  %v7712_v45 = vld [vmem:[#allocation14 + $0x668] sm:$0xf0]  ;;  %v10423_v7 = vor.u32 %v8639_v60, %v7200_v30  ;;  %v7646_v25 = vld [vmem:[#allocation14 + $0x5a8] sm:$0xf]  ;;  %v10433_v60 = vpop.f32.mrf.mxu2 }
 0x1a5   : > { %13777 = vst [vmem:[#allocation214_spill] sm:$0xff] %v10417_v1  ;;  %v10425_v61 = vor.u32 %v8767_v13, %v7712_v45  ;;  %v8759_v24 = vld [vmem:[#allocation14 + $0x5e4] sm:$0xf0]  ;;  %v8591_v52 = vld [vmem:[#allocation14 + $0xac] sm:$0xf] }
 0x1a6   : > { %13778 = vst [vmem:[#allocation215_spill] sm:$0xff] %v10419_v21  ;;  %v10431_v17 = vor.u32 %v8759_v24, %v7646_v25  ;;  %v7582_v45 = vld [vmem:[#allocation14 + $0x528] sm:$0xf]  ;;  %v8735_v24 = vld [vmem:[#allocation14 + $0x52c] sm:$0xf] }
 0x1a7   : > { %2938 = vmatpush.bf16.msrb.mxu0 %v10401_v11  ;;  %2951 = vmatpush.bf16.msrb.mxu1 %v10403_v31  ;;  %13779 = vst [vmem:[#allocation216_spill] sm:$0xff] %v10423_v7  ;;  %v7136_v11 = vld [vmem:[#allocation14 + $0x1e8] sm:$0xf0] }
 0x1a8   : > { %2964 = vmatpush.bf16.msrb.mxu2 %v10407_v42  ;;  %2977 = vmatpush.bf16.msrb.mxu3 %v10409_v5  ;;  %13780 = vst [vmem:[#allocation217_spill] sm:$0xff] %v10425_v61  ;;  %v7648_v31 = vld [vmem:[#allocation14 + $0x5e8] sm:$0xf0]  ;;  %v10437_v13 = vor.u32 %v8623_v53, %v7136_v11  ;;  %v8743_v5 = vld [vmem:[#allocation14 + $0x564] sm:$0xf0]  ;;  %v10449_v53 = vor.u32 %v8615_v15, %v7070_v54 }
 0x1a9   : > { %13781 = vst [vmem:[#allocation218_spill] sm:$0xff] %v10429_v57  ;;  %v10439_v30 = vor.u32 %v8751_v62, %v7648_v31  ;;  %v7584_v25 = vld [vmem:[#allocation14 + $0x568] sm:$0xf0]  ;;  %v10451_v62 = vor.u32 %v8743_v5, %v7582_v45  ;;  %v7006_v11 = vld [vmem:[#allocation14 + $0xa8] sm:$0xf] }
 0x1aa   : > { %13782 = vst [vmem:[#allocation219_spill] sm:$0xff] %v10431_v17  ;;  %v8599_v31 = vld [vmem:[#allocation14 + $0xe4] sm:$0xf0]  ;;  %v10457_v42 = vor.u32 %v8735_v24, %v7584_v25  ;;  %v8719_v12 = vld [vmem:[#allocation14 + $0x4ac] sm:$0xf] }
 0x1ab   : > { %2939 = vmatpush.bf16.msrb.mxu0 %v10417_v1  ;;  %2952 = vmatpush.bf16.msrb.mxu1 %v10419_v21  ;;  %13783 = vst [vmem:[#allocation220_spill] sm:$0xff] %v10437_v13  ;;  %v8607_v1 = vld [vmem:[#allocation14 + $0x12c] sm:$0xf]  ;;  %v10441_v21 = vpop.f32.mrf.mxu3  ;;  %v6942_v54 = vld [vmem:[#allocation14 + $0x28] sm:$0xf]  ;;  %v10461_v5 = vor.u32 %v8599_v31, %v7006_v11 }
 0x1ac   : > { %2965 = vmatpush.bf16.msrb.mxu2 %v10423_v7  ;;  %2978 = vmatpush.bf16.msrb.mxu3 %v10425_v61  ;;  %13784 = vst [vmem:[#allocation221_spill] sm:$0xff] %v10439_v30  ;;  %v10447_v7 = vpop.f32.mrf.mxu1  ;;  %v10455_v61 = vor.u32 %v8607_v1, %v7072_v40  ;;  %v8583_v45 = vld [vmem:[#allocation14 + $0x64] sm:$0xf0]  ;;  %v10465_v24 = vpop.f32.mrf.mxu2  ;;  %v8696_v31 = vld [vmem:[#allocation14 + $0x3ec] sm:$0xf0] }
 0x1ad   : > { %13785 = vst [vmem:[#allocation222_spill] sm:$0xff] %v10443_v47  ;;  %v7518_v47 = vld [vmem:[#allocation14 + $0x4a8] sm:$0xf] }
 0x1ae   : > { %13786 = vst [vmem:[#allocation223_spill] sm:$0xff] %v10447_v7  ;;  %v7520_v7 = vld [vmem:[#allocation14 + $0x4e8] sm:$0xf0]  ;;  %v7454_v1 = vld [vmem:[#allocation14 + $0x428] sm:$0xf] }
 0x1af   : > { %2940 = vmatpush.bf16.msrb.mxu0 %v10429_v57  ;;  %2953 = vmatpush.bf16.msrb.mxu1 %v10431_v17  ;;  %13787 = vst [vmem:[#allocation224_spill] sm:$0xff] %v10449_v53  ;;  %v8727_v57 = vld [vmem:[#allocation14 + $0x4e4] sm:$0xf0]  ;;  %v7008_v17 = vld [vmem:[#allocation14 + $0xe8] sm:$0xf0] }
 0x1b0   : > { %13788 = vst [vmem:[#allocation225_spill] sm:$0xff] %v10451_v62  ;;  %2966 = vmatpush.bf16.msrb.mxu2 %v10437_v13  ;;  %2979 = vmatpush.bf16.msrb.mxu3 %v10439_v30  ;;  %v10463_v15 = vor.u32 %v8727_v57, %v7518_v47  ;;  %v8711_v40 = vld [vmem:[#allocation14 + $0x464] sm:$0xf0]  ;;  %v10469_v25 = vor.u32 %v8591_v52, %v7008_v17  ;;  %v6944_v13 = vld [vmem:[#allocation14 + $0x68] sm:$0xf0] }
 0x1b1   : > { %13789 = vst [vmem:[#allocation226_spill] sm:$0xff] %v10455_v61  ;;  %v10471_v30 = vor.u32 %v8719_v12, %v7520_v7  ;;  %v7456_v57 = vld [vmem:[#allocation14 + $0x468] sm:$0xf0]  ;;  %v7398_v47 = vld [vmem:[#allocation14 + $0x3b0] sm:$0xf]  ;;  %v10479_v52 = vor.u32 %v8711_v40, %v7454_v1 }
 0x1b2   : > { %13790 = vst [vmem:[#allocation227_spill] sm:$0xff] %v10457_v42  ;;  %v7400_v12 = vld [vmem:[#allocation14 + $0x3f0] sm:$0xf0]  ;;  %v8680_v1 = vld [vmem:[#allocation14 + $0x36c] sm:$0xf0] }
 0x1b3   : > { %2941 = vmatpush.bf16.msrb.mxu0 %v10449_v53  ;;  %2954 = vmatpush.bf16.msrb.mxu1 %v10451_v62  ;;  %13791 = vst [vmem:[#allocation228_spill] sm:$0xff] %v10461_v5  ;;  %v8575_v53 = vld [vmem:[#allocation14 + $0x2c] sm:$0xf]  ;;  %v10473_v11 = vpop.f32.mrf.mxu3  ;;  %v8816_v7 = vld [vmem:[#allocation14 + $0x7b4] sm:$0xf]  ;;  %v10495_v40 = vor.u32 %v8688_v22, %v7400_v12 }
 0x1b4   : > { %13792 = vst [vmem:[#allocation229_spill] sm:$0xff] %v10463_v15  ;;  %2967 = vmatpush.bf16.msrb.mxu2 %v10455_v61  ;;  %2980 = vmatpush.bf16.msrb.mxu3 %v10457_v42  ;;  %v8703_v62 = vld [vmem:[#allocation14 + $0x42c] sm:$0xf]  ;;  %v7912_v17 = vld [vmem:[#allocation14 + $0x7f0] sm:$0xf0]  ;;  %v10485_v42 = vor.u32 %v8575_v53, %v6944_v13 }
 0x1b5   : > { %13793 = vst [vmem:[#allocation230_spill] sm:$0xff] %v10465_v24  ;;  %v10477_v24 = vor.u32 %v8583_v45, %v6942_v54  ;;  %v10487_v61 = vor.u32 %v8703_v62, %v7456_v57  ;;  %v10493_v54 = vor.u32 %v8824_v8, %v7910_v49  ;;  %v7334_v45 = vld [vmem:[#allocation14 + $0x330] sm:$0xf]  ;;  %v10497_v16 = vor.u32 %v8816_v7, %v7912_v17  ;;  %v7336_v13 = vld [vmem:[#allocation14 + $0x370] sm:$0xf0] }
 0x1b6   : > { %13794 = vst [vmem:[#allocation231_spill] sm:$0xff] %v10469_v25  ;;  %v8800_v53 = vld [vmem:[#allocation14 + $0x734] sm:$0xf]  ;;  %v10505_v8 = vor.u32 %v8680_v1, %v7334_v45  ;;  %v7270_v49 = vld [vmem:[#allocation14 + $0x2b0] sm:$0xf]  ;;  %v894_v1 = vadd.f32 %v9912_v41, %v9945_v3 }
 0x1b7   : > { %13795 = vst [vmem:[#allocation232_spill] sm:$0xff] %v10471_v30  ;;  %2942 = vmatpush.bf16.msrb.mxu0 %v10461_v5  ;;  %2955 = vmatpush.bf16.msrb.mxu1 %v10463_v15  ;;  %v10489_v5 = vpop.f32.mrf.mxu1  ;;  %v10491_v15 = vor.u32 %v8696_v31, %v7398_v47  ;;  %v7848_v62 = vld [vmem:[#allocation14 + $0x770] sm:$0xf0]  ;;  %v8664_v57 = vld [vmem:[#allocation14 + $0x2ec] sm:$0xf0]  ;;  %v10509_v47 = vpop.f32.mrf.mxu2  ;;  %v10513_v31 = vor.u32 %v8672_v0, %v7336_v13 }
 0x1b8   : > { %13796 = vst [vmem:[#allocation233_spill] sm:$0xff] %v10473_v11  ;;  %2968 = vmatpush.bf16.msrb.mxu2 %v10469_v25  ;;  %2981 = vmatpush.bf16.msrb.mxu3 %v10471_v30  ;;  %v10483_v11 = vpop.f32.mrf.mxu0  ;;  %v7846_v25 = vld [vmem:[#allocation14 + $0x730] sm:$0xf]  ;;  %v10515_v12 = vor.u32 %v8800_v53, %v7848_v62  ;;  %v7784_v45 = vld [vmem:[#allocation14 + $0x6f0] sm:$0xf0]  ;;  %v10527_v13 = vor.u32 %v8664_v57, %v7270_v49 }
 0x1b9   : > { %13797 = vst [vmem:[#allocation234_spill] sm:$0xff] %v10477_v24  ;;  %v8808_v30 = vld [vmem:[#allocation14 + $0x76c] sm:$0xf0]  ;;  %v8768_v49 = vld [vmem:[#allocation14 + $0x634] sm:$0xf] }
 0x1ba   : > { %13798 = vst [vmem:[#allocation235_spill] sm:$0xff] %v10479_v52  ;;  %v10507_v22 = vor.u32 %v8808_v30, %v7846_v25  ;;  %v7782_v7 = vld [vmem:[#allocation14 + $0x6b0] sm:$0xf]  ;;  %v7272_v30 = vld [vmem:[#allocation14 + $0x2f0] sm:$0xf0] }
 0x1bb   : > { %13799 = vst [vmem:[#allocation236_spill] sm:$0xff] %v10483_v11  ;;  %2943 = vmatpush.bf16.msrb.mxu0 %v10477_v24  ;;  %2956 = vmatpush.bf16.msrb.mxu1 %v10479_v52  ;;  %v8792_v17 = vld [vmem:[#allocation14 + $0x6ec] sm:$0xf0]  ;;  %v10517_v11 = vpop.f32.mrf.mxu3  ;;  %v8784_v25 = vld [vmem:[#allocation14 + $0x6b4] sm:$0xf] }
 0x1bc   : > { %13800 = vst [vmem:[#allocation237_spill] sm:$0xff] %v10485_v42  ;;  %2969 = vmatpush.bf16.msrb.mxu2 %v10485_v42  ;;  %2982 = vmatpush.bf16.msrb.mxu3 %v10487_v61  ;;  %v10529_v53 = vor.u32 %v8792_v17, %v7782_v7  ;;  %v7718_v3 = vld [vmem:[#allocation14 + $0x630] sm:$0xf]  ;;  %v8640_v52 = vld [vmem:[#allocation14 + $0x234] sm:$0xf] }
 0x1bd   : > { %13801 = vst [vmem:[#allocation238_spill] sm:$0xff] %v10487_v61  ;;  %v8776_v61 = vld [vmem:[#allocation14 + $0x66c] sm:$0xf0]  ;;  %v7720_v57 = vld [vmem:[#allocation14 + $0x670] sm:$0xf0] }
 0x1be   : > { %13802 = vst [vmem:[#allocation239_spill] sm:$0xff] %v10489_v5  ;;  %v8656_v5 = vld [vmem:[#allocation14 + $0x2b4] sm:$0xf]  ;;  %2944 = vmatmul.bf16.vlgmr.msrb.gmra.mxu0 %v10067_v14  ;;  %2957 = vmatmul.bf16.vlgmr.msrb.gmra.mxu1 %v10073_v35 }
 0x1bf   : > { %13803 = vst [vmem:[#allocation240_spill] sm:$0xff] %v10491_v15  ;;  %2988 = vmatpush.bf16.msra.mxu0 %v10491_v15  ;;  %3001 = vmatpush.bf16.msra.mxu1 %v10493_v54  ;;  %v2698_v62 = vpop.f32.mrf.mxu1 }
 0x1c0   : > { %13804 = vst [vmem:[#allocation241_spill] sm:$0xff] %v10493_v54  ;;  %3014 = vmatpush.bf16.msra.mxu2 %v10495_v40  ;;  %3027 = vmatpush.bf16.msra.mxu3 %v10497_v16  ;;  %v2685_v0 = vpop.f32.mrf.mxu0  ;;  %v10535_v54 = vor.u32 %v8784_v25, %v7784_v45  ;;  %v10549_v45 = vor.u32 %v8768_v49, %v7720_v57  ;;  %v7078_v57 = vld [vmem:[#allocation14 + $0x130] sm:$0xf] }
 0x1c1   : > { %13805 = vst [vmem:[#allocation242_spill] sm:$0xff] %v10495_v40  ;;  %2970 = vmatmul.bf16.vlgmr.msrb.gmra.mxu2 %v10067_v14  ;;  %2983 = vmatmul.bf16.vlgmr.msrb.gmra.mxu3 %v10073_v35  ;;  %v2699_v41 = vadd.f32 %v2698_v62, %v2685_v0  ;;  %v2711_v0 = vpop.f32.mrf.mxu2  ;;  %v8760_v62 = vld [vmem:[#allocation14 + $0x5ec] sm:$0xf0]  ;;  %v8689_v40 = vld [vmem:[#allocation14 + $0x3bc] sm:$0xf] }
 0x1c2   : > { %13806 = vst [vmem:[#allocation243_spill] sm:$0xff] %v10497_v16  ;;  %v10533_v16 = vor.u32 %v8656_v5, %v7272_v30  ;;  %v7142_v5 = vld [vmem:[#allocation14 + $0x1b0] sm:$0xf] }
 0x1c3   : > { %13807 = vst [vmem:[#allocation244_spill] sm:$0xff] %v10505_v8  ;;  %2989 = vmatpush.bf16.msra.mxu0 %v10505_v8  ;;  %3002 = vmatpush.bf16.msra.mxu1 %v10507_v22  ;;  %v10537_v7 = vadd.f32 %v2699_v41, %v894_v1  ;;  %v8632_v30 = vld [vmem:[#allocation14 + $0x1ec] sm:$0xf0]  ;;  %v8624_v41 = vld [vmem:[#allocation14 + $0x1b4] sm:$0xf] }
 0x1c4   : > { %13808 = vst [vmem:[#allocation245_spill] sm:$0xff] %v10507_v22  ;;  %3015 = vmatpush.bf16.msra.mxu2 %v10513_v31  ;;  %3028 = vmatpush.bf16.msra.mxu3 %v10515_v12  ;;  %v7208_v22 = vld [vmem:[#allocation14 + $0x270] sm:$0xf0]  ;;  %v7654_v1 = vld [vmem:[#allocation14 + $0x5b0] sm:$0xf] }
 0x1c5   : > { %13809 = vst [vmem:[#allocation246_spill] sm:$0xff] %v10509_v47  ;;  %v8648_v47 = vld [vmem:[#allocation14 + $0x26c] sm:$0xf0]  ;;  %v10547_v25 = vor.u32 %v8640_v52, %v7208_v22  ;;  %v10555_v52 = vor.u32 %v8632_v30, %v7142_v5  ;;  %v10557_v22 = vor.u32 %v8760_v62, %v7654_v1  ;;  %v7080_v5 = vld [vmem:[#allocation14 + $0x170] sm:$0xf0] }
 0x1c6   : > { %13810 = vst [vmem:[#allocation247_spill] sm:$0xff] %v10513_v31  ;;  %v8736_v30 = vld [vmem:[#allocation14 + $0x534] sm:$0xf]  ;;  %v8825_v8 = vld [vmem:[#allocation14 + $0x7f4] sm:$0xf0] }
 0x1c7   : > { %13811 = vst [vmem:[#allocation248_spill] sm:$0xff] %v10515_v12  ;;  %2990 = vmatpush.bf16.msra.mxu0 %v10527_v13  ;;  %3003 = vmatpush.bf16.msra.mxu1 %v10529_v53  ;;  %v10543_v12 = vor.u32 %v8776_v61, %v7718_v3  ;;  %v913_v3 = vadd.f32 %v9917_v48, %v9955_v28  ;;  %v2700_v49 = vpop.f32.mrf.mxu1  ;;  %v8608_v28 = vld [vmem:[#allocation14 + $0x134] sm:$0xf] }
 0x1c8   : > { %13812 = vst [vmem:[#allocation249_spill] sm:$0xff] %v10517_v11  ;;  %v7206_v11 = vld [vmem:[#allocation14 + $0x230] sm:$0xf]  ;;  %3016 = vmatpush.bf16.msra.mxu2 %v10533_v16  ;;  %3029 = vmatpush.bf16.msra.mxu3 %v10535_v54  ;;  %v2687_v31 = vpop.f32.mrf.mxu0  ;;  %v7592_v1 = vld [vmem:[#allocation14 + $0x570] sm:$0xf0] }
 0x1c9   : > { %13813 = vst [vmem:[#allocation250_spill] sm:$0xff] %v10527_v13  ;;  %v10541_v17 = vor.u32 %v8648_v47, %v7206_v11  ;;  %v2724_v13 = vpop.f32.mrf.mxu3  ;;  %v8752_v11 = vld [vmem:[#allocation14 + $0x5b4] sm:$0xf] }
 0x1ca   : > { %13814 = vst [vmem:[#allocation251_spill] sm:$0xff] %v10529_v53  ;;  %v7144_v53 = vld [vmem:[#allocation14 + $0x1f0] sm:$0xf0]  ;;  %v2725_v61 = vadd.f32 %v2724_v13, %v2711_v0  ;;  %v7590_v13 = vld [vmem:[#allocation14 + $0x530] sm:$0xf] }
 0x1cb   : > { %13815 = vst [vmem:[#allocation252_spill] sm:$0xff] %v10533_v16  ;;  %v7656_v47 = vld [vmem:[#allocation14 + $0x5f0] sm:$0xf0]  ;;  %2991 = vmatpush.bf16.msra.mxu0 %v10541_v17  ;;  %3004 = vmatpush.bf16.msra.mxu1 %v10543_v12  ;;  %v10563_v48 = vor.u32 %v8624_v41, %v7144_v53  ;;  %v8744_v0 = vld [vmem:[#allocation14 + $0x56c] sm:$0xf0]  ;;  %v10575_v53 = vor.u32 %v8608_v28, %v7080_v5 }
 0x1cc   : > { %13816 = vst [vmem:[#allocation253_spill] sm:$0xff] %v10535_v54  ;;  %v8616_v54 = vld [vmem:[#allocation14 + $0x16c] sm:$0xf0]  ;;  %3017 = vmatpush.bf16.msra.mxu2 %v10547_v25  ;;  %3030 = vmatpush.bf16.msra.mxu3 %v10549_v45  ;;  %v10561_v16 = vadd.f32 %v2725_v61, %v913_v3  ;;  %v10565_v31 = vor.u32 %v8752_v11, %v7656_v47  ;;  %v2713_v11 = vpop.f32.mrf.mxu2 }
 0x1cd   : > { %13817 = vst [vmem:[#allocation254_spill] sm:$0xff] %v10541_v17  ;;  %v10569_v62 = vor.u32 %v8616_v54, %v7078_v57  ;;  %v10571_v49 = vor.u32 %v8744_v0, %v7590_v13  ;;  %v7014_v3 = vld [vmem:[#allocation14 + $0xb0] sm:$0xf]  ;;  %v10577_v41 = vor.u32 %v8736_v30, %v7592_v1  ;;  %v8720_v54 = vld [vmem:[#allocation14 + $0x4b4] sm:$0xf] }
 0x1ce   : > { %13818 = vst [vmem:[#allocation255_spill] sm:$0xff] %v10543_v12  ;;  %v8600_v61 = vld [vmem:[#allocation14 + $0xec] sm:$0xf0]  ;;  %v8592_v12 = vld [vmem:[#allocation14 + $0xb4] sm:$0xf] }
 0x1cf   : > { %13819 = vst [vmem:[#allocation256_spill] sm:$0xff] %v10547_v25  ;;  %2992 = vmatpush.bf16.msra.mxu0 %v10555_v52  ;;  %3005 = vmatpush.bf16.msra.mxu1 %v10557_v22  ;;  %v7526_v47 = vld [vmem:[#allocation14 + $0x4b0] sm:$0xf]  ;;  %v7528_v57 = vld [vmem:[#allocation14 + $0x4f0] sm:$0xf0]  ;;  %v932_v25 = vadd.f32 %v9933_v29, %v9948_v10  ;;  %v10583_v28 = vor.u32 %v8600_v61, %v7014_v3  ;;  %v2750_v30 = vpop.f32.mrf.mxu1 }
 0x1d0   : > { %13820 = vst [vmem:[#allocation257_spill] sm:$0xff] %v10549_v45  ;;  %3018 = vmatpush.bf16.msra.mxu2 %v10563_v48  ;;  %3031 = vmatpush.bf16.msra.mxu3 %v10565_v31  ;;  %v8728_v45 = vld [vmem:[#allocation14 + $0x4ec] sm:$0xf0]  ;;  %v2737_v13 = vpop.f32.mrf.mxu0  ;;  %v8576_v10 = vld [vmem:[#allocation14 + $0x34] sm:$0xf] }
 0x1d1   : > { %13821 = vst [vmem:[#allocation258_spill] sm:$0xff] %v10555_v52  ;;  %v2726_v52 = vpop.f32.mrf.mxu3  ;;  %v6950_v0 = vld [vmem:[#allocation14 + $0x30] sm:$0xf]  ;;  %v10585_v5 = vor.u32 %v8728_v45, %v7526_v47  ;;  %v2751_v29 = vadd.f32 %v2750_v30, %v2737_v13  ;;  %v7464_v3 = vld [vmem:[#allocation14 + $0x470] sm:$0xf0] }
 0x1d2   : > { %13822 = vst [vmem:[#allocation259_spill] sm:$0xff] %v10557_v22  ;;  %v7016_v22 = vld [vmem:[#allocation14 + $0xf0] sm:$0xf0]  ;;  %v8584_v1 = vld [vmem:[#allocation14 + $0x6c] sm:$0xf0] }
 0x1d3   : > { %13823 = vst [vmem:[#allocation260_spill] sm:$0xff] %v10563_v48  ;;  %2993 = vmatpush.bf16.msra.mxu0 %v10569_v62  ;;  %3006 = vmatpush.bf16.msra.mxu1 %v10571_v49  ;;  %v7462_v11 = vld [vmem:[#allocation14 + $0x430] sm:$0xf]  ;;  %v10591_v48 = vor.u32 %v8720_v54, %v7528_v57  ;;  %v7406_v61 = vld [vmem:[#allocation14 + $0x3b8] sm:$0xf]  ;;  %v10593_v47 = vadd.f32 %v2751_v29, %v932_v25 }
 0x1d4   : > { %13824 = vst [vmem:[#allocation261_spill] sm:$0xff] %v10565_v31  ;;  %v8712_v52 = vld [vmem:[#allocation14 + $0x46c] sm:$0xf0]  ;;  %3019 = vmatpush.bf16.msra.mxu2 %v10575_v53  ;;  %3032 = vmatpush.bf16.msra.mxu3 %v10577_v41  ;;  %v10589_v31 = vor.u32 %v8592_v12, %v7016_v22  ;;  %v8697_v45 = vld [vmem:[#allocation14 + $0x3f4] sm:$0xf0]  ;;  %v10597_v12 = vor.u32 %v8584_v1, %v6950_v0  ;;  %v2763_v29 = vpop.f32.mrf.mxu2 }
 0x1d5   : > { %13825 = vst [vmem:[#allocation262_spill] sm:$0xff] %v10569_v62  ;;  %v6952_v62 = vld [vmem:[#allocation14 + $0x70] sm:$0xf0]  ;;  %v7918_v17 = vld [vmem:[#allocation14 + $0x7b8] sm:$0xf]  ;;  %v10599_v22 = vor.u32 %v8712_v52, %v7462_v11  ;;  %v951_v52 = vadd.f32 %v9939_v55, %v9958_v37 }
 0x1d6   : > { %13826 = vst [vmem:[#allocation263_spill] sm:$0xff] %v10571_v49  ;;  %v8704_v49 = vld [vmem:[#allocation14 + $0x434] sm:$0xf]  ;;  %v7408_v54 = vld [vmem:[#allocation14 + $0x3f8] sm:$0xf0]  ;;  %v10603_v25 = vor.u32 %v8576_v10, %v6952_v62 }
 0x1d7   : > { %13827 = vst [vmem:[#allocation264_spill] sm:$0xff] %v10575_v53  ;;  %2994 = vmatpush.bf16.msra.mxu0 %v10583_v28  ;;  %3007 = vmatpush.bf16.msra.mxu1 %v10585_v5  ;;  %v8817_v57 = vld [vmem:[#allocation14 + $0x7bc] sm:$0xf]  ;;  %v10605_v30 = vor.u32 %v8704_v49, %v7464_v3  ;;  %v7342_v1 = vld [vmem:[#allocation14 + $0x338] sm:$0xf] }
 0x1d8   : > { %13828 = vst [vmem:[#allocation265_spill] sm:$0xff] %v10577_v41  ;;  %v7920_v13 = vld [vmem:[#allocation14 + $0x7f8] sm:$0xf0]  ;;  %3020 = vmatpush.bf16.msra.mxu2 %v10589_v31  ;;  %3033 = vmatpush.bf16.msra.mxu3 %v10591_v48  ;;  %v10607_v41 = vor.u32 %v8697_v45, %v7406_v61  ;;  %v8681_v11 = vld [vmem:[#allocation14 + $0x374] sm:$0xf0]  ;;  %v2739_v10 = vpop.f32.mrf.mxu0 }
 0x1d9   : > { %13829 = vst [vmem:[#allocation266_spill] sm:$0xff] %v10583_v28  ;;  %v10609_v28 = vor.u32 %v8825_v8, %v7918_v17  ;;  %v2776_v0 = vpop.f32.mrf.mxu3  ;;  %v7854_v62 = vld [vmem:[#allocation14 + $0x738] sm:$0xf]  ;;  %v8673_v3 = vld [vmem:[#allocation14 + $0x33c] sm:$0xf]  ;;  %v2752_v8 = vpop.f32.mrf.mxu1 }
 0x1da   : > { %13830 = vst [vmem:[#allocation267_spill] sm:$0xff] %v10585_v5  ;;  %v10613_v5 = vor.u32 %v8689_v40, %v7408_v54  ;;  %v8809_v49 = vld [vmem:[#allocation14 + $0x774] sm:$0xf0]  ;;  %v7344_v17 = vld [vmem:[#allocation14 + $0x378] sm:$0xf0]  ;;  %v10625_v40 = vor.u32 %v8681_v11, %v7342_v1 }
 0x1db   : > { %13831 = vst [vmem:[#allocation268_spill] sm:$0xff] %v10589_v31  ;;  %v10615_v31 = vor.u32 %v8817_v57, %v7920_v13  ;;  %2995 = vmatpush.bf16.msra.mxu0 %v10597_v12  ;;  %3008 = vmatpush.bf16.msra.mxu1 %v10599_v22  ;;  %v8801_v61 = vld [vmem:[#allocation14 + $0x73c] sm:$0xf]  ;;  %v10627_v54 = vor.u32 %v8809_v49, %v7854_v62  ;;  %v7278_v57 = vld [vmem:[#allocation14 + $0x2b8] sm:$0xf] }
 0x1dc   : > { %13832 = vst [vmem:[#allocation269_spill] sm:$0xff] %v10591_v48  ;;  %v2777_v48 = vadd.f32 %v2776_v0, %v2763_v29  ;;  %v7856_v45 = vld [vmem:[#allocation14 + $0x778] sm:$0xf0]  ;;  %3021 = vmatpush.bf16.msra.mxu2 %v10603_v25  ;;  %3034 = vmatpush.bf16.msra.mxu3 %v10605_v30  ;;  %v8665_v13 = vld [vmem:[#allocation14 + $0x2f4] sm:$0xf0]  ;;  %v10631_v29 = vor.u32 %v8673_v3, %v7344_v17  ;;  %v2765_v49 = vpop.f32.mrf.mxu2 }
 0x1dd   : > { %13833 = vst [vmem:[#allocation270_spill] sm:$0xff] %v10597_v12  ;;  %v10633_v0 = vor.u32 %v8801_v61, %v7856_v45  ;;  %v8657_v10 = vld [vmem:[#allocation14 + $0x2bc] sm:$0xf]  ;;  %v10641_v3 = vor.u32 %v8665_v13, %v7278_v57  ;;  %v7214_v61 = vld [vmem:[#allocation14 + $0x238] sm:$0xf] }
 0x1de   : > { %13834 = vst [vmem:[#allocation271_spill] sm:$0xff] %v10599_v22  ;;  %v10621_v55 = vadd.f32 %v2777_v48, %v951_v52  ;;  %v7790_v48 = vld [vmem:[#allocation14 + $0x6b8] sm:$0xf]  ;;  %2996 = vmatmul.bf16.vlgmr.msra.gmra.mxu0 %v10067_v14  ;;  %3009 = vmatmul.bf16.vlgmr.msra.gmra.mxu1 %v10073_v35  ;;  %v7280_v1 = vld [vmem:[#allocation14 + $0x2f8] sm:$0xf0] }
 0x1df   : > { %13835 = vst [vmem:[#allocation272_spill] sm:$0xff] %v10603_v25  ;;  %3040 = vmatpush.bf16.msrb.mxu0 %v10607_v41  ;;  %3053 = vmatpush.bf16.msrb.mxu1 %v10609_v28  ;;  %v8793_v52 = vld [vmem:[#allocation14 + $0x6f4] sm:$0xf0]  ;;  %v8785_v11 = vld [vmem:[#allocation14 + $0x6bc] sm:$0xf]  ;;  %v10647_v37 = vor.u32 %v8657_v10, %v7280_v1 }
 0x1e0   : > { %13836 = vst [vmem:[#allocation273_spill] sm:$0xff] %v10605_v30  ;;  %3066 = vmatpush.bf16.msrb.mxu2 %v10613_v5  ;;  %3079 = vmatpush.bf16.msrb.mxu3 %v10615_v31  ;;  %v7792_v62 = vld [vmem:[#allocation14 + $0x6f8] sm:$0xf0]  ;;  %v10643_v8 = vor.u32 %v8793_v52, %v7790_v48  ;;  %v8649_v45 = vld [vmem:[#allocation14 + $0x274] sm:$0xf0]  ;;  %v2789_v13 = vpop.f32.mrf.mxu0 }
 0x1e1   : > { %13837 = vst [vmem:[#allocation274_spill] sm:$0xff] %v10607_v41  ;;  %3022 = vmatmul.bf16.vlgmr.msra.gmra.mxu2 %v10067_v14  ;;  %3035 = vmatmul.bf16.vlgmr.msra.gmra.mxu3 %v10073_v35  ;;  %v2778_v17 = vpop.f32.mrf.mxu3  ;;  %v7726_v49 = vld [vmem:[#allocation14 + $0x638] sm:$0xf]  ;;  %v8641_v30 = vld [vmem:[#allocation14 + $0x23c] sm:$0xf]  ;;  %v2802_v48 = vpop.f32.mrf.mxu1 }
 0x1e2   : > { %13838 = vst [vmem:[#allocation275_spill] sm:$0xff] %v10609_v28  ;;  %v8777_v28 = vld [vmem:[#allocation14 + $0x674] sm:$0xf0]  ;;  %v7216_v22 = vld [vmem:[#allocation14 + $0x278] sm:$0xf0]  ;;  %v10653_v52 = vadd.f32 %v2802_v48, %v2789_v13  ;;  %v10655_v17 = vor.u32 %v8649_v45, %v7214_v61 }
 0x1e3   : > { %13839 = vst [vmem:[#allocation276_spill] sm:$0xff] %v10613_v5  ;;  %3041 = vmatpush.bf16.msrb.mxu0 %v10625_v40  ;;  %3054 = vmatpush.bf16.msrb.mxu1 %v10627_v54  ;;  %v7728_v57 = vld [vmem:[#allocation14 + $0x678] sm:$0xf0]  ;;  %v10657_v10 = vor.u32 %v8777_v28, %v7726_v49  ;;  %v7150_v1 = vld [vmem:[#allocation14 + $0x1b8] sm:$0xf] }
 0x1e4   : > { %13840 = vst [vmem:[#allocation277_spill] sm:$0xff] %v10615_v31  ;;  %3067 = vmatpush.bf16.msrb.mxu2 %v10631_v29  ;;  %3080 = vmatpush.bf16.msrb.mxu3 %v10633_v0  ;;  %v10649_v31 = vor.u32 %v8785_v11, %v7792_v62  ;;  %v8633_v11 = vld [vmem:[#allocation14 + $0x1f4] sm:$0xf0]  ;;  %v10661_v62 = vor.u32 %v8641_v30, %v7216_v22  ;;  %v8753_v13 = vld [vmem:[#allocation14 + $0x5bc] sm:$0xf] }
 0x1e5   : > { %13841 = vst [vmem:[#allocation278_spill] sm:$0xff] %v10625_v40  ;;  %v8625_v40 = vld [vmem:[#allocation14 + $0x1bc] sm:$0xf]  ;;  %v10667_v28 = vor.u32 %v8633_v11, %v7150_v1  ;;  %v7086_v45 = vld [vmem:[#allocation14 + $0x138] sm:$0xf] }
 0x1e6   : > { %13842 = vst [vmem:[#allocation279_spill] sm:$0xff] %v10627_v54  ;;  %v8769_v54 = vld [vmem:[#allocation14 + $0x63c] sm:$0xf]  ;;  %v8617_v49 = vld [vmem:[#allocation14 + $0x174] sm:$0xf0] }
 0x1e7   : > { %13843 = vst [vmem:[#allocation280_spill] sm:$0xff] %v10631_v29  ;;  %3042 = vmatpush.bf16.msrb.mxu0 %v10641_v3  ;;  %3055 = vmatpush.bf16.msrb.mxu1 %v10643_v8  ;;  %v7662_v29 = vld [vmem:[#allocation14 + $0x5b8] sm:$0xf]  ;;  %v7664_v48 = vld [vmem:[#allocation14 + $0x5f8] sm:$0xf0] }
 0x1e8   : > { %13844 = vst [vmem:[#allocation281_spill] sm:$0xff] %v10633_v0  ;;  %3068 = vmatpush.bf16.msrb.mxu2 %v10647_v37  ;;  %3081 = vmatpush.bf16.msrb.mxu3 %v10649_v31  ;;  %v10663_v0 = vor.u32 %v8769_v54, %v7728_v57  ;;  %v10675_v30 = vor.u32 %v8753_v13, %v7664_v48  ;;  %v7598_v54 = vld [vmem:[#allocation14 + $0x538] sm:$0xf]  ;;  %v8737_v1 = vld [vmem:[#allocation14 + $0x53c] sm:$0xf] }
 0x1e9   : > { %13845 = vst [vmem:[#allocation282_spill] sm:$0xff] %v10641_v3  ;;  %v8761_v3 = vld [vmem:[#allocation14 + $0x5f4] sm:$0xf0]  ;;  %v7600_v11 = vld [vmem:[#allocation14 + $0x578] sm:$0xf0]  ;;  %v2804_v5 = vpop.f32.mrf.mxu1 }
 0x1ea   : > { %13846 = vst [vmem:[#allocation283_spill] sm:$0xff] %v10643_v8  ;;  %v7152_v8 = vld [vmem:[#allocation14 + $0x1f8] sm:$0xf0]  ;;  %v10669_v61 = vor.u32 %v8761_v3, %v7662_v29  ;;  %v8745_v57 = vld [vmem:[#allocation14 + $0x574] sm:$0xf0]  ;;  %v2791_v3 = vpop.f32.mrf.mxu0 }
 0x1eb   : > { %13847 = vst [vmem:[#allocation284_spill] sm:$0xff] %v10647_v37  ;;  %3043 = vmatpush.bf16.msrb.mxu0 %v10655_v17  ;;  %3056 = vmatpush.bf16.msrb.mxu1 %v10657_v10  ;;  %v10673_v22 = vor.u32 %v8625_v40, %v7152_v8  ;;  %v2828_v37 = vpop.f32.mrf.mxu3  ;;  %v10681_v40 = vor.u32 %v8617_v49, %v7086_v45  ;;  %v7022_v13 = vld [vmem:[#allocation14 + $0xb8] sm:$0xf]  ;;  %v8593_v3 = vld [vmem:[#allocation14 + $0xbc] sm:$0xf] }
 0x1ec   : > { %13848 = vst [vmem:[#allocation285_spill] sm:$0xff] %v10649_v31  ;;  %3069 = vmatpush.bf16.msrb.mxu2 %v10661_v62  ;;  %3082 = vmatpush.bf16.msrb.mxu3 %v10663_v0  ;;  %v8609_v31 = vld [vmem:[#allocation14 + $0x13c] sm:$0xf]  ;;  %v10683_v8 = vor.u32 %v8745_v57, %v7598_v54  ;;  %v8601_v48 = vld [vmem:[#allocation14 + $0xf4] sm:$0xf0] }
 0x1ed   : > { %13849 = vst [vmem:[#allocation286_spill] sm:$0xff] %v10655_v17  ;;  %v2815_v17 = vpop.f32.mrf.mxu2  ;;  %v8729_v5 = vld [vmem:[#allocation14 + $0x4f4] sm:$0xf0]  ;;  %v10693_v45 = vor.u32 %v8601_v48, %v7022_v13  ;;  %v8705_v13 = vld [vmem:[#allocation14 + $0x43c] sm:$0xf] }
 0x1ee   : > { %13850 = vst [vmem:[#allocation287_spill] sm:$0xff] %v10657_v10  ;;  %v7088_v10 = vld [vmem:[#allocation14 + $0x178] sm:$0xf0]  ;;  %v10677_v29 = vadd.f32 %v2828_v37, %v2815_v17  ;;  %v10689_v37 = vor.u32 %v8737_v1, %v7600_v11  ;;  %v7534_v17 = vld [vmem:[#allocation14 + $0x4b8] sm:$0xf] }
 0x1ef   : > { %13851 = vst [vmem:[#allocation288_spill] sm:$0xff] %v10661_v62  ;;  %3044 = vmatpush.bf16.msrb.mxu0 %v10667_v28  ;;  %3057 = vmatpush.bf16.msrb.mxu1 %v10669_v61  ;;  %v8721_v62 = vld [vmem:[#allocation14 + $0x4bc] sm:$0xf]  ;;  %v10695_v49 = vor.u32 %v8729_v5, %v7534_v17  ;;  %v6958_v54 = vld [vmem:[#allocation14 + $0x38] sm:$0xf] }
 0x1f0   : > { %13852 = vst [vmem:[#allocation289_spill] sm:$0xff] %v10663_v0  ;;  %3070 = vmatpush.bf16.msrb.mxu2 %v10673_v22  ;;  %3083 = vmatpush.bf16.msrb.mxu3 %v10675_v30  ;;  %v10687_v0 = vor.u32 %v8609_v31, %v7088_v10  ;;  %v8585_v57 = vld [vmem:[#allocation14 + $0x74] sm:$0xf0]  ;;  %v7472_v48 = vld [vmem:[#allocation14 + $0x478] sm:$0xf0] }
 0x1f1   : > { %13853 = vst [vmem:[#allocation290_spill] sm:$0xff] %v10667_v28  ;;  %v7024_v28 = vld [vmem:[#allocation14 + $0xf8] sm:$0xf0]  ;;  %v7470_v1 = vld [vmem:[#allocation14 + $0x438] sm:$0xf]  ;;  %v10705_v17 = vor.u32 %v8585_v57, %v6958_v54 }
 0x1f2   : > { %13854 = vst [vmem:[#allocation291_spill] sm:$0xff] %v10669_v61  ;;  %v7536_v61 = vld [vmem:[#allocation14 + $0x4f8] sm:$0xf0]  ;;  %v10699_v31 = vor.u32 %v8593_v3, %v7024_v28  ;;  %v8713_v11 = vld [vmem:[#allocation14 + $0x474] sm:$0xf0]  ;;  %v10713_v28 = vor.u32 %v8705_v13, %v7472_v48 }
 0x1f3   : > { %13855 = vst [vmem:[#allocation292_spill] sm:$0xff] %v10673_v22  ;;  %3045 = vmatpush.bf16.msrb.mxu0 %v10681_v40  ;;  %3058 = vmatpush.bf16.msrb.mxu1 %v10683_v8  ;;  %v10701_v10 = vor.u32 %v8721_v62, %v7536_v61  ;;  %v2830_v22 = vpop.f32.mrf.mxu3  ;;  %v10707_v5 = vor.u32 %v8713_v11, %v7470_v1  ;;  %v4151_v61 = vmul.f32 0.5, %v10593_v47  ;;  %v4152_v47 = vmul.f32 0.5, %v10621_v55 }
 0x1f4   : > { %13856 = vst [vmem:[#allocation293_spill] sm:$0xff] %v10675_v30  ;;  %3071 = vmatpush.bf16.msrb.mxu2 %v10687_v0  ;;  %3084 = vmatpush.bf16.msrb.mxu3 %v10689_v37  ;;  %v8577_v30 = vld [vmem:[#allocation14 + $0x3c] sm:$0xf]  ;;  %v4149_v22 = vmul.f32 0.5, %v10537_v7  ;;  %v1008_v7 = vadd.f32 %v10433_v60, %v10050_v38 }
 0x1f5   : > { %13857 = vst [vmem:[#allocation294_spill] sm:$0xff] %v10681_v40  ;;  %v2817_v40 = vpop.f32.mrf.mxu2  ;;  %9121 = vtanh.f32 %v4151_v61 }
 0x1f6   : > { %13858 = vst [vmem:[#allocation295_spill] sm:$0xff] %v10683_v8  ;;  %v6960_v8 = vld [vmem:[#allocation14 + $0x78] sm:$0xf0]  ;;  %9123 = vtanh.f32 %v4149_v22 }
 0x1f7   : > { %13859 = vst [vmem:[#allocation296_spill] sm:$0xff] %v10687_v0  ;;  %3046 = vmatpush.bf16.msrb.mxu0 %v10693_v45  ;;  %3059 = vmatpush.bf16.msrb.mxu1 %v10695_v49  ;;  %v10711_v62 = vor.u32 %v8577_v30, %v6960_v8  ;;  %v4150_v30 = vmul.f32 0.5, %v10561_v16  ;;  %9125 = vtanh.f32 %v4152_v47  ;;  %v1027_v16 = vadd.f32 %v10441_v21, %v10054_v2 }
 0x1f8   : > { %13860 = vst [vmem:[#allocation297_spill] sm:$0xff] %v10689_v37  ;;  %3072 = vmatpush.bf16.msrb.mxu2 %v10699_v31  ;;  %3085 = vmatpush.bf16.msrb.mxu3 %v10701_v10 }
 0x1f9   : > { %13861 = vst [vmem:[#allocation298_spill] sm:$0xff] %v10693_v45  ;;  %9127 = vtanh.f32 %v4150_v30 }
 0x1fa   : > { %13862 = vst [vmem:[#allocation299_spill] sm:$0xff] %v10695_v49  ;;  %v8032_v49 = vld [vmem:[#allocation16 + $0xe8] sm:$0xf0] }
 0x1fb   : > { %13863 = vst [vmem:[#allocation300_spill] sm:$0xff] %v10699_v31  ;;  %3047 = vmatpush.bf16.msrb.mxu0 %v10705_v17  ;;  %3060 = vmatpush.bf16.msrb.mxu1 %v10707_v5  ;;  %v2841_v40 = vpop.f32.mrf.mxu0  ;;  %v2854_v8 = vpop.f32.mrf.mxu1 }
 0x1fc   : > { %13864 = vst [vmem:[#allocation301_spill] sm:$0xff] %v10701_v10  ;;  %3073 = vmatpush.bf16.msrb.mxu2 %v10711_v62  ;;  %3086 = vmatpush.bf16.msrb.mxu3 %v10713_v28  ;;  %v9122_v3 = vpop.eup %9121  ;;  %v2855_v54 = vadd.f32 %v2854_v8, %v2841_v40  ;;  %v8030_v10 = vld [vmem:[#allocation16 + $0xc8] sm:$0xf] }
 0x1fd   : > { %13865 = vst [vmem:[#allocation302_spill] sm:$0xff] %v10705_v17  ;;  %v9124_v57 = vpop.eup %9123  ;;  %v4163_v11 = vadd.f32 1.0, %v9122_v3 }
 0x1fe   : > { %13866 = vst [vmem:[#allocation303_spill] sm:$0xff] %v10707_v5  ;;  %3048 = vmatmul.bf16.vlgmr.msrb.gmra.mxu0 %v10067_v14  ;;  %3061 = vmatmul.bf16.vlgmr.msrb.gmra.mxu1 %v10073_v35  ;;  %v4147_v1 = vadd.f32 %v2855_v54, %v1008_v7  ;;  %v9126_v48 = vpop.eup %9125 }
 0x1ff   : > { %13867 = vst [vmem:[#allocation304_spill] sm:$0xff] %v10711_v62  ;;  %3074 = vmatmul.bf16.vlgmr.msrb.gmra.mxu2 %v10067_v14  ;;  %3087 = vmatmul.bf16.vlgmr.msrb.gmra.mxu3 %v10073_v35  ;;  %v4161_v14 = vadd.f32 1.0, %v9124_v57  ;;  %v4169_v55 = vmul.f32 0.5, %v4163_v11  ;;  %v9128_v5 = vpop.eup %9127  ;;  %v4164_v8 = vadd.f32 1.0, %v9126_v48  ;;  %v8000_v62 = vld [vmem:[#allocation16 + $0xa8] sm:$0xf0] }
 0x200   : > { %13868 = vst [vmem:[#allocation305_spill] sm:$0xff] %v10713_v28  ;;  %9129 = vtanh.f32 %v4147_v1  ;;  %v4162_v7 = vadd.f32 1.0, %v9128_v5 }
 0x201   : > { %v4167_v60 = vmul.f32 0.5, %v4161_v14  ;;  %v4175_v30 = vmul.f32 %v4169_v55, %v10061_v34  ;;  %v4170_v57 = vmul.f32 0.5, %v4164_v8 }
 0x202   : > { %v4168_v21 = vmul.f32 0.5, %v4162_v7  ;;  %v8118_v7 = vld [vmem:[#allocation16 + $0x180] sm:$0xf] }
 0x203   : > { %v2843_v22 = vpop.f32.mrf.mxu0  ;;  %v2856_v28 = vpop.f32.mrf.mxu1 }
 0x204   : > { %v2867_v35 = vpop.f32.mrf.mxu2  ;;  %v2880_v13 = vpop.f32.mrf.mxu3 }
 0x205   : > { %v2881_v61 = vadd.f32 %v2880_v13, %v2867_v35  ;;  %v4176_v35 = vmul.f32 %v4170_v57, %v10063_v58  ;;  %v8882_v58 = vld [vmem:[#allocation16 + $0x1c4] sm:$0xf]  ;;  %v8878_v57 = vld [vmem:[#allocation16 + $0x19c] sm:$0xf0] }
 0x206   : > { %v9130_v47 = vpop.eup %9129 }
 0x207   : > { %v4148_v40 = vadd.f32 %v2881_v61, %v1027_v16  ;;  %v4177_v3 = vmul.f32 %v9130_v47, %v4167_v60  ;;  %v8886_v47 = vld [vmem:[#allocation16 + $0x1dc] sm:$0xf0] }
 0x209   : > { %9131 = vtanh.f32 %v4148_v40  ;;  %v10732_v54 = vadd.f32 %v4177_v3, %v4175_v30  ;;  %v8152_v30 = vld [vmem:[#allocation16 + $0x1e0] sm:$0xf0] }
 0x20a   : > { %v10743_v3 = vor.u32 %v8882_v58, %v8152_v30  ;;  %v8088_v30 = vld [vmem:[#allocation16 + $0x160] sm:$0xf0] }
 0x20c   : > { %v2869_v1 = vpop.f32.mrf.mxu2  ;;  %v2882_v38 = vpop.f32.mrf.mxu3  ;;  %13870 = vst [vmem:[#allocation307_spill] sm:$0xff] %v10743_v3  ;;  %3950 = vmatpush.bf16.msra.mxu2 %v10743_v3  ;;  %v8898_v3 = vld [vmem:[#allocation16 + $0x244] sm:$0xf] }
 0x20d   : > { %v8150_v38 = vld [vmem:[#allocation16 + $0x1c0] sm:$0xf]  ;;  %v10747_v1 = vor.u32 %v8878_v57, %v8118_v7 }
 0x20e   : > { %v10741_v8 = vor.u32 %v8886_v47, %v8150_v38  ;;  %v8870_v38 = vld [vmem:[#allocation16 + $0x15c] sm:$0xf0]  ;;  %v8866_v47 = vld [vmem:[#allocation16 + $0x144] sm:$0xf] }
 0x20f   : > { %v9132_v11 = vpop.eup %9131  ;;  %13871 = vst [vmem:[#allocation308_spill] sm:$0xff] %v10747_v1  ;;  %v10765_v7 = vor.u32 %v8866_v47, %v8088_v30  ;;  %v8374_v57 = vld [vmem:[#allocation16 + $0x380] sm:$0xf]  ;;  %v8056_v30 = vld [vmem:[#allocation16 + $0x120] sm:$0xf0] }
 0x210   : > { %v4178_v28 = vmul.f32 %v9132_v11, %v4168_v21  ;;  %13869 = vst [vmem:[#allocation306_spill] sm:$0xff] %v10741_v8  ;;  %3924 = vmatpush.bf16.msra.mxu0 %v10741_v8  ;;  %v8874_v21 = vld [vmem:[#allocation16 + $0x184] sm:$0xf] }
 0x211   : > { %v8120_v11 = vld [vmem:[#allocation16 + $0x1a0] sm:$0xf0]  ;;  %13876 = vst [vmem:[#allocation313_spill] sm:$0xff] %v10765_v7 }
 0x212   : > { %v10735_v13 = vadd.f32 %v4178_v28, %v4176_v35 }
 0x214   : > { %3925 = vmatpush.bf16.msra.mxu0 %v10747_v1  ;;  %v8887_v1 = vld [vmem:[#allocation16 + $0x1e4] sm:$0xf0] }
 0x21b   : > { %v2893_v14 = vpop.f32.mrf.mxu0  ;;  %v2906_v16 = vpop.f32.mrf.mxu1 }
 0x21c   : > { %v10737_v48 = vadd.f32 %v2906_v16, %v2893_v14  ;;  %v10753_v14 = vor.u32 %v8874_v21, %v8120_v11  ;;  %v8406_v16 = vld [vmem:[#allocation16 + $0x3c0] sm:$0xf]  ;;  %v8938_v11 = vld [vmem:[#allocation16 + $0x384] sm:$0xf] }
 0x21d   : > { %v8942_v21 = vld [vmem:[#allocation16 + $0x39c] sm:$0xf0] }
 0x21e   : > { %13872 = vst [vmem:[#allocation309_spill] sm:$0xff] %v10753_v14  ;;  %3951 = vmatpush.bf16.msra.mxu2 %v10753_v14  ;;  %v8344_v14 = vld [vmem:[#allocation16 + $0x360] sm:$0xf0] }
 0x222   : > { %3952 = vmatpush.bf16.msra.mxu2 %v10765_v7  ;;  %v8930_v7 = vld [vmem:[#allocation16 + $0x344] sm:$0xf] }
 0x223   : > { %v2895_v5 = vpop.f32.mrf.mxu0  ;;  %v2908_v22 = vpop.f32.mrf.mxu1 }
 0x224   : > { %v2919_v34 = vpop.f32.mrf.mxu2  ;;  %v2932_v55 = vpop.f32.mrf.mxu3  ;;  %v8408_v22 = vld [vmem:[#allocation16 + $0x3e0] sm:$0xf0] }
 0x225   : > { %v10739_v61 = vadd.f32 %v2932_v55, %v2919_v34  ;;  %v8950_v34 = vld [vmem:[#allocation16 + $0x3dc] sm:$0xf0]  ;;  %v8946_v55 = vld [vmem:[#allocation16 + $0x3c4] sm:$0xf] }
 0x226   : > { %v10756_v5 = vor.u32 %v8950_v34, %v8406_v16  ;;  %v10768_v16 = vor.u32 %v8942_v21, %v8374_v57  ;;  %v8376_v34 = vld [vmem:[#allocation16 + $0x3a0] sm:$0xf0] }
 0x228   : > { %13873 = vst [vmem:[#allocation310_spill] sm:$0xff] %v10756_v5  ;;  %3937 = vmatpush.bf16.msra.mxu1 %v10756_v5 }
 0x229   : > { %13877 = vst [vmem:[#allocation314_spill] sm:$0xff] %v10768_v16 }
 0x22c   : > { %v2921_v60 = vpop.f32.mrf.mxu2  ;;  %v2934_v40 = vpop.f32.mrf.mxu3  ;;  %3938 = vmatpush.bf16.msra.mxu1 %v10768_v16  ;;  %v10787_v16 = vor.u32 %v8930_v7, %v8344_v14  ;;  %v8922_v14 = vld [vmem:[#allocation16 + $0x304] sm:$0xf] }
 0x22d   : > { %v10759_v60 = vor.u32 %v8946_v55, %v8408_v22  ;;  %v8086_v40 = vld [vmem:[#allocation16 + $0x140] sm:$0xf]  ;;  %v10771_v55 = vor.u32 %v8938_v11, %v8376_v34  ;;  %v8312_v7 = vld [vmem:[#allocation16 + $0x320] sm:$0xf0] }
 0x22e   : > { %v10762_v58 = vor.u32 %v8870_v38, %v8086_v40  ;;  %v8054_v22 = vld [vmem:[#allocation16 + $0x100] sm:$0xf]  ;;  %v8858_v38 = vld [vmem:[#allocation16 + $0x104] sm:$0xf]  ;;  %13882 = vst [vmem:[#allocation319_spill] sm:$0xff] %v10787_v16 }
 0x22f   : > { %13874 = vst [vmem:[#allocation311_spill] sm:$0xff] %v10759_v60  ;;  %3963 = vmatpush.bf16.msra.mxu3 %v10759_v60  ;;  %v8862_v40 = vld [vmem:[#allocation16 + $0x11c] sm:$0xf0]  ;;  %v10781_v21 = vor.u32 %v8858_v38, %v8056_v30  ;;  %v8024_v38 = vld [vmem:[#allocation16 + $0xe0] sm:$0xf0] }
 0x230   : > { %13875 = vst [vmem:[#allocation312_spill] sm:$0xff] %v10762_v58  ;;  %3926 = vmatpush.bf16.msra.mxu0 %v10762_v58  ;;  %v10778_v47 = vor.u32 %v8862_v40, %v8054_v22  ;;  %v8342_v11 = vld [vmem:[#allocation16 + $0x340] sm:$0xf] }
 0x231   : > { %13878 = vst [vmem:[#allocation315_spill] sm:$0xff] %v10771_v55  ;;  %v8934_v34 = vld [vmem:[#allocation16 + $0x35c] sm:$0xf0]  ;;  %3953 = vmatpush.bf16.msra.mxu2 %v10781_v21 }
 0x232   : > { %13879 = vst [vmem:[#allocation316_spill] sm:$0xff] %v10778_v47  ;;  %v10784_v5 = vor.u32 %v8934_v34, %v8342_v11  ;;  %v8022_v22 = vld [vmem:[#allocation16 + $0xc0] sm:$0xf] }
 0x233   : > { %3964 = vmatpush.bf16.msra.mxu3 %v10771_v55  ;;  %13880 = vst [vmem:[#allocation317_spill] sm:$0xff] %v10781_v21  ;;  %v8854_v40 = vld [vmem:[#allocation16 + $0xdc] sm:$0xf0]  ;;  %v10799_v21 = vor.u32 %v8922_v14, %v8312_v7  ;;  %v8914_v7 = vld [vmem:[#allocation16 + $0x2c4] sm:$0xf] }
 0x234   : > { %3927 = vmatpush.bf16.msra.mxu0 %v10778_v47  ;;  %13881 = vst [vmem:[#allocation318_spill] sm:$0xff] %v10784_v5  ;;  %3939 = vmatpush.bf16.msra.mxu1 %v10784_v5  ;;  %v8310_v47 = vld [vmem:[#allocation16 + $0x300] sm:$0xf] }
 0x235   : > { %v8926_v11 = vld [vmem:[#allocation16 + $0x31c] sm:$0xf0]  ;;  %13886 = vst [vmem:[#allocation323_spill] sm:$0xff] %v10799_v21 }
 0x236   : > { %v10796_v34 = vor.u32 %v8926_v11, %v8310_v47  ;;  %v7990_v5 = vld [vmem:[#allocation16 + $0x80] sm:$0xf] }
 0x237   : > { %3965 = vmatpush.bf16.msra.mxu3 %v10787_v16  ;;  %v7992_v16 = vld [vmem:[#allocation16 + $0xa0] sm:$0xf0]  ;;  %v8278_v11 = vld [vmem:[#allocation16 + $0x2c0] sm:$0xf] }
 0x238   : > { %13885 = vst [vmem:[#allocation322_spill] sm:$0xff] %v10796_v34  ;;  %3940 = vmatpush.bf16.msra.mxu1 %v10796_v34 }
 0x23b   : > { %v10749_v35 = vpop.f32.mrf.mxu0  ;;  %v10751_v28 = vpop.f32.mrf.mxu1  ;;  %3966 = vmatpush.bf16.msra.mxu3 %v10799_v21 }
 0x243   : > { %v2947_v58 = vpop.f32.mrf.mxu0  ;;  %v2960_v57 = vpop.f32.mrf.mxu1 }
 0x244   : > { %v10773_v2 = vpop.f32.mrf.mxu2  ;;  %v10775_v60 = vpop.f32.mrf.mxu3  ;;  %v8850_v58 = vld [vmem:[#allocation16 + $0xc4] sm:$0xf]  ;;  %v10790_v57 = vor.u32 %v8854_v40, %v8022_v22  ;;  %v8846_v22 = vld [vmem:[#allocation16 + $0x9c] sm:$0xf0] }
 0x245   : > { %v10793_v30 = vor.u32 %v8850_v58, %v8024_v38  ;;  %v10802_v58 = vor.u32 %v8846_v22, %v7990_v5  ;;  %v8842_v38 = vld [vmem:[#allocation16 + $0x84] sm:$0xf]  ;;  %v7958_v5 = vld [vmem:[#allocation16 + $0x40] sm:$0xf] }
 0x246   : > { %13883 = vst [vmem:[#allocation320_spill] sm:$0xff] %v10790_v57  ;;  %3928 = vmatpush.bf16.msra.mxu0 %v10790_v57  ;;  %v10805_v47 = vor.u32 %v8842_v38, %v7992_v16  ;;  %v8918_v57 = vld [vmem:[#allocation16 + $0x2dc] sm:$0xf0]  ;;  %v7960_v16 = vld [vmem:[#allocation16 + $0x60] sm:$0xf0] }
 0x247   : > { %13884 = vst [vmem:[#allocation321_spill] sm:$0xff] %v10793_v30  ;;  %3954 = vmatpush.bf16.msra.mxu2 %v10793_v30  ;;  %v10808_v14 = vor.u32 %v8918_v57, %v8278_v11  ;;  %v8280_v30 = vld [vmem:[#allocation16 + $0x2e0] sm:$0xf0]  ;;  %v8838_v22 = vld [vmem:[#allocation16 + $0x5c] sm:$0xf0] }
 0x248   : > { %13887 = vst [vmem:[#allocation324_spill] sm:$0xff] %v10802_v58  ;;  %v10814_v21 = vor.u32 %v8838_v22, %v7958_v5  ;;  %v8246_v57 = vld [vmem:[#allocation16 + $0x280] sm:$0xf]  ;;  %v8826_v22 = vld [vmem:[#allocation16 + $0x4] sm:$0xf] }
 0x249   : > { %13888 = vst [vmem:[#allocation325_spill] sm:$0xff] %v10805_v47  ;;  %3941 = vmatpush.bf16.msra.mxu1 %v10808_v14  ;;  %v8910_v11 = vld [vmem:[#allocation16 + $0x29c] sm:$0xf0] }
 0x24a   : > { %3929 = vmatpush.bf16.msra.mxu0 %v10802_v58  ;;  %13889 = vst [vmem:[#allocation326_spill] sm:$0xff] %v10808_v14  ;;  %v8906_v58 = vld [vmem:[#allocation16 + $0x284] sm:$0xf]  ;;  %v8830_v5 = vld [vmem:[#allocation16 + $0x1c] sm:$0xf0] }
 0x24b   : > { %3955 = vmatpush.bf16.msra.mxu2 %v10805_v47  ;;  %13891 = vst [vmem:[#allocation328_spill] sm:$0xff] %v10814_v21  ;;  %v10820_v47 = vor.u32 %v8910_v11, %v8246_v57  ;;  %v7928_v14 = vld [vmem:[#allocation16 + $0x20] sm:$0xf0]  ;;  %v8883_v11 = vld [vmem:[#allocation16 + $0x1cc] sm:$0xf] }
 0x24c   : > { %v2973_v40 = vpop.f32.mrf.mxu2  ;;  %v2986_v55 = vpop.f32.mrf.mxu3 }
 0x24d   : > { %v10811_v55 = vor.u32 %v8914_v7, %v8280_v30  ;;  %v8834_v40 = vld [vmem:[#allocation16 + $0x44] sm:$0xf]  ;;  %13893 = vst [vmem:[#allocation330_spill] sm:$0xff] %v10820_v47  ;;  %v7926_v7 = vld [vmem:[#allocation16] sm:$0xf]  ;;  %3942 = vmatpush.bf16.msra.mxu1 %v10820_v47 }
 0x24e   : > { %v10817_v38 = vor.u32 %v8834_v40, %v7960_v16  ;;  %3930 = vmatpush.bf16.msra.mxu0 %v10814_v21  ;;  %v8248_v30 = vld [vmem:[#allocation16 + $0x2a0] sm:$0xf0]  ;;  %v10826_v40 = vor.u32 %v8830_v5, %v7926_v7  ;;  %v10828_v16 = vor.u32 %v8826_v22, %v7928_v14  ;;  %v8160_v21 = vld [vmem:[#allocation16 + $0x1e8] sm:$0xf0] }
 0x24f   : > { %13890 = vst [vmem:[#allocation327_spill] sm:$0xff] %v10811_v55  ;;  %3967 = vmatpush.bf16.msra.mxu3 %v10811_v55  ;;  %v10823_v34 = vor.u32 %v8906_v58, %v8248_v30  ;;  %v8158_v55 = vld [vmem:[#allocation16 + $0x1c8] sm:$0xf]  ;;  %v10834_v58 = vor.u32 %v8883_v11, %v8160_v21  ;;  %v8902_v30 = vld [vmem:[#allocation16 + $0x25c] sm:$0xf0] }
 0x250   : > { %13892 = vst [vmem:[#allocation329_spill] sm:$0xff] %v10817_v38  ;;  %3956 = vmatpush.bf16.msra.mxu2 %v10817_v38  ;;  %v10831_v57 = vor.u32 %v8887_v1, %v8158_v55  ;;  %v8214_v38 = vld [vmem:[#allocation16 + $0x240] sm:$0xf]  ;;  %v8216_v47 = vld [vmem:[#allocation16 + $0x260] sm:$0xf0] }
 0x251   : > { %13894 = vst [vmem:[#allocation331_spill] sm:$0xff] %v10823_v34  ;;  %v10838_v14 = vor.u32 %v8902_v30, %v8214_v38  ;;  %v10840_v7 = vor.u32 %v8898_v3, %v8216_v47  ;;  %v8126_v1 = vld [vmem:[#allocation16 + $0x188] sm:$0xf]  ;;  %v8875_v5 = vld [vmem:[#allocation16 + $0x18c] sm:$0xf] }
 0x252   : > { %13895 = vst [vmem:[#allocation332_spill] sm:$0xff] %v10826_v40  ;;  %3931 = vmatpush.bf16.msra.mxu0 %v10826_v40  ;;  %v8879_v55 = vld [vmem:[#allocation16 + $0x1a4] sm:$0xf0]  ;;  %v8128_v22 = vld [vmem:[#allocation16 + $0x1a8] sm:$0xf0] }
 0x253   : > { %13896 = vst [vmem:[#allocation333_spill] sm:$0xff] %v10828_v16  ;;  %3968 = vmatpush.bf16.msra.mxu3 %v10823_v34  ;;  %3943 = vmatpush.bf16.msra.mxu1 %v10838_v14  ;;  %v10845_v21 = vor.u32 %v8879_v55, %v8126_v1  ;;  %v8182_v11 = vld [vmem:[#allocation16 + $0x200] sm:$0xf]  ;;  %v8890_v38 = vld [vmem:[#allocation16 + $0x204] sm:$0xf] }
 0x254   : > { %13897 = vst [vmem:[#allocation334_spill] sm:$0xff] %v10831_v57  ;;  %3957 = vmatpush.bf16.msra.mxu2 %v10828_v16  ;;  %v10847_v16 = vor.u32 %v8875_v5, %v8128_v22  ;;  %v8184_v30 = vld [vmem:[#allocation16 + $0x220] sm:$0xf0]  ;;  %v8414_v1 = vld [vmem:[#allocation16 + $0x3c8] sm:$0xf] }
 0x255   : > { %13898 = vst [vmem:[#allocation335_spill] sm:$0xff] %v10834_v58  ;;  %v8951_v55 = vld [vmem:[#allocation16 + $0x3e4] sm:$0xf0]  ;;  %v8416_v22 = vld [vmem:[#allocation16 + $0x3e8] sm:$0xf0] }
 0x256   : > { %3976 = vmatpush.bf16.msrb.mxu0 %v10831_v57  ;;  %13899 = vst [vmem:[#allocation336_spill] sm:$0xff] %v10838_v14  ;;  %v8894_v57 = vld [vmem:[#allocation16 + $0x21c] sm:$0xf0]  ;;  %v10856_v14 = vor.u32 %v8890_v38, %v8184_v30  ;;  %v10859_v5 = vor.u32 %v8951_v55, %v8414_v1  ;;  %v8094_v40 = vld [vmem:[#allocation16 + $0x148] sm:$0xf] }
 0x257   : > { %13900 = vst [vmem:[#allocation337_spill] sm:$0xff] %v10840_v7  ;;  %3969 = vmatpush.bf16.msra.mxu3 %v10840_v7  ;;  %v8947_v7 = vld [vmem:[#allocation16 + $0x3cc] sm:$0xf]  ;;  %v8871_v34 = vld [vmem:[#allocation16 + $0x164] sm:$0xf0] }
 0x258   : > { %4002 = vmatpush.bf16.msrb.mxu2 %v10834_v58  ;;  %13901 = vst [vmem:[#allocation338_spill] sm:$0xff] %v10845_v21  ;;  %v10854_v58 = vor.u32 %v8894_v57, %v8182_v11  ;;  %v10863_v8 = vor.u32 %v8947_v7, %v8416_v22  ;;  %v10865_v57 = vor.u32 %v8871_v34, %v8094_v40  ;;  %v8867_v11 = vld [vmem:[#allocation16 + $0x14c] sm:$0xf]  ;;  %v8943_v1 = vld [vmem:[#allocation16 + $0x3a4] sm:$0xf0] }
 0x259   : > { %13902 = vst [vmem:[#allocation339_spill] sm:$0xff] %v10847_v16  ;;  %v8096_v38 = vld [vmem:[#allocation16 + $0x168] sm:$0xf0]  ;;  %v8062_v40 = vld [vmem:[#allocation16 + $0x108] sm:$0xf] }
 0x25a   : > { %3977 = vmatpush.bf16.msrb.mxu0 %v10845_v21  ;;  %13903 = vst [vmem:[#allocation340_spill] sm:$0xff] %v10854_v58  ;;  %3944 = vmatpush.bf16.msra.mxu1 %v10854_v58  ;;  %v10868_v30 = vor.u32 %v8867_v11, %v8096_v38  ;;  %v8939_v55 = vld [vmem:[#allocation16 + $0x38c] sm:$0xf]  ;;  %v8863_v7 = vld [vmem:[#allocation16 + $0x124] sm:$0xf0] }
 0x25b   : > { %v10849_v3 = vpop.f32.mrf.mxu0  ;;  %v10851_v47 = vpop.f32.mrf.mxu1  ;;  %13904 = vst [vmem:[#allocation341_spill] sm:$0xff] %v10856_v14  ;;  %3970 = vmatpush.bf16.msra.mxu3 %v10856_v14  ;;  %v8384_v14 = vld [vmem:[#allocation16 + $0x3a8] sm:$0xf0]  ;;  %v10877_v22 = vor.u32 %v8863_v7, %v8062_v40 }
 0x25c   : > { %4003 = vmatpush.bf16.msrb.mxu2 %v10847_v16  ;;  %13905 = vst [vmem:[#allocation342_spill] sm:$0xff] %v10859_v5  ;;  %v8382_v16 = vld [vmem:[#allocation16 + $0x388] sm:$0xf]  ;;  %v10875_v34 = vor.u32 %v8939_v55, %v8384_v14  ;;  %v8859_v11 = vld [vmem:[#allocation16 + $0x10c] sm:$0xf] }
 0x25d   : > { %13906 = vst [vmem:[#allocation343_spill] sm:$0xff] %v10863_v8  ;;  %v10872_v58 = vor.u32 %v8943_v1, %v8382_v16  ;;  %v8064_v38 = vld [vmem:[#allocation16 + $0x128] sm:$0xf0]  ;;  %v8350_v16 = vld [vmem:[#allocation16 + $0x348] sm:$0xf] }
 0x25e   : > { %13907 = vst [vmem:[#allocation344_spill] sm:$0xff] %v10865_v57  ;;  %3989 = vmatpush.bf16.msrb.mxu1 %v10859_v5  ;;  %3978 = vmatpush.bf16.msrb.mxu0 %v10865_v57  ;;  %v10884_v57 = vor.u32 %v8859_v11, %v8064_v38  ;;  %v8935_v1 = vld [vmem:[#allocation16 + $0x364] sm:$0xf0]  ;;  %v8352_v40 = vld [vmem:[#allocation16 + $0x368] sm:$0xf0] }
 0x25f   : > { %13908 = vst [vmem:[#allocation345_spill] sm:$0xff] %v10868_v30  ;;  %4015 = vmatpush.bf16.msrb.mxu3 %v10863_v8  ;;  %v8931_v8 = vld [vmem:[#allocation16 + $0x34c] sm:$0xf]  ;;  %v10888_v55 = vor.u32 %v8935_v1, %v8350_v16  ;;  %v2959_v1 = vadd.f32 %v10751_v28, %v10749_v35 }
 0x260   : > { %13909 = vst [vmem:[#allocation346_spill] sm:$0xff] %v10872_v58  ;;  %4004 = vmatpush.bf16.msrb.mxu2 %v10868_v30  ;;  %v10891_v7 = vor.u32 %v8931_v8, %v8352_v40  ;;  %v8851_v11 = vld [vmem:[#allocation16 + $0xcc] sm:$0xf]  ;;  %v8847_v40 = vld [vmem:[#allocation16 + $0xa4] sm:$0xf0] }
 0x261   : > { %13910 = vst [vmem:[#allocation347_spill] sm:$0xff] %v10875_v34  ;;  %v1076_v16 = vld [vmem:[#allocation4 + $0x10] sm:$0xff] }
 0x262   : > { %13911 = vst [vmem:[#allocation348_spill] sm:$0xff] %v10877_v22  ;;  %3990 = vmatpush.bf16.msrb.mxu1 %v10872_v58  ;;  %3979 = vmatpush.bf16.msrb.mxu0 %v10877_v22  ;;  %v8855_v58 = vld [vmem:[#allocation16 + $0xe4] sm:$0xf0]  ;;  %v8923_v22 = vld [vmem:[#allocation16 + $0x30c] sm:$0xf] }
 0x263   : > { %13912 = vst [vmem:[#allocation349_spill] sm:$0xff] %v10884_v57  ;;  %v2999_v30 = vpop.f32.mrf.mxu0  ;;  %v3012_v14 = vpop.f32.mrf.mxu1  ;;  %4016 = vmatpush.bf16.msrb.mxu3 %v10875_v34  ;;  %v10893_v38 = vor.u32 %v8855_v58, %v8030_v10  ;;  %v8927_v34 = vld [vmem:[#allocation16 + $0x324] sm:$0xf0]  ;;  %v8320_v10 = vld [vmem:[#allocation16 + $0x328] sm:$0xf0] }
 0x264   : > { %v10879_v5 = vpop.f32.mrf.mxu2  ;;  %v10881_v21 = vpop.f32.mrf.mxu3  ;;  %13913 = vst [vmem:[#allocation350_spill] sm:$0xff] %v10888_v55  ;;  %4005 = vmatpush.bf16.msrb.mxu2 %v10884_v57  ;;  %v10896_v30 = vor.u32 %v8851_v11, %v8032_v49  ;;  %v8318_v14 = vld [vmem:[#allocation16 + $0x308] sm:$0xf]  ;;  %v10905_v58 = vor.u32 %v8923_v22, %v8320_v10  ;;  %v8843_v11 = vld [vmem:[#allocation16 + $0x8c] sm:$0xf] }
 0x265   : > { %13914 = vst [vmem:[#allocation351_spill] sm:$0xff] %v10891_v7  ;;  %v10902_v8 = vor.u32 %v8927_v34, %v8318_v14  ;;  %v7998_v49 = vld [vmem:[#allocation16 + $0x88] sm:$0xf]  ;;  %v10910_v28 = vor.u32 %v8843_v11, %v8000_v62  ;;  %v8288_v10 = vld [vmem:[#allocation16 + $0x2e8] sm:$0xf0] }
 0x266   : > { %13915 = vst [vmem:[#allocation352_spill] sm:$0xff] %v10893_v38  ;;  %3991 = vmatpush.bf16.msrb.mxu1 %v10888_v55  ;;  %3980 = vmatpush.bf16.msrb.mxu0 %v10893_v38  ;;  %v1074_v55 = vld [vmem:[#allocation4] sm:$0xff]  ;;  %v10907_v57 = vor.u32 %v8847_v40, %v7998_v49  ;;  %v8286_v34 = vld [vmem:[#allocation16 + $0x2c8] sm:$0xf]  ;;  %v8915_v38 = vld [vmem:[#allocation16 + $0x2cc] sm:$0xf] }
 0x267   : > { %13916 = vst [vmem:[#allocation353_spill] sm:$0xff] %v10896_v30  ;;  %4017 = vmatpush.bf16.msrb.mxu3 %v10891_v7  ;;  %v8919_v14 = vld [vmem:[#allocation16 + $0x2e4] sm:$0xf0]  ;;  %v3094_v7 = vadd.f32 %v2959_v1, %v1076_v16  ;;  %v10917_v49 = vor.u32 %v8915_v38, %v8288_v10  ;;  %v3092_v62 = vadd.f32 %v10737_v48, %v1074_v55  ;;  %v1077_v10 = vld [vmem:[#allocation4 + $0x20] sm:$0xff]  ;;  %v8256_v55 = vld [vmem:[#allocation16 + $0x2a8] sm:$0xf0] }
 0x268   : > { %13917 = vst [vmem:[#allocation354_spill] sm:$0xff] %v10902_v8  ;;  %4006 = vmatpush.bf16.msrb.mxu2 %v10896_v30  ;;  %v10914_v22 = vor.u32 %v8919_v14, %v8286_v34  ;;  %v8839_v40 = vld [vmem:[#allocation16 + $0x64] sm:$0xf0]  ;;  %v2985_v16 = vadd.f32 %v10775_v60, %v10773_v2 }
 0x269   : > { %13918 = vst [vmem:[#allocation355_spill] sm:$0xff] %v10905_v58  ;;  %v8254_v34 = vld [vmem:[#allocation16 + $0x288] sm:$0xf]  ;;  %v3102_v38 = vmul.f32 0.5, %v3094_v7  ;;  %v7936_v7 = vld [vmem:[#allocation16 + $0x28] sm:$0xf0] }
 0x26a   : > { %13919 = vst [vmem:[#allocation356_spill] sm:$0xff] %v10907_v57  ;;  %3992 = vmatpush.bf16.msrb.mxu1 %v10902_v8  ;;  %3981 = vmatpush.bf16.msrb.mxu0 %v10907_v57  ;;  %v7968_v8 = vld [vmem:[#allocation16 + $0x68] sm:$0xf0]  ;;  %v8911_v14 = vld [vmem:[#allocation16 + $0x2a4] sm:$0xf0]  ;;  %v3095_v57 = vadd.f32 %v2985_v16, %v1077_v10 }
 0x26b   : > { %13920 = vst [vmem:[#allocation357_spill] sm:$0xff] %v10910_v28  ;;  %4018 = vmatpush.bf16.msrb.mxu3 %v10905_v58  ;;  %v10929_v48 = vor.u32 %v8911_v14, %v8254_v34  ;;  %v7934_v2 = vld [vmem:[#allocation16 + $0x8] sm:$0xf]  ;;  %9133 = vtanh.f32 %v3102_v38  ;;  %v3011_v34 = vadd.f32 %v10851_v47, %v10849_v3  ;;  %v8899_v10 = vld [vmem:[#allocation16 + $0x24c] sm:$0xf] }
 0x26c   : > { %v3025_v17 = vpop.f32.mrf.mxu2  ;;  %v3038_v35 = vpop.f32.mrf.mxu3  ;;  %13921 = vst [vmem:[#allocation358_spill] sm:$0xff] %v10914_v22  ;;  %4007 = vmatpush.bf16.msrb.mxu2 %v10910_v28  ;;  %v8907_v28 = vld [vmem:[#allocation16 + $0x28c] sm:$0xf]  ;;  %v8831_v60 = vld [vmem:[#allocation16 + $0x24] sm:$0xf0] }
 0x26d   : > { %13922 = vst [vmem:[#allocation359_spill] sm:$0xff] %v10917_v49  ;;  %v7966_v17 = vld [vmem:[#allocation16 + $0x48] sm:$0xf]  ;;  %v8835_v35 = vld [vmem:[#allocation16 + $0x4c] sm:$0xf] }
 0x26e   : > { %v10920_v11 = vor.u32 %v8839_v40, %v7966_v17  ;;  %3993 = vmatpush.bf16.msrb.mxu1 %v10914_v22  ;;  %v10925_v1 = vor.u32 %v8835_v35, %v7968_v8  ;;  %13925 = vst [vmem:[#allocation362_spill] sm:$0xff] %v10929_v48  ;;  %v10932_v17 = vor.u32 %v8907_v28, %v8256_v55  ;;  %v3100_v8 = vmul.f32 0.5, %v3092_v62  ;;  %v1075_v40 = vld [vmem:[#allocation4 + $0x18] sm:$0xff]  ;;  %v8827_v22 = vld [vmem:[#allocation16 + $0xc] sm:$0xf]  ;;  %v1078_v55 = vld [vmem:[#allocation4 + $0x28] sm:$0xff] }
 0x26f   : > { %4019 = vmatpush.bf16.msrb.mxu3 %v10917_v49  ;;  %v10934_v35 = vor.u32 %v8831_v60, %v7934_v2  ;;  %v10937_v49 = vor.u32 %v8827_v22, %v7936_v7  ;;  %v8222_v28 = vld [vmem:[#allocation16 + $0x248] sm:$0xf]  ;;  %v3093_v14 = vadd.f32 %v10739_v61, %v1075_v40  ;;  %v8224_v22 = vld [vmem:[#allocation16 + $0x268] sm:$0xf0]  ;;  %v3103_v2 = vmul.f32 0.5, %v3095_v57 }
 0x270   : > { %13923 = vst [vmem:[#allocation360_spill] sm:$0xff] %v10920_v11  ;;  %3982 = vmatpush.bf16.msrb.mxu0 %v10920_v11  ;;  %4008 = vmatpush.bf16.msrb.mxu2 %v10925_v1  ;;  %v8903_v62 = vld [vmem:[#allocation16 + $0x264] sm:$0xf0]  ;;  %9135 = vtanh.f32 %v3100_v8  ;;  %v10947_v38 = vor.u32 %v8899_v10, %v8224_v22  ;;  %v3096_v60 = vadd.f32 %v3011_v34, %v1078_v55  ;;  %v8891_v61 = vld [vmem:[#allocation16 + $0x20c] sm:$0xf]  ;;  %v1079_v22 = vld [vmem:[#allocation4 + $0x8] sm:$0xff] }
 0x271   : > { %13924 = vst [vmem:[#allocation361_spill] sm:$0xff] %v10925_v1  ;;  %v10945_v16 = vor.u32 %v8903_v62, %v8222_v28  ;;  %v8190_v3 = vld [vmem:[#allocation16 + $0x208] sm:$0xf]  ;;  %v8192_v40 = vld [vmem:[#allocation16 + $0x228] sm:$0xf0]  ;;  %v9134_v8 = vpop.eup %9133  ;;  %9137 = vtanh.f32 %v3103_v2  ;;  %v3037_v57 = vadd.f32 %v10881_v21, %v10879_v5 }
 0x272   : > { %13926 = vst [vmem:[#allocation363_spill] sm:$0xff] %v10932_v17  ;;  %3994 = vmatpush.bf16.msrb.mxu1 %v10929_v48  ;;  %v8895_v47 = vld [vmem:[#allocation16 + $0x224] sm:$0xf0]  ;;  %v3104_v55 = vmul.f32 0.5, %v3096_v60 }
 0x273   : > { %13927 = vst [vmem:[#allocation364_spill] sm:$0xff] %v10934_v35  ;;  %4020 = vmatpush.bf16.msrb.mxu3 %v10932_v17  ;;  %v10951_v7 = vor.u32 %v8895_v47, %v8190_v3  ;;  %v1080_v62 = vld [vmem:[#allocation4 + $0x30] sm:$0xff]  ;;  %v10953_v17 = vor.u32 %v8891_v61, %v8192_v40  ;;  %v3097_v61 = vadd.f32 %v3037_v57, %v1079_v22 }
 0x274   : > { %13928 = vst [vmem:[#allocation365_spill] sm:$0xff] %v10937_v49  ;;  %3983 = vmatpush.bf16.msrb.mxu0 %v10934_v35  ;;  %4009 = vmatpush.bf16.msrb.mxu2 %v10937_v49  ;;  %v3101_v49 = vmul.f32 0.5, %v3093_v14  ;;  %v3114_v14 = vadd.f32 1.0, %v9134_v8 }
 0x275   : > { %13929 = vst [vmem:[#allocation366_spill] sm:$0xff] %v10945_v16 }
 0x276   : > { %13930 = vst [vmem:[#allocation367_spill] sm:$0xff] %v10947_v38  ;;  %3995 = vmatpush.bf16.msrb.mxu1 %v10945_v16  ;;  %v9136_v34 = vpop.eup %9135  ;;  %9139 = vtanh.f32 %v3101_v49  ;;  %v1084_v16 = vld [vmem:[#allocation7 + $0x8] sm:$0xff] }
 0x277   : > { %4021 = vmatpush.bf16.msrb.mxu3 %v10947_v38  ;;  %13931 = vst [vmem:[#allocation368_spill] sm:$0xff] %v10951_v7  ;;  %v3112_v47 = vadd.f32 1.0, %v9136_v34  ;;  %v3120_v38 = vmul.f32 0.5, %v3114_v14 }
 0x278   : > { %13932 = vst [vmem:[#allocation369_spill] sm:$0xff] %v10953_v17 }
 0x279   : > { %v3118_v48 = vmul.f32 0.5, %v3112_v47  ;;  %v3126_v8 = vmul.f32 %v3120_v38, %v1084_v16  ;;  %v8888_v38 = vld [vmem:[#allocation16 + $0x1ec] sm:$0xf0] }
 0x27a   : > { %3996 = vmatpush.bf16.msrb.mxu1 %v10951_v7 }
 0x27b   : > { %v3049_v28 = vpop.f32.mrf.mxu0  ;;  %v3062_v35 = vpop.f32.mrf.mxu1  ;;  %4022 = vmatpush.bf16.msrb.mxu3 %v10953_v17 }
 0x27c   : > { %v3063_v10 = vadd.f32 %v3062_v35, %v3049_v28  ;;  %v1081_v35 = vld [vmem:[#allocation4 + $0x38] sm:$0xff]  ;;  %v9138_v28 = vpop.eup %9137 }
 0x27d   : > { %v9140_v60 = vpop.eup %9139  ;;  %v3115_v49 = vadd.f32 1.0, %v9138_v28 }
 0x27e   : > { %v3098_v3 = vadd.f32 %v3063_v10, %v1080_v62  ;;  %v3105_v62 = vmul.f32 0.5, %v3097_v61  ;;  %v3113_v34 = vadd.f32 1.0, %v9140_v60  ;;  %v8168_v60 = vld [vmem:[#allocation16 + $0x1f0] sm:$0xf0] }
 0x27f   : > { %v3121_v22 = vmul.f32 0.5, %v3115_v49 }
 0x280   : > { %9141 = vtanh.f32 %v3098_v3  ;;  %v3119_v47 = vmul.f32 0.5, %v3113_v34 }
 0x281   : > { %9143 = vtanh.f32 %v3104_v55 }
 0x282   : > { %v3075_v40 = vpop.f32.mrf.mxu2  ;;  %v3088_v2 = vpop.f32.mrf.mxu3 }
 0x283   : > { %v3089_v21 = vadd.f32 %v3088_v2, %v3075_v40  ;;  %v3051_v5 = vpop.f32.mrf.mxu0  ;;  %v3064_v7 = vpop.f32.mrf.mxu1  ;;  %v1085_v2 = vld [vmem:[#allocation7] sm:$0xff] }
 0x284   : > { %v8884_v5 = vld [vmem:[#allocation16 + $0x1d4] sm:$0xf] }
 0x285   : > { %v3099_v10 = vadd.f32 %v3089_v21, %v1081_v35  ;;  %v3127_v35 = vmul.f32 %v3121_v22, %v1085_v2  ;;  %v8880_v22 = vld [vmem:[#allocation16 + $0x1ac] sm:$0xf0] }
 0x286   : > { %v9142_v17 = vpop.eup %9141 }
 0x287   : > { %v3128_v3 = vmul.f32 %v9142_v17, %v3118_v48  ;;  %9145 = vtanh.f32 %v3099_v10  ;;  %v9144_v57 = vpop.eup %9143  ;;  %v8166_v48 = vld [vmem:[#allocation16 + $0x1d0] sm:$0xf] }
 0x288   : > { %9147 = vtanh.f32 %v3105_v62  ;;  %v3116_v7 = vadd.f32 1.0, %v9144_v57  ;;  %v8134_v57 = vld [vmem:[#allocation16 + $0x190] sm:$0xf] }
 0x289   : > { %v10959_v55 = vadd.f32 %v3128_v3, %v3126_v8  ;;  %v10965_v8 = vor.u32 %v8888_v38, %v8166_v48  ;;  %v10967_v3 = vor.u32 %v8884_v5, %v8168_v60  ;;  %v8872_v38 = vld [vmem:[#allocation16 + $0x16c] sm:$0xf0]  ;;  %v8868_v5 = vld [vmem:[#allocation16 + $0x154] sm:$0xf] }
 0x28a   : > { %v3077_v14 = vpop.f32.mrf.mxu2  ;;  %v3090_v40 = vpop.f32.mrf.mxu3  ;;  %v3122_v16 = vmul.f32 0.5, %v3116_v7  ;;  %v8422_v7 = vld [vmem:[#allocation16 + $0x3d0] sm:$0xf]  ;;  %v8104_v60 = vld [vmem:[#allocation16 + $0x170] sm:$0xf0] }
 0x28b   : > { %13933 = vst [vmem:[#allocation370_spill] sm:$0xff] %v10959_v55  ;;  %9149 = vtanh.f32 %v10959_v55  ;;  %v8876_v14 = vld [vmem:[#allocation16 + $0x194] sm:$0xf] }
 0x28c   : > { %13935 = vst [vmem:[#allocation372_spill] sm:$0xff] %v10965_v8  ;;  %v8136_v40 = vld [vmem:[#allocation16 + $0x1b0] sm:$0xf0] }
 0x28d   : > { %v9146_v61 = vpop.eup %9145  ;;  %13936 = vst [vmem:[#allocation373_spill] sm:$0xff] %v10967_v3 }
 0x28e   : > { %v3129_v21 = vmul.f32 %v9146_v61, %v3119_v47  ;;  %v9148_v28 = vpop.eup %9147  ;;  %v8952_v47 = vld [vmem:[#allocation16 + $0x3ec] sm:$0xf0]  ;;  %v10975_v61 = vor.u32 %v8880_v22, %v8134_v57  ;;  %v10989_v22 = vor.u32 %v8868_v5, %v8104_v60  ;;  %v8932_v60 = vld [vmem:[#allocation16 + $0x354] sm:$0xf] }
 0x28f   : > { %v3117_v10 = vadd.f32 1.0, %v9148_v28  ;;  %v8424_v28 = vld [vmem:[#allocation16 + $0x3f0] sm:$0xf0]  ;;  %v8936_v5 = vld [vmem:[#allocation16 + $0x36c] sm:$0xf0] }
 0x290   : > { %v10962_v17 = vadd.f32 %v3129_v21, %v3127_v35  ;;  %13937 = vst [vmem:[#allocation374_spill] sm:$0xff] %v10975_v61  ;;  %v10977_v35 = vor.u32 %v8876_v14, %v8136_v40  ;;  %v8948_v21 = vld [vmem:[#allocation16 + $0x3d4] sm:$0xf] }
 0x291   : > { %v9150_v62 = vpop.eup %9149  ;;  %v3123_v2 = vmul.f32 0.5, %v3117_v10  ;;  %v10979_v10 = vor.u32 %v8952_v47, %v8422_v7  ;;  %13942 = vst [vmem:[#allocation379_spill] sm:$0xff] %v10989_v22  ;;  %v8940_v14 = vld [vmem:[#allocation16 + $0x394] sm:$0xf] }
 0x292   : > { %13934 = vst [vmem:[#allocation371_spill] sm:$0xff] %v10962_v17  ;;  %v3134_v49 = vmul.f32 %v9150_v62, %v3122_v16  ;;  %9151 = vtanh.f32 %v10962_v17  ;;  %v8102_v16 = vld [vmem:[#allocation16 + $0x150] sm:$0xf]  ;;  %v8392_v40 = vld [vmem:[#allocation16 + $0x3b0] sm:$0xf0] }
 0x293   : > { %13938 = vst [vmem:[#allocation375_spill] sm:$0xff] %v10977_v35  ;;  %v8390_v17 = vld [vmem:[#allocation16 + $0x390] sm:$0xf]  ;;  %v10987_v57 = vor.u32 %v8872_v38, %v8102_v16  ;;  %v8860_v7 = vld [vmem:[#allocation16 + $0x114] sm:$0xf] }
 0x294   : > { %v10969_v34 = vpack.c.bf16 %v3134_v49, %v3134_v49  ;;  %13939 = vst [vmem:[#allocation376_spill] sm:$0xff] %v10979_v10  ;;  %v10981_v49 = vor.u32 %v8948_v21, %v8424_v28  ;;  %v8072_v47 = vld [vmem:[#allocation16 + $0x130] sm:$0xf0]  ;;  %v10997_v28 = vor.u32 %v8940_v14, %v8392_v40  ;;  %v8358_v16 = vld [vmem:[#allocation16 + $0x350] sm:$0xf] }
 0x295   : > { %13941 = vst [vmem:[#allocation378_spill] sm:$0xff] %v10987_v57  ;;  %v11003_v38 = vor.u32 %v8860_v7, %v8072_v47  ;;  %v8326_v14 = vld [vmem:[#allocation16 + $0x310] sm:$0xf]  ;;  %v8924_v40 = vld [vmem:[#allocation16 + $0x314] sm:$0xf] }
 0x296   : > { %3932 = vmatmul.bf16.vlgmr.msra.gmra.mxu0 %v10969_v34  ;;  %3958 = vmatmul.bf16.vlgmr.msra.gmra.mxu2 %v10969_v34  ;;  %13940 = vst [vmem:[#allocation377_spill] sm:$0xff] %v10981_v49 }
 0x297   : > { %4028 = vmatpush.bf16.msra.mxu0 %v10965_v8  ;;  %4054 = vmatpush.bf16.msra.mxu2 %v10967_v3  ;;  %v8944_v8 = vld [vmem:[#allocation16 + $0x3ac] sm:$0xf0]  ;;  %13944 = vst [vmem:[#allocation381_spill] sm:$0xff] %v10997_v28 }
 0x298   : > { %v9152_v48 = vpop.eup %9151  ;;  %v8070_v3 = vld [vmem:[#allocation16 + $0x110] sm:$0xf]  ;;  %v10995_v21 = vor.u32 %v8944_v8, %v8390_v17  ;;  %13946 = vst [vmem:[#allocation383_spill] sm:$0xff] %v11003_v38  ;;  %v11007_v17 = vor.u32 %v8936_v5, %v8358_v16 }
 0x299   : > { %v3135_v62 = vmul.f32 %v9152_v48, %v3123_v2  ;;  %v8864_v2 = vld [vmem:[#allocation16 + $0x12c] sm:$0xf0] }
 0x29a   : > { %13943 = vst [vmem:[#allocation380_spill] sm:$0xff] %v10995_v21  ;;  %v11001_v48 = vor.u32 %v8864_v2, %v8070_v3  ;;  %v8928_v3 = vld [vmem:[#allocation16 + $0x32c] sm:$0xf0]  ;;  %v8328_v2 = vld [vmem:[#allocation16 + $0x330] sm:$0xf0] }
 0x29b   : > { %v10983_v55 = vpack.c.bf16 %v3135_v62, %v3135_v62  ;;  %4029 = vmatpush.bf16.msra.mxu0 %v10975_v61  ;;  %4055 = vmatpush.bf16.msra.mxu2 %v10977_v35  ;;  %v8360_v62 = vld [vmem:[#allocation16 + $0x370] sm:$0xf0]  ;;  %v8038_v35 = vld [vmem:[#allocation16 + $0xd0] sm:$0xf]  ;;  %13947 = vst [vmem:[#allocation384_spill] sm:$0xff] %v11007_v17  ;;  %v11019_v16 = vor.u32 %v8928_v3, %v8326_v14 }
 0x29c   : > { %13945 = vst [vmem:[#allocation382_spill] sm:$0xff] %v11001_v48  ;;  %v8852_v61 = vld [vmem:[#allocation16 + $0xd4] sm:$0xf]  ;;  %v11009_v8 = vor.u32 %v8932_v60, %v8360_v62  ;;  %v11021_v5 = vor.u32 %v8924_v40, %v8328_v2  ;;  %v8294_v60 = vld [vmem:[#allocation16 + $0x2d0] sm:$0xf] }
 0x29d   : > { %3945 = vmatmul.bf16.vlgmr.msra.gmra.mxu1 %v10983_v55  ;;  %3971 = vmatmul.bf16.vlgmr.msra.gmra.mxu3 %v10983_v55  ;;  %13951 = vst [vmem:[#allocation388_spill] sm:$0xff] %v11019_v16  ;;  %v7974_v14 = vld [vmem:[#allocation16 + $0x50] sm:$0xf]  ;;  %v8836_v40 = vld [vmem:[#allocation16 + $0x54] sm:$0xf] }
 0x29e   : > { %4041 = vmatpush.bf16.msra.mxu1 %v10979_v10  ;;  %4067 = vmatpush.bf16.msra.mxu3 %v10981_v49  ;;  %v8856_v10 = vld [vmem:[#allocation16 + $0xec] sm:$0xf0]  ;;  %v8040_v49 = vld [vmem:[#allocation16 + $0xf0] sm:$0xf0]  ;;  %13948 = vst [vmem:[#allocation385_spill] sm:$0xff] %v11009_v8 }
 0x29f   : > { %4030 = vmatpush.bf16.msra.mxu0 %v10987_v57  ;;  %4056 = vmatpush.bf16.msra.mxu2 %v10989_v22  ;;  %v11013_v7 = vor.u32 %v8856_v10, %v8038_v35  ;;  %v11015_v47 = vor.u32 %v8852_v61, %v8040_v49  ;;  %v8006_v22 = vld [vmem:[#allocation16 + $0x90] sm:$0xf]  ;;  %v8844_v57 = vld [vmem:[#allocation16 + $0x94] sm:$0xf]  ;;  %13952 = vst [vmem:[#allocation389_spill] sm:$0xff] %v11021_v5 }
 0x2a0   : > { %v8920_v35 = vld [vmem:[#allocation16 + $0x2ec] sm:$0xf0]  ;;  %v8916_v61 = vld [vmem:[#allocation16 + $0x2d4] sm:$0xf] }
 0x2a1   : > { %13949 = vst [vmem:[#allocation386_spill] sm:$0xff] %v11013_v7  ;;  %v8296_v10 = vld [vmem:[#allocation16 + $0x2f0] sm:$0xf0]  ;;  %v8840_v3 = vld [vmem:[#allocation16 + $0x6c] sm:$0xf0] }
 0x2a2   : > { %4042 = vmatpush.bf16.msra.mxu1 %v10995_v21  ;;  %4068 = vmatpush.bf16.msra.mxu3 %v10997_v28  ;;  %13950 = vst [vmem:[#allocation387_spill] sm:$0xff] %v11015_v47  ;;  %v8848_v21 = vld [vmem:[#allocation16 + $0xac] sm:$0xf0]  ;;  %v8008_v28 = vld [vmem:[#allocation16 + $0xb0] sm:$0xf0] }
 0x2a3   : > { %4031 = vmatpush.bf16.msra.mxu0 %v11001_v48  ;;  %4057 = vmatpush.bf16.msra.mxu2 %v11003_v38  ;;  %v11027_v49 = vor.u32 %v8848_v21, %v8006_v22  ;;  %v11029_v62 = vor.u32 %v8844_v57, %v8008_v28  ;;  %v7976_v2 = vld [vmem:[#allocation16 + $0x70] sm:$0xf0]  ;;  %v8262_v38 = vld [vmem:[#allocation16 + $0x290] sm:$0xf]  ;;  %v11039_v57 = vor.u32 %v8840_v3, %v7974_v14  ;;  %v8885_v3 = vld [vmem:[#allocation16 + $0x1dc] sm:$0xf] }
 0x2a4   : > { %v8908_v48 = vld [vmem:[#allocation16 + $0x294] sm:$0xf]  ;;  %v11041_v22 = vor.u32 %v8836_v40, %v7976_v2  ;;  %v7942_v21 = vld [vmem:[#allocation16 + $0x10] sm:$0xf]  ;;  %v8176_v40 = vld [vmem:[#allocation16 + $0x1f8] sm:$0xf0] }
 0x2a5   : > { %13953 = vst [vmem:[#allocation390_spill] sm:$0xff] %v11027_v49  ;;  %v8832_v28 = vld [vmem:[#allocation16 + $0x2c] sm:$0xf0] }
 0x2a6   : > { %4043 = vmatpush.bf16.msra.mxu1 %v11007_v17  ;;  %4069 = vmatpush.bf16.msra.mxu3 %v11009_v8  ;;  %13954 = vst [vmem:[#allocation391_spill] sm:$0xff] %v11029_v62  ;;  %v11033_v8 = vor.u32 %v8920_v35, %v8294_v60  ;;  %v11035_v17 = vor.u32 %v8916_v61, %v8296_v10  ;;  %v7944_v60 = vld [vmem:[#allocation16 + $0x30] sm:$0xf0]  ;;  %v8174_v35 = vld [vmem:[#allocation16 + $0x1d8] sm:$0xf] }
 0x2a7   : > { %3984 = vmatmul.bf16.vlgmr.msrb.gmra.mxu0 %v10969_v34  ;;  %4010 = vmatmul.bf16.vlgmr.msrb.gmra.mxu2 %v10969_v34  ;;  %13957 = vst [vmem:[#allocation394_spill] sm:$0xff] %v11039_v57  ;;  %v8889_v61 = vld [vmem:[#allocation16 + $0x1f4] sm:$0xf0]  ;;  %v8230_v2 = vld [vmem:[#allocation16 + $0x250] sm:$0xf]  ;;  %v11053_v1 = vor.u32 %v8832_v28, %v7942_v21 }
 0x2a8   : > { %4032 = vmatpush.bf16.msra.mxu0 %v11013_v7  ;;  %4058 = vmatpush.bf16.msra.mxu2 %v11015_v47  ;;  %13955 = vst [vmem:[#allocation392_spill] sm:$0xff] %v11033_v8  ;;  %v8912_v7 = vld [vmem:[#allocation16 + $0x2ac] sm:$0xf0]  ;;  %v8264_v47 = vld [vmem:[#allocation16 + $0x2b0] sm:$0xf0] }
 0x2a9   : > { %13956 = vst [vmem:[#allocation393_spill] sm:$0xff] %v11035_v17  ;;  %v11047_v10 = vor.u32 %v8912_v7, %v8262_v38  ;;  %v11049_v14 = vor.u32 %v8908_v48, %v8264_v47  ;;  %v11059_v38 = vor.u32 %v8885_v3, %v8176_v40  ;;  %v8142_v48 = vld [vmem:[#allocation16 + $0x198] sm:$0xf]  ;;  %v8877_v47 = vld [vmem:[#allocation16 + $0x19c] sm:$0xf] }
 0x2aa   : > { %4044 = vmatpush.bf16.msra.mxu1 %v11019_v16  ;;  %4070 = vmatpush.bf16.msra.mxu3 %v11021_v5  ;;  %13958 = vst [vmem:[#allocation395_spill] sm:$0xff] %v11041_v22  ;;  %v8828_v16 = vld [vmem:[#allocation16 + $0x14] sm:$0xf]  ;;  %v8881_v7 = vld [vmem:[#allocation16 + $0x1b4] sm:$0xf0] }
 0x2ab   : > { %13959 = vst [vmem:[#allocation396_spill] sm:$0xff] %v11047_v10  ;;  %v8232_v5 = vld [vmem:[#allocation16 + $0x270] sm:$0xf0]  ;;  %v11055_v11 = vor.u32 %v8828_v16, %v7944_v60  ;;  %v8198_v21 = vld [vmem:[#allocation16 + $0x210] sm:$0xf] }
 0x2ac   : > { %4033 = vmatpush.bf16.msra.mxu0 %v11027_v49  ;;  %4059 = vmatpush.bf16.msra.mxu2 %v11029_v62  ;;  %13960 = vst [vmem:[#allocation397_spill] sm:$0xff] %v11049_v14  ;;  %v8904_v62 = vld [vmem:[#allocation16 + $0x26c] sm:$0xf0]  ;;  %v8900_v49 = vld [vmem:[#allocation16 + $0x254] sm:$0xf] }
 0x2ad   : > { %3997 = vmatmul.bf16.vlgmr.msrb.gmra.mxu1 %v10983_v55  ;;  %4023 = vmatmul.bf16.vlgmr.msrb.gmra.mxu3 %v10983_v55  ;;  %13961 = vst [vmem:[#allocation398_spill] sm:$0xff] %v11053_v1  ;;  %v8896_v28 = vld [vmem:[#allocation16 + $0x22c] sm:$0xf0]  ;;  %v8892_v16 = vld [vmem:[#allocation16 + $0x214] sm:$0xf] }
 0x2ae   : > { %4045 = vmatpush.bf16.msra.mxu1 %v11033_v8  ;;  %4071 = vmatpush.bf16.msra.mxu3 %v11035_v17  ;;  %13962 = vst [vmem:[#allocation399_spill] sm:$0xff] %v11055_v11  ;;  %v11057_v8 = vor.u32 %v8889_v61, %v8174_v35  ;;  %v11063_v17 = vor.u32 %v8904_v62, %v8230_v2  ;;  %v8200_v60 = vld [vmem:[#allocation16 + $0x230] sm:$0xf0]  ;;  %v8430_v35 = vld [vmem:[#allocation16 + $0x3d8] sm:$0xf] }
 0x2af   : > { %13964 = vst [vmem:[#allocation401_spill] sm:$0xff] %v11059_v38  ;;  %v8953_v61 = vld [vmem:[#allocation16 + $0x3f4] sm:$0xf0]  ;;  %v8949_v3 = vld [vmem:[#allocation16 + $0x3dc] sm:$0xf]  ;;  %v11071_v62 = vor.u32 %v8881_v7, %v8142_v48  ;;  %v11077_v2 = vor.u32 %v8896_v28, %v8198_v21 }
 0x2b0   : > { %4034 = vmatpush.bf16.msra.mxu0 %v11039_v57  ;;  %4060 = vmatpush.bf16.msra.mxu2 %v11041_v22  ;;  %13963 = vst [vmem:[#allocation400_spill] sm:$0xff] %v11057_v8  ;;  %v11065_v57 = vor.u32 %v8900_v49, %v8232_v5  ;;  %v8144_v22 = vld [vmem:[#allocation16 + $0x1b8] sm:$0xf0]  ;;  %v8110_v49 = vld [vmem:[#allocation16 + $0x158] sm:$0xf]  ;;  %v11083_v48 = vor.u32 %v8953_v61, %v8430_v35 }
 0x2b1   : > { %13965 = vst [vmem:[#allocation402_spill] sm:$0xff] %v11063_v17  ;;  %v8432_v40 = vld [vmem:[#allocation16 + $0x3f8] sm:$0xf0]  ;;  %v11073_v5 = vor.u32 %v8877_v47, %v8144_v22  ;;  %v8398_v7 = vld [vmem:[#allocation16 + $0x398] sm:$0xf] }
 0x2b2   : > { %4046 = vmatpush.bf16.msra.mxu1 %v11047_v10  ;;  %4072 = vmatpush.bf16.msra.mxu3 %v11049_v14  ;;  %13966 = vst [vmem:[#allocation403_spill] sm:$0xff] %v11065_v57  ;;  %v8869_v14 = vld [vmem:[#allocation16 + $0x15c] sm:$0xf]  ;;  %v11085_v22 = vor.u32 %v8949_v3, %v8432_v40  ;;  %v8945_v47 = vld [vmem:[#allocation16 + $0x3b4] sm:$0xf0] }
 0x2b3   : > { %13967 = vst [vmem:[#allocation404_spill] sm:$0xff] %v11071_v62  ;;  %v8112_v10 = vld [vmem:[#allocation16 + $0x178] sm:$0xf0]  ;;  %v11097_v3 = vor.u32 %v8945_v47, %v8398_v7  ;;  %v8857_v7 = vld [vmem:[#allocation16 + $0xf4] sm:$0xf0] }
 0x2b4   : > { %4035 = vmatpush.bf16.msra.mxu0 %v11053_v1  ;;  %4061 = vmatpush.bf16.msra.mxu2 %v11055_v11  ;;  %13968 = vst [vmem:[#allocation405_spill] sm:$0xff] %v11073_v5  ;;  %v11079_v1 = vor.u32 %v8892_v16, %v8200_v60  ;;  %v8873_v11 = vld [vmem:[#allocation16 + $0x174] sm:$0xf0]  ;;  %v11091_v28 = vor.u32 %v8869_v14, %v8112_v10  ;;  %v8861_v35 = vld [vmem:[#allocation16 + $0x11c] sm:$0xf] }
 0x2b5   : > { %13969 = vst [vmem:[#allocation406_spill] sm:$0xff] %v11077_v2  ;;  %v11089_v21 = vor.u32 %v8873_v11, %v8110_v49  ;;  %v8078_v16 = vld [vmem:[#allocation16 + $0x118] sm:$0xf]  ;;  %v8080_v61 = vld [vmem:[#allocation16 + $0x138] sm:$0xf0] }
 0x2b6   : > { %4047 = vmatpush.bf16.msra.mxu1 %v11063_v17  ;;  %4073 = vmatpush.bf16.msra.mxu3 %v11065_v57  ;;  %13970 = vst [vmem:[#allocation407_spill] sm:$0xff] %v11079_v1  ;;  %v8941_v17 = vld [vmem:[#allocation16 + $0x39c] sm:$0xf]  ;;  %v8865_v60 = vld [vmem:[#allocation16 + $0x134] sm:$0xf0] }
 0x2b7   : > { %4036 = vmatmul.bf16.vlgmr.msra.gmra.mxu0 %v10969_v34  ;;  %4062 = vmatmul.bf16.vlgmr.msra.gmra.mxu2 %v10969_v34  ;;  %13971 = vst [vmem:[#allocation408_spill] sm:$0xff] %v11083_v48  ;;  %v8366_v11 = vld [vmem:[#allocation16 + $0x358] sm:$0xf]  ;;  %v8933_v10 = vld [vmem:[#allocation16 + $0x35c] sm:$0xf] }
 0x2b8   : > { %4080 = vmatpush.bf16.msrb.mxu0 %v11057_v8  ;;  %4106 = vmatpush.bf16.msrb.mxu2 %v11059_v38  ;;  %13972 = vst [vmem:[#allocation409_spill] sm:$0xff] %v11085_v22  ;;  %v8400_v38 = vld [vmem:[#allocation16 + $0x3b8] sm:$0xf0]  ;;  %v8937_v49 = vld [vmem:[#allocation16 + $0x374] sm:$0xf0] }
 0x2b9   : > { %13973 = vst [vmem:[#allocation410_spill] sm:$0xff] %v11089_v21  ;;  %v11099_v40 = vor.u32 %v8941_v17, %v8400_v38  ;;  %v8368_v14 = vld [vmem:[#allocation16 + $0x378] sm:$0xf0]  ;;  %v11111_v47 = vor.u32 %v8937_v49, %v8366_v11 }
 0x2ba   : > { %13974 = vst [vmem:[#allocation411_spill] sm:$0xff] %v11091_v28  ;;  %4048 = vmatpush.bf16.msra.mxu1 %v11077_v2  ;;  %4074 = vmatpush.bf16.msra.mxu3 %v11079_v1  ;;  %v11103_v1 = vor.u32 %v8865_v60, %v8078_v16  ;;  %v11105_v2 = vor.u32 %v8861_v35, %v8080_v61  ;;  %v8853_v17 = vld [vmem:[#allocation16 + $0xdc] sm:$0xf]  ;;  %v8334_v16 = vld [vmem:[#allocation16 + $0x318] sm:$0xf] }
 0x2bb   : > { %13975 = vst [vmem:[#allocation412_spill] sm:$0xff] %v11097_v3  ;;  %v8048_v38 = vld [vmem:[#allocation16 + $0xf8] sm:$0xf0]  ;;  %v8929_v60 = vld [vmem:[#allocation16 + $0x334] sm:$0xf0] }
 0x2bc   : > { %4081 = vmatpush.bf16.msrb.mxu0 %v11071_v62  ;;  %4107 = vmatpush.bf16.msrb.mxu2 %v11073_v5  ;;  %13976 = vst [vmem:[#allocation413_spill] sm:$0xff] %v11099_v40  ;;  %v8046_v5 = vld [vmem:[#allocation16 + $0xd8] sm:$0xf]  ;;  %v8925_v35 = vld [vmem:[#allocation16 + $0x31c] sm:$0xf]  ;;  %v11123_v11 = vor.u32 %v8929_v60, %v8334_v16 }
 0x2bd   : > { %13977 = vst [vmem:[#allocation414_spill] sm:$0xff] %v11103_v1  ;;  %4049 = vmatmul.bf16.vlgmr.msra.gmra.mxu1 %v10983_v55  ;;  %4075 = vmatmul.bf16.vlgmr.msra.gmra.mxu3 %v10983_v55  ;;  %v8336_v61 = vld [vmem:[#allocation16 + $0x338] sm:$0xf0] }
 0x2be   : > { %4093 = vmatpush.bf16.msrb.mxu1 %v11083_v48  ;;  %4119 = vmatpush.bf16.msrb.mxu3 %v11085_v22  ;;  %13978 = vst [vmem:[#allocation415_spill] sm:$0xff] %v11105_v2  ;;  %v11119_v22 = vor.u32 %v8853_v17, %v8048_v38  ;;  %v8014_v48 = vld [vmem:[#allocation16 + $0x98] sm:$0xf]  ;;  %v8845_v62 = vld [vmem:[#allocation16 + $0x9c] sm:$0xf]  ;;  %v11125_v49 = vor.u32 %v8925_v35, %v8336_v61 }
 0x2bf   : > { %13979 = vst [vmem:[#allocation416_spill] sm:$0xff] %v11111_v47  ;;  %v7982_v17 = vld [vmem:[#allocation16 + $0x58] sm:$0xf] }
 0x2c0   : > { %4082 = vmatpush.bf16.msrb.mxu0 %v11089_v21  ;;  %4108 = vmatpush.bf16.msrb.mxu2 %v11091_v28  ;;  %v11113_v21 = vor.u32 %v8933_v10, %v8368_v14  ;;  %v11117_v28 = vor.u32 %v8857_v7, %v8046_v5  ;;  %13982 = vst [vmem:[#allocation419_spill] sm:$0xff] %v11119_v22  ;;  %v8302_v10 = vld [vmem:[#allocation16 + $0x2d8] sm:$0xf] }
 0x2c1   : > { %13983 = vst [vmem:[#allocation420_spill] sm:$0xff] %v11123_v11  ;;  %v8921_v14 = vld [vmem:[#allocation16 + $0x2f4] sm:$0xf0] }
 0x2c2   : > { %4094 = vmatpush.bf16.msrb.mxu1 %v11097_v3  ;;  %4120 = vmatpush.bf16.msrb.mxu3 %v11099_v40  ;;  %13980 = vst [vmem:[#allocation417_spill] sm:$0xff] %v11113_v21  ;;  %v8849_v3 = vld [vmem:[#allocation16 + $0xb4] sm:$0xf0]  ;;  %v8016_v40 = vld [vmem:[#allocation16 + $0xb8] sm:$0xf0]  ;;  %v11135_v16 = vor.u32 %v8921_v14, %v8302_v10 }
 0x2c3   : > { %13981 = vst [vmem:[#allocation418_spill] sm:$0xff] %v11117_v28  ;;  %v11129_v5 = vor.u32 %v8849_v3, %v8014_v48  ;;  %v11131_v7 = vor.u32 %v8845_v62, %v8016_v40  ;;  %v8841_v38 = vld [vmem:[#allocation16 + $0x74] sm:$0xf0] }
 0x2c4   : > { %4083 = vmatpush.bf16.msrb.mxu0 %v11103_v1  ;;  %4109 = vmatpush.bf16.msrb.mxu2 %v11105_v2  ;;  %13984 = vst [vmem:[#allocation421_spill] sm:$0xff] %v11125_v49  ;;  %v8917_v1 = vld [vmem:[#allocation16 + $0x2dc] sm:$0xf]  ;;  %v8270_v35 = vld [vmem:[#allocation16 + $0x298] sm:$0xf]  ;;  %v11141_v62 = vor.u32 %v8841_v38, %v7982_v17 }
 0x2c5   : > { %v8304_v2 = vld [vmem:[#allocation16 + $0x2f8] sm:$0xf0]  ;;  %13985 = vst [vmem:[#allocation422_spill] sm:$0xff] %v11129_v5  ;;  %v8913_v61 = vld [vmem:[#allocation16 + $0x2b4] sm:$0xf0] }
 0x2c6   : > { %4095 = vmatpush.bf16.msrb.mxu1 %v11111_v47  ;;  %4121 = vmatpush.bf16.msrb.mxu3 %v11113_v21  ;;  %13986 = vst [vmem:[#allocation423_spill] sm:$0xff] %v11131_v7  ;;  %v8837_v47 = vld [vmem:[#allocation16 + $0x5c] sm:$0xf]  ;;  %v11137_v60 = vor.u32 %v8917_v1, %v8304_v2  ;;  %v7950_v3 = vld [vmem:[#allocation16 + $0x18] sm:$0xf]  ;;  %v11147_v1 = vor.u32 %v8913_v61, %v8270_v35 }
 0x2c7   : > { %v7984_v21 = vld [vmem:[#allocation16 + $0x78] sm:$0xf0]  ;;  %13987 = vst [vmem:[#allocation424_spill] sm:$0xff] %v11135_v16  ;;  %v8833_v40 = vld [vmem:[#allocation16 + $0x34] sm:$0xf0] }
 0x2c8   : > { %4084 = vmatpush.bf16.msrb.mxu0 %v11117_v28  ;;  %4110 = vmatpush.bf16.msrb.mxu2 %v11119_v22  ;;  %13988 = vst [vmem:[#allocation425_spill] sm:$0xff] %v11137_v60  ;;  %v8909_v28 = vld [vmem:[#allocation16 + $0x29c] sm:$0xf]  ;;  %v11143_v48 = vor.u32 %v8837_v47, %v7984_v21  ;;  %v8238_v10 = vld [vmem:[#allocation16 + $0x258] sm:$0xf]  ;;  %v11153_v21 = vor.u32 %v8833_v40, %v7950_v3  ;;  %v14000_v40 = vld [vmem:[#allocation46_spill] sm:$0xff] }
 0x2c9   : > { %v8272_v22 = vld [vmem:[#allocation16 + $0x2b8] sm:$0xf0]  ;;  %13989 = vst [vmem:[#allocation426_spill] sm:$0xff] %v11141_v62  ;;  %v8905_v14 = vld [vmem:[#allocation16 + $0x274] sm:$0xf0] }
 0x2ca   : > { %4096 = vmatpush.bf16.msrb.mxu1 %v11123_v11  ;;  %4122 = vmatpush.bf16.msrb.mxu3 %v11125_v49  ;;  %13990 = vst [vmem:[#allocation427_spill] sm:$0xff] %v11143_v48  ;;  %v8829_v11 = vld [vmem:[#allocation16 + $0x1c] sm:$0xf]  ;;  %v11149_v2 = vor.u32 %v8909_v28, %v8272_v22  ;;  %v11159_v17 = vor.u32 %v8905_v14, %v8238_v10  ;;  %v8206_v28 = vld [vmem:[#allocation16 + $0x218] sm:$0xf]  ;;  %v14001_v10 = vld [vmem:[#allocation48_spill] sm:$0xff] }
 0x2cb   : > { %v7952_v49 = vld [vmem:[#allocation16 + $0x38] sm:$0xf0]  ;;  %13991 = vst [vmem:[#allocation428_spill] sm:$0xff] %v11147_v1  ;;  %v8897_v38 = vld [vmem:[#allocation16 + $0x234] sm:$0xf0] }
 0x2cc   : > { %4085 = vmatpush.bf16.msrb.mxu0 %v11129_v5  ;;  %4111 = vmatpush.bf16.msrb.mxu2 %v11131_v7  ;;  %13992 = vst [vmem:[#allocation429_spill] sm:$0xff] %v11149_v2  ;;  %v8901_v5 = vld [vmem:[#allocation16 + $0x25c] sm:$0xf]  ;;  %v11155_v47 = vor.u32 %v8829_v11, %v7952_v49  ;;  %v970_v11 = vadd.f32 %v10411_v19, %v10007_v18 }
 0x2cd   : > { %v8240_v7 = vld [vmem:[#allocation16 + $0x278] sm:$0xf0]  ;;  %13993 = vst [vmem:[#allocation430_spill] sm:$0xff] %v11153_v21  ;;  %v11171_v49 = vor.u32 %v8897_v38, %v8206_v28  ;;  %v989_v19 = vadd.f32 %v10413_v6, %v10026_v44  ;;  %v14003_v38 = vld [vmem:[#allocation45_spill] sm:$0xff] }
 0x2ce   : > { %4097 = vmatpush.bf16.msrb.mxu1 %v11135_v16  ;;  %4123 = vmatpush.bf16.msrb.mxu3 %v11137_v60  ;;  %13994 = vst [vmem:[#allocation431_spill] sm:$0xff] %v11155_v47  ;;  %v11161_v22 = vor.u32 %v8901_v5, %v8240_v7  ;;  %v8893_v35 = vld [vmem:[#allocation16 + $0x21c] sm:$0xf]  ;;  %v4145_v7 = vadd.f32 %v10653_v52, %v970_v11  ;;  %v14004_v11 = vld [vmem:[#allocation50_spill] sm:$0xff] }
 0x2cf   : > { %13995 = vst [vmem:[#allocation432_spill] sm:$0xff] %v11159_v17  ;;  %v8208_v61 = vld [vmem:[#allocation16 + $0x238] sm:$0xf0] }
 0x2d0   : > { %4086 = vmatpush.bf16.msrb.mxu0 %v11141_v62  ;;  %4112 = vmatpush.bf16.msrb.mxu2 %v11143_v48  ;;  %13996 = vst [vmem:[#allocation433_spill] sm:$0xff] %v11161_v22  ;;  %v11173_v5 = vor.u32 %v8893_v35, %v8208_v61  ;;  %v4153_v3 = vmul.f32 0.5, %v4145_v7  ;;  %v14002_v28 = vld [vmem:[#allocation43_spill] sm:$0xff]  ;;  %v14005_v7 = vld [vmem:[#allocation52_spill] sm:$0xff] }
 0x2d1   : > { %13997 = vst [vmem:[#allocation434_spill] sm:$0xff] %v11171_v49 }
 0x2d2   : > { %4098 = vmatpush.bf16.msrb.mxu1 %v11147_v1  ;;  %4124 = vmatpush.bf16.msrb.mxu3 %v11149_v2  ;;  %13998 = vst [vmem:[#allocation435_spill] sm:$0xff] %v11173_v5  ;;  %9153 = vtanh.f32 %v4153_v3 }
 0x2d4   : > { %4087 = vmatpush.bf16.msrb.mxu0 %v11153_v21  ;;  %4113 = vmatpush.bf16.msrb.mxu2 %v11155_v47 }
 0x2d6   : > { %4099 = vmatpush.bf16.msrb.mxu1 %v11159_v17  ;;  %4125 = vmatpush.bf16.msrb.mxu3 %v11161_v22 }
 0x2d7   : > { %4088 = vmatmul.bf16.vlgmr.msrb.gmra.mxu0 %v10969_v34  ;;  %4114 = vmatmul.bf16.vlgmr.msrb.gmra.mxu2 %v10969_v34  ;;  %v4146_v34 = vadd.f32 %v10677_v29, %v989_v19  ;;  %v13999_v29 = vld [vmem:[#allocation41_spill] sm:$0xff] }
 0x2d8   : > { %4187 = vmatpush.bf16.msra.mxu0 %v9795_v20  ;;  %4213 = vmatpush.bf16.msra.mxu2 %v9800_v26  ;;  %v9154_v52 = vpop.eup %9153 }
 0x2d9   : > { %v4154_v6 = vmul.f32 0.5, %v4146_v34  ;;  %v14006_v34 = vld [vmem:[#allocation47_spill] sm:$0xff] }
 0x2da   : > { %4100 = vmatpush.bf16.msrb.mxu1 %v11171_v49  ;;  %4126 = vmatpush.bf16.msrb.mxu3 %v11173_v5 }
 0x2db   : > { %9155 = vtanh.f32 %v4154_v6  ;;  %v14007_v6 = vld [vmem:[#allocation49_spill] sm:$0xff] }
 0x2dc   : > { %4188 = vmatpush.bf16.msra.mxu0 %v9807_v32  ;;  %4214 = vmatpush.bf16.msra.mxu2 %v9811_v36  ;;  %9157 = vtanh.f32 %v10732_v54 }
 0x2dd   : > { %4101 = vmatmul.bf16.vlgmr.msrb.gmra.mxu1 %v10983_v55  ;;  %4127 = vmatmul.bf16.vlgmr.msrb.gmra.mxu3 %v10983_v55  ;;  %v4165_v55 = vadd.f32 1.0, %v9154_v52  ;;  %9159 = vtanh.f32 %v10735_v13 }
 0x2de   : > { %4200 = vmatpush.bf16.msra.mxu1 %v9797_v23  ;;  %4226 = vmatpush.bf16.msra.mxu3 %v9802_v27 }
 0x2df   : > { %v4171_v61 = vmul.f32 0.5, %v4165_v55  ;;  %v14011_v55 = vld [vmem:[#allocation60_spill] sm:$0xff] }
 0x2e0   : > { %4189 = vmatpush.bf16.msra.mxu0 %v9818_v43  ;;  %4215 = vmatpush.bf16.msra.mxu2 %v9823_v50  ;;  %v14169_v50 = vld [vmem:[#allocation224_spill] sm:$0xff] }
 0x2e1   : > { %v9156_v14 = vpop.eup %9155 }
 0x2e2   : > { %4201 = vmatpush.bf16.msra.mxu1 %v9809_v33  ;;  %4227 = vmatpush.bf16.msra.mxu3 %v9815_v39  ;;  %v9158_v35 = vpop.eup %9157  ;;  %v4166_v19 = vadd.f32 1.0, %v9156_v14  ;;  %v14013_v14 = vld [vmem:[#allocation53_spill] sm:$0xff] }
 0x2e3   : > { %v4183_v3 = vmul.f32 %v9158_v35, %v4171_v61  ;;  %v9160_v52 = vpop.eup %9159  ;;  %v14014_v61 = vld [vmem:[#allocation62_spill] sm:$0xff]  ;;  %v14164_v39 = vld [vmem:[#allocation77_spill] sm:$0xff] }
 0x2e4   : > { %4190 = vmatpush.bf16.msra.mxu0 %v9830_v56  ;;  %4216 = vmatpush.bf16.msra.mxu2 %v9835_v63 }
 0x2e6   : > { %4202 = vmatpush.bf16.msra.mxu1 %v9821_v46  ;;  %4228 = vmatpush.bf16.msra.mxu3 %v9825_v51  ;;  %v14098_v46 = vld [vmem:[#allocation154_spill] sm:$0xff] }
 0x2e8   : > { %4191 = vmatpush.bf16.msra.mxu0 %v9842_v4  ;;  %4217 = vmatpush.bf16.msra.mxu2 %v9847_v9 }
 0x2ea   : > { %4203 = vmatpush.bf16.msra.mxu1 %v9833_v59  ;;  %4229 = vmatpush.bf16.msra.mxu3 %v13999_v29  ;;  %v14010_v29 = vld [vmem:[#allocation58_spill] sm:$0xff]  ;;  %v14060_v59 = vld [vmem:[#allocation115_spill] sm:$0xff] }
 0x2ec   : > { %4192 = vmatpush.bf16.msra.mxu0 %v14000_v40  ;;  %4218 = vmatpush.bf16.msra.mxu2 %v14001_v10  ;;  %v14008_v10 = vld [vmem:[#allocation54_spill] sm:$0xff]  ;;  %v11213_v40 = vpack.c.bf16 %v4183_v3, %v4183_v3  ;;  %v14017_v3 = vld [vmem:[#allocation57_spill] sm:$0xff] }
 0x2ee   : > { %4204 = vmatpush.bf16.msra.mxu1 %v14002_v28  ;;  %4230 = vmatpush.bf16.msra.mxu3 %v14003_v38  ;;  %v14009_v28 = vld [vmem:[#allocation56_spill] sm:$0xff]  ;;  %v4172_v38 = vmul.f32 0.5, %v4166_v19  ;;  %v14016_v19 = vld [vmem:[#allocation55_spill] sm:$0xff] }
 0x2f0   : > { %4193 = vmatpush.bf16.msra.mxu0 %v14004_v11  ;;  %4219 = vmatpush.bf16.msra.mxu2 %v14005_v7  ;;  %v14012_v11 = vld [vmem:[#allocation51_spill] sm:$0xff]  ;;  %v4184_v35 = vmul.f32 %v9160_v52, %v4172_v38  ;;  %v14020_v38 = vld [vmem:[#allocation66_spill] sm:$0xff]  ;;  %v14021_v52 = vld [vmem:[#allocation68_spill] sm:$0xff] }
 0x2f2   : > { %4205 = vmatpush.bf16.msra.mxu1 %v14006_v34  ;;  %4231 = vmatpush.bf16.msra.mxu3 %v14007_v6  ;;  %v14058_v6 = vld [vmem:[#allocation120_spill] sm:$0xff] }
 0x2f4   : > { %4194 = vmatpush.bf16.msra.mxu0 %v14008_v10  ;;  %4220 = vmatpush.bf16.msra.mxu2 %v14009_v28  ;;  %v14015_v10 = vld [vmem:[#allocation64_spill] sm:$0xff]  ;;  %v14030_v28 = vld [vmem:[#allocation73_spill] sm:$0xff] }
 0x2f6   : > { %4206 = vmatpush.bf16.msra.mxu1 %v14012_v11  ;;  %4232 = vmatpush.bf16.msra.mxu3 %v14013_v14  ;;  %v14019_v11 = vld [vmem:[#allocation61_spill] sm:$0xff]  ;;  %v14029_v14 = vld [vmem:[#allocation82_spill] sm:$0xff] }
 0x2f7   : > { %4195 = vmatmul.bf16.vlgmr.msra.gmra.mxu0 %v11213_v40  ;;  %4221 = vmatmul.bf16.vlgmr.msra.gmra.mxu2 %v11213_v40 }
 0x2f8   : > { %4239 = vmatpush.bf16.msrb.mxu0 %v14010_v29  ;;  %4265 = vmatpush.bf16.msrb.mxu2 %v14011_v55  ;;  %v11225_v29 = vpack.c.bf16 %v4184_v35, %v4184_v35  ;;  %v14018_v55 = vld [vmem:[#allocation59_spill] sm:$0xff]  ;;  %v14025_v35 = vld [vmem:[#allocation76_spill] sm:$0xff] }
 0x2fa   : > { %4207 = vmatpush.bf16.msra.mxu1 %v14016_v19  ;;  %4233 = vmatpush.bf16.msra.mxu3 %v14017_v3  ;;  %v14024_v19 = vld [vmem:[#allocation70_spill] sm:$0xff]  ;;  %v14026_v3 = vld [vmem:[#allocation67_spill] sm:$0xff] }
 0x2fc   : > { %4240 = vmatpush.bf16.msrb.mxu0 %v14014_v61  ;;  %4266 = vmatpush.bf16.msrb.mxu2 %v14015_v10  ;;  %v14022_v61 = vld [vmem:[#allocation63_spill] sm:$0xff]  ;;  %v14023_v10 = vld [vmem:[#allocation65_spill] sm:$0xff] }
 0x2fd   : > { %4208 = vmatmul.bf16.vlgmr.msra.gmra.mxu1 %v11225_v29  ;;  %4234 = vmatmul.bf16.vlgmr.msra.gmra.mxu3 %v11225_v29 }
 0x2fe   : > { %4252 = vmatpush.bf16.msrb.mxu1 %v14018_v55  ;;  %4278 = vmatpush.bf16.msrb.mxu3 %v14019_v11  ;;  %v14027_v55 = vld [vmem:[#allocation69_spill] sm:$0xff]  ;;  %v14028_v11 = vld [vmem:[#allocation80_spill] sm:$0xff] }
 0x300   : > { %4241 = vmatpush.bf16.msrb.mxu0 %v14020_v38  ;;  %4267 = vmatpush.bf16.msrb.mxu2 %v14021_v52  ;;  %v14031_v38 = vld [vmem:[#allocation78_spill] sm:$0xff]  ;;  %v14032_v52 = vld [vmem:[#allocation85_spill] sm:$0xff] }
 0x302   : > { %4253 = vmatpush.bf16.msrb.mxu1 %v14022_v61  ;;  %4279 = vmatpush.bf16.msrb.mxu3 %v14023_v10  ;;  %v14033_v61 = vld [vmem:[#allocation90_spill] sm:$0xff]  ;;  %v14034_v10 = vld [vmem:[#allocation81_spill] sm:$0xff] }
 0x304   : > { %4242 = vmatpush.bf16.msrb.mxu0 %v14024_v19  ;;  %4268 = vmatpush.bf16.msrb.mxu2 %v14025_v35  ;;  %v14035_v19 = vld [vmem:[#allocation83_spill] sm:$0xff]  ;;  %v14036_v35 = vld [vmem:[#allocation93_spill] sm:$0xff] }
 0x306   : > { %4254 = vmatpush.bf16.msrb.mxu1 %v14026_v3  ;;  %4280 = vmatpush.bf16.msrb.mxu3 %v14027_v55  ;;  %v14037_v3 = vld [vmem:[#allocation95_spill] sm:$0xff] }
 0x307   : > { %v14038_v55 = vld [vmem:[#allocation87_spill] sm:$0xff] }
 0x308   : > { %4243 = vmatpush.bf16.msrb.mxu0 %v14028_v11  ;;  %4269 = vmatpush.bf16.msrb.mxu2 %v14029_v14  ;;  %v14039_v11 = vld [vmem:[#allocation92_spill] sm:$0xff] }
 0x309   : > { %v14040_v14 = vld [vmem:[#allocation100_spill] sm:$0xff] }
 0x30a   : > { %4255 = vmatpush.bf16.msrb.mxu1 %v14030_v28  ;;  %4281 = vmatpush.bf16.msrb.mxu3 %v14031_v38  ;;  %v14041_v28 = vld [vmem:[#allocation102_spill] sm:$0xff] }
 0x30b   : > { %v14042_v38 = vld [vmem:[#allocation106_spill] sm:$0xff] }
 0x30c   : > { %4244 = vmatpush.bf16.msrb.mxu0 %v14032_v52  ;;  %4270 = vmatpush.bf16.msrb.mxu2 %v14033_v61  ;;  %v14043_v52 = vld [vmem:[#allocation108_spill] sm:$0xff]  ;;  %v14044_v61 = vld [vmem:[#allocation94_spill] sm:$0xff] }
 0x30e   : > { %4256 = vmatpush.bf16.msrb.mxu1 %v14034_v10  ;;  %4282 = vmatpush.bf16.msrb.mxu3 %v14035_v19  ;;  %v14045_v10 = vld [vmem:[#allocation97_spill] sm:$0xff] }
 0x310   : > { %4245 = vmatpush.bf16.msrb.mxu0 %v14036_v35  ;;  %4271 = vmatpush.bf16.msrb.mxu2 %v14037_v3  ;;  %v14046_v3 = vld [vmem:[#allocation110_spill] sm:$0xff]  ;;  %v14055_v35 = vld [vmem:[#allocation111_spill] sm:$0xff] }
 0x312   : > { %4257 = vmatpush.bf16.msrb.mxu1 %v14038_v55  ;;  %4283 = vmatpush.bf16.msrb.mxu3 %v14039_v11  ;;  %v14047_v55 = vld [vmem:[#allocation112_spill] sm:$0xff] }
 0x313   : > { %v11261_v11 = vld [vmem:[#allocation17] sm:$0xff] }
 0x314   : > { %4246 = vmatpush.bf16.msrb.mxu0 %v14040_v14  ;;  %4272 = vmatpush.bf16.msrb.mxu2 %v14041_v28  ;;  %v14048_v14 = vld [vmem:[#allocation101_spill] sm:$0xff]  ;;  %v14049_v28 = vld [vmem:[#allocation103_spill] sm:$0xff]  ;;  %v11282_v7 = vperm.slane %v11261_v11, 1  ;;  %v11310_v4 = vperm.slane %v11261_v11, 3 }
 0x316   : > { %4258 = vmatpush.bf16.msrb.mxu1 %v14044_v61  ;;  %4284 = vmatpush.bf16.msrb.mxu3 %v14045_v10  ;;  %v14051_v61 = vld [vmem:[#allocation109_spill] sm:$0xff]  ;;  %v11268_v10 = vperm.slane %v11261_v11, 0  ;;  %14059 = vst [vmem:[#allocation437_spill] sm:$0xff] %v11282_v7 }
 0x317   : > { %4247 = vmatmul.bf16.vlgmr.msrb.gmra.mxu0 %v11213_v40  ;;  %4273 = vmatmul.bf16.vlgmr.msrb.gmra.mxu2 %v11213_v40  ;;  %14077 = vst [vmem:[#allocation439_spill] sm:$0xff] %v11310_v4 }
 0x318   : > { %4291 = vmatpush.bf16.msra.mxu0 %v14042_v38  ;;  %4317 = vmatpush.bf16.msra.mxu2 %v14043_v52  ;;  %v3933_v38 = vpop.f32.mrf.mxu0  ;;  %v14050_v52 = vld [vmem:[#allocation107_spill] sm:$0xff]  ;;  %14052 = vst [vmem:[#allocation436_spill] sm:$0xff] %v11268_v10 }
 0x31a   : > { %4259 = vmatpush.bf16.msrb.mxu1 %v14048_v14  ;;  %4285 = vmatpush.bf16.msrb.mxu3 %v14049_v28  ;;  %v14056_v14 = vld [vmem:[#allocation113_spill] sm:$0xff]  ;;  %v3934_v28 = vadd.f32 %v3933_v38, %v11268_v10  ;;  %v3946_v19 = vpop.f32.mrf.mxu1  ;;  %v14063_v38 = vld [vmem:[#allocation124_spill] sm:$0xff]  ;;  %v14064_v10 = vld [vmem:[#allocation119_spill] sm:$0xff] }
 0x31c   : > { %4292 = vmatpush.bf16.msra.mxu0 %v14046_v3  ;;  %4318 = vmatpush.bf16.msra.mxu2 %v14047_v55  ;;  %v14053_v3 = vld [vmem:[#allocation114_spill] sm:$0xff]  ;;  %v14054_v55 = vld [vmem:[#allocation116_spill] sm:$0xff]  ;;  %v11279_v34 = vadd.f32 %v3946_v19, %v3934_v28 }
 0x31d   : > { %4260 = vmatmul.bf16.vlgmr.msrb.gmra.mxu1 %v11225_v29  ;;  %4286 = vmatmul.bf16.vlgmr.msrb.gmra.mxu3 %v11225_v29 }
 0x31e   : > { %4304 = vmatpush.bf16.msra.mxu1 %v14050_v52  ;;  %4330 = vmatpush.bf16.msra.mxu3 %v14051_v61  ;;  %v3959_v52 = vpop.f32.mrf.mxu2  ;;  %v14057_v61 = vld [vmem:[#allocation118_spill] sm:$0xff] }
 0x320   : > { %4293 = vmatpush.bf16.msra.mxu0 %v14053_v3  ;;  %4319 = vmatpush.bf16.msra.mxu2 %v14054_v55  ;;  %v3935_v3 = vpop.f32.mrf.mxu0  ;;  %v14061_v55 = vld [vmem:[#allocation117_spill] sm:$0xff]  ;;  %v3972_v28 = vpop.f32.mrf.mxu3 }
 0x321   : > { %v14066_v3 = vld [vmem:[#allocation126_spill] sm:$0xff] }
 0x322   : > { %4305 = vmatpush.bf16.msra.mxu1 %v14055_v35  ;;  %4331 = vmatpush.bf16.msra.mxu3 %v14056_v14  ;;  %v3960_v14 = vadd.f32 %v3959_v52, %v11282_v7  ;;  %v14062_v35 = vld [vmem:[#allocation122_spill] sm:$0xff]  ;;  %v3948_v9 = vpop.f32.mrf.mxu1  ;;  %v14069_v52 = vld [vmem:[#allocation125_spill] sm:$0xff] }
 0x324   : > { %4294 = vmatpush.bf16.msra.mxu0 %v14057_v61  ;;  %4320 = vmatpush.bf16.msra.mxu2 %v14058_v6  ;;  %v14065_v61 = vld [vmem:[#allocation121_spill] sm:$0xff]  ;;  %v11291_v19 = vadd.f32 %v3972_v28, %v3960_v14  ;;  %v14073_v14 = vld [vmem:[#allocation127_spill] sm:$0xff] }
 0x326   : > { %4306 = vmatpush.bf16.msra.mxu1 %v14060_v59  ;;  %4332 = vmatpush.bf16.msra.mxu3 %v14061_v55  ;;  %v3961_v6 = vpop.f32.mrf.mxu2  ;;  %v14067_v59 = vld [vmem:[#allocation128_spill] sm:$0xff]  ;;  %v14068_v55 = vld [vmem:[#allocation123_spill] sm:$0xff] }
 0x327   : > { %v14074_v6 = vld [vmem:[#allocation129_spill] sm:$0xff] }
 0x328   : > { %4295 = vmatpush.bf16.msra.mxu0 %v14062_v35  ;;  %4321 = vmatpush.bf16.msra.mxu2 %v14063_v38  ;;  %v3985_v35 = vpop.f32.mrf.mxu0  ;;  %v11298_v38 = vperm.slane %v11261_v11, 2  ;;  %v3974_v9 = vpop.f32.mrf.mxu3 }
 0x329   : > { %v14081_v9 = vld [vmem:[#allocation133_spill] sm:$0xff] }
 0x32a   : > { %4307 = vmatpush.bf16.msra.mxu1 %v14064_v10  ;;  %4333 = vmatpush.bf16.msra.mxu3 %v14065_v61  ;;  %14070 = vst [vmem:[#allocation438_spill] sm:$0xff] %v11298_v38  ;;  %v14071_v10 = vld [vmem:[#allocation130_spill] sm:$0xff]  ;;  %v14072_v61 = vld [vmem:[#allocation132_spill] sm:$0xff]  ;;  %v3986_v28 = vadd.f32 %v3985_v35, %v11298_v38 }
 0x32c   : > { %4296 = vmatpush.bf16.msra.mxu0 %v14066_v3  ;;  %4322 = vmatpush.bf16.msra.mxu2 %v14067_v59  ;;  %v3998_v59 = vpop.f32.mrf.mxu1 }
 0x32d   : > { %v11307_v7 = vadd.f32 %v3998_v59, %v3986_v28  ;;  %v14082_v59 = vld [vmem:[#allocation142_spill] sm:$0xff]  ;;  %v14083_v28 = vld [vmem:[#allocation144_spill] sm:$0xff] }
 0x32e   : > { %4308 = vmatpush.bf16.msra.mxu1 %v14068_v55  ;;  %4334 = vmatpush.bf16.msra.mxu3 %v14069_v52  ;;  %v4011_v3 = vpop.f32.mrf.mxu2  ;;  %v14075_v55 = vld [vmem:[#allocation134_spill] sm:$0xff]  ;;  %v14076_v52 = vld [vmem:[#allocation136_spill] sm:$0xff] }
 0x32f   : > { %v4012_v35 = vadd.f32 %v4011_v3, %v11310_v4  ;;  %v14096_v4 = vld [vmem:[#allocation149_spill] sm:$0xff] }
 0x330   : > { %4297 = vmatpush.bf16.msra.mxu0 %v14071_v10  ;;  %4323 = vmatpush.bf16.msra.mxu2 %v14072_v61  ;;  %v14078_v10 = vld [vmem:[#allocation138_spill] sm:$0xff]  ;;  %v14079_v61 = vld [vmem:[#allocation140_spill] sm:$0xff] }
 0x332   : > { %4309 = vmatpush.bf16.msra.mxu1 %v14073_v14  ;;  %4335 = vmatpush.bf16.msra.mxu3 %v14074_v6  ;;  %v3987_v14 = vpop.f32.mrf.mxu0  ;;  %v14080_v6 = vld [vmem:[#allocation131_spill] sm:$0xff] }
 0x334   : > { %4298 = vmatpush.bf16.msra.mxu0 %v14075_v55  ;;  %4324 = vmatpush.bf16.msra.mxu2 %v14076_v52  ;;  %v4024_v52 = vpop.f32.mrf.mxu3  ;;  %v14084_v55 = vld [vmem:[#allocation135_spill] sm:$0xff] }
 0x335   : > { %v11323_v14 = vadd.f32 %v4024_v52, %v4012_v35  ;;  %v11334_v52 = vperm.slane %v11261_v11, 4 }
 0x336   : > { %4310 = vmatpush.bf16.msra.mxu1 %v14080_v6  ;;  %4336 = vmatpush.bf16.msra.mxu3 %v14081_v9  ;;  %v14086_v6 = vld [vmem:[#allocation139_spill] sm:$0xff]  ;;  %v14087_v9 = vld [vmem:[#allocation141_spill] sm:$0xff]  ;;  %v4013_v38 = vpop.f32.mrf.mxu2 }
 0x337   : > { %4299 = vmatmul.bf16.vlgmr.msra.gmra.mxu0 %v11213_v40  ;;  %4325 = vmatmul.bf16.vlgmr.msra.gmra.mxu2 %v11213_v40  ;;  %14092 = vst [vmem:[#allocation440_spill] sm:$0xff] %v11334_v52 }
 0x338   : > { %4343 = vmatpush.bf16.msrb.mxu0 %v14078_v10  ;;  %4369 = vmatpush.bf16.msrb.mxu2 %v14079_v61  ;;  %v14085_v10 = vld [vmem:[#allocation137_spill] sm:$0xff]  ;;  %v4000_v61 = vpop.f32.mrf.mxu1 }
 0x339   : > { %v14094_v61 = vld [vmem:[#allocation152_spill] sm:$0xff] }
 0x33a   : > { %4311 = vmatpush.bf16.msra.mxu1 %v14084_v55  ;;  %4337 = vmatpush.bf16.msra.mxu3 %v14085_v10  ;;  %v4037_v3 = vpop.f32.mrf.mxu0  ;;  %v14090_v55 = vld [vmem:[#allocation143_spill] sm:$0xff]  ;;  %v14091_v10 = vld [vmem:[#allocation145_spill] sm:$0xff] }
 0x33b   : > { %v4038_v38 = vadd.f32 %v4037_v3, %v11334_v52  ;;  %v14105_v52 = vld [vmem:[#allocation157_spill] sm:$0xff] }
 0x33c   : > { %4344 = vmatpush.bf16.msrb.mxu0 %v14082_v59  ;;  %4370 = vmatpush.bf16.msrb.mxu2 %v14083_v28  ;;  %v14088_v59 = vld [vmem:[#allocation146_spill] sm:$0xff]  ;;  %v14089_v28 = vld [vmem:[#allocation148_spill] sm:$0xff]  ;;  %v4026_v35 = vpop.f32.mrf.mxu3 }
 0x33d   : > { %4312 = vmatmul.bf16.vlgmr.msra.gmra.mxu1 %v11225_v29  ;;  %4338 = vmatmul.bf16.vlgmr.msra.gmra.mxu3 %v11225_v29  ;;  %v14099_v35 = vld [vmem:[#allocation156_spill] sm:$0xff] }
 0x33e   : > { %4356 = vmatpush.bf16.msrb.mxu1 %v14086_v6  ;;  %4382 = vmatpush.bf16.msrb.mxu3 %v14087_v9  ;;  %v14093_v9 = vld [vmem:[#allocation150_spill] sm:$0xff]  ;;  %v14095_v6 = vld [vmem:[#allocation147_spill] sm:$0xff] }
 0x340   : > { %4345 = vmatpush.bf16.msrb.mxu0 %v14088_v59  ;;  %4371 = vmatpush.bf16.msrb.mxu2 %v14089_v28  ;;  %v4063_v59 = vpop.f32.mrf.mxu2  ;;  %v4050_v28 = vpop.f32.mrf.mxu1 }
 0x341   : > { %v11341_v51 = vadd.f32 %v4050_v28, %v4038_v38  ;;  %v14104_v38 = vld [vmem:[#allocation155_spill] sm:$0xff] }
 0x342   : > { %4357 = vmatpush.bf16.msrb.mxu1 %v14090_v55  ;;  %4383 = vmatpush.bf16.msrb.mxu3 %v14091_v10  ;;  %v11344_v10 = vperm.slane %v11261_v11, 5  ;;  %v4039_v55 = vpop.f32.mrf.mxu0 }
 0x344   : > { %4346 = vmatpush.bf16.msrb.mxu0 %v14093_v9  ;;  %4372 = vmatpush.bf16.msrb.mxu2 %v14094_v61  ;;  %14097 = vst [vmem:[#allocation441_spill] sm:$0xff] %v11344_v10  ;;  %v14100_v9 = vld [vmem:[#allocation151_spill] sm:$0xff]  ;;  %v14101_v61 = vld [vmem:[#allocation153_spill] sm:$0xff]  ;;  %v4064_v3 = vadd.f32 %v4063_v59, %v11344_v10  ;;  %v4076_v28 = vpop.f32.mrf.mxu3 }
 0x345   : > { %v14109_v59 = vld [vmem:[#allocation161_spill] sm:$0xff] }
 0x346   : > { %4358 = vmatpush.bf16.msrb.mxu1 %v14095_v6  ;;  %4384 = vmatpush.bf16.msrb.mxu3 %v14096_v4  ;;  %v14102_v6 = vld [vmem:[#allocation158_spill] sm:$0xff]  ;;  %v14103_v4 = vld [vmem:[#allocation160_spill] sm:$0xff]  ;;  %v11355_v55 = vadd.f32 %v4076_v28, %v4064_v3  ;;  %v14114_v3 = vld [vmem:[#allocation163_spill] sm:$0xff] }
 0x347   : > { %v14117_v28 = vld [vmem:[#allocation176_spill] sm:$0xff] }
 0x348   : > { %4347 = vmatpush.bf16.msrb.mxu0 %v14098_v46  ;;  %4373 = vmatpush.bf16.msrb.mxu2 %v14099_v35  ;;  %v4065_v46 = vpop.f32.mrf.mxu2  ;;  %v4052_v63 = vpop.f32.mrf.mxu1  ;;  %v14106_v35 = vld [vmem:[#allocation162_spill] sm:$0xff] }
 0x349   : > { %v14115_v46 = vld [vmem:[#allocation165_spill] sm:$0xff]  ;;  %v14116_v63 = vld [vmem:[#allocation174_spill] sm:$0xff] }
 0x34a   : > { %4359 = vmatpush.bf16.msrb.mxu1 %v14100_v9  ;;  %4385 = vmatpush.bf16.msrb.mxu3 %v14101_v61  ;;  %v14107_v9 = vld [vmem:[#allocation164_spill] sm:$0xff]  ;;  %v14108_v61 = vld [vmem:[#allocation159_spill] sm:$0xff] }
 0x34c   : > { %4348 = vmatpush.bf16.msrb.mxu0 %v14102_v6  ;;  %4374 = vmatpush.bf16.msrb.mxu2 %v14103_v4  ;;  %v14110_v6 = vld [vmem:[#allocation166_spill] sm:$0xff]  ;;  %v14111_v4 = vld [vmem:[#allocation168_spill] sm:$0xff]  ;;  %v4078_v10 = vpop.f32.mrf.mxu3 }
 0x34d   : > { %v14120_v10 = vld [vmem:[#allocation171_spill] sm:$0xff] }
 0x34e   : > { %4360 = vmatpush.bf16.msrb.mxu1 %v14104_v38  ;;  %4386 = vmatpush.bf16.msrb.mxu3 %v14105_v52  ;;  %v14112_v38 = vld [vmem:[#allocation170_spill] sm:$0xff]  ;;  %v14113_v52 = vld [vmem:[#allocation172_spill] sm:$0xff] }
 0x350   : > { %4349 = vmatpush.bf16.msrb.mxu0 %v14106_v35  ;;  %4375 = vmatpush.bf16.msrb.mxu2 %v14107_v9  ;;  %v14129_v9 = vld [vmem:[#allocation179_spill] sm:$0xff]  ;;  %v14130_v35 = vld [vmem:[#allocation181_spill] sm:$0xff] }
 0x352   : > { %4361 = vmatpush.bf16.msrb.mxu1 %v14108_v61  ;;  %4387 = vmatpush.bf16.msrb.mxu3 %v14109_v59 }
 0x354   : > { %4350 = vmatpush.bf16.msrb.mxu0 %v14110_v6  ;;  %4376 = vmatpush.bf16.msrb.mxu2 %v14111_v4  ;;  %v14118_v6 = vld [vmem:[#allocation167_spill] sm:$0xff]  ;;  %v14119_v4 = vld [vmem:[#allocation169_spill] sm:$0xff] }
 0x356   : > { %4362 = vmatpush.bf16.msrb.mxu1 %v14114_v3  ;;  %4388 = vmatpush.bf16.msrb.mxu3 %v14115_v46  ;;  %v11378_v46 = vperm.slane %v11261_v11, 6  ;;  %v14123_v3 = vld [vmem:[#allocation178_spill] sm:$0xff] }
 0x357   : > { %4351 = vmatmul.bf16.vlgmr.msrb.gmra.mxu0 %v11213_v40  ;;  %4377 = vmatmul.bf16.vlgmr.msrb.gmra.mxu2 %v11213_v40 }
 0x358   : > { %4395 = vmatpush.bf16.msra.mxu0 %v14112_v38  ;;  %4421 = vmatpush.bf16.msra.mxu2 %v14113_v52  ;;  %v14121_v38 = vld [vmem:[#allocation173_spill] sm:$0xff]  ;;  %v4089_v52 = vpop.f32.mrf.mxu0  ;;  %14122 = vst [vmem:[#allocation442_spill] sm:$0xff] %v11378_v46 }
 0x35a   : > { %4363 = vmatpush.bf16.msrb.mxu1 %v14118_v6  ;;  %4389 = vmatpush.bf16.msrb.mxu3 %v14119_v4  ;;  %v14126_v6 = vld [vmem:[#allocation177_spill] sm:$0xff]  ;;  %v14127_v4 = vld [vmem:[#allocation182_spill] sm:$0xff]  ;;  %v4102_v59 = vpop.f32.mrf.mxu1  ;;  %v4115_v61 = vpop.f32.mrf.mxu2 }
 0x35c   : > { %4396 = vmatpush.bf16.msra.mxu0 %v14116_v63  ;;  %4422 = vmatpush.bf16.msra.mxu2 %v14117_v28  ;;  %v14124_v63 = vld [vmem:[#allocation180_spill] sm:$0xff]  ;;  %v14125_v28 = vld [vmem:[#allocation175_spill] sm:$0xff] }
 0x35d   : > { %4364 = vmatmul.bf16.vlgmr.msrb.gmra.mxu1 %v11225_v29  ;;  %4390 = vmatmul.bf16.vlgmr.msrb.gmra.mxu3 %v11225_v29 }
 0x35e   : > { %4408 = vmatpush.bf16.msra.mxu1 %v14120_v10  ;;  %4434 = vmatpush.bf16.msra.mxu3 %v14121_v38  ;;  %v4090_v10 = vadd.f32 %v4089_v52, %v11378_v46  ;;  %v14128_v38 = vld [vmem:[#allocation184_spill] sm:$0xff] }
 0x360   : > { %4397 = vmatpush.bf16.msra.mxu0 %v14123_v3  ;;  %4423 = vmatpush.bf16.msra.mxu2 %v14124_v63  ;;  %v11389_v56 = vadd.f32 %v4102_v59, %v4090_v10  ;;  %v11392_v63 = vperm.slane %v11261_v11, 7  ;;  %v14132_v3 = vld [vmem:[#allocation186_spill] sm:$0xff]  ;;  %v4128_v46 = vpop.f32.mrf.mxu3  ;;  %v14137_v59 = vld [vmem:[#allocation192_spill] sm:$0xff] }
 0x362   : > { %4409 = vmatpush.bf16.msra.mxu1 %v14125_v28  ;;  %4435 = vmatpush.bf16.msra.mxu3 %v14126_v6  ;;  %14131 = vst [vmem:[#allocation443_spill] sm:$0xff] %v11392_v63  ;;  %v4091_v28 = vpop.f32.mrf.mxu0  ;;  %v14133_v6 = vld [vmem:[#allocation188_spill] sm:$0xff]  ;;  %v4116_v52 = vadd.f32 %v4115_v61, %v11392_v63  ;;  %v4104_v11 = vpop.f32.mrf.mxu1 }
 0x363   : > { %v4117_v10 = vpop.f32.mrf.mxu2  ;;  %v14138_v28 = vld [vmem:[#allocation187_spill] sm:$0xff]  ;;  %v14141_v61 = vld [vmem:[#allocation196_spill] sm:$0xff] }
 0x364   : > { %4398 = vmatpush.bf16.msra.mxu0 %v14127_v4  ;;  %4424 = vmatpush.bf16.msra.mxu2 %v14128_v38  ;;  %v14134_v4 = vld [vmem:[#allocation183_spill] sm:$0xff]  ;;  %v14135_v38 = vld [vmem:[#allocation185_spill] sm:$0xff]  ;;  %v14147_v11 = vld [vmem:[#allocation204_spill] sm:$0xff] }
 0x365   : > { %v14148_v10 = vld [vmem:[#allocation195_spill] sm:$0xff] }
 0x366   : > { %4410 = vmatpush.bf16.msra.mxu1 %v14129_v9  ;;  %4436 = vmatpush.bf16.msra.mxu3 %v14130_v35  ;;  %v11399_v9 = vadd.f32 %v4128_v46, %v4116_v52  ;;  %v14136_v35 = vld [vmem:[#allocation190_spill] sm:$0xff] }
 0x367   : > { %v14144_v52 = vld [vmem:[#allocation198_spill] sm:$0xff] }
 0x368   : > { %4399 = vmatpush.bf16.msra.mxu0 %v14132_v3  ;;  %4425 = vmatpush.bf16.msra.mxu2 %v14133_v6  ;;  %v14139_v3 = vld [vmem:[#allocation189_spill] sm:$0xff]  ;;  %v14140_v6 = vld [vmem:[#allocation194_spill] sm:$0xff]  ;;  %v4130_v46 = vpop.f32.mrf.mxu3 }
 0x369   : > { %v14152_v46 = vld [vmem:[#allocation199_spill] sm:$0xff] }
 0x36a   : > { %4411 = vmatpush.bf16.msra.mxu1 %v14134_v4  ;;  %4437 = vmatpush.bf16.msra.mxu3 %v14135_v38  ;;  %v14142_v4 = vld [vmem:[#allocation191_spill] sm:$0xff]  ;;  %v14143_v38 = vld [vmem:[#allocation193_spill] sm:$0xff] }
 0x36c   : > { %4400 = vmatpush.bf16.msra.mxu0 %v14136_v35  ;;  %4426 = vmatpush.bf16.msra.mxu2 %v14137_v59  ;;  %v14145_v35 = vld [vmem:[#allocation200_spill] sm:$0xff]  ;;  %v14146_v59 = vld [vmem:[#allocation202_spill] sm:$0xff] }
 0x36e   : > { %4412 = vmatpush.bf16.msra.mxu1 %v14138_v28  ;;  %4438 = vmatpush.bf16.msra.mxu3 %v14139_v3  ;;  %v14149_v3 = vld [vmem:[#allocation197_spill] sm:$0xff] }
 0x370   : > { %4401 = vmatpush.bf16.msra.mxu0 %v14140_v6  ;;  %4427 = vmatpush.bf16.msra.mxu2 %v14141_v61  ;;  %v14163_v6 = vld [vmem:[#allocation213_spill] sm:$0xff] }
 0x372   : > { %4413 = vmatpush.bf16.msra.mxu1 %v14142_v4  ;;  %4439 = vmatpush.bf16.msra.mxu3 %v14143_v38  ;;  %v14150_v4 = vld [vmem:[#allocation206_spill] sm:$0xff]  ;;  %v14151_v38 = vld [vmem:[#allocation208_spill] sm:$0xff] }
 0x374   : > { %4402 = vmatpush.bf16.msra.mxu0 %v14144_v52  ;;  %4428 = vmatpush.bf16.msra.mxu2 %v14145_v35  ;;  %v14153_v52 = vld [vmem:[#allocation201_spill] sm:$0xff]  ;;  %v14154_v35 = vld [vmem:[#allocation203_spill] sm:$0xff] }
 0x376   : > { %4414 = vmatpush.bf16.msra.mxu1 %v14148_v10  ;;  %4440 = vmatpush.bf16.msra.mxu3 %v14149_v3  ;;  %v14156_v3 = vld [vmem:[#allocation210_spill] sm:$0xff]  ;;  %v14157_v10 = vld [vmem:[#allocation212_spill] sm:$0xff] }
 0x377   : > { %4403 = vmatmul.bf16.vlgmr.msra.gmra.mxu0 %v11213_v40  ;;  %4429 = vmatmul.bf16.vlgmr.msra.gmra.mxu2 %v11213_v40 }
 0x378   : > { %4447 = vmatpush.bf16.msrb.mxu0 %v14146_v59  ;;  %4473 = vmatpush.bf16.msrb.mxu2 %v14147_v11  ;;  %v14155_v59 = vld [vmem:[#allocation205_spill] sm:$0xff]  ;;  %v4196_v11 = vpop.f32.mrf.mxu0 }
 0x37a   : > { %4415 = vmatpush.bf16.msra.mxu1 %v14152_v46  ;;  %4441 = vmatpush.bf16.msra.mxu3 %v14153_v52  ;;  %v14160_v46 = vld [vmem:[#allocation214_spill] sm:$0xff]  ;;  %v14161_v52 = vld [vmem:[#allocation216_spill] sm:$0xff]  ;;  %v4222_v61 = vpop.f32.mrf.mxu2 }
 0x37c   : > { %4448 = vmatpush.bf16.msrb.mxu0 %v14150_v4  ;;  %4474 = vmatpush.bf16.msrb.mxu2 %v14151_v38  ;;  %v14158_v4 = vld [vmem:[#allocation207_spill] sm:$0xff]  ;;  %v14159_v38 = vld [vmem:[#allocation209_spill] sm:$0xff] }
 0x37d   : > { %4416 = vmatmul.bf16.vlgmr.msra.gmra.mxu1 %v11225_v29  ;;  %4442 = vmatmul.bf16.vlgmr.msra.gmra.mxu3 %v11225_v29 }
 0x37e   : > { %4460 = vmatpush.bf16.msrb.mxu1 %v14154_v35  ;;  %4486 = vmatpush.bf16.msrb.mxu3 %v14155_v59  ;;  %v4209_v35 = vpop.f32.mrf.mxu1  ;;  %v14162_v59 = vld [vmem:[#allocation211_spill] sm:$0xff] }
 0x37f   : > { %v4210_v28 = vadd.f32 %v4209_v35, %v4196_v11 }
 0x380   : > { %4449 = vmatpush.bf16.msrb.mxu0 %v14156_v3  ;;  %4475 = vmatpush.bf16.msrb.mxu2 %v14157_v10  ;;  %v4198_v63 = vpop.f32.mrf.mxu0  ;;  %v14165_v10 = vld [vmem:[#allocation218_spill] sm:$0xff] }
 0x381   : > { %v11434_v3 = vadd.f32 %v4210_v28, %v14164_v39  ;;  %v14171_v63 = vld [vmem:[#allocation219_spill] sm:$0xff]  ;;  %v14172_v39 = vld [vmem:[#allocation221_spill] sm:$0xff] }
 0x382   : > { %4461 = vmatpush.bf16.msrb.mxu1 %v14158_v4  ;;  %4487 = vmatpush.bf16.msrb.mxu3 %v14159_v38  ;;  %v14166_v4 = vld [vmem:[#allocation220_spill] sm:$0xff]  ;;  %v14167_v38 = vld [vmem:[#allocation215_spill] sm:$0xff]  ;;  %v4224_v35 = vpop.f32.mrf.mxu2 }
 0x383   : > { %v14173_v28 = vld [vmem:[#allocation79_spill] sm:$0xff]  ;;  %v14179_v35 = vld [vmem:[#allocation229_spill] sm:$0xff] }
 0x384   : > { %4450 = vmatpush.bf16.msrb.mxu0 %v14160_v46  ;;  %4476 = vmatpush.bf16.msrb.mxu2 %v14161_v52  ;;  %v14168_v46 = vld [vmem:[#allocation217_spill] sm:$0xff]  ;;  %v4235_v52 = vpop.f32.mrf.mxu3 }
 0x385   : > { %v4236_v33 = vadd.f32 %v4235_v52, %v4222_v61  ;;  %v14177_v61 = vld [vmem:[#allocation227_spill] sm:$0xff] }
 0x386   : > { %4462 = vmatpush.bf16.msrb.mxu1 %v14162_v59  ;;  %4488 = vmatpush.bf16.msrb.mxu3 %v14163_v6  ;;  %v14170_v59 = vld [vmem:[#allocation226_spill] sm:$0xff]  ;;  %v4211_v6 = vpop.f32.mrf.mxu1 }
 0x387   : > { %v11445_v11 = vadd.f32 %v4236_v33, %v14173_v28  ;;  %v14178_v6 = vld [vmem:[#allocation242_spill] sm:$0xff]  ;;  %v14180_v33 = vld [vmem:[#allocation232_spill] sm:$0xff] }
 0x388   : > { %4451 = vmatpush.bf16.msrb.mxu0 %v14165_v10  ;;  %4477 = vmatpush.bf16.msrb.mxu2 %v14166_v4  ;;  %v14174_v4 = vld [vmem:[#allocation228_spill] sm:$0xff] }
 0x389   : > { %v14181_v28 = vld [vmem:[#allocation244_spill] sm:$0xff] }
 0x38a   : > { %4463 = vmatpush.bf16.msrb.mxu1 %v14167_v38  ;;  %4489 = vmatpush.bf16.msrb.mxu3 %v14168_v46  ;;  %v14175_v38 = vld [vmem:[#allocation231_spill] sm:$0xff]  ;;  %v14176_v46 = vld [vmem:[#allocation225_spill] sm:$0xff] }
 0x38c   : > { %4452 = vmatpush.bf16.msrb.mxu0 %v14169_v50  ;;  %4478 = vmatpush.bf16.msrb.mxu2 %v14170_v59  ;;  %v4237_v52 = vpop.f32.mrf.mxu3  ;;  %v14200_v50 = vld [vmem:[#allocation262_spill] sm:$0xff] }
 0x38d   : > { %v14183_v52 = vld [vmem:[#allocation235_spill] sm:$0xff] }
 0x38e   : > { %4464 = vmatpush.bf16.msrb.mxu1 %v14171_v63  ;;  %4490 = vmatpush.bf16.msrb.mxu3 %v14172_v39  ;;  %v14195_v63 = vld [vmem:[#allocation84_spill] sm:$0xff] }
 0x390   : > { %4453 = vmatpush.bf16.msrb.mxu0 %v14174_v4  ;;  %4479 = vmatpush.bf16.msrb.mxu2 %v14175_v38  ;;  %v14194_v38 = vld [vmem:[#allocation253_spill] sm:$0xff] }
 0x392   : > { %4465 = vmatpush.bf16.msrb.mxu1 %v14176_v46  ;;  %4491 = vmatpush.bf16.msrb.mxu3 %v14177_v61  ;;  %v14182_v61 = vld [vmem:[#allocation247_spill] sm:$0xff] }
 0x394   : > { %4454 = vmatpush.bf16.msrb.mxu0 %v10477_v24  ;;  %4480 = vmatpush.bf16.msrb.mxu2 %v10485_v42  ;;  %v14184_v24 = vld [vmem:[#allocation238_spill] sm:$0xff]  ;;  %v14185_v42 = vld [vmem:[#allocation241_spill] sm:$0xff] }
 0x396   : > { %4466 = vmatpush.bf16.msrb.mxu1 %v14179_v35  ;;  %4492 = vmatpush.bf16.msrb.mxu3 %v14180_v33  ;;  %v14187_v33 = vld [vmem:[#allocation250_spill] sm:$0xff]  ;;  %v14188_v35 = vld [vmem:[#allocation252_spill] sm:$0xff] }
 0x397   : > { %4455 = vmatmul.bf16.vlgmr.msrb.gmra.mxu0 %v11213_v40  ;;  %4481 = vmatmul.bf16.vlgmr.msrb.gmra.mxu2 %v11213_v40 }
 0x398   : > { %4499 = vmatpush.bf16.msra.mxu0 %v10491_v15  ;;  %4525 = vmatpush.bf16.msra.mxu2 %v14178_v6  ;;  %v14186_v15 = vld [vmem:[#allocation243_spill] sm:$0xff]  ;;  %v4248_v6 = vpop.f32.mrf.mxu0 }
 0x39a   : > { %4467 = vmatpush.bf16.msrb.mxu1 %v14183_v52  ;;  %4493 = vmatpush.bf16.msrb.mxu3 %v14184_v24  ;;  %v14191_v52 = vld [vmem:[#allocation254_spill] sm:$0xff]  ;;  %v14192_v24 = vld [vmem:[#allocation256_spill] sm:$0xff]  ;;  %v4274_v46 = vpop.f32.mrf.mxu2 }
 0x39c   : > { %4500 = vmatpush.bf16.msra.mxu0 %v14181_v28  ;;  %4526 = vmatpush.bf16.msra.mxu2 %v14182_v61  ;;  %v14189_v28 = vld [vmem:[#allocation245_spill] sm:$0xff]  ;;  %v14190_v61 = vld [vmem:[#allocation248_spill] sm:$0xff] }
 0x39d   : > { %4468 = vmatmul.bf16.vlgmr.msrb.gmra.mxu1 %v11225_v29  ;;  %4494 = vmatmul.bf16.vlgmr.msrb.gmra.mxu3 %v11225_v29 }
 0x39e   : > { %4512 = vmatpush.bf16.msra.mxu1 %v14185_v42  ;;  %4538 = vmatpush.bf16.msra.mxu3 %v14186_v15  ;;  %v4261_v42 = vpop.f32.mrf.mxu1  ;;  %v14193_v15 = vld [vmem:[#allocation251_spill] sm:$0xff] }
 0x39f   : > { %v4262_v4 = vadd.f32 %v4261_v42, %v4248_v6 }
 0x3a0   : > { %4501 = vmatpush.bf16.msra.mxu0 %v14187_v33  ;;  %4527 = vmatpush.bf16.msra.mxu2 %v14188_v35  ;;  %v4250_v39 = vpop.f32.mrf.mxu0  ;;  %v14196_v35 = vld [vmem:[#allocation258_spill] sm:$0xff] }
 0x3a1   : > { %v11476_v33 = vadd.f32 %v4262_v4, %v14195_v63  ;;  %v14201_v39 = vld [vmem:[#allocation259_spill] sm:$0xff]  ;;  %v14202_v4 = vld [vmem:[#allocation261_spill] sm:$0xff]  ;;  %v14203_v63 = vld [vmem:[#allocation86_spill] sm:$0xff] }
 0x3a2   : > { %4513 = vmatpush.bf16.msra.mxu1 %v14189_v28  ;;  %4539 = vmatpush.bf16.msra.mxu3 %v14190_v61  ;;  %v14197_v28 = vld [vmem:[#allocation260_spill] sm:$0xff]  ;;  %v14198_v61 = vld [vmem:[#allocation255_spill] sm:$0xff]  ;;  %v4276_v42 = vpop.f32.mrf.mxu2 }
 0x3a3   : > { %v14209_v42 = vld [vmem:[#allocation267_spill] sm:$0xff] }
 0x3a4   : > { %4502 = vmatpush.bf16.msra.mxu0 %v14191_v52  ;;  %4528 = vmatpush.bf16.msra.mxu2 %v14192_v24  ;;  %v14199_v52 = vld [vmem:[#allocation257_spill] sm:$0xff]  ;;  %v4287_v24 = vpop.f32.mrf.mxu3 }
 0x3a5   : > { %v4288_v59 = vadd.f32 %v4287_v24, %v4274_v46  ;;  %v14207_v24 = vld [vmem:[#allocation265_spill] sm:$0xff] }
 0x3a6   : > { %4514 = vmatpush.bf16.msra.mxu1 %v14193_v15  ;;  %4540 = vmatpush.bf16.msra.mxu3 %v14194_v38  ;;  %v4263_v38 = vpop.f32.mrf.mxu1 }
 0x3a7   : > { %v11487_v6 = vadd.f32 %v4288_v59, %v14203_v63  ;;  %v14208_v38 = vld [vmem:[#allocation276_spill] sm:$0xff]  ;;  %v14210_v59 = vld [vmem:[#allocation269_spill] sm:$0xff]  ;;  %v14211_v63 = vld [vmem:[#allocation278_spill] sm:$0xff] }
 0x3a8   : > { %4503 = vmatpush.bf16.msra.mxu0 %v14196_v35  ;;  %4529 = vmatpush.bf16.msra.mxu2 %v14197_v28  ;;  %v14204_v28 = vld [vmem:[#allocation266_spill] sm:$0xff] }
 0x3aa   : > { %4515 = vmatpush.bf16.msra.mxu1 %v14198_v61  ;;  %4541 = vmatpush.bf16.msra.mxu3 %v14199_v52  ;;  %v14205_v61 = vld [vmem:[#allocation268_spill] sm:$0xff]  ;;  %v14206_v52 = vld [vmem:[#allocation263_spill] sm:$0xff] }
 0x3ac   : > { %4504 = vmatpush.bf16.msra.mxu0 %v14200_v50  ;;  %4530 = vmatpush.bf16.msra.mxu2 %v10575_v53  ;;  %v4289_v46 = vpop.f32.mrf.mxu3  ;;  %v14230_v50 = vld [vmem:[#allocation223_spill] sm:$0xff] }
 0x3ad   : > { %v14213_v46 = vld [vmem:[#allocation271_spill] sm:$0xff] }
 0x3ae   : > { %4516 = vmatpush.bf16.msra.mxu1 %v14201_v39  ;;  %4542 = vmatpush.bf16.msra.mxu3 %v14202_v4  ;;  %v14225_v4 = vld [vmem:[#allocation285_spill] sm:$0xff] }
 0x3b0   : > { %4505 = vmatpush.bf16.msra.mxu0 %v14204_v28  ;;  %4531 = vmatpush.bf16.msra.mxu2 %v14205_v61  ;;  %v14224_v28 = vld [vmem:[#allocation283_spill] sm:$0xff] }
 0x3b2   : > { %4517 = vmatpush.bf16.msra.mxu1 %v14206_v52  ;;  %4543 = vmatpush.bf16.msra.mxu3 %v14207_v24  ;;  %v14212_v24 = vld [vmem:[#allocation280_spill] sm:$0xff] }
 0x3b4   : > { %4506 = vmatpush.bf16.msra.mxu0 %v10597_v12  ;;  %4532 = vmatpush.bf16.msra.mxu2 %v10603_v25  ;;  %v14214_v12 = vld [vmem:[#allocation273_spill] sm:$0xff]  ;;  %v14215_v25 = vld [vmem:[#allocation275_spill] sm:$0xff] }
 0x3b6   : > { %4518 = vmatpush.bf16.msra.mxu1 %v14209_v42  ;;  %4544 = vmatpush.bf16.msra.mxu3 %v14210_v59  ;;  %v14217_v59 = vld [vmem:[#allocation282_spill] sm:$0xff]  ;;  %v14218_v42 = vld [vmem:[#allocation284_spill] sm:$0xff] }
 0x3b7   : > { %4507 = vmatmul.bf16.vlgmr.msra.gmra.mxu0 %v11213_v40  ;;  %4533 = vmatmul.bf16.vlgmr.msra.gmra.mxu2 %v11213_v40 }
 0x3b8   : > { %4551 = vmatpush.bf16.msrb.mxu0 %v10607_v41  ;;  %4577 = vmatpush.bf16.msrb.mxu2 %v14208_v38  ;;  %v14216_v41 = vld [vmem:[#allocation277_spill] sm:$0xff]  ;;  %v4300_v38 = vpop.f32.mrf.mxu0 }
 0x3ba   : > { %4519 = vmatpush.bf16.msra.mxu1 %v14213_v46  ;;  %4545 = vmatpush.bf16.msra.mxu3 %v14214_v12  ;;  %v14221_v46 = vld [vmem:[#allocation286_spill] sm:$0xff]  ;;  %v14222_v12 = vld [vmem:[#allocation288_spill] sm:$0xff]  ;;  %v4326_v52 = vpop.f32.mrf.mxu2 }
 0x3bc   : > { %4552 = vmatpush.bf16.msrb.mxu0 %v14211_v63  ;;  %4578 = vmatpush.bf16.msrb.mxu2 %v14212_v24  ;;  %v14219_v63 = vld [vmem:[#allocation279_spill] sm:$0xff]  ;;  %v14220_v24 = vld [vmem:[#allocation281_spill] sm:$0xff] }
 0x3bd   : > { %4520 = vmatmul.bf16.vlgmr.msra.gmra.mxu1 %v11225_v29  ;;  %4546 = vmatmul.bf16.vlgmr.msra.gmra.mxu3 %v11225_v29 }
 0x3be   : > { %4564 = vmatpush.bf16.msrb.mxu1 %v14215_v25  ;;  %4590 = vmatpush.bf16.msrb.mxu3 %v14216_v41  ;;  %v4313_v25 = vpop.f32.mrf.mxu1  ;;  %v14223_v41 = vld [vmem:[#allocation222_spill] sm:$0xff] }
 0x3bf   : > { %v973_v61 = vadd.f32 %v14223_v41, %v10007_v18  ;;  %v992_v41 = vadd.f32 %v14230_v50, %v10026_v44  ;;  %v14239_v44 = vld [vmem:[#allocation306_spill] sm:$0xff] }
 0x3c0   : > { %4553 = vmatpush.bf16.msrb.mxu0 %v14217_v59  ;;  %4579 = vmatpush.bf16.msrb.mxu2 %v14218_v42  ;;  %v4314_v59 = vadd.f32 %v4313_v25, %v4300_v38  ;;  %v4302_v39 = vpop.f32.mrf.mxu0  ;;  %v4339_v53 = vpop.f32.mrf.mxu3  ;;  %v14233_v38 = vld [vmem:[#allocation293_spill] sm:$0xff] }
 0x3c1   : > { %v4340_v18 = vadd.f32 %v4339_v53, %v4326_v52  ;;  %v14232_v39 = vld [vmem:[#allocation291_spill] sm:$0xff]  ;;  %v14235_v53 = vld [vmem:[#allocation302_spill] sm:$0xff]  ;;  %v14236_v52 = vld [vmem:[#allocation304_spill] sm:$0xff] }
 0x3c2   : > { %4565 = vmatpush.bf16.msrb.mxu1 %v14219_v63  ;;  %4591 = vmatpush.bf16.msrb.mxu3 %v14220_v24  ;;  %v11519_v42 = vadd.f32 %v4314_v59, %v973_v61  ;;  %v14226_v63 = vld [vmem:[#allocation290_spill] sm:$0xff]  ;;  %v14227_v24 = vld [vmem:[#allocation292_spill] sm:$0xff]  ;;  %v4328_v61 = vpop.f32.mrf.mxu2 }
 0x3c3   : > { %v11531_v59 = vadd.f32 %v4340_v18, %v992_v41  ;;  %v14238_v61 = vld [vmem:[#allocation301_spill] sm:$0xff]  ;;  %v14240_v18 = vld [vmem:[#allocation307_spill] sm:$0xff]  ;;  %v4876_v41 = vmul.f32 0.5, %v11476_v33  ;;  %v14247_v33 = vld [vmem:[#allocation312_spill] sm:$0xff] }
 0x3c4   : > { %4554 = vmatpush.bf16.msrb.mxu0 %v14221_v46  ;;  %4580 = vmatpush.bf16.msrb.mxu2 %v14222_v12  ;;  %v14228_v46 = vld [vmem:[#allocation287_spill] sm:$0xff]  ;;  %v14229_v12 = vld [vmem:[#allocation289_spill] sm:$0xff] }
 0x3c5   : > { %9161 = vtanh.f32 %v4876_v41 }
 0x3c6   : > { %4566 = vmatpush.bf16.msrb.mxu1 %v14224_v28  ;;  %4592 = vmatpush.bf16.msrb.mxu3 %v14225_v4  ;;  %v14231_v28 = vld [vmem:[#allocation294_spill] sm:$0xff]  ;;  %v4315_v25 = vpop.f32.mrf.mxu1 }
 0x3c7   : > { %v14237_v25 = vld [vmem:[#allocation299_spill] sm:$0xff] }
 0x3c8   : > { %4555 = vmatpush.bf16.msrb.mxu0 %v14226_v63  ;;  %4581 = vmatpush.bf16.msrb.mxu2 %v14227_v24  ;;  %v4341_v50 = vpop.f32.mrf.mxu3 }
 0x3c9   : > { %v14242_v50 = vld [vmem:[#allocation305_spill] sm:$0xff] }
 0x3ca   : > { %4567 = vmatpush.bf16.msrb.mxu1 %v14228_v46  ;;  %4593 = vmatpush.bf16.msrb.mxu3 %v14229_v12  ;;  %v14234_v12 = vld [vmem:[#allocation295_spill] sm:$0xff] }
 0x3cb   : > { %v9162_v41 = vpop.eup %9161 }
 0x3cc   : > { %4556 = vmatpush.bf16.msrb.mxu0 %v14231_v28  ;;  %4582 = vmatpush.bf16.msrb.mxu2 %v10687_v0 }
 0x3ce   : > { %4568 = vmatpush.bf16.msrb.mxu1 %v14232_v39  ;;  %4594 = vmatpush.bf16.msrb.mxu3 %v14233_v38  ;;  %v14257_v38 = vld [vmem:[#allocation320_spill] sm:$0xff]  ;;  %v14260_v39 = vld [vmem:[#allocation323_spill] sm:$0xff] }
 0x3d0   : > { %4557 = vmatpush.bf16.msrb.mxu0 %v10693_v45  ;;  %4583 = vmatpush.bf16.msrb.mxu2 %v10699_v31  ;;  %v4888_v45 = vadd.f32 1.0, %v9162_v41  ;;  %v14263_v41 = vld [vmem:[#allocation324_spill] sm:$0xff] }
 0x3d2   : > { %4569 = vmatpush.bf16.msrb.mxu1 %v14234_v12  ;;  %4595 = vmatpush.bf16.msrb.mxu3 %v10689_v37  ;;  %v14241_v37 = vld [vmem:[#allocation303_spill] sm:$0xff]  ;;  %v14253_v12 = vld [vmem:[#allocation104_spill] sm:$0xff] }
 0x3d4   : > { %4558 = vmatpush.bf16.msrb.mxu0 %v14235_v53  ;;  %4584 = vmatpush.bf16.msrb.mxu2 %v14236_v52  ;;  %v14243_v53 = vld [vmem:[#allocation308_spill] sm:$0xff]  ;;  %v14244_v52 = vld [vmem:[#allocation309_spill] sm:$0xff] }
 0x3d6   : > { %4570 = vmatpush.bf16.msrb.mxu1 %v14237_v25  ;;  %4596 = vmatpush.bf16.msrb.mxu3 %v14238_v61  ;;  %v4874_v61 = vmul.f32 0.5, %v11434_v3  ;;  %v14245_v25 = vld [vmem:[#allocation310_spill] sm:$0xff]  ;;  %v14250_v3 = vld [vmem:[#allocation315_spill] sm:$0xff] }
 0x3d7   : > { %4559 = vmatmul.bf16.vlgmr.msrb.gmra.mxu0 %v11213_v40  ;;  %4585 = vmatmul.bf16.vlgmr.msrb.gmra.mxu2 %v11213_v40  ;;  %v4352_v40 = vpop.f32.mrf.mxu0 }
 0x3d8   : > { %4649 = vmatpush.bf16.msra.mxu0 %v14239_v44  ;;  %4675 = vmatpush.bf16.msra.mxu2 %v14240_v18  ;;  %v14246_v44 = vld [vmem:[#allocation311_spill] sm:$0xff]  ;;  %9163 = vtanh.f32 %v4874_v61  ;;  %v14251_v18 = vld [vmem:[#allocation316_spill] sm:$0xff] }
 0x3da   : > { %4571 = vmatpush.bf16.msrb.mxu1 %v14241_v37  ;;  %4597 = vmatpush.bf16.msrb.mxu3 %v14242_v50  ;;  %v14248_v37 = vld [vmem:[#allocation313_spill] sm:$0xff]  ;;  %v4378_v50 = vpop.f32.mrf.mxu2 }
 0x3dc   : > { %4650 = vmatpush.bf16.msra.mxu0 %v14243_v53  ;;  %4676 = vmatpush.bf16.msra.mxu2 %v14244_v52  ;;  %v4877_v53 = vmul.f32 0.5, %v11487_v6  ;;  %v14249_v52 = vld [vmem:[#allocation314_spill] sm:$0xff]  ;;  %v14256_v6 = vld [vmem:[#allocation319_spill] sm:$0xff] }
 0x3dd   : > { %4572 = vmatmul.bf16.vlgmr.msrb.gmra.mxu1 %v11225_v29  ;;  %4598 = vmatmul.bf16.vlgmr.msrb.gmra.mxu3 %v11225_v29  ;;  %v14252_v29 = vld [vmem:[#allocation317_spill] sm:$0xff] }
 0x3de   : > { %4662 = vmatpush.bf16.msra.mxu1 %v14245_v25  ;;  %4688 = vmatpush.bf16.msra.mxu3 %v14246_v44  ;;  %v4875_v25 = vmul.f32 0.5, %v11445_v11  ;;  %v4365_v44 = vpop.f32.mrf.mxu1  ;;  %9165 = vtanh.f32 %v4877_v53 }
 0x3df   : > { %v4366_v61 = vadd.f32 %v4365_v44, %v4352_v40 }
 0x3e0   : > { %4651 = vmatpush.bf16.msra.mxu0 %v14247_v33  ;;  %4677 = vmatpush.bf16.msra.mxu2 %v14248_v37  ;;  %v14254_v33 = vld [vmem:[#allocation230_spill] sm:$0xff]  ;;  %9167 = vtanh.f32 %v4875_v25  ;;  %v4391_v44 = vpop.f32.mrf.mxu3 }
 0x3e1   : > { %v1011_v31 = vadd.f32 %v14254_v33, %v14253_v12  ;;  %v14255_v37 = vld [vmem:[#allocation318_spill] sm:$0xff]  ;;  %v14261_v33 = vld [vmem:[#allocation105_spill] sm:$0xff]  ;;  %v4894_v12 = vmul.f32 0.5, %v4888_v45 }
 0x3e2   : > { %4663 = vmatpush.bf16.msra.mxu1 %v14249_v52  ;;  %4689 = vmatpush.bf16.msra.mxu3 %v14250_v3  ;;  %v4354_v52 = vpop.f32.mrf.mxu0  ;;  %v9164_v3 = vpop.eup %9163 }
 0x3e3   : > { %v4872_v11 = vadd.f32 %v4366_v61, %v1011_v31  ;;  %v4886_v53 = vadd.f32 1.0, %v9164_v3  ;;  %v4392_v52 = vadd.f32 %v4391_v44, %v4378_v50  ;;  %v4380_v31 = vpop.f32.mrf.mxu2  ;;  %v14264_v61 = vld [vmem:[#allocation325_spill] sm:$0xff]  ;;  %v14267_v50 = vld [vmem:[#allocation328_spill] sm:$0xff] }
 0x3e4   : > { %4652 = vmatpush.bf16.msra.mxu0 %v14251_v18  ;;  %4678 = vmatpush.bf16.msra.mxu2 %v14252_v29  ;;  %v14258_v18 = vld [vmem:[#allocation321_spill] sm:$0xff]  ;;  %v14259_v29 = vld [vmem:[#allocation322_spill] sm:$0xff]  ;;  %v9166_v40 = vpop.eup %9165  ;;  %v14270_v31 = vld [vmem:[#allocation331_spill] sm:$0xff] }
 0x3e5   : > { %9169 = vtanh.f32 %v4872_v11  ;;  %v4892_v3 = vmul.f32 0.5, %v4886_v53  ;;  %v14268_v44 = vld [vmem:[#allocation329_spill] sm:$0xff] }
 0x3e6   : > { %4664 = vmatpush.bf16.msra.mxu1 %v14255_v37  ;;  %4690 = vmatpush.bf16.msra.mxu3 %v14256_v6  ;;  %v14262_v37 = vld [vmem:[#allocation233_spill] sm:$0xff]  ;;  %v4367_v25 = vpop.f32.mrf.mxu1 }
 0x3e7   : > { %v1030_v6 = vadd.f32 %v14262_v37, %v14261_v33  ;;  %v4900_v37 = vmul.f32 %v4894_v12, %v10732_v54  ;;  %v14269_v25 = vld [vmem:[#allocation330_spill] sm:$0xff] }
 0x3e8   : > { %4653 = vmatpush.bf16.msra.mxu0 %v14257_v38  ;;  %4679 = vmatpush.bf16.msra.mxu2 %v14258_v18  ;;  %v9168_v18 = vpop.eup %9167  ;;  %v14265_v38 = vld [vmem:[#allocation326_spill] sm:$0xff] }
 0x3e9   : > { %v4873_v11 = vadd.f32 %v4392_v52, %v1030_v6  ;;  %v4887_v28 = vadd.f32 1.0, %v9168_v18  ;;  %v14273_v12 = vld [vmem:[#allocation334_spill] sm:$0xff] }
 0x3ea   : > { %4665 = vmatpush.bf16.msra.mxu1 %v14259_v29  ;;  %4691 = vmatpush.bf16.msra.mxu3 %v14260_v39  ;;  %v14266_v29 = vld [vmem:[#allocation327_spill] sm:$0xff]  ;;  %v4889_v39 = vadd.f32 1.0, %v9166_v40  ;;  %v14271_v40 = vld [vmem:[#allocation332_spill] sm:$0xff] }
 0x3eb   : > { %v9170_v0 = vpop.eup %9169  ;;  %9171 = vtanh.f32 %v4873_v11  ;;  %v4893_v53 = vmul.f32 0.5, %v4887_v28  ;;  %v14272_v11 = vld [vmem:[#allocation333_spill] sm:$0xff]  ;;  %v14278_v28 = vld [vmem:[#allocation339_spill] sm:$0xff] }
 0x3ec   : > { %4654 = vmatpush.bf16.msra.mxu0 %v14263_v41  ;;  %4680 = vmatpush.bf16.msra.mxu2 %v14264_v61  ;;  %v4902_v45 = vmul.f32 %v9170_v0, %v4892_v3  ;;  %v4895_v6 = vmul.f32 0.5, %v4889_v39  ;;  %v14274_v0 = vld [vmem:[#allocation335_spill] sm:$0xff] }
 0x3ee   : > { %4666 = vmatpush.bf16.msra.mxu1 %v14265_v38  ;;  %4692 = vmatpush.bf16.msra.mxu3 %v14266_v29  ;;  %v11582_v52 = vadd.f32 %v4902_v45, %v4900_v37  ;;  %v4393_v29 = vpop.f32.mrf.mxu3  ;;  %v4901_v54 = vmul.f32 %v4895_v6, %v10735_v13  ;;  %v14279_v37 = vld [vmem:[#allocation340_spill] sm:$0xff]  ;;  %v14280_v45 = vld [vmem:[#allocation341_spill] sm:$0xff] }
 0x3ef   : > { %v14277_v29 = vld [vmem:[#allocation338_spill] sm:$0xff]  ;;  %v14283_v6 = vld [vmem:[#allocation344_spill] sm:$0xff] }
 0x3f0   : > { %4655 = vmatpush.bf16.msra.mxu0 %v14267_v50  ;;  %4681 = vmatpush.bf16.msra.mxu2 %v14268_v44 }
 0x3f1   : > { %v9172_v18 = vpop.eup %9171 }
 0x3f2   : > { %4667 = vmatpush.bf16.msra.mxu1 %v14269_v25  ;;  %4693 = vmatpush.bf16.msra.mxu3 %v14270_v31  ;;  %v4903_v3 = vmul.f32 %v9172_v18, %v4893_v53  ;;  %v14275_v25 = vld [vmem:[#allocation336_spill] sm:$0xff]  ;;  %v14276_v31 = vld [vmem:[#allocation337_spill] sm:$0xff]  ;;  %v14285_v18 = vld [vmem:[#allocation346_spill] sm:$0xff] }
 0x3f3   : > { %v14284_v53 = vld [vmem:[#allocation345_spill] sm:$0xff] }
 0x3f4   : > { %4656 = vmatpush.bf16.msra.mxu0 %v14271_v40  ;;  %4682 = vmatpush.bf16.msra.mxu2 %v14272_v11  ;;  %v11591_v39 = vadd.f32 %v4903_v3, %v4901_v54  ;;  %v4404_v13 = vpop.f32.mrf.mxu0  ;;  %v14286_v54 = vld [vmem:[#allocation347_spill] sm:$0xff]  ;;  %v14287_v3 = vld [vmem:[#allocation348_spill] sm:$0xff] }
 0x3f6   : > { %4668 = vmatpush.bf16.msra.mxu1 %v14275_v25  ;;  %4694 = vmatpush.bf16.msra.mxu3 %v14276_v31  ;;  %v14289_v31 = vld [vmem:[#allocation350_spill] sm:$0xff]  ;;  %v14291_v25 = vld [vmem:[#allocation352_spill] sm:$0xff] }
 0x3f8   : > { %4701 = vmatpush.bf16.msrb.mxu0 %v14273_v12  ;;  %4727 = vmatpush.bf16.msrb.mxu2 %v14274_v0  ;;  %v14281_v12 = vld [vmem:[#allocation342_spill] sm:$0xff]  ;;  %v14282_v0 = vld [vmem:[#allocation343_spill] sm:$0xff] }
 0x3fa   : > { %4669 = vmatpush.bf16.msra.mxu1 %v14279_v37  ;;  %4695 = vmatpush.bf16.msra.mxu3 %v14280_v45  ;;  %v4417_v37 = vpop.f32.mrf.mxu1 }
 0x3fb   : > { %v4418_v45 = vadd.f32 %v4417_v37, %v4404_v13  ;;  %v14294_v37 = vld [vmem:[#allocation357_spill] sm:$0xff] }
 0x3fc   : > { %4702 = vmatpush.bf16.msrb.mxu0 %v14277_v29  ;;  %4728 = vmatpush.bf16.msrb.mxu2 %v14278_v28  ;;  %v14288_v28 = vld [vmem:[#allocation349_spill] sm:$0xff]  ;;  %v4430_v29 = vpop.f32.mrf.mxu2 }
 0x3fe   : > { %4714 = vmatpush.bf16.msrb.mxu1 %v14281_v12  ;;  %4740 = vmatpush.bf16.msrb.mxu3 %v14282_v0  ;;  %v14290_v12 = vld [vmem:[#allocation351_spill] sm:$0xff]  ;;  %v4406_v0 = vpop.f32.mrf.mxu0 }
 0x400   : > { %4703 = vmatpush.bf16.msrb.mxu0 %v14283_v6  ;;  %4729 = vmatpush.bf16.msrb.mxu2 %v14284_v53  ;;  %v4603_v6 = vadd.f32 %v4418_v45, %v11279_v34  ;;  %v14296_v34 = vld [vmem:[#allocation359_spill] sm:$0xff]  ;;  %v14297_v45 = vld [vmem:[#allocation360_spill] sm:$0xff] }
 0x402   : > { %4715 = vmatpush.bf16.msrb.mxu1 %v14285_v18  ;;  %4741 = vmatpush.bf16.msrb.mxu3 %v14286_v54  ;;  %v14292_v18 = vld [vmem:[#allocation354_spill] sm:$0xff]  ;;  %v14293_v54 = vld [vmem:[#allocation356_spill] sm:$0xff]  ;;  %v4419_v13 = vpop.f32.mrf.mxu1  ;;  %v4611_v38 = vmul.f32 0.5, %v4603_v6 }
 0x403   : > { %v14306_v13 = vld [vmem:[#allocation369_spill] sm:$0xff] }
 0x404   : > { %4704 = vmatpush.bf16.msrb.mxu0 %v14287_v3  ;;  %4730 = vmatpush.bf16.msrb.mxu2 %v14288_v28  ;;  %v4443_v3 = vpop.f32.mrf.mxu3 }
 0x405   : > { %v4444_v28 = vadd.f32 %v4443_v3, %v4430_v29  ;;  %v14301_v3 = vld [vmem:[#allocation364_spill] sm:$0xff] }
 0x406   : > { %4716 = vmatpush.bf16.msrb.mxu1 %v14289_v31  ;;  %4742 = vmatpush.bf16.msrb.mxu3 %v14290_v12  ;;  %v4432_v31 = vpop.f32.mrf.mxu2  ;;  %v14295_v12 = vld [vmem:[#allocation358_spill] sm:$0xff] }
 0x407   : > { %v4604_v0 = vadd.f32 %v4444_v28, %v11291_v19  ;;  %v14303_v31 = vld [vmem:[#allocation366_spill] sm:$0xff]  ;;  %v14304_v19 = vld [vmem:[#allocation367_spill] sm:$0xff]  ;;  %v14305_v28 = vld [vmem:[#allocation368_spill] sm:$0xff] }
 0x408   : > { %4705 = vmatpush.bf16.msrb.mxu0 %v14291_v25  ;;  %4731 = vmatpush.bf16.msrb.mxu2 %v10896_v30  ;;  %v14298_v30 = vld [vmem:[#allocation361_spill] sm:$0xff] }
 0x409   : > { %v4612_v61 = vmul.f32 0.5, %v4604_v0 }
 0x40a   : > { %4717 = vmatpush.bf16.msrb.mxu1 %v14292_v18  ;;  %4743 = vmatpush.bf16.msrb.mxu3 %v10905_v58  ;;  %v14299_v18 = vld [vmem:[#allocation362_spill] sm:$0xff]  ;;  %v14300_v58 = vld [vmem:[#allocation363_spill] sm:$0xff] }
 0x40c   : > { %4706 = vmatpush.bf16.msrb.mxu0 %v14293_v54  ;;  %4732 = vmatpush.bf16.msrb.mxu2 %v14294_v37  ;;  %v4445_v29 = vpop.f32.mrf.mxu3  ;;  %v14302_v37 = vld [vmem:[#allocation365_spill] sm:$0xff] }
 0x40e   : > { %4718 = vmatpush.bf16.msrb.mxu1 %v14295_v12  ;;  %4744 = vmatpush.bf16.msrb.mxu3 %v14296_v34 }
 0x410   : > { %4707 = vmatpush.bf16.msrb.mxu0 %v14297_v45  ;;  %4733 = vmatpush.bf16.msrb.mxu2 %v14298_v30 }
 0x412   : > { %4719 = vmatpush.bf16.msrb.mxu1 %v14299_v18  ;;  %4745 = vmatpush.bf16.msrb.mxu3 %v14300_v58 }
 0x414   : > { %4708 = vmatpush.bf16.msrb.mxu0 %v14301_v3  ;;  %4734 = vmatpush.bf16.msrb.mxu2 %v14302_v37  ;;  %v4456_v45 = vpop.f32.mrf.mxu0 }
 0x416   : > { %4720 = vmatpush.bf16.msrb.mxu1 %v14303_v31  ;;  %4746 = vmatpush.bf16.msrb.mxu3 %v14304_v19 }
 0x41a   : > { %4721 = vmatpush.bf16.msrb.mxu1 %v14305_v28  ;;  %4747 = vmatpush.bf16.msrb.mxu3 %v14306_v13  ;;  %v4469_v34 = vpop.f32.mrf.mxu1  ;;  %v4482_v30 = vpop.f32.mrf.mxu2 }
 0x41b   : > { %v4470_v19 = vadd.f32 %v4469_v34, %v4456_v45 }
 0x41c   : > { %v4458_v12 = vpop.f32.mrf.mxu0 }
 0x41d   : > { %v4605_v28 = vadd.f32 %v4470_v19, %v11307_v7 }
 0x41f   : > { %v4613_v50 = vmul.f32 0.5, %v4605_v28 }
 0x420   : > { %v4495_v18 = vpop.f32.mrf.mxu3 }
 0x421   : > { %v4496_v13 = vadd.f32 %v4495_v18, %v4482_v30  ;;  %9173 = vtanh.f32 %v4613_v50 }
 0x422   : > { %v4471_v54 = vpop.f32.mrf.mxu1  ;;  %v4484_v58 = vpop.f32.mrf.mxu2  ;;  %9175 = vtanh.f32 %v4611_v38 }
 0x423   : > { %v4606_v12 = vadd.f32 %v4496_v13, %v11323_v14 }
 0x428   : > { %v4497_v29 = vpop.f32.mrf.mxu3 }
 0x429   : > { %v4614_v29 = vmul.f32 0.5, %v4606_v12  ;;  %v14307_v12 = vld [vmem:[#allocation370_spill] sm:$0xff] }
 0x42b   : > { %9177 = vtanh.f32 %v4614_v29 }
 0x42c   : > { %9179 = vtanh.f32 %v4612_v61 }
 0x434   : > { %v4508_v25 = vpop.f32.mrf.mxu0 }
 0x43a   : > { %v4521_v3 = vpop.f32.mrf.mxu1  ;;  %v4534_v53 = vpop.f32.mrf.mxu2 }
 0x43b   : > { %v4522_v58 = vadd.f32 %v4521_v3, %v4508_v25 }
 0x43c   : > { %v4510_v37 = vpop.f32.mrf.mxu0 }
 0x43d   : > { %v4607_v37 = vadd.f32 %v4522_v58, %v11341_v51 }
 0x43f   : > { %v4615_v50 = vmul.f32 0.5, %v4607_v37 }
 0x440   : > { %v4547_v11 = vpop.f32.mrf.mxu3 }
 0x441   : > { %v4548_v34 = vadd.f32 %v4547_v11, %v4534_v53 }
 0x442   : > { %v4523_v31 = vpop.f32.mrf.mxu1  ;;  %v4536_v40 = vpop.f32.mrf.mxu2 }
 0x443   : > { %v9174_v31 = vpop.eup %9173  ;;  %v4608_v38 = vadd.f32 %v4548_v34, %v11355_v55  ;;  %v14308_v34 = vld [vmem:[#allocation371_spill] sm:$0xff] }
 0x444   : > { %v9176_v7 = vpop.eup %9175  ;;  %v4625_v14 = vadd.f32 1.0, %v9174_v31 }
 0x445   : > { %v4623_v25 = vadd.f32 1.0, %v9176_v7  ;;  %v9178_v0 = vpop.eup %9177 }
 0x446   : > { %v4631_v45 = vmul.f32 0.5, %v4625_v14  ;;  %v4626_v19 = vadd.f32 1.0, %v9178_v0 }
 0x447   : > { %v4629_v61 = vmul.f32 0.5, %v4623_v25 }
 0x448   : > { %v4549_v44 = vpop.f32.mrf.mxu3  ;;  %v4632_v29 = vmul.f32 0.5, %v4626_v19  ;;  %v14312_v19 = vld [vmem:[#allocation375_spill] sm:$0xff] }
 0x44a   : > { %v4638_v7 = vmul.f32 %v4632_v29, %v14308_v34  ;;  %v14320_v29 = vld [vmem:[#allocation383_spill] sm:$0xff]  ;;  %v14325_v34 = vld [vmem:[#allocation388_spill] sm:$0xff] }
 0x454   : > { %v4560_v54 = vpop.f32.mrf.mxu0 }
 0x45a   : > { %v4573_v41 = vpop.f32.mrf.mxu1  ;;  %v4586_v44 = vpop.f32.mrf.mxu2 }
 0x45b   : > { %v4574_v40 = vadd.f32 %v4573_v41, %v4560_v54  ;;  %v9180_v41 = vpop.eup %9179  ;;  %v4637_v54 = vmul.f32 %v4631_v45, %v14307_v12  ;;  %v14316_v12 = vld [vmem:[#allocation379_spill] sm:$0xff] }
 0x45c   : > { %v4562_v6 = vpop.f32.mrf.mxu0  ;;  %v4624_v13 = vadd.f32 1.0, %v9180_v41  ;;  %v14310_v41 = vld [vmem:[#allocation373_spill] sm:$0xff] }
 0x45d   : > { %v4609_v30 = vadd.f32 %v4574_v40, %v11389_v56  ;;  %v4616_v56 = vmul.f32 0.5, %v4608_v38 }
 0x45e   : > { %v4630_v40 = vmul.f32 0.5, %v4624_v13  ;;  %v14315_v13 = vld [vmem:[#allocation378_spill] sm:$0xff] }
 0x45f   : > { %9181 = vtanh.f32 %v4609_v30 }
 0x460   : > { %v4599_v18 = vpop.f32.mrf.mxu3  ;;  %9183 = vtanh.f32 %v4615_v50 }
 0x461   : > { %v4600_v51 = vadd.f32 %v4599_v18, %v4586_v44 }
 0x462   : > { %v4575_v3 = vpop.f32.mrf.mxu1  ;;  %v4588_v53 = vpop.f32.mrf.mxu2 }
 0x463   : > { %v4610_v11 = vadd.f32 %v4600_v51, %v11399_v9  ;;  %v14309_v3 = vld [vmem:[#allocation372_spill] sm:$0xff] }
 0x465   : > { %v9182_v28 = vpop.eup %9181  ;;  %9185 = vtanh.f32 %v4610_v11 }
 0x466   : > { %v4639_v58 = vmul.f32 %v9182_v28, %v4629_v61  ;;  %v9184_v55 = vpop.eup %9183  ;;  %9187 = vtanh.f32 %v4616_v56  ;;  %v14311_v61 = vld [vmem:[#allocation374_spill] sm:$0xff]  ;;  %v14313_v56 = vld [vmem:[#allocation376_spill] sm:$0xff]  ;;  %v14314_v28 = vld [vmem:[#allocation377_spill] sm:$0xff] }
 0x467   : > { %v4627_v44 = vadd.f32 1.0, %v9184_v55  ;;  %v14319_v55 = vld [vmem:[#allocation382_spill] sm:$0xff] }
 0x468   : > { %v11634_v37 = vadd.f32 %v4639_v58, %v4637_v54  ;;  %v4601_v31 = vpop.f32.mrf.mxu3  ;;  %v14317_v54 = vld [vmem:[#allocation380_spill] sm:$0xff]  ;;  %v14318_v58 = vld [vmem:[#allocation381_spill] sm:$0xff] }
 0x469   : > { %v4633_v50 = vmul.f32 0.5, %v4627_v44  ;;  %v14321_v31 = vld [vmem:[#allocation384_spill] sm:$0xff]  ;;  %v14324_v44 = vld [vmem:[#allocation387_spill] sm:$0xff] }
 0x46a   : > { %9189 = vtanh.f32 %v11634_v37 }
 0x46b   : > { %v9186_v9 = vpop.eup %9185 }
 0x46c   : > { %v4640_v30 = vmul.f32 %v9186_v9, %v4630_v40  ;;  %v9188_v6 = vpop.eup %9187  ;;  %v14322_v40 = vld [vmem:[#allocation385_spill] sm:$0xff]  ;;  %v14323_v9 = vld [vmem:[#allocation386_spill] sm:$0xff] }
 0x46d   : > { %v4628_v38 = vadd.f32 1.0, %v9188_v6  ;;  %v14328_v6 = vld [vmem:[#allocation391_spill] sm:$0xff] }
 0x46e   : > { %v11638_v14 = vadd.f32 %v4640_v30, %v4638_v7  ;;  %v14326_v7 = vld [vmem:[#allocation389_spill] sm:$0xff]  ;;  %v14327_v30 = vld [vmem:[#allocation390_spill] sm:$0xff] }
 0x46f   : > { %v4634_v51 = vmul.f32 0.5, %v4628_v38  ;;  %v14331_v38 = vld [vmem:[#allocation394_spill] sm:$0xff] }
 0x470   : > { %v9190_v25 = vpop.eup %9189  ;;  %9191 = vtanh.f32 %v11638_v14 }
 0x471   : > { %v4645_v18 = vmul.f32 %v9190_v25, %v4633_v50  ;;  %v14329_v50 = vld [vmem:[#allocation392_spill] sm:$0xff]  ;;  %v14330_v25 = vld [vmem:[#allocation393_spill] sm:$0xff] }
 0x473   : > { %v11641_v0 = vpack.c.bf16 %v4645_v18, %v4645_v18  ;;  %v14332_v18 = vld [vmem:[#allocation395_spill] sm:$0xff] }
 0x475   : > { %4657 = vmatmul.bf16.vlgmr.msra.gmra.mxu0 %v11641_v0  ;;  %4683 = vmatmul.bf16.vlgmr.msra.gmra.mxu2 %v11641_v0 }
 0x476   : > { %v9192_v45 = vpop.eup %9191  ;;  %4753 = vmatpush.bf16.msra.mxu0 %v14309_v3  ;;  %4779 = vmatpush.bf16.msra.mxu2 %v14310_v41 }
 0x477   : > { %v4646_v11 = vmul.f32 %v9192_v45, %v4634_v51  ;;  %v14333_v51 = vld [vmem:[#allocation396_spill] sm:$0xff]  ;;  %v14334_v45 = vld [vmem:[#allocation397_spill] sm:$0xff] }
 0x479   : > { %v11647_v53 = vpack.c.bf16 %v4646_v11, %v4646_v11  ;;  %v14335_v11 = vld [vmem:[#allocation398_spill] sm:$0xff] }
 0x47a   : > { %4754 = vmatpush.bf16.msra.mxu0 %v14311_v61  ;;  %4780 = vmatpush.bf16.msra.mxu2 %v14312_v19 }
 0x47b   : > { %4670 = vmatmul.bf16.vlgmr.msra.gmra.mxu1 %v11647_v53  ;;  %4696 = vmatmul.bf16.vlgmr.msra.gmra.mxu3 %v11647_v53 }
 0x47c   : > { %4766 = vmatpush.bf16.msra.mxu1 %v14313_v56  ;;  %4792 = vmatpush.bf16.msra.mxu3 %v14314_v28 }
 0x47e   : > { %4755 = vmatpush.bf16.msra.mxu0 %v14315_v13  ;;  %4781 = vmatpush.bf16.msra.mxu2 %v14316_v12 }
 0x480   : > { %4767 = vmatpush.bf16.msra.mxu1 %v14317_v54  ;;  %4793 = vmatpush.bf16.msra.mxu3 %v14318_v58 }
 0x482   : > { %4756 = vmatpush.bf16.msra.mxu0 %v14319_v55  ;;  %4782 = vmatpush.bf16.msra.mxu2 %v14320_v29 }
 0x484   : > { %4768 = vmatpush.bf16.msra.mxu1 %v14321_v31  ;;  %4794 = vmatpush.bf16.msra.mxu3 %v14322_v40 }
 0x485   : > { %4709 = vmatmul.bf16.vlgmr.msrb.gmra.mxu0 %v11641_v0  ;;  %4735 = vmatmul.bf16.vlgmr.msrb.gmra.mxu2 %v11641_v0 }
 0x486   : > { %4757 = vmatpush.bf16.msra.mxu0 %v14323_v9  ;;  %4783 = vmatpush.bf16.msra.mxu2 %v14324_v44 }
 0x488   : > { %4769 = vmatpush.bf16.msra.mxu1 %v14325_v34  ;;  %4795 = vmatpush.bf16.msra.mxu3 %v14326_v7  ;;  %v14338_v7 = vld [vmem:[#allocation402_spill] sm:$0xff] }
 0x48a   : > { %4758 = vmatpush.bf16.msra.mxu0 %v14327_v30  ;;  %4784 = vmatpush.bf16.msra.mxu2 %v14328_v6  ;;  %v14336_v30 = vld [vmem:[#allocation399_spill] sm:$0xff]  ;;  %v14337_v6 = vld [vmem:[#allocation401_spill] sm:$0xff] }
 0x48b   : > { %4722 = vmatmul.bf16.vlgmr.msrb.gmra.mxu1 %v11647_v53  ;;  %4748 = vmatmul.bf16.vlgmr.msrb.gmra.mxu3 %v11647_v53 }
 0x48c   : > { %4770 = vmatpush.bf16.msra.mxu1 %v14329_v50  ;;  %4796 = vmatpush.bf16.msra.mxu3 %v14330_v25  ;;  %v14357_v25 = vld [vmem:[#allocation422_spill] sm:$0xff] }
 0x48e   : > { %4759 = vmatpush.bf16.msra.mxu0 %v14331_v38  ;;  %4785 = vmatpush.bf16.msra.mxu2 %v14332_v18  ;;  %v14339_v18 = vld [vmem:[#allocation404_spill] sm:$0xff]  ;;  %v14356_v38 = vld [vmem:[#allocation421_spill] sm:$0xff] }
 0x490   : > { %4771 = vmatpush.bf16.msra.mxu1 %v14333_v51  ;;  %4797 = vmatpush.bf16.msra.mxu3 %v14334_v45  ;;  %v14340_v51 = vld [vmem:[#allocation405_spill] sm:$0xff]  ;;  %v14341_v45 = vld [vmem:[#allocation406_spill] sm:$0xff] }
 0x492   : > { %4760 = vmatpush.bf16.msra.mxu0 %v14335_v11  ;;  %4786 = vmatpush.bf16.msra.mxu2 %v14336_v30  ;;  %v14342_v11 = vld [vmem:[#allocation407_spill] sm:$0xff]  ;;  %v14343_v30 = vld [vmem:[#allocation408_spill] sm:$0xff] }
 0x494   : > { %4772 = vmatpush.bf16.msra.mxu1 %v14338_v7  ;;  %4798 = vmatpush.bf16.msra.mxu3 %v11065_v57  ;;  %v14346_v7 = vld [vmem:[#allocation411_spill] sm:$0xff]  ;;  %v14347_v57 = vld [vmem:[#allocation412_spill] sm:$0xff] }
 0x495   : > { %4761 = vmatmul.bf16.vlgmr.msra.gmra.mxu0 %v11641_v0  ;;  %4787 = vmatmul.bf16.vlgmr.msra.gmra.mxu2 %v11641_v0 }
 0x496   : > { %4805 = vmatpush.bf16.msrb.mxu0 %v11057_v8  ;;  %4831 = vmatpush.bf16.msrb.mxu2 %v14337_v6  ;;  %v14344_v8 = vld [vmem:[#allocation409_spill] sm:$0xff]  ;;  %v14345_v6 = vld [vmem:[#allocation410_spill] sm:$0xff] }
 0x498   : > { %4773 = vmatpush.bf16.msra.mxu1 %v14341_v45  ;;  %4799 = vmatpush.bf16.msra.mxu3 %v14342_v11  ;;  %v14350_v45 = vld [vmem:[#allocation415_spill] sm:$0xff]  ;;  %v14351_v11 = vld [vmem:[#allocation416_spill] sm:$0xff] }
 0x49a   : > { %4806 = vmatpush.bf16.msrb.mxu0 %v14339_v18  ;;  %4832 = vmatpush.bf16.msrb.mxu2 %v14340_v51  ;;  %v14348_v18 = vld [vmem:[#allocation413_spill] sm:$0xff]  ;;  %v14349_v51 = vld [vmem:[#allocation414_spill] sm:$0xff] }
 0x49b   : > { %4774 = vmatmul.bf16.vlgmr.msra.gmra.mxu1 %v11647_v53  ;;  %4800 = vmatmul.bf16.vlgmr.msra.gmra.mxu3 %v11647_v53 }
 0x49c   : > { %4818 = vmatpush.bf16.msrb.mxu1 %v14343_v30  ;;  %4844 = vmatpush.bf16.msrb.mxu3 %v14344_v8  ;;  %v14352_v30 = vld [vmem:[#allocation417_spill] sm:$0xff]  ;;  %v14353_v8 = vld [vmem:[#allocation418_spill] sm:$0xff] }
 0x49e   : > { %4807 = vmatpush.bf16.msrb.mxu0 %v14345_v6  ;;  %4833 = vmatpush.bf16.msrb.mxu2 %v14346_v7  ;;  %v14354_v6 = vld [vmem:[#allocation419_spill] sm:$0xff]  ;;  %v14355_v7 = vld [vmem:[#allocation420_spill] sm:$0xff] }
 0x4a0   : > { %4819 = vmatpush.bf16.msrb.mxu1 %v14347_v57  ;;  %4845 = vmatpush.bf16.msrb.mxu3 %v14348_v18  ;;  %v14358_v57 = vld [vmem:[#allocation423_spill] sm:$0xff] }
 0x4a2   : > { %4808 = vmatpush.bf16.msrb.mxu0 %v14349_v51  ;;  %4834 = vmatpush.bf16.msrb.mxu2 %v14350_v45 }
 0x4a4   : > { %4820 = vmatpush.bf16.msrb.mxu1 %v14351_v11  ;;  %4846 = vmatpush.bf16.msrb.mxu3 %v14352_v30 }
 0x4a6   : > { %4809 = vmatpush.bf16.msrb.mxu0 %v14353_v8  ;;  %4835 = vmatpush.bf16.msrb.mxu2 %v14354_v6 }
 0x4a8   : > { %4821 = vmatpush.bf16.msrb.mxu1 %v14355_v7  ;;  %4847 = vmatpush.bf16.msrb.mxu3 %v14356_v38  ;;  %v14539_v38 = vld [vmem:[#allocation74_spill] sm:$0xff]  ;;  %v14540_v7 = vld [vmem:[#allocation91_spill] sm:$0xff] }
 0x4aa   : > { %4810 = vmatpush.bf16.msrb.mxu0 %v14357_v25  ;;  %4836 = vmatpush.bf16.msrb.mxu2 %v14358_v57  ;;  %v14506_v57 = vld [vmem:[#allocation190_spill] sm:$0xff] }
 0x4ac   : > { %4822 = vmatpush.bf16.msrb.mxu1 %v11135_v16  ;;  %4848 = vmatpush.bf16.msrb.mxu3 %v11137_v60 }
 0x4ae   : > { %4811 = vmatpush.bf16.msrb.mxu0 %v11141_v62  ;;  %4837 = vmatpush.bf16.msrb.mxu2 %v11143_v48  ;;  %v14467_v62 = vld [vmem:[#allocation154_spill] sm:$0xff] }
 0x4b0   : > { %4823 = vmatpush.bf16.msrb.mxu1 %v11147_v1  ;;  %4849 = vmatpush.bf16.msrb.mxu3 %v11149_v2  ;;  %v14449_v1 = vld [vmem:[#allocation131_spill] sm:$0xff] }
 0x4b2   : > { %4812 = vmatpush.bf16.msrb.mxu0 %v11153_v21  ;;  %4838 = vmatpush.bf16.msrb.mxu2 %v11155_v47  ;;  %v14380_v47 = vld [vmem:[#allocation58_spill] sm:$0xff] }
 0x4b4   : > { %4824 = vmatpush.bf16.msrb.mxu1 %v11159_v17  ;;  %4850 = vmatpush.bf16.msrb.mxu3 %v11161_v22  ;;  %v4878_v17 = vmul.f32 0.5, %v11519_v42  ;;  %v14364_v42 = vld [vmem:[#allocation35_spill] sm:$0xff]  ;;  %v14374_v22 = vld [vmem:[#allocation50_spill] sm:$0xff] }
 0x4b5   : > { %4813 = vmatmul.bf16.vlgmr.msrb.gmra.mxu0 %v11641_v0  ;;  %4839 = vmatmul.bf16.vlgmr.msrb.gmra.mxu2 %v11641_v0  ;;  %v14359_v0 = vld [vmem:[#allocation36_spill] sm:$0xff] }
 0x4b6   : > { %4912 = vmatpush.bf16.msra.mxu0 %v9795_v20  ;;  %4938 = vmatpush.bf16.msra.mxu2 %v9800_v26  ;;  %9193 = vtanh.f32 %v4878_v17  ;;  %v14369_v17 = vld [vmem:[#allocation41_spill] sm:$0xff]  ;;  %v14378_v26 = vld [vmem:[#allocation54_spill] sm:$0xff] }
 0x4b8   : > { %4825 = vmatpush.bf16.msrb.mxu1 %v11171_v49  ;;  %4851 = vmatpush.bf16.msrb.mxu3 %v11173_v5  ;;  %v4879_v5 = vmul.f32 0.5, %v11531_v59  ;;  %v14365_v49 = vld [vmem:[#allocation37_spill] sm:$0xff] }
 0x4ba   : > { %4913 = vmatpush.bf16.msra.mxu0 %v9807_v32  ;;  %4939 = vmatpush.bf16.msra.mxu2 %v9811_v36  ;;  %v14360_v32 = vld [vmem:[#allocation31_spill] sm:$0xff]  ;;  %v14361_v36 = vld [vmem:[#allocation33_spill] sm:$0xff]  ;;  %9195 = vtanh.f32 %v4879_v5 }
 0x4bb   : > { %4826 = vmatmul.bf16.vlgmr.msrb.gmra.mxu1 %v11647_v53  ;;  %4852 = vmatmul.bf16.vlgmr.msrb.gmra.mxu3 %v11647_v53  ;;  %9197 = vtanh.f32 %v11582_v52  ;;  %v14373_v5 = vld [vmem:[#allocation45_spill] sm:$0xff] }
 0x4bc   : > { %4925 = vmatpush.bf16.msra.mxu1 %v9797_v23  ;;  %4951 = vmatpush.bf16.msra.mxu3 %v9802_v27  ;;  %v14362_v23 = vld [vmem:[#allocation38_spill] sm:$0xff]  ;;  %v14363_v27 = vld [vmem:[#allocation40_spill] sm:$0xff]  ;;  %v9194_v53 = vpop.eup %9193  ;;  %9199 = vtanh.f32 %v11591_v39 }
 0x4bd   : > { %v4890_v59 = vadd.f32 1.0, %v9194_v53  ;;  %v14376_v53 = vld [vmem:[#allocation47_spill] sm:$0xff] }
 0x4be   : > { %4914 = vmatpush.bf16.msra.mxu0 %v9818_v43  ;;  %4940 = vmatpush.bf16.msra.mxu2 %v14359_v0  ;;  %v14366_v0 = vld [vmem:[#allocation42_spill] sm:$0xff]  ;;  %v14372_v43 = vld [vmem:[#allocation43_spill] sm:$0xff] }
 0x4c0   : > { %4926 = vmatpush.bf16.msra.mxu1 %v14360_v32  ;;  %4952 = vmatpush.bf16.msra.mxu3 %v14361_v36  ;;  %v14367_v32 = vld [vmem:[#allocation44_spill] sm:$0xff]  ;;  %v14368_v36 = vld [vmem:[#allocation39_spill] sm:$0xff] }
 0x4c2   : > { %4915 = vmatpush.bf16.msra.mxu0 %v14362_v23  ;;  %4941 = vmatpush.bf16.msra.mxu2 %v14363_v27  ;;  %v14370_v23 = vld [vmem:[#allocation46_spill] sm:$0xff]  ;;  %v14371_v27 = vld [vmem:[#allocation48_spill] sm:$0xff] }
 0x4c4   : > { %4927 = vmatpush.bf16.msra.mxu1 %v14364_v42  ;;  %4953 = vmatpush.bf16.msra.mxu3 %v14365_v49  ;;  %v9196_v42 = vpop.eup %9195 }
 0x4c5   : > { %v9198_v49 = vpop.eup %9197 }
 0x4c6   : > { %4916 = vmatpush.bf16.msra.mxu0 %v14366_v0  ;;  %4942 = vmatpush.bf16.msra.mxu2 %v14367_v32  ;;  %v4896_v0 = vmul.f32 0.5, %v4890_v59  ;;  %v14375_v32 = vld [vmem:[#allocation52_spill] sm:$0xff] }
 0x4c7   : > { %v14381_v59 = vld [vmem:[#allocation60_spill] sm:$0xff] }
 0x4c8   : > { %4928 = vmatpush.bf16.msra.mxu1 %v14368_v36  ;;  %4954 = vmatpush.bf16.msra.mxu3 %v14369_v17  ;;  %v4891_v36 = vadd.f32 1.0, %v9196_v42  ;;  %v4908_v17 = vmul.f32 %v9198_v49, %v4896_v0  ;;  %v14383_v42 = vld [vmem:[#allocation53_spill] sm:$0xff]  ;;  %v14384_v0 = vld [vmem:[#allocation62_spill] sm:$0xff] }
 0x4ca   : > { %4917 = vmatpush.bf16.msra.mxu0 %v14370_v23  ;;  %4943 = vmatpush.bf16.msra.mxu2 %v14371_v27  ;;  %v14377_v23 = vld [vmem:[#allocation49_spill] sm:$0xff]  ;;  %v9200_v27 = vpop.eup %9199  ;;  %v11757_v20 = vpack.c.bf16 %v4908_v17, %v4908_v17 }
 0x4cb   : > { %v14387_v17 = vld [vmem:[#allocation57_spill] sm:$0xff] }
 0x4cc   : > { %4929 = vmatpush.bf16.msra.mxu1 %v14372_v43  ;;  %4955 = vmatpush.bf16.msra.mxu3 %v14373_v5  ;;  %v14379_v43 = vld [vmem:[#allocation56_spill] sm:$0xff]  ;;  %v4897_v5 = vmul.f32 0.5, %v4891_v36  ;;  %v14386_v36 = vld [vmem:[#allocation55_spill] sm:$0xff] }
 0x4ce   : > { %4918 = vmatpush.bf16.msra.mxu0 %v14374_v22  ;;  %4944 = vmatpush.bf16.msra.mxu2 %v14375_v32  ;;  %v14382_v22 = vld [vmem:[#allocation51_spill] sm:$0xff]  ;;  %v4909_v49 = vmul.f32 %v9200_v27, %v4897_v5  ;;  %v14390_v27 = vld [vmem:[#allocation66_spill] sm:$0xff]  ;;  %v14391_v5 = vld [vmem:[#allocation68_spill] sm:$0xff] }
 0x4cf   : > { %v14430_v32 = vld [vmem:[#allocation117_spill] sm:$0xff] }
 0x4d0   : > { %4930 = vmatpush.bf16.msra.mxu1 %v14376_v53  ;;  %4956 = vmatpush.bf16.msra.mxu3 %v14377_v23  ;;  %v14429_v53 = vld [vmem:[#allocation115_spill] sm:$0xff] }
 0x4d2   : > { %4919 = vmatpush.bf16.msra.mxu0 %v14378_v26  ;;  %4945 = vmatpush.bf16.msra.mxu2 %v14379_v43  ;;  %v14385_v26 = vld [vmem:[#allocation64_spill] sm:$0xff]  ;;  %v14400_v43 = vld [vmem:[#allocation73_spill] sm:$0xff] }
 0x4d4   : > { %4931 = vmatpush.bf16.msra.mxu1 %v14382_v22  ;;  %4957 = vmatpush.bf16.msra.mxu3 %v14383_v42  ;;  %v14389_v22 = vld [vmem:[#allocation61_spill] sm:$0xff]  ;;  %v14399_v42 = vld [vmem:[#allocation82_spill] sm:$0xff] }
 0x4d5   : > { %4920 = vmatmul.bf16.vlgmr.msra.gmra.mxu0 %v11757_v20  ;;  %4946 = vmatmul.bf16.vlgmr.msra.gmra.mxu2 %v11757_v20 }
 0x4d6   : > { %4964 = vmatpush.bf16.msrb.mxu0 %v14380_v47  ;;  %4990 = vmatpush.bf16.msrb.mxu2 %v14381_v59  ;;  %v11769_v47 = vpack.c.bf16 %v4909_v49, %v4909_v49  ;;  %v14388_v59 = vld [vmem:[#allocation59_spill] sm:$0xff]  ;;  %v14395_v49 = vld [vmem:[#allocation76_spill] sm:$0xff] }
 0x4d8   : > { %4932 = vmatpush.bf16.msra.mxu1 %v14386_v36  ;;  %4958 = vmatpush.bf16.msra.mxu3 %v14387_v17  ;;  %v14394_v36 = vld [vmem:[#allocation70_spill] sm:$0xff]  ;;  %v14396_v17 = vld [vmem:[#allocation67_spill] sm:$0xff] }
 0x4da   : > { %4965 = vmatpush.bf16.msrb.mxu0 %v14384_v0  ;;  %4991 = vmatpush.bf16.msrb.mxu2 %v14385_v26  ;;  %v14392_v0 = vld [vmem:[#allocation63_spill] sm:$0xff]  ;;  %v14393_v26 = vld [vmem:[#allocation65_spill] sm:$0xff] }
 0x4db   : > { %4933 = vmatmul.bf16.vlgmr.msra.gmra.mxu1 %v11769_v47  ;;  %4959 = vmatmul.bf16.vlgmr.msra.gmra.mxu3 %v11769_v47 }
 0x4dc   : > { %4977 = vmatpush.bf16.msrb.mxu1 %v14388_v59  ;;  %5003 = vmatpush.bf16.msrb.mxu3 %v14389_v22  ;;  %v14397_v59 = vld [vmem:[#allocation69_spill] sm:$0xff]  ;;  %v14398_v22 = vld [vmem:[#allocation80_spill] sm:$0xff] }
 0x4de   : > { %4966 = vmatpush.bf16.msrb.mxu0 %v14390_v27  ;;  %4992 = vmatpush.bf16.msrb.mxu2 %v14391_v5  ;;  %v14401_v27 = vld [vmem:[#allocation78_spill] sm:$0xff]  ;;  %v14402_v5 = vld [vmem:[#allocation85_spill] sm:$0xff] }
 0x4e0   : > { %4978 = vmatpush.bf16.msrb.mxu1 %v14392_v0  ;;  %5004 = vmatpush.bf16.msrb.mxu3 %v14393_v26  ;;  %v14403_v0 = vld [vmem:[#allocation90_spill] sm:$0xff]  ;;  %v14404_v26 = vld [vmem:[#allocation81_spill] sm:$0xff] }
 0x4e2   : > { %4967 = vmatpush.bf16.msrb.mxu0 %v14394_v36  ;;  %4993 = vmatpush.bf16.msrb.mxu2 %v14395_v49  ;;  %v14405_v36 = vld [vmem:[#allocation83_spill] sm:$0xff]  ;;  %v14406_v49 = vld [vmem:[#allocation93_spill] sm:$0xff] }
 0x4e4   : > { %4979 = vmatpush.bf16.msrb.mxu1 %v14396_v17  ;;  %5005 = vmatpush.bf16.msrb.mxu3 %v14397_v59  ;;  %v14407_v17 = vld [vmem:[#allocation95_spill] sm:$0xff] }
 0x4e5   : > { %v14408_v59 = vld [vmem:[#allocation87_spill] sm:$0xff] }
 0x4e6   : > { %4968 = vmatpush.bf16.msrb.mxu0 %v14398_v22  ;;  %4994 = vmatpush.bf16.msrb.mxu2 %v14399_v42  ;;  %v14409_v22 = vld [vmem:[#allocation92_spill] sm:$0xff] }
 0x4e7   : > { %v14410_v42 = vld [vmem:[#allocation100_spill] sm:$0xff] }
 0x4e8   : > { %4980 = vmatpush.bf16.msrb.mxu1 %v14400_v43  ;;  %5006 = vmatpush.bf16.msrb.mxu3 %v14401_v27  ;;  %v14411_v43 = vld [vmem:[#allocation102_spill] sm:$0xff] }
 0x4e9   : > { %v14412_v27 = vld [vmem:[#allocation106_spill] sm:$0xff] }
 0x4ea   : > { %4969 = vmatpush.bf16.msrb.mxu0 %v14402_v5  ;;  %4995 = vmatpush.bf16.msrb.mxu2 %v14403_v0  ;;  %v14413_v5 = vld [vmem:[#allocation108_spill] sm:$0xff]  ;;  %v14414_v0 = vld [vmem:[#allocation94_spill] sm:$0xff] }
 0x4ec   : > { %4981 = vmatpush.bf16.msrb.mxu1 %v14404_v26  ;;  %5007 = vmatpush.bf16.msrb.mxu3 %v14405_v36  ;;  %v14415_v26 = vld [vmem:[#allocation97_spill] sm:$0xff] }
 0x4ee   : > { %4970 = vmatpush.bf16.msrb.mxu0 %v14406_v49  ;;  %4996 = vmatpush.bf16.msrb.mxu2 %v14407_v17  ;;  %v14416_v17 = vld [vmem:[#allocation110_spill] sm:$0xff] }
 0x4f0   : > { %4982 = vmatpush.bf16.msrb.mxu1 %v14408_v59  ;;  %5008 = vmatpush.bf16.msrb.mxu3 %v14409_v22  ;;  %v14417_v59 = vld [vmem:[#allocation112_spill] sm:$0xff]  ;;  %v14418_v22 = vld [vmem:[#allocation101_spill] sm:$0xff] }
 0x4f2   : > { %4971 = vmatpush.bf16.msrb.mxu0 %v14410_v42  ;;  %4997 = vmatpush.bf16.msrb.mxu2 %v14411_v43  ;;  %v14419_v42 = vld [vmem:[#allocation103_spill] sm:$0xff] }
 0x4f3   : > { %v14420_v43 = vld [vmem:[#allocation107_spill] sm:$0xff] }
 0x4f4   : > { %4983 = vmatpush.bf16.msrb.mxu1 %v14414_v0  ;;  %5009 = vmatpush.bf16.msrb.mxu3 %v14415_v26  ;;  %v14422_v26 = vld [vmem:[#allocation114_spill] sm:$0xff]  ;;  %v14423_v0 = vld [vmem:[#allocation116_spill] sm:$0xff] }
 0x4f5   : > { %4972 = vmatmul.bf16.vlgmr.msrb.gmra.mxu0 %v11757_v20  ;;  %4998 = vmatmul.bf16.vlgmr.msrb.gmra.mxu2 %v11757_v20 }
 0x4f6   : > { %5016 = vmatpush.bf16.msra.mxu0 %v14412_v27  ;;  %5042 = vmatpush.bf16.msra.mxu2 %v14413_v5  ;;  %v14421_v27 = vld [vmem:[#allocation109_spill] sm:$0xff]  ;;  %v4658_v5 = vpop.f32.mrf.mxu0 }
 0x4f8   : > { %4984 = vmatpush.bf16.msrb.mxu1 %v14418_v22  ;;  %5010 = vmatpush.bf16.msrb.mxu3 %v14419_v42  ;;  %v14426_v22 = vld [vmem:[#allocation436_spill] sm:$0xff]  ;;  %v4671_v42 = vpop.f32.mrf.mxu1  ;;  %v4684_v36 = vpop.f32.mrf.mxu2 }
 0x4f9   : > { %v4659_v49 = vadd.f32 %v4658_v5, %v14426_v22  ;;  %v14434_v5 = vld [vmem:[#allocation119_spill] sm:$0xff]  ;;  %v14435_v22 = vld [vmem:[#allocation121_spill] sm:$0xff] }
 0x4fa   : > { %5017 = vmatpush.bf16.msra.mxu0 %v14416_v17  ;;  %5043 = vmatpush.bf16.msra.mxu2 %v14417_v59  ;;  %v14424_v17 = vld [vmem:[#allocation111_spill] sm:$0xff]  ;;  %v14425_v59 = vld [vmem:[#allocation113_spill] sm:$0xff] }
 0x4fb   : > { %4985 = vmatmul.bf16.vlgmr.msrb.gmra.mxu1 %v11769_v47  ;;  %5011 = vmatmul.bf16.vlgmr.msrb.gmra.mxu3 %v11769_v47  ;;  %v11818_v23 = vadd.f32 %v4671_v42, %v4659_v49 }
 0x4fc   : > { %5029 = vmatpush.bf16.msra.mxu1 %v14420_v43  ;;  %5055 = vmatpush.bf16.msra.mxu3 %v14421_v27  ;;  %v14427_v43 = vld [vmem:[#allocation118_spill] sm:$0xff]  ;;  %v14428_v27 = vld [vmem:[#allocation120_spill] sm:$0xff] }
 0x4fe   : > { %5018 = vmatpush.bf16.msra.mxu0 %v14422_v26  ;;  %5044 = vmatpush.bf16.msra.mxu2 %v14423_v0  ;;  %v4660_v26 = vpop.f32.mrf.mxu0  ;;  %v14431_v0 = vld [vmem:[#allocation437_spill] sm:$0xff] }
 0x4ff   : > { %v4685_v21 = vadd.f32 %v4684_v36, %v14431_v0  ;;  %v14438_v26 = vld [vmem:[#allocation123_spill] sm:$0xff]  ;;  %v14439_v36 = vld [vmem:[#allocation125_spill] sm:$0xff]  ;;  %v14440_v0 = vld [vmem:[#allocation130_spill] sm:$0xff] }
 0x500   : > { %5030 = vmatpush.bf16.msra.mxu1 %v14424_v17  ;;  %5056 = vmatpush.bf16.msra.mxu3 %v14425_v59  ;;  %v14432_v17 = vld [vmem:[#allocation122_spill] sm:$0xff]  ;;  %v14433_v59 = vld [vmem:[#allocation124_spill] sm:$0xff]  ;;  %v4673_v42 = vpop.f32.mrf.mxu1  ;;  %v4686_v49 = vpop.f32.mrf.mxu2 }
 0x502   : > { %5019 = vmatpush.bf16.msra.mxu0 %v14427_v43  ;;  %5045 = vmatpush.bf16.msra.mxu2 %v14428_v27  ;;  %v4697_v43 = vpop.f32.mrf.mxu3  ;;  %v14436_v27 = vld [vmem:[#allocation126_spill] sm:$0xff] }
 0x503   : > { %v11827_v2 = vadd.f32 %v4697_v43, %v4685_v21  ;;  %v14444_v21 = vld [vmem:[#allocation438_spill] sm:$0xff] }
 0x504   : > { %5031 = vmatpush.bf16.msra.mxu1 %v14429_v53  ;;  %5057 = vmatpush.bf16.msra.mxu3 %v14430_v32  ;;  %v14437_v53 = vld [vmem:[#allocation128_spill] sm:$0xff]  ;;  %v14445_v32 = vld [vmem:[#allocation134_spill] sm:$0xff] }
 0x506   : > { %5020 = vmatpush.bf16.msra.mxu0 %v14432_v17  ;;  %5046 = vmatpush.bf16.msra.mxu2 %v14433_v59  ;;  %v4710_v17 = vpop.f32.mrf.mxu0  ;;  %v14441_v59 = vld [vmem:[#allocation132_spill] sm:$0xff] }
 0x507   : > { %v4711_v42 = vadd.f32 %v4710_v17, %v14444_v21  ;;  %v14451_v17 = vld [vmem:[#allocation439_spill] sm:$0xff] }
 0x508   : > { %5032 = vmatpush.bf16.msra.mxu1 %v14434_v5  ;;  %5058 = vmatpush.bf16.msra.mxu3 %v14435_v22  ;;  %v14442_v5 = vld [vmem:[#allocation127_spill] sm:$0xff]  ;;  %v14443_v22 = vld [vmem:[#allocation129_spill] sm:$0xff]  ;;  %v4723_v49 = vpop.f32.mrf.mxu1 }
 0x50a   : > { %5021 = vmatpush.bf16.msra.mxu0 %v14436_v27  ;;  %5047 = vmatpush.bf16.msra.mxu2 %v14437_v53  ;;  %v4699_v43 = vpop.f32.mrf.mxu3  ;;  %v4736_v27 = vpop.f32.mrf.mxu2  ;;  %v14446_v53 = vld [vmem:[#allocation136_spill] sm:$0xff] }
 0x50b   : > { %v4737_v43 = vadd.f32 %v4736_v27, %v14451_v17  ;;  %v14466_v17 = vld [vmem:[#allocation149_spill] sm:$0xff] }
 0x50c   : > { %5033 = vmatpush.bf16.msra.mxu1 %v14438_v26  ;;  %5059 = vmatpush.bf16.msra.mxu3 %v14439_v36  ;;  %v11840_v26 = vadd.f32 %v4723_v49, %v4711_v42  ;;  %v14447_v36 = vld [vmem:[#allocation138_spill] sm:$0xff]  ;;  %v14454_v49 = vld [vmem:[#allocation135_spill] sm:$0xff] }
 0x50e   : > { %5022 = vmatpush.bf16.msra.mxu0 %v14440_v0  ;;  %5048 = vmatpush.bf16.msra.mxu2 %v14441_v59  ;;  %v14448_v0 = vld [vmem:[#allocation140_spill] sm:$0xff]  ;;  %v4712_v59 = vpop.f32.mrf.mxu0 }
 0x510   : > { %5034 = vmatpush.bf16.msra.mxu1 %v14442_v5  ;;  %5060 = vmatpush.bf16.msra.mxu3 %v14443_v22  ;;  %v14450_v5 = vld [vmem:[#allocation133_spill] sm:$0xff] }
 0x512   : > { %5023 = vmatpush.bf16.msra.mxu0 %v14445_v32  ;;  %5049 = vmatpush.bf16.msra.mxu2 %v14446_v53  ;;  %v14452_v32 = vld [vmem:[#allocation142_spill] sm:$0xff]  ;;  %v14453_v53 = vld [vmem:[#allocation144_spill] sm:$0xff]  ;;  %v4749_v42 = vpop.f32.mrf.mxu3  ;;  %v4738_v21 = vpop.f32.mrf.mxu2 }
 0x513   : > { %v11853_v59 = vadd.f32 %v4749_v42, %v4737_v43  ;;  %v14462_v42 = vld [vmem:[#allocation150_spill] sm:$0xff] }
 0x514   : > { %5035 = vmatpush.bf16.msra.mxu1 %v14449_v1  ;;  %5061 = vmatpush.bf16.msra.mxu3 %v14450_v5  ;;  %v14456_v1 = vld [vmem:[#allocation139_spill] sm:$0xff]  ;;  %v14457_v5 = vld [vmem:[#allocation141_spill] sm:$0xff] }
 0x515   : > { %5024 = vmatmul.bf16.vlgmr.msra.gmra.mxu0 %v11757_v20  ;;  %5050 = vmatmul.bf16.vlgmr.msra.gmra.mxu2 %v11757_v20 }
 0x516   : > { %5068 = vmatpush.bf16.msrb.mxu0 %v14447_v36  ;;  %5094 = vmatpush.bf16.msrb.mxu2 %v14448_v0  ;;  %v14455_v36 = vld [vmem:[#allocation137_spill] sm:$0xff]  ;;  %v4725_v0 = vpop.f32.mrf.mxu1  ;;  %v4762_v27 = vpop.f32.mrf.mxu0 }
 0x517   : > { %v14464_v0 = vld [vmem:[#allocation440_spill] sm:$0xff] }
 0x518   : > { %5036 = vmatpush.bf16.msra.mxu1 %v14454_v49  ;;  %5062 = vmatpush.bf16.msra.mxu3 %v14455_v36  ;;  %v14460_v49 = vld [vmem:[#allocation143_spill] sm:$0xff]  ;;  %v14461_v36 = vld [vmem:[#allocation145_spill] sm:$0xff]  ;;  %v4763_v21 = vadd.f32 %v4762_v27, %v14464_v0  ;;  %v14472_v27 = vld [vmem:[#allocation158_spill] sm:$0xff] }
 0x519   : > { %v14474_v0 = vld [vmem:[#allocation155_spill] sm:$0xff] }
 0x51a   : > { %5069 = vmatpush.bf16.msrb.mxu0 %v14452_v32  ;;  %5095 = vmatpush.bf16.msrb.mxu2 %v14453_v53  ;;  %v14458_v32 = vld [vmem:[#allocation146_spill] sm:$0xff]  ;;  %v14459_v53 = vld [vmem:[#allocation148_spill] sm:$0xff]  ;;  %v4751_v43 = vpop.f32.mrf.mxu3  ;;  %v4788_v22 = vpop.f32.mrf.mxu2 }
 0x51b   : > { %5037 = vmatmul.bf16.vlgmr.msra.gmra.mxu1 %v11769_v47  ;;  %5063 = vmatmul.bf16.vlgmr.msra.gmra.mxu3 %v11769_v47  ;;  %v14469_v43 = vld [vmem:[#allocation151_spill] sm:$0xff] }
 0x51c   : > { %5081 = vmatpush.bf16.msrb.mxu1 %v14456_v1  ;;  %5107 = vmatpush.bf16.msrb.mxu3 %v14457_v5  ;;  %v14463_v1 = vld [vmem:[#allocation152_spill] sm:$0xff]  ;;  %v14465_v5 = vld [vmem:[#allocation147_spill] sm:$0xff] }
 0x51e   : > { %5070 = vmatpush.bf16.msrb.mxu0 %v14458_v32  ;;  %5096 = vmatpush.bf16.msrb.mxu2 %v14459_v53  ;;  %v4775_v48 = vpop.f32.mrf.mxu1  ;;  %v4764_v53 = vpop.f32.mrf.mxu0 }
 0x51f   : > { %v11868_v32 = vadd.f32 %v4775_v48, %v4763_v21  ;;  %v14475_v48 = vld [vmem:[#allocation157_spill] sm:$0xff] }
 0x520   : > { %5082 = vmatpush.bf16.msrb.mxu1 %v14460_v49  ;;  %5108 = vmatpush.bf16.msrb.mxu3 %v14461_v36  ;;  %v14468_v49 = vld [vmem:[#allocation156_spill] sm:$0xff] }
 0x522   : > { %5071 = vmatpush.bf16.msrb.mxu0 %v14462_v42  ;;  %5097 = vmatpush.bf16.msrb.mxu2 %v14463_v1  ;;  %v14470_v42 = vld [vmem:[#allocation153_spill] sm:$0xff]  ;;  %v4790_v21 = vpop.f32.mrf.mxu2 }
 0x523   : > { %v14471_v1 = vld [vmem:[#allocation441_spill] sm:$0xff]  ;;  %v14487_v21 = vld [vmem:[#allocation176_spill] sm:$0xff] }
 0x524   : > { %5083 = vmatpush.bf16.msrb.mxu1 %v14465_v5  ;;  %5109 = vmatpush.bf16.msrb.mxu3 %v14466_v17  ;;  %v4789_v36 = vadd.f32 %v4788_v22, %v14471_v1  ;;  %v14473_v5 = vld [vmem:[#allocation160_spill] sm:$0xff]  ;;  %v4801_v17 = vpop.f32.mrf.mxu3  ;;  %v14479_v22 = vld [vmem:[#allocation161_spill] sm:$0xff] }
 0x526   : > { %5072 = vmatpush.bf16.msrb.mxu0 %v14467_v62  ;;  %5098 = vmatpush.bf16.msrb.mxu2 %v14468_v49  ;;  %v11879_v53 = vadd.f32 %v4801_v17, %v4789_v36  ;;  %v4777_v62 = vpop.f32.mrf.mxu1  ;;  %v14476_v49 = vld [vmem:[#allocation162_spill] sm:$0xff]  ;;  %v14484_v36 = vld [vmem:[#allocation163_spill] sm:$0xff] }
 0x527   : > { %v14485_v62 = vld [vmem:[#allocation165_spill] sm:$0xff]  ;;  %v14486_v17 = vld [vmem:[#allocation174_spill] sm:$0xff] }
 0x528   : > { %5084 = vmatpush.bf16.msrb.mxu1 %v14469_v43  ;;  %5110 = vmatpush.bf16.msrb.mxu3 %v14470_v42  ;;  %v14477_v43 = vld [vmem:[#allocation164_spill] sm:$0xff]  ;;  %v14478_v42 = vld [vmem:[#allocation159_spill] sm:$0xff] }
 0x52a   : > { %5073 = vmatpush.bf16.msrb.mxu0 %v14472_v27  ;;  %5099 = vmatpush.bf16.msrb.mxu2 %v14473_v5  ;;  %v14480_v27 = vld [vmem:[#allocation166_spill] sm:$0xff]  ;;  %v14481_v5 = vld [vmem:[#allocation168_spill] sm:$0xff] }
 0x52c   : > { %5085 = vmatpush.bf16.msrb.mxu1 %v14474_v0  ;;  %5111 = vmatpush.bf16.msrb.mxu3 %v14475_v48  ;;  %v4803_v1 = vpop.f32.mrf.mxu3  ;;  %v14482_v0 = vld [vmem:[#allocation170_spill] sm:$0xff]  ;;  %v14483_v48 = vld [vmem:[#allocation172_spill] sm:$0xff] }
 0x52d   : > { %v14490_v1 = vld [vmem:[#allocation171_spill] sm:$0xff] }
 0x52e   : > { %5074 = vmatpush.bf16.msrb.mxu0 %v14476_v49  ;;  %5100 = vmatpush.bf16.msrb.mxu2 %v14477_v43  ;;  %v14499_v43 = vld [vmem:[#allocation179_spill] sm:$0xff]  ;;  %v14500_v49 = vld [vmem:[#allocation181_spill] sm:$0xff] }
 0x530   : > { %5086 = vmatpush.bf16.msrb.mxu1 %v14478_v42  ;;  %5112 = vmatpush.bf16.msrb.mxu3 %v14479_v22 }
 0x532   : > { %5075 = vmatpush.bf16.msrb.mxu0 %v14480_v27  ;;  %5101 = vmatpush.bf16.msrb.mxu2 %v14481_v5  ;;  %v14488_v27 = vld [vmem:[#allocation167_spill] sm:$0xff]  ;;  %v14489_v5 = vld [vmem:[#allocation169_spill] sm:$0xff] }
 0x534   : > { %5087 = vmatpush.bf16.msrb.mxu1 %v14484_v36  ;;  %5113 = vmatpush.bf16.msrb.mxu3 %v14485_v62  ;;  %v14492_v62 = vld [vmem:[#allocation178_spill] sm:$0xff]  ;;  %v14493_v36 = vld [vmem:[#allocation180_spill] sm:$0xff] }
 0x535   : > { %5076 = vmatmul.bf16.vlgmr.msrb.gmra.mxu0 %v11757_v20  ;;  %5102 = vmatmul.bf16.vlgmr.msrb.gmra.mxu2 %v11757_v20 }
 0x536   : > { %5120 = vmatpush.bf16.msra.mxu0 %v14482_v0  ;;  %5146 = vmatpush.bf16.msra.mxu2 %v14483_v48  ;;  %v14491_v0 = vld [vmem:[#allocation173_spill] sm:$0xff]  ;;  %v4814_v48 = vpop.f32.mrf.mxu0 }
 0x538   : > { %5088 = vmatpush.bf16.msrb.mxu1 %v14488_v27  ;;  %5114 = vmatpush.bf16.msrb.mxu3 %v14489_v5  ;;  %v14496_v27 = vld [vmem:[#allocation442_spill] sm:$0xff]  ;;  %v4840_v42 = vpop.f32.mrf.mxu2 }
 0x539   : > { %v4815_v22 = vadd.f32 %v4814_v48, %v14496_v27  ;;  %v14497_v5 = vld [vmem:[#allocation182_spill] sm:$0xff]  ;;  %v14504_v48 = vld [vmem:[#allocation183_spill] sm:$0xff] }
 0x53a   : > { %5121 = vmatpush.bf16.msra.mxu0 %v14486_v17  ;;  %5147 = vmatpush.bf16.msra.mxu2 %v14487_v21  ;;  %v14494_v17 = vld [vmem:[#allocation175_spill] sm:$0xff]  ;;  %v14495_v21 = vld [vmem:[#allocation177_spill] sm:$0xff] }
 0x53b   : > { %5089 = vmatmul.bf16.vlgmr.msrb.gmra.mxu1 %v11769_v47  ;;  %5115 = vmatmul.bf16.vlgmr.msrb.gmra.mxu3 %v11769_v47 }
 0x53c   : > { %5133 = vmatpush.bf16.msra.mxu1 %v14490_v1  ;;  %5159 = vmatpush.bf16.msra.mxu3 %v14491_v0  ;;  %v14498_v1 = vld [vmem:[#allocation184_spill] sm:$0xff]  ;;  %v4827_v0 = vpop.f32.mrf.mxu1 }
 0x53d   : > { %v11910_v60 = vadd.f32 %v4827_v0, %v4815_v22 }
 0x53e   : > { %5122 = vmatpush.bf16.msra.mxu0 %v14492_v62  ;;  %5148 = vmatpush.bf16.msra.mxu2 %v14493_v36  ;;  %v4816_v62 = vpop.f32.mrf.mxu0  ;;  %v14501_v36 = vld [vmem:[#allocation186_spill] sm:$0xff] }
 0x53f   : > { %v14508_v62 = vld [vmem:[#allocation187_spill] sm:$0xff] }
 0x540   : > { %5134 = vmatpush.bf16.msra.mxu1 %v14494_v17  ;;  %5160 = vmatpush.bf16.msra.mxu3 %v14495_v21  ;;  %v14502_v17 = vld [vmem:[#allocation188_spill] sm:$0xff]  ;;  %v14503_v21 = vld [vmem:[#allocation443_spill] sm:$0xff]  ;;  %v4842_v22 = vpop.f32.mrf.mxu2 }
 0x541   : > { %v4841_v16 = vadd.f32 %v4840_v42, %v14503_v21  ;;  %v14511_v42 = vld [vmem:[#allocation196_spill] sm:$0xff]  ;;  %v14518_v22 = vld [vmem:[#allocation195_spill] sm:$0xff] }
 0x542   : > { %5123 = vmatpush.bf16.msra.mxu0 %v14497_v5  ;;  %5149 = vmatpush.bf16.msra.mxu2 %v14498_v1  ;;  %v14505_v5 = vld [vmem:[#allocation185_spill] sm:$0xff]  ;;  %v4853_v1 = vpop.f32.mrf.mxu3  ;;  %v14534_v21 = vld [vmem:[#allocation211_spill] sm:$0xff] }
 0x543   : > { %v11917_v27 = vadd.f32 %v4853_v1, %v4841_v16  ;;  %v14514_v1 = vld [vmem:[#allocation198_spill] sm:$0xff] }
 0x544   : > { %5135 = vmatpush.bf16.msra.mxu1 %v14499_v43  ;;  %5161 = vmatpush.bf16.msra.mxu3 %v14500_v49  ;;  %v14507_v43 = vld [vmem:[#allocation192_spill] sm:$0xff]  ;;  %v4829_v0 = vpop.f32.mrf.mxu1  ;;  %v14535_v49 = vld [vmem:[#allocation213_spill] sm:$0xff] }
 0x545   : > { %v14517_v0 = vld [vmem:[#allocation204_spill] sm:$0xff] }
 0x546   : > { %5124 = vmatpush.bf16.msra.mxu0 %v14501_v36  ;;  %5150 = vmatpush.bf16.msra.mxu2 %v14502_v17  ;;  %v14509_v36 = vld [vmem:[#allocation189_spill] sm:$0xff]  ;;  %v14510_v17 = vld [vmem:[#allocation194_spill] sm:$0xff] }
 0x548   : > { %5136 = vmatpush.bf16.msra.mxu1 %v14504_v48  ;;  %5162 = vmatpush.bf16.msra.mxu3 %v14505_v5  ;;  %v14512_v48 = vld [vmem:[#allocation191_spill] sm:$0xff]  ;;  %v14513_v5 = vld [vmem:[#allocation193_spill] sm:$0xff] }
 0x54a   : > { %5125 = vmatpush.bf16.msra.mxu0 %v14506_v57  ;;  %5151 = vmatpush.bf16.msra.mxu2 %v14507_v43  ;;  %v4855_v16 = vpop.f32.mrf.mxu3  ;;  %v14515_v57 = vld [vmem:[#allocation200_spill] sm:$0xff]  ;;  %v14516_v43 = vld [vmem:[#allocation202_spill] sm:$0xff] }
 0x54b   : > { %v14522_v16 = vld [vmem:[#allocation199_spill] sm:$0xff] }
 0x54c   : > { %5137 = vmatpush.bf16.msra.mxu1 %v14508_v62  ;;  %5163 = vmatpush.bf16.msra.mxu3 %v14509_v36  ;;  %v14519_v36 = vld [vmem:[#allocation197_spill] sm:$0xff] }
 0x54e   : > { %5126 = vmatpush.bf16.msra.mxu0 %v14510_v17  ;;  %5152 = vmatpush.bf16.msra.mxu2 %v14511_v42  ;;  %v14533_v17 = vld [vmem:[#allocation88_spill] sm:$0xff] }
 0x550   : > { %5138 = vmatpush.bf16.msra.mxu1 %v14512_v48  ;;  %5164 = vmatpush.bf16.msra.mxu3 %v14513_v5  ;;  %v14520_v48 = vld [vmem:[#allocation206_spill] sm:$0xff]  ;;  %v14521_v5 = vld [vmem:[#allocation208_spill] sm:$0xff] }
 0x552   : > { %5127 = vmatpush.bf16.msra.mxu0 %v14514_v1  ;;  %5153 = vmatpush.bf16.msra.mxu2 %v14515_v57  ;;  %v14523_v1 = vld [vmem:[#allocation201_spill] sm:$0xff]  ;;  %v14524_v57 = vld [vmem:[#allocation203_spill] sm:$0xff] }
 0x554   : > { %5139 = vmatpush.bf16.msra.mxu1 %v14518_v22  ;;  %5165 = vmatpush.bf16.msra.mxu3 %v14519_v36  ;;  %v14526_v36 = vld [vmem:[#allocation210_spill] sm:$0xff]  ;;  %v14527_v22 = vld [vmem:[#allocation212_spill] sm:$0xff] }
 0x555   : > { %5128 = vmatmul.bf16.vlgmr.msra.gmra.mxu0 %v11757_v20  ;;  %5154 = vmatmul.bf16.vlgmr.msra.gmra.mxu2 %v11757_v20 }
 0x556   : > { %5172 = vmatpush.bf16.msrb.mxu0 %v14516_v43  ;;  %5198 = vmatpush.bf16.msrb.mxu2 %v14517_v0  ;;  %v14525_v43 = vld [vmem:[#allocation205_spill] sm:$0xff]  ;;  %v4921_v0 = vpop.f32.mrf.mxu0 }
 0x558   : > { %5140 = vmatpush.bf16.msra.mxu1 %v14522_v16  ;;  %5166 = vmatpush.bf16.msra.mxu3 %v14523_v1  ;;  %v14530_v16 = vld [vmem:[#allocation214_spill] sm:$0xff]  ;;  %v14531_v1 = vld [vmem:[#allocation216_spill] sm:$0xff]  ;;  %v4947_v42 = vpop.f32.mrf.mxu2 }
 0x55a   : > { %5173 = vmatpush.bf16.msrb.mxu0 %v14520_v48  ;;  %5199 = vmatpush.bf16.msrb.mxu2 %v14521_v5  ;;  %v14528_v48 = vld [vmem:[#allocation207_spill] sm:$0xff]  ;;  %v14529_v5 = vld [vmem:[#allocation209_spill] sm:$0xff] }
 0x55b   : > { %5141 = vmatmul.bf16.vlgmr.msra.gmra.mxu1 %v11769_v47  ;;  %5167 = vmatmul.bf16.vlgmr.msra.gmra.mxu3 %v11769_v47 }
 0x55c   : > { %5185 = vmatpush.bf16.msrb.mxu1 %v14524_v57  ;;  %5211 = vmatpush.bf16.msrb.mxu3 %v14525_v43  ;;  %v4934_v57 = vpop.f32.mrf.mxu1  ;;  %v14532_v43 = vld [vmem:[#allocation71_spill] sm:$0xff] }
 0x55d   : > { %v899_v62 = vadd.f32 %v14533_v17, %v14532_v43  ;;  %v918_v43 = vadd.f32 %v14540_v7, %v14539_v38  ;;  %v14548_v7 = vld [vmem:[#allocation227_spill] sm:$0xff] }
 0x55e   : > { %5174 = vmatpush.bf16.msrb.mxu0 %v14526_v36  ;;  %5200 = vmatpush.bf16.msrb.mxu2 %v14527_v22  ;;  %v4935_v36 = vadd.f32 %v4934_v57, %v4921_v0  ;;  %v4923_v25 = vpop.f32.mrf.mxu0 }
 0x560   : > { %5186 = vmatpush.bf16.msrb.mxu1 %v14528_v48  ;;  %5212 = vmatpush.bf16.msrb.mxu3 %v14529_v5  ;;  %v11953_v22 = vadd.f32 %v4935_v36, %v899_v62  ;;  %v14536_v5 = vld [vmem:[#allocation220_spill] sm:$0xff]  ;;  %v4960_v48 = vpop.f32.mrf.mxu3  ;;  %v4949_v25 = vpop.f32.mrf.mxu2  ;;  %v14543_v36 = vld [vmem:[#allocation219_spill] sm:$0xff]  ;;  %v14544_v62 = vld [vmem:[#allocation221_spill] sm:$0xff] }
 0x561   : > { %v4961_v17 = vadd.f32 %v4960_v48, %v4947_v42  ;;  %v14549_v48 = vld [vmem:[#allocation234_spill] sm:$0xff]  ;;  %v14550_v42 = vld [vmem:[#allocation237_spill] sm:$0xff] }
 0x562   : > { %5175 = vmatpush.bf16.msrb.mxu0 %v14530_v16  ;;  %5201 = vmatpush.bf16.msrb.mxu2 %v14531_v1  ;;  %v14537_v16 = vld [vmem:[#allocation215_spill] sm:$0xff]  ;;  %v14538_v1 = vld [vmem:[#allocation217_spill] sm:$0xff]  ;;  %v14552_v25 = vld [vmem:[#allocation242_spill] sm:$0xff] }
 0x563   : > { %v11965_v0 = vadd.f32 %v4961_v17, %v918_v43  ;;  %v14554_v43 = vld [vmem:[#allocation232_spill] sm:$0xff] }
 0x564   : > { %5187 = vmatpush.bf16.msrb.mxu1 %v14534_v21  ;;  %5213 = vmatpush.bf16.msrb.mxu3 %v14535_v49  ;;  %v14541_v21 = vld [vmem:[#allocation224_spill] sm:$0xff]  ;;  %v14542_v49 = vld [vmem:[#allocation226_spill] sm:$0xff]  ;;  %v4936_v57 = vpop.f32.mrf.mxu1 }
 0x565   : > { %v14551_v57 = vld [vmem:[#allocation240_spill] sm:$0xff] }
 0x566   : > { %5176 = vmatpush.bf16.msrb.mxu0 %v14165_v10  ;;  %5202 = vmatpush.bf16.msrb.mxu2 %v14536_v5  ;;  %v14547_v5 = vld [vmem:[#allocation225_spill] sm:$0xff]  ;;  %v14555_v17 = vld [vmem:[#allocation244_spill] sm:$0xff] }
 0x568   : > { %5188 = vmatpush.bf16.msrb.mxu1 %v14537_v16  ;;  %5214 = vmatpush.bf16.msrb.mxu3 %v14538_v1  ;;  %v14545_v16 = vld [vmem:[#allocation228_spill] sm:$0xff]  ;;  %v14546_v1 = vld [vmem:[#allocation231_spill] sm:$0xff]  ;;  %v4962_v38 = vpop.f32.mrf.mxu3 }
 0x569   : > { %v14557_v38 = vld [vmem:[#allocation235_spill] sm:$0xff] }
 0x56a   : > { %5177 = vmatpush.bf16.msrb.mxu0 %v14541_v21  ;;  %5203 = vmatpush.bf16.msrb.mxu2 %v14542_v49  ;;  %v14579_v49 = vld [vmem:[#allocation270_spill] sm:$0xff] }
 0x56c   : > { %5189 = vmatpush.bf16.msrb.mxu1 %v14543_v36  ;;  %5215 = vmatpush.bf16.msrb.mxu3 %v14544_v62  ;;  %v14553_v62 = vld [vmem:[#allocation229_spill] sm:$0xff] }
 0x56e   : > { %5178 = vmatpush.bf16.msrb.mxu0 %v14545_v16  ;;  %5204 = vmatpush.bf16.msrb.mxu2 %v14546_v1 }
 0x570   : > { %5190 = vmatpush.bf16.msrb.mxu1 %v14547_v5  ;;  %5216 = vmatpush.bf16.msrb.mxu3 %v14548_v7  ;;  %v14556_v7 = vld [vmem:[#allocation247_spill] sm:$0xff]  ;;  %v14567_v5 = vld [vmem:[#allocation253_spill] sm:$0xff] }
 0x572   : > { %5179 = vmatpush.bf16.msrb.mxu0 %v14549_v48  ;;  %5205 = vmatpush.bf16.msrb.mxu2 %v14550_v42  ;;  %v14558_v48 = vld [vmem:[#allocation238_spill] sm:$0xff]  ;;  %v14559_v42 = vld [vmem:[#allocation241_spill] sm:$0xff] }
 0x574   : > { %5191 = vmatpush.bf16.msrb.mxu1 %v14553_v62  ;;  %5217 = vmatpush.bf16.msrb.mxu3 %v14554_v43  ;;  %v14561_v43 = vld [vmem:[#allocation250_spill] sm:$0xff]  ;;  %v14562_v62 = vld [vmem:[#allocation252_spill] sm:$0xff] }
 0x575   : > { %5180 = vmatmul.bf16.vlgmr.msrb.gmra.mxu0 %v11757_v20  ;;  %5206 = vmatmul.bf16.vlgmr.msrb.gmra.mxu2 %v11757_v20 }
 0x576   : > { %5224 = vmatpush.bf16.msra.mxu0 %v14551_v57  ;;  %5250 = vmatpush.bf16.msra.mxu2 %v14552_v25  ;;  %v14560_v57 = vld [vmem:[#allocation243_spill] sm:$0xff]  ;;  %v11985_v25 = vpop.f32.mrf.mxu0 }
 0x578   : > { %5192 = vmatpush.bf16.msrb.mxu1 %v14557_v38  ;;  %5218 = vmatpush.bf16.msrb.mxu3 %v14558_v48  ;;  %v14565_v38 = vld [vmem:[#allocation254_spill] sm:$0xff]  ;;  %v14566_v48 = vld [vmem:[#allocation256_spill] sm:$0xff] }
 0x57a   : > { %5225 = vmatpush.bf16.msra.mxu0 %v14555_v17  ;;  %5251 = vmatpush.bf16.msra.mxu2 %v14556_v7  ;;  %v14563_v17 = vld [vmem:[#allocation245_spill] sm:$0xff]  ;;  %v14564_v7 = vld [vmem:[#allocation248_spill] sm:$0xff] }
 0x57b   : > { %5193 = vmatmul.bf16.vlgmr.msrb.gmra.mxu1 %v11769_v47  ;;  %5219 = vmatmul.bf16.vlgmr.msrb.gmra.mxu3 %v11769_v47 }
 0x57c   : > { %5237 = vmatpush.bf16.msra.mxu1 %v14559_v42  ;;  %5263 = vmatpush.bf16.msra.mxu3 %v14560_v57  ;;  %v11995_v42 = vpop.f32.mrf.mxu1  ;;  %v11997_v57 = vpop.f32.mrf.mxu2 }
 0x57e   : > { %5226 = vmatpush.bf16.msra.mxu0 %v14561_v43  ;;  %5252 = vmatpush.bf16.msra.mxu2 %v14562_v62  ;;  %v4975_v1 = vpop.f32.mrf.mxu0  ;;  %v14568_v62 = vld [vmem:[#allocation260_spill] sm:$0xff] }
 0x57f   : > { %v14572_v43 = vld [vmem:[#allocation264_spill] sm:$0xff]  ;;  %v14575_v1 = vld [vmem:[#allocation266_spill] sm:$0xff] }
 0x580   : > { %5238 = vmatpush.bf16.msra.mxu1 %v14563_v17  ;;  %5264 = vmatpush.bf16.msra.mxu3 %v14564_v7  ;;  %v14569_v17 = vld [vmem:[#allocation255_spill] sm:$0xff]  ;;  %v14570_v7 = vld [vmem:[#allocation257_spill] sm:$0xff] }
 0x582   : > { %5227 = vmatpush.bf16.msra.mxu0 %v14565_v38  ;;  %5253 = vmatpush.bf16.msra.mxu2 %v14566_v48  ;;  %v12005_v38 = vpop.f32.mrf.mxu3  ;;  %v14571_v48 = vld [vmem:[#allocation262_spill] sm:$0xff] }
 0x584   : > { %5239 = vmatpush.bf16.msra.mxu1 %v14193_v15  ;;  %5265 = vmatpush.bf16.msra.mxu3 %v14567_v5  ;;  %v4988_v16 = vpop.f32.mrf.mxu1  ;;  %v5001_v36 = vpop.f32.mrf.mxu2  ;;  %v14573_v15 = vld [vmem:[#allocation259_spill] sm:$0xff]  ;;  %v14574_v5 = vld [vmem:[#allocation261_spill] sm:$0xff] }
 0x585   : > { %v14582_v16 = vld [vmem:[#allocation276_spill] sm:$0xff]  ;;  %v14583_v36 = vld [vmem:[#allocation267_spill] sm:$0xff] }
 0x586   : > { %5228 = vmatpush.bf16.msra.mxu0 %v14196_v35  ;;  %5254 = vmatpush.bf16.msra.mxu2 %v14568_v62  ;;  %v14576_v35 = vld [vmem:[#allocation268_spill] sm:$0xff]  ;;  %v14577_v62 = vld [vmem:[#allocation263_spill] sm:$0xff] }
 0x588   : > { %5240 = vmatpush.bf16.msra.mxu1 %v14569_v17  ;;  %5266 = vmatpush.bf16.msra.mxu3 %v14570_v7  ;;  %v14578_v17 = vld [vmem:[#allocation265_spill] sm:$0xff] }
 0x58a   : > { %5229 = vmatpush.bf16.msra.mxu0 %v14571_v48  ;;  %5255 = vmatpush.bf16.msra.mxu2 %v14572_v43  ;;  %v5014_v7 = vpop.f32.mrf.mxu3  ;;  %v14580_v48 = vld [vmem:[#allocation272_spill] sm:$0xff]  ;;  %v14581_v43 = vld [vmem:[#allocation274_spill] sm:$0xff] }
 0x58b   : > { %v14587_v7 = vld [vmem:[#allocation271_spill] sm:$0xff] }
 0x58c   : > { %5241 = vmatpush.bf16.msra.mxu1 %v14573_v15  ;;  %5267 = vmatpush.bf16.msra.mxu3 %v14574_v5  ;;  %v14584_v5 = vld [vmem:[#allocation269_spill] sm:$0xff] }
 0x58e   : > { %5230 = vmatpush.bf16.msra.mxu0 %v14575_v1  ;;  %5256 = vmatpush.bf16.msra.mxu2 %v14576_v35 }
 0x590   : > { %5242 = vmatpush.bf16.msra.mxu1 %v14577_v62  ;;  %5268 = vmatpush.bf16.msra.mxu3 %v14578_v17  ;;  %v14585_v62 = vld [vmem:[#allocation278_spill] sm:$0xff]  ;;  %v14586_v17 = vld [vmem:[#allocation280_spill] sm:$0xff] }
 0x592   : > { %5231 = vmatpush.bf16.msra.mxu0 %v14579_v49  ;;  %5257 = vmatpush.bf16.msra.mxu2 %v14580_v48  ;;  %v14588_v49 = vld [vmem:[#allocation273_spill] sm:$0xff]  ;;  %v14589_v48 = vld [vmem:[#allocation275_spill] sm:$0xff] }
 0x594   : > { %5243 = vmatpush.bf16.msra.mxu1 %v14583_v36  ;;  %5269 = vmatpush.bf16.msra.mxu3 %v14584_v5  ;;  %v14591_v5 = vld [vmem:[#allocation282_spill] sm:$0xff]  ;;  %v14592_v36 = vld [vmem:[#allocation284_spill] sm:$0xff] }
 0x595   : > { %5232 = vmatmul.bf16.vlgmr.msra.gmra.mxu0 %v11757_v20  ;;  %5258 = vmatmul.bf16.vlgmr.msra.gmra.mxu2 %v11757_v20 }
 0x596   : > { %5276 = vmatpush.bf16.msrb.mxu0 %v14581_v43  ;;  %5302 = vmatpush.bf16.msrb.mxu2 %v14582_v16  ;;  %v14590_v43 = vld [vmem:[#allocation277_spill] sm:$0xff]  ;;  %v5025_v16 = vpop.f32.mrf.mxu0 }
 0x598   : > { %5244 = vmatpush.bf16.msra.mxu1 %v14587_v7  ;;  %5270 = vmatpush.bf16.msra.mxu3 %v14588_v49  ;;  %v14595_v7 = vld [vmem:[#allocation286_spill] sm:$0xff]  ;;  %v14596_v49 = vld [vmem:[#allocation288_spill] sm:$0xff]  ;;  %v5051_v35 = vpop.f32.mrf.mxu2 }
 0x59a   : > { %5277 = vmatpush.bf16.msrb.mxu0 %v14585_v62  ;;  %5303 = vmatpush.bf16.msrb.mxu2 %v14586_v17  ;;  %v14593_v62 = vld [vmem:[#allocation279_spill] sm:$0xff]  ;;  %v14594_v17 = vld [vmem:[#allocation281_spill] sm:$0xff] }
 0x59b   : > { %5245 = vmatmul.bf16.vlgmr.msra.gmra.mxu1 %v11769_v47  ;;  %5271 = vmatmul.bf16.vlgmr.msra.gmra.mxu3 %v11769_v47 }
 0x59c   : > { %5289 = vmatpush.bf16.msrb.mxu1 %v14589_v48  ;;  %5315 = vmatpush.bf16.msrb.mxu3 %v14590_v43  ;;  %v5038_v48 = vpop.f32.mrf.mxu1  ;;  %v14597_v43 = vld [vmem:[#allocation283_spill] sm:$0xff] }
 0x59d   : > { %v5039_v1 = vadd.f32 %v5038_v48, %v5025_v16  ;;  %v14603_v48 = vld [vmem:[#allocation298_spill] sm:$0xff]  ;;  %v14604_v16 = vld [vmem:[#allocation300_spill] sm:$0xff] }
 0x59e   : > { %5278 = vmatpush.bf16.msrb.mxu0 %v14591_v5  ;;  %5304 = vmatpush.bf16.msrb.mxu2 %v14592_v36  ;;  %v5027_v15 = vpop.f32.mrf.mxu0  ;;  %v14600_v36 = vld [vmem:[#allocation296_spill] sm:$0xff] }
 0x59f   : > { %v14602_v15 = vld [vmem:[#allocation293_spill] sm:$0xff] }
 0x5a0   : > { %5290 = vmatpush.bf16.msrb.mxu1 %v14593_v62  ;;  %5316 = vmatpush.bf16.msrb.mxu3 %v14594_v17  ;;  %v14598_v62 = vld [vmem:[#allocation289_spill] sm:$0xff]  ;;  %v5064_v17 = vpop.f32.mrf.mxu3  ;;  %v5053_v5 = vpop.f32.mrf.mxu2 }
 0x5a1   : > { %v14609_v5 = vld [vmem:[#allocation302_spill] sm:$0xff] }
 0x5a2   : > { %5279 = vmatpush.bf16.msrb.mxu0 %v14595_v7  ;;  %5305 = vmatpush.bf16.msrb.mxu2 %v14596_v49  ;;  %v12043_v7 = vadd.f32 %v5064_v17, %v5051_v35  ;;  %v14599_v49 = vld [vmem:[#allocation294_spill] sm:$0xff]  ;;  %v14606_v35 = vld [vmem:[#allocation297_spill] sm:$0xff] }
 0x5a4   : > { %5291 = vmatpush.bf16.msrb.mxu1 %v14597_v43  ;;  %5317 = vmatpush.bf16.msrb.mxu3 %v14225_v4  ;;  %v5040_v43 = vpop.f32.mrf.mxu1  ;;  %v14601_v4 = vld [vmem:[#allocation291_spill] sm:$0xff] }
 0x5a6   : > { %5280 = vmatpush.bf16.msrb.mxu0 %v14226_v63  ;;  %5306 = vmatpush.bf16.msrb.mxu2 %v14227_v24  ;;  %v14611_v24 = vld [vmem:[#allocation299_spill] sm:$0xff]  ;;  %v14638_v63 = vld [vmem:[#allocation321_spill] sm:$0xff] }
 0x5a8   : > { %5292 = vmatpush.bf16.msrb.mxu1 %v14228_v46  ;;  %5318 = vmatpush.bf16.msrb.mxu3 %v14598_v62  ;;  %v4987_v62 = vadd.f32 %v11995_v42, %v11985_v25  ;;  %v14605_v46 = vld [vmem:[#allocation295_spill] sm:$0xff]  ;;  %v5066_v17 = vpop.f32.mrf.mxu3  ;;  %v5013_v25 = vadd.f32 %v12005_v38, %v11997_v57  ;;  %v14621_v57 = vld [vmem:[#allocation310_spill] sm:$0xff] }
 0x5a9   : > { %v14614_v42 = vld [vmem:[#allocation307_spill] sm:$0xff] }
 0x5aa   : > { %5281 = vmatpush.bf16.msrb.mxu0 %v14599_v49  ;;  %5307 = vmatpush.bf16.msrb.mxu2 %v14600_v36  ;;  %v14607_v49 = vld [vmem:[#allocation72_spill] sm:$0xff]  ;;  %v14608_v36 = vld [vmem:[#allocation98_spill] sm:$0xff]  ;;  %v14622_v38 = vld [vmem:[#allocation311_spill] sm:$0xff] }
 0x5ab   : > { %v937_v43 = vadd.f32 %v14608_v36, %v14607_v49  ;;  %v14615_v49 = vld [vmem:[#allocation75_spill] sm:$0xff] }
 0x5ac   : > { %5293 = vmatpush.bf16.msrb.mxu1 %v14601_v4  ;;  %5319 = vmatpush.bf16.msrb.mxu3 %v14602_v15  ;;  %v14610_v4 = vld [vmem:[#allocation304_spill] sm:$0xff]  ;;  %v14616_v36 = vld [vmem:[#allocation99_spill] sm:$0xff] }
 0x5ad   : > { %v5593_v15 = vadd.f32 %v4987_v62, %v937_v43  ;;  %v956_v17 = vadd.f32 %v14616_v36, %v14615_v49  ;;  %v14617_v62 = vld [vmem:[#allocation303_spill] sm:$0xff]  ;;  %v14618_v43 = vld [vmem:[#allocation305_spill] sm:$0xff] }
 0x5ae   : > { %5282 = vmatpush.bf16.msrb.mxu0 %v14603_v48  ;;  %5308 = vmatpush.bf16.msrb.mxu2 %v14604_v16  ;;  %v14612_v48 = vld [vmem:[#allocation301_spill] sm:$0xff]  ;;  %v14613_v16 = vld [vmem:[#allocation306_spill] sm:$0xff] }
 0x5af   : > { %v14624_v49 = vld [vmem:[#allocation313_spill] sm:$0xff] }
 0x5b0   : > { %5294 = vmatpush.bf16.msrb.mxu1 %v14605_v46  ;;  %5320 = vmatpush.bf16.msrb.mxu3 %v14606_v35 }
 0x5b2   : > { %5283 = vmatpush.bf16.msrb.mxu0 %v14609_v5  ;;  %5309 = vmatpush.bf16.msrb.mxu2 %v14610_v4  ;;  %v5601_v4 = vmul.f32 0.5, %v5593_v15  ;;  %v14623_v15 = vld [vmem:[#allocation312_spill] sm:$0xff]  ;;  %v14633_v5 = vld [vmem:[#allocation318_spill] sm:$0xff] }
 0x5b4   : > { %5295 = vmatpush.bf16.msrb.mxu1 %v14611_v24  ;;  %5321 = vmatpush.bf16.msrb.mxu3 %v14612_v48  ;;  %v14619_v48 = vld [vmem:[#allocation308_spill] sm:$0xff]  ;;  %v5594_v24 = vadd.f32 %v5013_v25, %v956_v17  ;;  %9201 = vtanh.f32 %v5601_v4  ;;  %v14627_v25 = vld [vmem:[#allocation89_spill] sm:$0xff] }
 0x5b5   : > { %5284 = vmatmul.bf16.vlgmr.msrb.gmra.mxu0 %v11757_v20  ;;  %5310 = vmatmul.bf16.vlgmr.msrb.gmra.mxu2 %v11757_v20  ;;  %v5077_v20 = vpop.f32.mrf.mxu0  ;;  %v14628_v17 = vld [vmem:[#allocation236_spill] sm:$0xff]  ;;  %v14630_v4 = vld [vmem:[#allocation317_spill] sm:$0xff] }
 0x5b6   : > { %5374 = vmatpush.bf16.msra.mxu0 %v14613_v16  ;;  %5400 = vmatpush.bf16.msra.mxu2 %v14614_v42  ;;  %v14620_v16 = vld [vmem:[#allocation309_spill] sm:$0xff]  ;;  %v5599_v42 = vmul.f32 0.5, %v11953_v22  ;;  %v5602_v36 = vmul.f32 0.5, %v5594_v24  ;;  %v14626_v22 = vld [vmem:[#allocation315_spill] sm:$0xff] }
 0x5b8   : > { %5296 = vmatpush.bf16.msrb.mxu1 %v14617_v62  ;;  %5322 = vmatpush.bf16.msrb.mxu3 %v14618_v43  ;;  %9203 = vtanh.f32 %v5599_v42  ;;  %v5090_v43 = vpop.f32.mrf.mxu1  ;;  %v14629_v62 = vld [vmem:[#allocation316_spill] sm:$0xff]  ;;  %v14632_v42 = vld [vmem:[#allocation246_spill] sm:$0xff] }
 0x5b9   : > { %9205 = vtanh.f32 %v5602_v36 }
 0x5ba   : > { %5375 = vmatpush.bf16.msra.mxu0 %v14619_v48  ;;  %5401 = vmatpush.bf16.msra.mxu2 %v14620_v16  ;;  %v14625_v16 = vld [vmem:[#allocation314_spill] sm:$0xff] }
 0x5bb   : > { %5297 = vmatmul.bf16.vlgmr.msrb.gmra.mxu1 %v11769_v47  ;;  %5323 = vmatmul.bf16.vlgmr.msrb.gmra.mxu3 %v11769_v47  ;;  %v5103_v47 = vpop.f32.mrf.mxu2 }
 0x5bc   : > { %5387 = vmatpush.bf16.msra.mxu1 %v14621_v57  ;;  %5413 = vmatpush.bf16.msra.mxu3 %v14622_v38  ;;  %v975_v57 = vadd.f32 %v14628_v17, %v14627_v25  ;;  %v5600_v38 = vmul.f32 0.5, %v11965_v0 }
 0x5bd   : > { %v5079_v25 = vpop.f32.mrf.mxu0 }
 0x5be   : > { %5376 = vmatpush.bf16.msra.mxu0 %v14623_v15  ;;  %5402 = vmatpush.bf16.msra.mxu2 %v14624_v49  ;;  %v5595_v48 = vadd.f32 %v5039_v1, %v975_v57  ;;  %v9202_v15 = vpop.eup %9201  ;;  %v14631_v49 = vld [vmem:[#allocation104_spill] sm:$0xff]  ;;  %9207 = vtanh.f32 %v5600_v38  ;;  %v14636_v57 = vld [vmem:[#allocation239_spill] sm:$0xff] }
 0x5bf   : > { %v1013_v24 = vadd.f32 %v14632_v42, %v14631_v49  ;;  %v9204_v17 = vpop.eup %9203  ;;  %v14635_v1 = vld [vmem:[#allocation96_spill] sm:$0xff]  ;;  %v14639_v49 = vld [vmem:[#allocation322_spill] sm:$0xff]  ;;  %v5116_v42 = vpop.f32.mrf.mxu3 }
 0x5c0   : > { %5388 = vmatpush.bf16.msra.mxu1 %v14625_v16  ;;  %5414 = vmatpush.bf16.msra.mxu3 %v14626_v22  ;;  %v5091_v16 = vadd.f32 %v5090_v43, %v5077_v20  ;;  %v14634_v22 = vld [vmem:[#allocation319_spill] sm:$0xff]  ;;  %v994_v35 = vadd.f32 %v14636_v57, %v14635_v1  ;;  %v5603_v46 = vmul.f32 0.5, %v5595_v48  ;;  %v5611_v20 = vadd.f32 1.0, %v9204_v17  ;;  %v9206_v38 = vpop.eup %9205  ;;  %v5092_v48 = vpop.f32.mrf.mxu1  ;;  %v14642_v57 = vld [vmem:[#allocation324_spill] sm:$0xff] }
 0x5c1   : > { %v14640_v43 = vld [vmem:[#allocation323_spill] sm:$0xff]  ;;  %v5117_v25 = vadd.f32 %v5116_v42, %v5103_v47  ;;  %v14646_v47 = vld [vmem:[#allocation328_spill] sm:$0xff]  ;;  %v14647_v42 = vld [vmem:[#allocation329_spill] sm:$0xff] }
 0x5c2   : > { %5377 = vmatpush.bf16.msra.mxu0 %v14629_v62  ;;  %5403 = vmatpush.bf16.msra.mxu2 %v14630_v4  ;;  %v5597_v0 = vadd.f32 %v5091_v16, %v1013_v24  ;;  %v5613_v62 = vadd.f32 1.0, %v9202_v15  ;;  %v14637_v4 = vld [vmem:[#allocation320_spill] sm:$0xff]  ;;  %v5596_v36 = vadd.f32 %v12043_v7, %v994_v35  ;;  %v14641_v16 = vld [vmem:[#allocation249_spill] sm:$0xff]  ;;  %v14645_v17 = vld [vmem:[#allocation327_spill] sm:$0xff]  ;;  %v5617_v7 = vmul.f32 0.5, %v5611_v20 }
 0x5c3   : > { %v1032_v24 = vadd.f32 %v14641_v16, %v14261_v33  ;;  %v5105_v1 = vpop.f32.mrf.mxu2  ;;  %v5614_v35 = vadd.f32 1.0, %v9206_v38  ;;  %v14648_v16 = vld [vmem:[#allocation330_spill] sm:$0xff] }
 0x5c4   : > { %5389 = vmatpush.bf16.msra.mxu1 %v14633_v5  ;;  %5415 = vmatpush.bf16.msra.mxu3 %v14634_v22  ;;  %9209 = vtanh.f32 %v5597_v0  ;;  %v5619_v15 = vmul.f32 0.5, %v5613_v62  ;;  %v14643_v0 = vld [vmem:[#allocation325_spill] sm:$0xff]  ;;  %v14653_v1 = vld [vmem:[#allocation335_spill] sm:$0xff] }
 0x5c5   : > { %9211 = vtanh.f32 %v5603_v46  ;;  %v5620_v48 = vmul.f32 0.5, %v5614_v35  ;;  %v14654_v35 = vld [vmem:[#allocation336_spill] sm:$0xff] }
 0x5c6   : > { %5378 = vmatpush.bf16.msra.mxu0 %v14637_v4  ;;  %5404 = vmatpush.bf16.msra.mxu2 %v14638_v63  ;;  %v5598_v63 = vadd.f32 %v5117_v25, %v1032_v24  ;;  %v5604_v4 = vmul.f32 0.5, %v5596_v36  ;;  %v5625_v46 = vmul.f32 %v5619_v15, %v11582_v52  ;;  %v14649_v24 = vld [vmem:[#allocation331_spill] sm:$0xff]  ;;  %v14651_v52 = vld [vmem:[#allocation333_spill] sm:$0xff]  ;;  %v14652_v15 = vld [vmem:[#allocation334_spill] sm:$0xff] }
 0x5c7   : > { %v5118_v38 = vpop.f32.mrf.mxu3 }
 0x5c8   : > { %5390 = vmatpush.bf16.msra.mxu1 %v14639_v49  ;;  %5416 = vmatpush.bf16.msra.mxu3 %v14640_v43  ;;  %v9208_v49 = vpop.eup %9207  ;;  %v14644_v43 = vld [vmem:[#allocation326_spill] sm:$0xff]  ;;  %9213 = vtanh.f32 %v5598_v63  ;;  %v14650_v63 = vld [vmem:[#allocation332_spill] sm:$0xff]  ;;  %v14657_v38 = vld [vmem:[#allocation339_spill] sm:$0xff] }
 0x5c9   : > { %v5612_v33 = vadd.f32 1.0, %v9208_v49  ;;  %9215 = vtanh.f32 %v5604_v4  ;;  %v14655_v4 = vld [vmem:[#allocation337_spill] sm:$0xff] }
 0x5ca   : > { %5379 = vmatpush.bf16.msra.mxu0 %v14642_v57  ;;  %5405 = vmatpush.bf16.msra.mxu2 %v14643_v0  ;;  %v9210_v22 = vpop.eup %9209 }
 0x5cb   : > { %v5627_v62 = vmul.f32 %v9210_v22, %v5617_v7  ;;  %v9212_v25 = vpop.eup %9211  ;;  %v5618_v36 = vmul.f32 0.5, %v5612_v33  ;;  %v5626_v7 = vmul.f32 %v5620_v48, %v11591_v39 }
 0x5cc   : > { %5391 = vmatpush.bf16.msra.mxu1 %v14644_v43  ;;  %5417 = vmatpush.bf16.msra.mxu3 %v14645_v17  ;;  %v5615_v49 = vadd.f32 1.0, %v9212_v25  ;;  %v14658_v25 = vld [vmem:[#allocation340_spill] sm:$0xff] }
 0x5cd   : > { %v5629_v20 = vadd.f32 %v5627_v62, %v5625_v46 }
 0x5ce   : > { %5380 = vmatpush.bf16.msra.mxu0 %v14646_v47  ;;  %5406 = vmatpush.bf16.msra.mxu2 %v14647_v42  ;;  %v9214_v22 = vpop.eup %9213  ;;  %v5621_v62 = vmul.f32 0.5, %v5615_v49  ;;  %v14662_v49 = vld [vmem:[#allocation344_spill] sm:$0xff] }
 0x5cf   : > { %9217 = vtanh.f32 %v5629_v20  ;;  %6323 = vst [vmem:[#allocation5 + $0x8] sm:$0xff] %v5629_v20  ;;  %v9216_v33 = vpop.eup %9215  ;;  %v14656_v20 = vld [vmem:[#allocation338_spill] sm:$0xff] }
 0x5d0   : > { %5392 = vmatpush.bf16.msra.mxu1 %v14648_v16  ;;  %5418 = vmatpush.bf16.msra.mxu3 %v14649_v24  ;;  %v5628_v24 = vmul.f32 %v9214_v22, %v5618_v36  ;;  %v5616_v39 = vadd.f32 1.0, %v9216_v33  ;;  %v14660_v36 = vld [vmem:[#allocation342_spill] sm:$0xff]  ;;  %v14661_v22 = vld [vmem:[#allocation343_spill] sm:$0xff]  ;;  %v14666_v33 = vld [vmem:[#allocation348_spill] sm:$0xff] }
 0x5d2   : > { %5381 = vmatpush.bf16.msra.mxu0 %v14650_v63  ;;  %5407 = vmatpush.bf16.msra.mxu2 %v14651_v52  ;;  %v5630_v46 = vadd.f32 %v5628_v24, %v5626_v7  ;;  %v5129_v24 = vpop.f32.mrf.mxu0  ;;  %v14663_v7 = vld [vmem:[#allocation345_spill] sm:$0xff] }
 0x5d4   : > { %5393 = vmatpush.bf16.msra.mxu1 %v14654_v35  ;;  %5419 = vmatpush.bf16.msra.mxu3 %v14655_v4  ;;  %9219 = vtanh.f32 %v5630_v46  ;;  %6324 = vst [vmem:[#allocation5] sm:$0xff] %v5630_v46  ;;  %v14665_v46 = vld [vmem:[#allocation347_spill] sm:$0xff]  ;;  %v14674_v35 = vld [vmem:[#allocation356_spill] sm:$0xff] }
 0x5d5   : > { %v9218_v52 = vpop.eup %9217 }
 0x5d6   : > { %5426 = vmatpush.bf16.msrb.mxu0 %v14652_v15  ;;  %5452 = vmatpush.bf16.msrb.mxu2 %v14653_v1  ;;  %v14659_v1 = vld [vmem:[#allocation341_spill] sm:$0xff]  ;;  %v12120_v48 = vmul.f32 %v9218_v52, %v5621_v62 }
 0x5d7   : > { %v14667_v52 = vld [vmem:[#allocation349_spill] sm:$0xff] }
 0x5d8   : > { %5394 = vmatpush.bf16.msra.mxu1 %v14658_v25  ;;  %5420 = vmatpush.bf16.msra.mxu3 %v14659_v1  ;;  %v5142_v62 = vpop.f32.mrf.mxu1  ;;  %v14668_v1 = vld [vmem:[#allocation350_spill] sm:$0xff] }
 0x5da   : > { %5427 = vmatpush.bf16.msrb.mxu0 %v14656_v20  ;;  %5453 = vmatpush.bf16.msrb.mxu2 %v14657_v38  ;;  %v5622_v38 = vmul.f32 0.5, %v5616_v39  ;;  %v14664_v20 = vld [vmem:[#allocation346_spill] sm:$0xff]  ;;  %v9220_v25 = vpop.eup %9219 }
 0x5dc   : > { %5439 = vmatpush.bf16.msrb.mxu1 %v14660_v36  ;;  %5465 = vmatpush.bf16.msrb.mxu3 %v14661_v22  ;;  %v12128_v4 = vmul.f32 %v9220_v25, %v5622_v38  ;;  %v5155_v36 = vpop.f32.mrf.mxu2  ;;  %v5143_v22 = vadd.f32 %v5142_v62, %v5129_v24  ;;  %v14672_v38 = vld [vmem:[#allocation354_spill] sm:$0xff]  ;;  %v14673_v25 = vld [vmem:[#allocation355_spill] sm:$0xff]  ;;  %v14675_v24 = vld [vmem:[#allocation357_spill] sm:$0xff] }
 0x5de   : > { %5428 = vmatpush.bf16.msrb.mxu0 %v14662_v49  ;;  %5454 = vmatpush.bf16.msrb.mxu2 %v14663_v7  ;;  %v14669_v49 = vld [vmem:[#allocation351_spill] sm:$0xff]  ;;  %v5131_v7 = vpop.f32.mrf.mxu0  ;;  %v5328_v39 = vadd.f32 %v5143_v22, %v11818_v23  ;;  %v14678_v22 = vld [vmem:[#allocation360_spill] sm:$0xff] }
 0x5df   : > { %v14677_v23 = vld [vmem:[#allocation359_spill] sm:$0xff] }
 0x5e0   : > { %5440 = vmatpush.bf16.msrb.mxu1 %v14664_v20  ;;  %5466 = vmatpush.bf16.msrb.mxu3 %v14665_v46  ;;  %v14670_v20 = vld [vmem:[#allocation352_spill] sm:$0xff]  ;;  %v14671_v46 = vld [vmem:[#allocation353_spill] sm:$0xff]  ;;  %v5144_v62 = vpop.f32.mrf.mxu1  ;;  %v5336_v17 = vmul.f32 0.5, %v5328_v39 }
 0x5e1   : > { %v14687_v62 = vld [vmem:[#allocation369_spill] sm:$0xff] }
 0x5e2   : > { %5429 = vmatpush.bf16.msrb.mxu0 %v14666_v33  ;;  %5455 = vmatpush.bf16.msrb.mxu2 %v14667_v52  ;;  %v5168_v33 = vpop.f32.mrf.mxu3 }
 0x5e3   : > { %v5169_v52 = vadd.f32 %v5168_v33, %v5155_v36  ;;  %v14682_v33 = vld [vmem:[#allocation364_spill] sm:$0xff] }
 0x5e4   : > { %5441 = vmatpush.bf16.msrb.mxu1 %v14668_v1  ;;  %5467 = vmatpush.bf16.msrb.mxu3 %v14669_v49  ;;  %v5157_v1 = vpop.f32.mrf.mxu2  ;;  %v14676_v49 = vld [vmem:[#allocation358_spill] sm:$0xff] }
 0x5e5   : > { %v5329_v7 = vadd.f32 %v5169_v52, %v11827_v2  ;;  %v14684_v1 = vld [vmem:[#allocation366_spill] sm:$0xff]  ;;  %v14685_v2 = vld [vmem:[#allocation367_spill] sm:$0xff]  ;;  %v14686_v52 = vld [vmem:[#allocation368_spill] sm:$0xff] }
 0x5e6   : > { %5430 = vmatpush.bf16.msrb.mxu0 %v14670_v20  ;;  %5456 = vmatpush.bf16.msrb.mxu2 %v14671_v46  ;;  %v14679_v46 = vld [vmem:[#allocation361_spill] sm:$0xff] }
 0x5e7   : > { %v5337_v43 = vmul.f32 0.5, %v5329_v7 }
 0x5e8   : > { %5442 = vmatpush.bf16.msrb.mxu1 %v14672_v38  ;;  %5468 = vmatpush.bf16.msrb.mxu3 %v14673_v25  ;;  %v14680_v38 = vld [vmem:[#allocation362_spill] sm:$0xff]  ;;  %v14681_v25 = vld [vmem:[#allocation363_spill] sm:$0xff] }
 0x5ea   : > { %5431 = vmatpush.bf16.msrb.mxu0 %v14674_v35  ;;  %5457 = vmatpush.bf16.msrb.mxu2 %v14675_v24  ;;  %v5170_v36 = vpop.f32.mrf.mxu3  ;;  %v14683_v24 = vld [vmem:[#allocation365_spill] sm:$0xff] }
 0x5ec   : > { %5443 = vmatpush.bf16.msrb.mxu1 %v14676_v49  ;;  %5469 = vmatpush.bf16.msrb.mxu3 %v14677_v23 }
 0x5ee   : > { %5432 = vmatpush.bf16.msrb.mxu0 %v14678_v22  ;;  %5458 = vmatpush.bf16.msrb.mxu2 %v14679_v46 }
 0x5f0   : > { %5444 = vmatpush.bf16.msrb.mxu1 %v14680_v38  ;;  %5470 = vmatpush.bf16.msrb.mxu3 %v14681_v25 }
 0x5f2   : > { %5433 = vmatpush.bf16.msrb.mxu0 %v14682_v33  ;;  %5459 = vmatpush.bf16.msrb.mxu2 %v14683_v24  ;;  %v5181_v22 = vpop.f32.mrf.mxu0 }
 0x5f4   : > { %5445 = vmatpush.bf16.msrb.mxu1 %v14684_v1  ;;  %5471 = vmatpush.bf16.msrb.mxu3 %v14685_v2 }
 0x5f8   : > { %5446 = vmatpush.bf16.msrb.mxu1 %v14686_v52  ;;  %5472 = vmatpush.bf16.msrb.mxu3 %v14687_v62  ;;  %v5194_v23 = vpop.f32.mrf.mxu1  ;;  %v5207_v46 = vpop.f32.mrf.mxu2 }
 0x5f9   : > { %v5195_v2 = vadd.f32 %v5194_v23, %v5181_v22 }
 0x5fa   : > { %v5183_v49 = vpop.f32.mrf.mxu0 }
 0x5fb   : > { %v5330_v52 = vadd.f32 %v5195_v2, %v11840_v26 }
 0x5fd   : > { %v5338_v47 = vmul.f32 0.5, %v5330_v52 }
 0x5fe   : > { %v5220_v38 = vpop.f32.mrf.mxu3 }
 0x5ff   : > { %v5221_v62 = vadd.f32 %v5220_v38, %v5207_v46  ;;  %9221 = vtanh.f32 %v5338_v47 }
 0x600   : > { %v5196_v35 = vpop.f32.mrf.mxu1  ;;  %v5209_v25 = vpop.f32.mrf.mxu2  ;;  %9223 = vtanh.f32 %v5336_v17 }
 0x601   : > { %v5331_v49 = vadd.f32 %v5221_v62, %v11853_v59 }
 0x606   : > { %v5222_v36 = vpop.f32.mrf.mxu3 }
 0x607   : > { %v5339_v36 = vmul.f32 0.5, %v5331_v49 }
 0x609   : > { %9225 = vtanh.f32 %v5339_v36 }
 0x60a   : > { %9227 = vtanh.f32 %v5337_v43 }
 0x612   : > { %v5233_v20 = vpop.f32.mrf.mxu0 }
 0x618   : > { %v5246_v33 = vpop.f32.mrf.mxu1  ;;  %v5259_v15 = vpop.f32.mrf.mxu2 }
 0x619   : > { %v5247_v25 = vadd.f32 %v5246_v33, %v5233_v20 }
 0x61a   : > { %v5235_v24 = vpop.f32.mrf.mxu0 }
 0x61b   : > { %v5332_v24 = vadd.f32 %v5247_v25, %v11868_v32 }
 0x61d   : > { %v5340_v47 = vmul.f32 0.5, %v5332_v24 }
 0x61e   : > { %v5272_v63 = vpop.f32.mrf.mxu3 }
 0x61f   : > { %v5273_v23 = vadd.f32 %v5272_v63, %v5259_v15 }
 0x620   : > { %v5248_v1 = vpop.f32.mrf.mxu1  ;;  %v5261_v16 = vpop.f32.mrf.mxu2 }
 0x621   : > { %v9222_v1 = vpop.eup %9221  ;;  %v5333_v17 = vadd.f32 %v5273_v23, %v11879_v53 }
 0x622   : > { %v9224_v26 = vpop.eup %9223  ;;  %v5350_v59 = vadd.f32 1.0, %v9222_v1 }
 0x623   : > { %v5348_v20 = vadd.f32 1.0, %v9224_v26  ;;  %v9226_v7 = vpop.eup %9225 }
 0x624   : > { %v5356_v22 = vmul.f32 0.5, %v5350_v59  ;;  %v5351_v2 = vadd.f32 1.0, %v9226_v7 }
 0x625   : > { %v5354_v43 = vmul.f32 0.5, %v5348_v20 }
 0x626   : > { %v5274_v42 = vpop.f32.mrf.mxu3  ;;  %v5362_v49 = vmul.f32 %v5356_v22, %v11634_v37  ;;  %v5357_v25 = vmul.f32 0.5, %v5351_v2  ;;  %v14689_v22 = vld [vmem:[#allocation390_spill] sm:$0xff]  ;;  %v14695_v2 = vld [vmem:[#allocation397_spill] sm:$0xff] }
 0x632   : > { %v5285_v35 = vpop.f32.mrf.mxu0 }
 0x638   : > { %v5298_v0 = vpop.f32.mrf.mxu1  ;;  %v5311_v42 = vpop.f32.mrf.mxu2 }
 0x639   : > { %v5299_v16 = vadd.f32 %v5298_v0, %v5285_v35  ;;  %v9228_v0 = vpop.eup %9227 }
 0x63a   : > { %v5287_v39 = vpop.f32.mrf.mxu0  ;;  %v5349_v62 = vadd.f32 1.0, %v9228_v0  ;;  %v14691_v0 = vld [vmem:[#allocation393_spill] sm:$0xff] }
 0x63b   : > { %v5334_v46 = vadd.f32 %v5299_v16, %v11910_v60  ;;  %v5341_v60 = vmul.f32 0.5, %v5333_v17 }
 0x63c   : > { %v5355_v1 = vmul.f32 0.5, %v5349_v62  ;;  %v14698_v62 = vld [vmem:[#allocation400_spill] sm:$0xff] }
 0x63d   : > { %9229 = vtanh.f32 %v5334_v46 }
 0x63e   : > { %v5324_v38 = vpop.f32.mrf.mxu3  ;;  %9231 = vtanh.f32 %v5340_v47 }
 0x63f   : > { %v5325_v32 = vadd.f32 %v5324_v38, %v5311_v42  ;;  %v5363_v42 = vmul.f32 %v5357_v25, %v11638_v14  ;;  %v14702_v25 = vld [vmem:[#allocation404_spill] sm:$0xff] }
 0x640   : > { %v5300_v33 = vpop.f32.mrf.mxu1  ;;  %v5313_v15 = vpop.f32.mrf.mxu2 }
 0x641   : > { %v5335_v63 = vadd.f32 %v5325_v32, %v11917_v27  ;;  %v14688_v32 = vld [vmem:[#allocation389_spill] sm:$0xff]  ;;  %v14690_v33 = vld [vmem:[#allocation391_spill] sm:$0xff] }
 0x642   : > { %v14693_v15 = vld [vmem:[#allocation395_spill] sm:$0xff] }
 0x643   : > { %v9230_v52 = vpop.eup %9229  ;;  %9233 = vtanh.f32 %v5335_v63  ;;  %v14692_v63 = vld [vmem:[#allocation394_spill] sm:$0xff] }
 0x644   : > { %v5364_v35 = vmul.f32 %v9230_v52, %v5354_v43  ;;  %v9232_v53 = vpop.eup %9231  ;;  %9235 = vtanh.f32 %v5341_v60  ;;  %v14694_v43 = vld [vmem:[#allocation396_spill] sm:$0xff]  ;;  %v14696_v60 = vld [vmem:[#allocation398_spill] sm:$0xff]  ;;  %v14697_v52 = vld [vmem:[#allocation399_spill] sm:$0xff] }
 0x645   : > { %v5352_v16 = vadd.f32 1.0, %v9232_v53  ;;  %v14701_v53 = vld [vmem:[#allocation403_spill] sm:$0xff] }
 0x646   : > { %v12161_v36 = vadd.f32 %v5364_v35, %v5362_v49  ;;  %v5326_v24 = vpop.f32.mrf.mxu3  ;;  %v14699_v49 = vld [vmem:[#allocation401_spill] sm:$0xff]  ;;  %v14700_v35 = vld [vmem:[#allocation402_spill] sm:$0xff] }
 0x647   : > { %v5358_v39 = vmul.f32 0.5, %v5352_v16  ;;  %v14703_v24 = vld [vmem:[#allocation405_spill] sm:$0xff]  ;;  %v14706_v16 = vld [vmem:[#allocation408_spill] sm:$0xff] }
 0x648   : > { %9237 = vtanh.f32 %v12161_v36 }
 0x649   : > { %v9234_v27 = vpop.eup %9233 }
 0x64a   : > { %v5365_v23 = vmul.f32 %v9234_v27, %v5355_v1  ;;  %v9236_v26 = vpop.eup %9235  ;;  %v14704_v1 = vld [vmem:[#allocation406_spill] sm:$0xff]  ;;  %v14705_v27 = vld [vmem:[#allocation407_spill] sm:$0xff] }
 0x64b   : > { %v5353_v59 = vadd.f32 1.0, %v9236_v26  ;;  %v14709_v26 = vld [vmem:[#allocation411_spill] sm:$0xff] }
 0x64c   : > { %v12165_v46 = vadd.f32 %v5365_v23, %v5363_v42  ;;  %v14707_v42 = vld [vmem:[#allocation409_spill] sm:$0xff]  ;;  %v14708_v23 = vld [vmem:[#allocation410_spill] sm:$0xff] }
 0x64d   : > { %v5359_v17 = vmul.f32 0.5, %v5353_v59  ;;  %v14712_v59 = vld [vmem:[#allocation421_spill] sm:$0xff] }
 0x64e   : > { %v9238_v37 = vpop.eup %9237  ;;  %9239 = vtanh.f32 %v12165_v46 }
 0x64f   : > { %v5370_v47 = vmul.f32 %v9238_v37, %v5358_v39  ;;  %v14710_v39 = vld [vmem:[#allocation412_spill] sm:$0xff] }
 0x650   : > { %v14711_v37 = vld [vmem:[#allocation420_spill] sm:$0xff] }
 0x651   : > { %v12168_v20 = vpack.c.bf16 %v5370_v47, %v5370_v47  ;;  %v14713_v47 = vld [vmem:[#allocation422_spill] sm:$0xff] }
 0x653   : > { %5382 = vmatmul.bf16.vlgmr.msra.gmra.mxu0 %v12168_v20  ;;  %5408 = vmatmul.bf16.vlgmr.msra.gmra.mxu2 %v12168_v20 }
 0x654   : > { %v9240_v38 = vpop.eup %9239  ;;  %5478 = vmatpush.bf16.msra.mxu0 %v14309_v3  ;;  %5504 = vmatpush.bf16.msra.mxu2 %v14310_v41 }
 0x655   : > { %v5371_v14 = vmul.f32 %v9240_v38, %v5359_v17  ;;  %v14714_v17 = vld [vmem:[#allocation423_spill] sm:$0xff]  ;;  %v14715_v38 = vld [vmem:[#allocation424_spill] sm:$0xff] }
 0x657   : > { %v12174_v7 = vpack.c.bf16 %v5371_v14, %v5371_v14  ;;  %v14716_v14 = vld [vmem:[#allocation425_spill] sm:$0xff] }
 0x658   : > { %5479 = vmatpush.bf16.msra.mxu0 %v14311_v61  ;;  %5505 = vmatpush.bf16.msra.mxu2 %v14312_v19 }
 0x659   : > { %5395 = vmatmul.bf16.vlgmr.msra.gmra.mxu1 %v12174_v7  ;;  %5421 = vmatmul.bf16.vlgmr.msra.gmra.mxu3 %v12174_v7 }
 0x65a   : > { %5491 = vmatpush.bf16.msra.mxu1 %v14313_v56  ;;  %5517 = vmatpush.bf16.msra.mxu3 %v14314_v28 }
 0x65c   : > { %5480 = vmatpush.bf16.msra.mxu0 %v14315_v13  ;;  %5506 = vmatpush.bf16.msra.mxu2 %v14316_v12 }
 0x65e   : > { %5492 = vmatpush.bf16.msra.mxu1 %v14317_v54  ;;  %5518 = vmatpush.bf16.msra.mxu3 %v14318_v58 }
 0x660   : > { %5481 = vmatpush.bf16.msra.mxu0 %v14319_v55  ;;  %5507 = vmatpush.bf16.msra.mxu2 %v14320_v29 }
 0x662   : > { %5493 = vmatpush.bf16.msra.mxu1 %v14321_v31  ;;  %5519 = vmatpush.bf16.msra.mxu3 %v14322_v40 }
 0x663   : > { %5434 = vmatmul.bf16.vlgmr.msrb.gmra.mxu0 %v12168_v20  ;;  %5460 = vmatmul.bf16.vlgmr.msrb.gmra.mxu2 %v12168_v20 }
 0x664   : > { %5482 = vmatpush.bf16.msra.mxu0 %v14323_v9  ;;  %5508 = vmatpush.bf16.msra.mxu2 %v14324_v44 }
 0x666   : > { %5494 = vmatpush.bf16.msra.mxu1 %v14325_v34  ;;  %5520 = vmatpush.bf16.msra.mxu3 %v14688_v32 }
 0x668   : > { %5483 = vmatpush.bf16.msra.mxu0 %v14689_v22  ;;  %5509 = vmatpush.bf16.msra.mxu2 %v14690_v33 }
 0x669   : > { %5447 = vmatmul.bf16.vlgmr.msrb.gmra.mxu1 %v12174_v7  ;;  %5473 = vmatmul.bf16.vlgmr.msrb.gmra.mxu3 %v12174_v7 }
 0x66a   : > { %5495 = vmatpush.bf16.msra.mxu1 %v14329_v50  ;;  %5521 = vmatpush.bf16.msra.mxu3 %v14691_v0 }
 0x66c   : > { %5484 = vmatpush.bf16.msra.mxu0 %v14692_v63  ;;  %5510 = vmatpush.bf16.msra.mxu2 %v14693_v15 }
 0x66e   : > { %5496 = vmatpush.bf16.msra.mxu1 %v14694_v43  ;;  %5522 = vmatpush.bf16.msra.mxu3 %v14695_v2 }
 0x670   : > { %5485 = vmatpush.bf16.msra.mxu0 %v14696_v60  ;;  %5511 = vmatpush.bf16.msra.mxu2 %v14697_v52 }
 0x672   : > { %5497 = vmatpush.bf16.msra.mxu1 %v14700_v35  ;;  %5523 = vmatpush.bf16.msra.mxu3 %v14701_v53 }
 0x673   : > { %5486 = vmatmul.bf16.vlgmr.msra.gmra.mxu0 %v12168_v20  ;;  %5512 = vmatmul.bf16.vlgmr.msra.gmra.mxu2 %v12168_v20 }
 0x674   : > { %5530 = vmatpush.bf16.msrb.mxu0 %v14698_v62  ;;  %5556 = vmatpush.bf16.msrb.mxu2 %v14699_v49 }
 0x676   : > { %5498 = vmatpush.bf16.msra.mxu1 %v14704_v1  ;;  %5524 = vmatpush.bf16.msra.mxu3 %v14705_v27  ;;  %v14881_v1 = vld [vmem:[#allocation190_spill] sm:$0xff] }
 0x678   : > { %5531 = vmatpush.bf16.msrb.mxu0 %v14702_v25  ;;  %5557 = vmatpush.bf16.msrb.mxu2 %v14703_v24 }
 0x679   : > { %5499 = vmatmul.bf16.vlgmr.msra.gmra.mxu1 %v12174_v7  ;;  %5525 = vmatmul.bf16.vlgmr.msra.gmra.mxu3 %v12174_v7 }
 0x67a   : > { %5543 = vmatpush.bf16.msrb.mxu1 %v14706_v16  ;;  %5569 = vmatpush.bf16.msrb.mxu3 %v14707_v42  ;;  %v14842_v42 = vld [vmem:[#allocation154_spill] sm:$0xff] }
 0x67c   : > { %5532 = vmatpush.bf16.msrb.mxu0 %v14708_v23  ;;  %5558 = vmatpush.bf16.msrb.mxu2 %v14709_v26  ;;  %v14824_v26 = vld [vmem:[#allocation131_spill] sm:$0xff] }
 0x67e   : > { %5544 = vmatpush.bf16.msrb.mxu1 %v14710_v39  ;;  %5570 = vmatpush.bf16.msrb.mxu3 %v14348_v18 }
 0x680   : > { %5533 = vmatpush.bf16.msrb.mxu0 %v14349_v51  ;;  %5559 = vmatpush.bf16.msrb.mxu2 %v14350_v45  ;;  %v14717_v45 = vld [vmem:[#allocation426_spill] sm:$0xff]  ;;  %v14805_v51 = vld [vmem:[#allocation117_spill] sm:$0xff] }
 0x682   : > { %5545 = vmatpush.bf16.msrb.mxu1 %v14351_v11  ;;  %5571 = vmatpush.bf16.msrb.mxu3 %v14352_v30  ;;  %v14718_v11 = vld [vmem:[#allocation427_spill] sm:$0xff]  ;;  %v14719_v30 = vld [vmem:[#allocation428_spill] sm:$0xff] }
 0x684   : > { %5534 = vmatpush.bf16.msrb.mxu0 %v14353_v8  ;;  %5560 = vmatpush.bf16.msrb.mxu2 %v14354_v6  ;;  %v14720_v8 = vld [vmem:[#allocation429_spill] sm:$0xff]  ;;  %v14721_v6 = vld [vmem:[#allocation430_spill] sm:$0xff] }
 0x686   : > { %5546 = vmatpush.bf16.msrb.mxu1 %v14711_v37  ;;  %5572 = vmatpush.bf16.msrb.mxu3 %v14712_v59  ;;  %v14722_v37 = vld [vmem:[#allocation431_spill] sm:$0xff]  ;;  %v14723_v59 = vld [vmem:[#allocation26_spill] sm:$0xff] }
 0x688   : > { %5535 = vmatpush.bf16.msrb.mxu0 %v14713_v47  ;;  %5561 = vmatpush.bf16.msrb.mxu2 %v14714_v17  ;;  %v14724_v47 = vld [vmem:[#allocation28_spill] sm:$0xff] }
 0x689   : > { %v14725_v17 = vld [vmem:[#allocation432_spill] sm:$0xff] }
 0x68a   : > { %5547 = vmatpush.bf16.msrb.mxu1 %v14715_v38  ;;  %5573 = vmatpush.bf16.msrb.mxu3 %v14716_v14  ;;  %v14726_v38 = vld [vmem:[#allocation433_spill] sm:$0xff]  ;;  %v14804_v14 = vld [vmem:[#allocation115_spill] sm:$0xff] }
 0x68c   : > { %5536 = vmatpush.bf16.msrb.mxu0 %v14717_v45  ;;  %5562 = vmatpush.bf16.msrb.mxu2 %v14718_v11  ;;  %v14727_v11 = vld [vmem:[#allocation30_spill] sm:$0xff] }
 0x68e   : > { %5548 = vmatpush.bf16.msrb.mxu1 %v14719_v30  ;;  %5574 = vmatpush.bf16.msrb.mxu3 %v14720_v8  ;;  %v14728_v30 = vld [vmem:[#allocation32_spill] sm:$0xff]  ;;  %v14729_v8 = vld [vmem:[#allocation434_spill] sm:$0xff] }
 0x690   : > { %5537 = vmatpush.bf16.msrb.mxu0 %v14721_v6  ;;  %5563 = vmatpush.bf16.msrb.mxu2 %v14722_v37  ;;  %v14730_v6 = vld [vmem:[#allocation435_spill] sm:$0xff] }
 0x691   : > { %v14731_v37 = vld [vmem:[#allocation27_spill] sm:$0xff] }
 0x692   : > { %5549 = vmatpush.bf16.msrb.mxu1 %v14725_v17  ;;  %5575 = vmatpush.bf16.msrb.mxu3 %v14726_v38  ;;  %v14734_v38 = vld [vmem:[#allocation36_spill] sm:$0xff] }
 0x693   : > { %5538 = vmatmul.bf16.vlgmr.msrb.gmra.mxu0 %v12168_v20  ;;  %5564 = vmatmul.bf16.vlgmr.msrb.gmra.mxu2 %v12168_v20  ;;  %v14735_v20 = vld [vmem:[#allocation31_spill] sm:$0xff]  ;;  %v14742_v17 = vld [vmem:[#allocation44_spill] sm:$0xff] }
 0x694   : > { %5637 = vmatpush.bf16.msra.mxu0 %v14723_v59  ;;  %5663 = vmatpush.bf16.msra.mxu2 %v14724_v47  ;;  %v14732_v59 = vld [vmem:[#allocation29_spill] sm:$0xff]  ;;  %v14733_v47 = vld [vmem:[#allocation34_spill] sm:$0xff] }
 0x696   : > { %5550 = vmatpush.bf16.msrb.mxu1 %v14729_v8  ;;  %5576 = vmatpush.bf16.msrb.mxu3 %v14730_v6  ;;  %v14738_v8 = vld [vmem:[#allocation40_spill] sm:$0xff]  ;;  %v14739_v6 = vld [vmem:[#allocation35_spill] sm:$0xff] }
 0x698   : > { %5638 = vmatpush.bf16.msra.mxu0 %v14727_v11  ;;  %5664 = vmatpush.bf16.msra.mxu2 %v14728_v30  ;;  %v14736_v11 = vld [vmem:[#allocation33_spill] sm:$0xff]  ;;  %v14737_v30 = vld [vmem:[#allocation38_spill] sm:$0xff] }
 0x699   : > { %5551 = vmatmul.bf16.vlgmr.msrb.gmra.mxu1 %v12174_v7  ;;  %5577 = vmatmul.bf16.vlgmr.msrb.gmra.mxu3 %v12174_v7  ;;  %v14743_v7 = vld [vmem:[#allocation39_spill] sm:$0xff] }
 0x69a   : > { %5650 = vmatpush.bf16.msra.mxu1 %v14731_v37  ;;  %5676 = vmatpush.bf16.msra.mxu3 %v14732_v59  ;;  %v14740_v37 = vld [vmem:[#allocation37_spill] sm:$0xff]  ;;  %v14741_v59 = vld [vmem:[#allocation42_spill] sm:$0xff] }
 0x69c   : > { %5639 = vmatpush.bf16.msra.mxu0 %v14733_v47  ;;  %5665 = vmatpush.bf16.msra.mxu2 %v14734_v38  ;;  %v14744_v47 = vld [vmem:[#allocation41_spill] sm:$0xff]  ;;  %v14745_v38 = vld [vmem:[#allocation46_spill] sm:$0xff] }
 0x69e   : > { %5651 = vmatpush.bf16.msra.mxu1 %v14735_v20  ;;  %5677 = vmatpush.bf16.msra.mxu3 %v14736_v11  ;;  %v14746_v20 = vld [vmem:[#allocation48_spill] sm:$0xff]  ;;  %v14747_v11 = vld [vmem:[#allocation43_spill] sm:$0xff] }
 0x6a0   : > { %5640 = vmatpush.bf16.msra.mxu0 %v14737_v30  ;;  %5666 = vmatpush.bf16.msra.mxu2 %v14738_v8  ;;  %v14748_v30 = vld [vmem:[#allocation45_spill] sm:$0xff]  ;;  %v14749_v8 = vld [vmem:[#allocation50_spill] sm:$0xff] }
 0x6a2   : > { %5652 = vmatpush.bf16.msra.mxu1 %v14739_v6  ;;  %5678 = vmatpush.bf16.msra.mxu3 %v14740_v37  ;;  %v14750_v6 = vld [vmem:[#allocation52_spill] sm:$0xff]  ;;  %v14751_v37 = vld [vmem:[#allocation47_spill] sm:$0xff] }
 0x6a4   : > { %5641 = vmatpush.bf16.msra.mxu0 %v14741_v59  ;;  %5667 = vmatpush.bf16.msra.mxu2 %v14742_v17  ;;  %v14752_v59 = vld [vmem:[#allocation49_spill] sm:$0xff]  ;;  %v14753_v17 = vld [vmem:[#allocation54_spill] sm:$0xff] }
 0x6a6   : > { %5653 = vmatpush.bf16.msra.mxu1 %v14743_v7  ;;  %5679 = vmatpush.bf16.msra.mxu3 %v14744_v47  ;;  %v14754_v7 = vld [vmem:[#allocation56_spill] sm:$0xff]  ;;  %v12282_v47 = vpack.c.bf16 %v12120_v48, %v12120_v48  ;;  %v14762_v48 = vld [vmem:[#allocation57_spill] sm:$0xff] }
 0x6a8   : > { %5642 = vmatpush.bf16.msra.mxu0 %v14745_v38  ;;  %5668 = vmatpush.bf16.msra.mxu2 %v14746_v20  ;;  %v14755_v38 = vld [vmem:[#allocation58_spill] sm:$0xff]  ;;  %v14756_v20 = vld [vmem:[#allocation60_spill] sm:$0xff] }
 0x6aa   : > { %5654 = vmatpush.bf16.msra.mxu1 %v14747_v11  ;;  %5680 = vmatpush.bf16.msra.mxu3 %v14748_v30  ;;  %v14757_v11 = vld [vmem:[#allocation51_spill] sm:$0xff]  ;;  %v14758_v30 = vld [vmem:[#allocation53_spill] sm:$0xff] }
 0x6ac   : > { %5643 = vmatpush.bf16.msra.mxu0 %v14749_v8  ;;  %5669 = vmatpush.bf16.msra.mxu2 %v14750_v6  ;;  %v14759_v8 = vld [vmem:[#allocation62_spill] sm:$0xff]  ;;  %v14760_v6 = vld [vmem:[#allocation64_spill] sm:$0xff] }
 0x6ae   : > { %5655 = vmatpush.bf16.msra.mxu1 %v14751_v37  ;;  %5681 = vmatpush.bf16.msra.mxu3 %v14752_v59  ;;  %v14761_v37 = vld [vmem:[#allocation55_spill] sm:$0xff]  ;;  %v12296_v59 = vpack.c.bf16 %v12128_v4, %v12128_v4  ;;  %v14770_v4 = vld [vmem:[#allocation76_spill] sm:$0xff] }
 0x6b0   : > { %5644 = vmatpush.bf16.msra.mxu0 %v14753_v17  ;;  %5670 = vmatpush.bf16.msra.mxu2 %v14754_v7  ;;  %v14763_v17 = vld [vmem:[#allocation59_spill] sm:$0xff]  ;;  %v14764_v7 = vld [vmem:[#allocation61_spill] sm:$0xff] }
 0x6b2   : > { %5656 = vmatpush.bf16.msra.mxu1 %v14757_v11  ;;  %5682 = vmatpush.bf16.msra.mxu3 %v14758_v30  ;;  %v14767_v11 = vld [vmem:[#allocation63_spill] sm:$0xff]  ;;  %v14768_v30 = vld [vmem:[#allocation65_spill] sm:$0xff] }
 0x6b3   : > { %5645 = vmatmul.bf16.vlgmr.msra.gmra.mxu0 %v12282_v47  ;;  %5671 = vmatmul.bf16.vlgmr.msra.gmra.mxu2 %v12282_v47 }
 0x6b4   : > { %5689 = vmatpush.bf16.msrb.mxu0 %v14755_v38  ;;  %5715 = vmatpush.bf16.msrb.mxu2 %v14756_v20  ;;  %v14765_v38 = vld [vmem:[#allocation66_spill] sm:$0xff]  ;;  %v14766_v20 = vld [vmem:[#allocation68_spill] sm:$0xff] }
 0x6b6   : > { %5657 = vmatpush.bf16.msra.mxu1 %v14761_v37  ;;  %5683 = vmatpush.bf16.msra.mxu3 %v14762_v48  ;;  %v14772_v37 = vld [vmem:[#allocation69_spill] sm:$0xff]  ;;  %v14773_v48 = vld [vmem:[#allocation80_spill] sm:$0xff] }
 0x6b8   : > { %5690 = vmatpush.bf16.msrb.mxu0 %v14759_v8  ;;  %5716 = vmatpush.bf16.msrb.mxu2 %v14760_v6  ;;  %v14769_v8 = vld [vmem:[#allocation70_spill] sm:$0xff]  ;;  %v14771_v6 = vld [vmem:[#allocation67_spill] sm:$0xff] }
 0x6b9   : > { %5658 = vmatmul.bf16.vlgmr.msra.gmra.mxu1 %v12296_v59  ;;  %5684 = vmatmul.bf16.vlgmr.msra.gmra.mxu3 %v12296_v59 }
 0x6ba   : > { %5702 = vmatpush.bf16.msrb.mxu1 %v14763_v17  ;;  %5728 = vmatpush.bf16.msrb.mxu3 %v14764_v7  ;;  %v14774_v17 = vld [vmem:[#allocation82_spill] sm:$0xff]  ;;  %v14775_v7 = vld [vmem:[#allocation73_spill] sm:$0xff] }
 0x6bc   : > { %5691 = vmatpush.bf16.msrb.mxu0 %v14765_v38  ;;  %5717 = vmatpush.bf16.msrb.mxu2 %v14766_v20  ;;  %v14776_v38 = vld [vmem:[#allocation78_spill] sm:$0xff]  ;;  %v14777_v20 = vld [vmem:[#allocation85_spill] sm:$0xff] }
 0x6be   : > { %5703 = vmatpush.bf16.msrb.mxu1 %v14767_v11  ;;  %5729 = vmatpush.bf16.msrb.mxu3 %v14768_v30  ;;  %v14778_v11 = vld [vmem:[#allocation90_spill] sm:$0xff]  ;;  %v14779_v30 = vld [vmem:[#allocation81_spill] sm:$0xff] }
 0x6c0   : > { %5692 = vmatpush.bf16.msrb.mxu0 %v14769_v8  ;;  %5718 = vmatpush.bf16.msrb.mxu2 %v14770_v4  ;;  %v14780_v8 = vld [vmem:[#allocation83_spill] sm:$0xff]  ;;  %v14781_v4 = vld [vmem:[#allocation93_spill] sm:$0xff] }
 0x6c2   : > { %5704 = vmatpush.bf16.msrb.mxu1 %v14771_v6  ;;  %5730 = vmatpush.bf16.msrb.mxu3 %v14772_v37  ;;  %v14782_v6 = vld [vmem:[#allocation95_spill] sm:$0xff] }
 0x6c3   : > { %v14783_v37 = vld [vmem:[#allocation87_spill] sm:$0xff] }
 0x6c4   : > { %5693 = vmatpush.bf16.msrb.mxu0 %v14773_v48  ;;  %5719 = vmatpush.bf16.msrb.mxu2 %v14774_v17  ;;  %v14784_v48 = vld [vmem:[#allocation92_spill] sm:$0xff] }
 0x6c5   : > { %v14785_v17 = vld [vmem:[#allocation100_spill] sm:$0xff] }
 0x6c6   : > { %5705 = vmatpush.bf16.msrb.mxu1 %v14775_v7  ;;  %5731 = vmatpush.bf16.msrb.mxu3 %v14776_v38  ;;  %v14786_v7 = vld [vmem:[#allocation102_spill] sm:$0xff] }
 0x6c7   : > { %v14787_v38 = vld [vmem:[#allocation106_spill] sm:$0xff] }
 0x6c8   : > { %5694 = vmatpush.bf16.msrb.mxu0 %v14777_v20  ;;  %5720 = vmatpush.bf16.msrb.mxu2 %v14778_v11  ;;  %v14788_v20 = vld [vmem:[#allocation108_spill] sm:$0xff]  ;;  %v14789_v11 = vld [vmem:[#allocation94_spill] sm:$0xff] }
 0x6ca   : > { %5706 = vmatpush.bf16.msrb.mxu1 %v14779_v30  ;;  %5732 = vmatpush.bf16.msrb.mxu3 %v14780_v8  ;;  %v14790_v30 = vld [vmem:[#allocation97_spill] sm:$0xff]  ;;  %v14791_v8 = vld [vmem:[#allocation110_spill] sm:$0xff] }
 0x6cc   : > { %5695 = vmatpush.bf16.msrb.mxu0 %v14781_v4  ;;  %5721 = vmatpush.bf16.msrb.mxu2 %v14782_v6  ;;  %v14792_v4 = vld [vmem:[#allocation112_spill] sm:$0xff]  ;;  %v14793_v6 = vld [vmem:[#allocation101_spill] sm:$0xff] }
 0x6ce   : > { %5707 = vmatpush.bf16.msrb.mxu1 %v14783_v37  ;;  %5733 = vmatpush.bf16.msrb.mxu3 %v14784_v48  ;;  %v14794_v37 = vld [vmem:[#allocation103_spill] sm:$0xff] }
 0x6cf   : > { %v14795_v48 = vld [vmem:[#allocation107_spill] sm:$0xff] }
 0x6d0   : > { %5696 = vmatpush.bf16.msrb.mxu0 %v14785_v17  ;;  %5722 = vmatpush.bf16.msrb.mxu2 %v14786_v7  ;;  %v14796_v17 = vld [vmem:[#allocation109_spill] sm:$0xff]  ;;  %v5383_v7 = vpop.f32.mrf.mxu0 }
 0x6d2   : > { %5708 = vmatpush.bf16.msrb.mxu1 %v14789_v11  ;;  %5734 = vmatpush.bf16.msrb.mxu3 %v14790_v30  ;;  %v14799_v11 = vld [vmem:[#allocation111_spill] sm:$0xff]  ;;  %v14800_v30 = vld [vmem:[#allocation113_spill] sm:$0xff] }
 0x6d3   : > { %5697 = vmatmul.bf16.vlgmr.msrb.gmra.mxu0 %v12282_v47  ;;  %5723 = vmatmul.bf16.vlgmr.msrb.gmra.mxu2 %v12282_v47 }
 0x6d4   : > { %5741 = vmatpush.bf16.msra.mxu0 %v14787_v38  ;;  %5767 = vmatpush.bf16.msra.mxu2 %v14788_v20  ;;  %v14797_v38 = vld [vmem:[#allocation114_spill] sm:$0xff]  ;;  %v14798_v20 = vld [vmem:[#allocation116_spill] sm:$0xff] }
 0x6d6   : > { %5709 = vmatpush.bf16.msrb.mxu1 %v14793_v6  ;;  %5735 = vmatpush.bf16.msrb.mxu3 %v14794_v37  ;;  %v5396_v6 = vpop.f32.mrf.mxu1  ;;  %v5409_v37 = vpop.f32.mrf.mxu2 }
 0x6d8   : > { %5742 = vmatpush.bf16.msra.mxu0 %v14791_v8  ;;  %5768 = vmatpush.bf16.msra.mxu2 %v14792_v4  ;;  %v14801_v8 = vld [vmem:[#allocation436_spill] sm:$0xff] }
 0x6d9   : > { %5710 = vmatmul.bf16.vlgmr.msrb.gmra.mxu1 %v12296_v59  ;;  %5736 = vmatmul.bf16.vlgmr.msrb.gmra.mxu3 %v12296_v59  ;;  %v5384_v4 = vadd.f32 %v5383_v7, %v14801_v8  ;;  %v14809_v7 = vld [vmem:[#allocation119_spill] sm:$0xff]  ;;  %v14810_v8 = vld [vmem:[#allocation121_spill] sm:$0xff] }
 0x6da   : > { %5754 = vmatpush.bf16.msra.mxu1 %v14795_v48  ;;  %5780 = vmatpush.bf16.msra.mxu3 %v14796_v17  ;;  %v14802_v48 = vld [vmem:[#allocation118_spill] sm:$0xff]  ;;  %v14803_v17 = vld [vmem:[#allocation120_spill] sm:$0xff] }
 0x6db   : > { %v12345_v45 = vadd.f32 %v5396_v6, %v5384_v4 }
 0x6dc   : > { %5743 = vmatpush.bf16.msra.mxu0 %v14797_v38  ;;  %5769 = vmatpush.bf16.msra.mxu2 %v14798_v20  ;;  %v5385_v38 = vpop.f32.mrf.mxu0  ;;  %v14806_v20 = vld [vmem:[#allocation437_spill] sm:$0xff] }
 0x6dd   : > { %v5410_v18 = vadd.f32 %v5409_v37, %v14806_v20  ;;  %v14814_v37 = vld [vmem:[#allocation125_spill] sm:$0xff]  ;;  %v14820_v20 = vld [vmem:[#allocation134_spill] sm:$0xff] }
 0x6de   : > { %5755 = vmatpush.bf16.msra.mxu1 %v14799_v11  ;;  %5781 = vmatpush.bf16.msra.mxu3 %v14800_v30  ;;  %v14807_v11 = vld [vmem:[#allocation122_spill] sm:$0xff]  ;;  %v14808_v30 = vld [vmem:[#allocation124_spill] sm:$0xff]  ;;  %v5398_v4 = vpop.f32.mrf.mxu1  ;;  %v5411_v6 = vpop.f32.mrf.mxu2 }
 0x6e0   : > { %5744 = vmatpush.bf16.msra.mxu0 %v14802_v48  ;;  %5770 = vmatpush.bf16.msra.mxu2 %v14803_v17  ;;  %v5422_v48 = vpop.f32.mrf.mxu3  ;;  %v14811_v17 = vld [vmem:[#allocation126_spill] sm:$0xff] }
 0x6e1   : > { %v12354_v39 = vadd.f32 %v5422_v48, %v5410_v18  ;;  %v14819_v48 = vld [vmem:[#allocation438_spill] sm:$0xff] }
 0x6e2   : > { %5756 = vmatpush.bf16.msra.mxu1 %v14804_v14  ;;  %5782 = vmatpush.bf16.msra.mxu3 %v14805_v51  ;;  %v14812_v14 = vld [vmem:[#allocation128_spill] sm:$0xff]  ;;  %v14813_v51 = vld [vmem:[#allocation123_spill] sm:$0xff] }
 0x6e4   : > { %5745 = vmatpush.bf16.msra.mxu0 %v14807_v11  ;;  %5771 = vmatpush.bf16.msra.mxu2 %v14808_v30  ;;  %v5435_v38 = vpop.f32.mrf.mxu0  ;;  %v14815_v11 = vld [vmem:[#allocation130_spill] sm:$0xff]  ;;  %v14816_v30 = vld [vmem:[#allocation132_spill] sm:$0xff] }
 0x6e5   : > { %v5436_v4 = vadd.f32 %v5435_v38, %v14819_v48  ;;  %v14826_v38 = vld [vmem:[#allocation439_spill] sm:$0xff] }
 0x6e6   : > { %5757 = vmatpush.bf16.msra.mxu1 %v14809_v7  ;;  %5783 = vmatpush.bf16.msra.mxu3 %v14810_v8  ;;  %v14817_v7 = vld [vmem:[#allocation127_spill] sm:$0xff]  ;;  %v14818_v8 = vld [vmem:[#allocation129_spill] sm:$0xff]  ;;  %v5448_v6 = vpop.f32.mrf.mxu1 }
 0x6e8   : > { %5746 = vmatpush.bf16.msra.mxu0 %v14811_v17  ;;  %5772 = vmatpush.bf16.msra.mxu2 %v14812_v14  ;;  %v5424_v18 = vpop.f32.mrf.mxu3  ;;  %v5461_v17 = vpop.f32.mrf.mxu2  ;;  %v14821_v14 = vld [vmem:[#allocation136_spill] sm:$0xff] }
 0x6e9   : > { %v14828_v18 = vld [vmem:[#allocation144_spill] sm:$0xff] }
 0x6ea   : > { %5758 = vmatpush.bf16.msra.mxu1 %v14813_v51  ;;  %5784 = vmatpush.bf16.msra.mxu3 %v14814_v37  ;;  %v12367_v51 = vadd.f32 %v5448_v6, %v5436_v4  ;;  %v14822_v37 = vld [vmem:[#allocation138_spill] sm:$0xff]  ;;  %v14829_v6 = vld [vmem:[#allocation135_spill] sm:$0xff] }
 0x6ec   : > { %5747 = vmatpush.bf16.msra.mxu0 %v14815_v11  ;;  %5773 = vmatpush.bf16.msra.mxu2 %v14816_v30  ;;  %v14823_v11 = vld [vmem:[#allocation140_spill] sm:$0xff]  ;;  %v5437_v30 = vpop.f32.mrf.mxu0 }
 0x6ee   : > { %5759 = vmatpush.bf16.msra.mxu1 %v14817_v7  ;;  %5785 = vmatpush.bf16.msra.mxu3 %v14818_v8  ;;  %v14825_v7 = vld [vmem:[#allocation133_spill] sm:$0xff]  ;;  %v5462_v8 = vadd.f32 %v5461_v17, %v14826_v38  ;;  %v5450_v30 = vpop.f32.mrf.mxu1 }
 0x6ef   : > { %v14841_v38 = vld [vmem:[#allocation149_spill] sm:$0xff] }
 0x6f0   : > { %5748 = vmatpush.bf16.msra.mxu0 %v14820_v20  ;;  %5774 = vmatpush.bf16.msra.mxu2 %v14821_v14  ;;  %v14827_v20 = vld [vmem:[#allocation142_spill] sm:$0xff]  ;;  %v5474_v4 = vpop.f32.mrf.mxu3  ;;  %v14830_v14 = vld [vmem:[#allocation137_spill] sm:$0xff] }
 0x6f2   : > { %5760 = vmatpush.bf16.msra.mxu1 %v14824_v26  ;;  %5786 = vmatpush.bf16.msra.mxu3 %v14825_v7  ;;  %v14831_v26 = vld [vmem:[#allocation139_spill] sm:$0xff]  ;;  %v5463_v7 = vpop.f32.mrf.mxu2 }
 0x6f3   : > { %5749 = vmatmul.bf16.vlgmr.msra.gmra.mxu0 %v12282_v47  ;;  %5775 = vmatmul.bf16.vlgmr.msra.gmra.mxu2 %v12282_v47  ;;  %v14840_v7 = vld [vmem:[#allocation147_spill] sm:$0xff] }
 0x6f4   : > { %5793 = vmatpush.bf16.msrb.mxu0 %v14822_v37  ;;  %5819 = vmatpush.bf16.msrb.mxu2 %v14823_v11  ;;  %v12380_v37 = vadd.f32 %v5474_v4, %v5462_v8  ;;  %v14832_v11 = vld [vmem:[#allocation141_spill] sm:$0xff]  ;;  %v5487_v17 = vpop.f32.mrf.mxu0  ;;  %v14837_v4 = vld [vmem:[#allocation150_spill] sm:$0xff] }
 0x6f6   : > { %5761 = vmatpush.bf16.msra.mxu1 %v14829_v6  ;;  %5787 = vmatpush.bf16.msra.mxu3 %v14830_v14  ;;  %v14835_v6 = vld [vmem:[#allocation143_spill] sm:$0xff]  ;;  %v14836_v14 = vld [vmem:[#allocation145_spill] sm:$0xff]  ;;  %v5500_v23 = vpop.f32.mrf.mxu1 }
 0x6f8   : > { %5794 = vmatpush.bf16.msrb.mxu0 %v14827_v20  ;;  %5820 = vmatpush.bf16.msrb.mxu2 %v14828_v18  ;;  %v14833_v20 = vld [vmem:[#allocation146_spill] sm:$0xff]  ;;  %v14834_v18 = vld [vmem:[#allocation148_spill] sm:$0xff]  ;;  %v5476_v8 = vpop.f32.mrf.mxu3 }
 0x6f9   : > { %5762 = vmatmul.bf16.vlgmr.msra.gmra.mxu1 %v12296_v59  ;;  %5788 = vmatmul.bf16.vlgmr.msra.gmra.mxu3 %v12296_v59  ;;  %v14845_v8 = vld [vmem:[#allocation153_spill] sm:$0xff] }
 0x6fa   : > { %5806 = vmatpush.bf16.msrb.mxu1 %v14831_v26  ;;  %5832 = vmatpush.bf16.msrb.mxu3 %v14832_v11  ;;  %v14838_v26 = vld [vmem:[#allocation152_spill] sm:$0xff]  ;;  %v5513_v48 = vpop.f32.mrf.mxu2 }
 0x6fb   : > { %v14839_v11 = vld [vmem:[#allocation440_spill] sm:$0xff] }
 0x6fc   : > { %5795 = vmatpush.bf16.msrb.mxu0 %v14833_v20  ;;  %5821 = vmatpush.bf16.msrb.mxu2 %v14834_v18  ;;  %v5488_v30 = vadd.f32 %v5487_v17, %v14839_v11  ;;  %v5489_v18 = vpop.f32.mrf.mxu0  ;;  %v14847_v17 = vld [vmem:[#allocation158_spill] sm:$0xff]  ;;  %v14849_v11 = vld [vmem:[#allocation155_spill] sm:$0xff] }
 0x6fe   : > { %5807 = vmatpush.bf16.msrb.mxu1 %v14835_v6  ;;  %5833 = vmatpush.bf16.msrb.mxu3 %v14836_v14  ;;  %v12395_v20 = vadd.f32 %v5500_v23, %v5488_v30  ;;  %v14843_v6 = vld [vmem:[#allocation156_spill] sm:$0xff]  ;;  %v14844_v14 = vld [vmem:[#allocation151_spill] sm:$0xff]  ;;  %v14850_v23 = vld [vmem:[#allocation157_spill] sm:$0xff]  ;;  %v5502_v18 = vpop.f32.mrf.mxu1 }
 0x6ff   : > { %v14862_v18 = vld [vmem:[#allocation176_spill] sm:$0xff] }
 0x700   : > { %5796 = vmatpush.bf16.msrb.mxu0 %v14837_v4  ;;  %5822 = vmatpush.bf16.msrb.mxu2 %v14838_v26  ;;  %v14846_v4 = vld [vmem:[#allocation441_spill] sm:$0xff] }
 0x701   : > { %v5514_v26 = vadd.f32 %v5513_v48, %v14846_v4  ;;  %v14854_v48 = vld [vmem:[#allocation161_spill] sm:$0xff] }
 0x702   : > { %5808 = vmatpush.bf16.msrb.mxu1 %v14840_v7  ;;  %5834 = vmatpush.bf16.msrb.mxu3 %v14841_v38  ;;  %v14848_v7 = vld [vmem:[#allocation160_spill] sm:$0xff]  ;;  %v5526_v38 = vpop.f32.mrf.mxu3 }
 0x703   : > { %v12406_v30 = vadd.f32 %v5526_v38, %v5514_v26  ;;  %v14859_v26 = vld [vmem:[#allocation163_spill] sm:$0xff]  ;;  %v14860_v38 = vld [vmem:[#allocation165_spill] sm:$0xff] }
 0x704   : > { %5797 = vmatpush.bf16.msrb.mxu0 %v14842_v42  ;;  %5823 = vmatpush.bf16.msrb.mxu2 %v14843_v6  ;;  %v5515_v42 = vpop.f32.mrf.mxu2  ;;  %v14851_v6 = vld [vmem:[#allocation162_spill] sm:$0xff] }
 0x705   : > { %v14861_v42 = vld [vmem:[#allocation174_spill] sm:$0xff] }
 0x706   : > { %5809 = vmatpush.bf16.msrb.mxu1 %v14844_v14  ;;  %5835 = vmatpush.bf16.msrb.mxu3 %v14845_v8  ;;  %v14852_v14 = vld [vmem:[#allocation164_spill] sm:$0xff]  ;;  %v14853_v8 = vld [vmem:[#allocation159_spill] sm:$0xff] }
 0x708   : > { %5798 = vmatpush.bf16.msrb.mxu0 %v14847_v17  ;;  %5824 = vmatpush.bf16.msrb.mxu2 %v14848_v7  ;;  %v14855_v17 = vld [vmem:[#allocation166_spill] sm:$0xff]  ;;  %v14856_v7 = vld [vmem:[#allocation168_spill] sm:$0xff] }
 0x70a   : > { %5810 = vmatpush.bf16.msrb.mxu1 %v14849_v11  ;;  %5836 = vmatpush.bf16.msrb.mxu3 %v14850_v23  ;;  %v5528_v4 = vpop.f32.mrf.mxu3  ;;  %v14857_v11 = vld [vmem:[#allocation170_spill] sm:$0xff]  ;;  %v14858_v23 = vld [vmem:[#allocation172_spill] sm:$0xff] }
 0x70b   : > { %v14865_v4 = vld [vmem:[#allocation171_spill] sm:$0xff] }
 0x70c   : > { %5799 = vmatpush.bf16.msrb.mxu0 %v14851_v6  ;;  %5825 = vmatpush.bf16.msrb.mxu2 %v14852_v14  ;;  %v14863_v6 = vld [vmem:[#allocation167_spill] sm:$0xff]  ;;  %v14864_v14 = vld [vmem:[#allocation169_spill] sm:$0xff] }
 0x70e   : > { %5811 = vmatpush.bf16.msrb.mxu1 %v14853_v8  ;;  %5837 = vmatpush.bf16.msrb.mxu3 %v14854_v48  ;;  %v14866_v8 = vld [vmem:[#allocation173_spill] sm:$0xff] }
 0x710   : > { %5800 = vmatpush.bf16.msrb.mxu0 %v14855_v17  ;;  %5826 = vmatpush.bf16.msrb.mxu2 %v14856_v7  ;;  %v5539_v48 = vpop.f32.mrf.mxu0  ;;  %v14867_v17 = vld [vmem:[#allocation178_spill] sm:$0xff]  ;;  %v14868_v7 = vld [vmem:[#allocation180_spill] sm:$0xff] }
 0x712   : > { %5812 = vmatpush.bf16.msrb.mxu1 %v14859_v26  ;;  %5838 = vmatpush.bf16.msrb.mxu3 %v14860_v38  ;;  %v14871_v26 = vld [vmem:[#allocation442_spill] sm:$0xff] }
 0x713   : > { %5801 = vmatmul.bf16.vlgmr.msrb.gmra.mxu0 %v12282_v47  ;;  %5827 = vmatmul.bf16.vlgmr.msrb.gmra.mxu2 %v12282_v47  ;;  %v5540_v38 = vadd.f32 %v5539_v48, %v14871_v26  ;;  %v14879_v48 = vld [vmem:[#allocation183_spill] sm:$0xff] }
 0x714   : > { %5845 = vmatpush.bf16.msra.mxu0 %v14857_v11  ;;  %5871 = vmatpush.bf16.msra.mxu2 %v14858_v23  ;;  %v14869_v11 = vld [vmem:[#allocation175_spill] sm:$0xff]  ;;  %v14870_v23 = vld [vmem:[#allocation177_spill] sm:$0xff] }
 0x716   : > { %5813 = vmatpush.bf16.msrb.mxu1 %v14863_v6  ;;  %5839 = vmatpush.bf16.msrb.mxu3 %v14864_v14  ;;  %v5552_v6 = vpop.f32.mrf.mxu1  ;;  %v5565_v14 = vpop.f32.mrf.mxu2 }
 0x717   : > { %v12437_v16 = vadd.f32 %v5552_v6, %v5540_v38 }
 0x718   : > { %5846 = vmatpush.bf16.msra.mxu0 %v14861_v42  ;;  %5872 = vmatpush.bf16.msra.mxu2 %v14862_v18  ;;  %v14872_v42 = vld [vmem:[#allocation182_spill] sm:$0xff]  ;;  %v14873_v18 = vld [vmem:[#allocation184_spill] sm:$0xff] }
 0x719   : > { %5814 = vmatmul.bf16.vlgmr.msrb.gmra.mxu1 %v12296_v59  ;;  %5840 = vmatmul.bf16.vlgmr.msrb.gmra.mxu3 %v12296_v59 }
 0x71a   : > { %5858 = vmatpush.bf16.msra.mxu1 %v14865_v4  ;;  %5884 = vmatpush.bf16.msra.mxu3 %v14866_v8  ;;  %v14874_v4 = vld [vmem:[#allocation179_spill] sm:$0xff]  ;;  %v14875_v8 = vld [vmem:[#allocation181_spill] sm:$0xff] }
 0x71c   : > { %5847 = vmatpush.bf16.msra.mxu0 %v14867_v17  ;;  %5873 = vmatpush.bf16.msra.mxu2 %v14868_v7  ;;  %v5541_v17 = vpop.f32.mrf.mxu0  ;;  %v14876_v7 = vld [vmem:[#allocation186_spill] sm:$0xff] }
 0x71d   : > { %v14884_v17 = vld [vmem:[#allocation189_spill] sm:$0xff] }
 0x71e   : > { %5859 = vmatpush.bf16.msra.mxu1 %v14869_v11  ;;  %5885 = vmatpush.bf16.msra.mxu3 %v14870_v23  ;;  %v14877_v11 = vld [vmem:[#allocation188_spill] sm:$0xff]  ;;  %v14878_v23 = vld [vmem:[#allocation443_spill] sm:$0xff]  ;;  %v5554_v38 = vpop.f32.mrf.mxu1  ;;  %v5567_v6 = vpop.f32.mrf.mxu2 }
 0x71f   : > { %v5566_v27 = vadd.f32 %v5565_v14, %v14878_v23  ;;  %v14886_v14 = vld [vmem:[#allocation196_spill] sm:$0xff]  ;;  %v14893_v38 = vld [vmem:[#allocation195_spill] sm:$0xff]  ;;  %v14894_v6 = vld [vmem:[#allocation197_spill] sm:$0xff] }
 0x720   : > { %5848 = vmatpush.bf16.msra.mxu0 %v14872_v42  ;;  %5874 = vmatpush.bf16.msra.mxu2 %v14873_v18  ;;  %v14880_v42 = vld [vmem:[#allocation185_spill] sm:$0xff]  ;;  %v5578_v18 = vpop.f32.mrf.mxu3 }
 0x721   : > { %v12444_v26 = vadd.f32 %v5578_v18, %v5566_v27  ;;  %v14891_v18 = vld [vmem:[#allocation202_spill] sm:$0xff] }
 0x722   : > { %5860 = vmatpush.bf16.msra.mxu1 %v14874_v4  ;;  %5886 = vmatpush.bf16.msra.mxu3 %v14875_v8  ;;  %v14882_v4 = vld [vmem:[#allocation192_spill] sm:$0xff]  ;;  %v14883_v8 = vld [vmem:[#allocation187_spill] sm:$0xff] }
 0x724   : > { %5849 = vmatpush.bf16.msra.mxu0 %v14876_v7  ;;  %5875 = vmatpush.bf16.msra.mxu2 %v14877_v11  ;;  %v14885_v7 = vld [vmem:[#allocation194_spill] sm:$0xff]  ;;  %v14887_v11 = vld [vmem:[#allocation191_spill] sm:$0xff] }
 0x726   : > { %5861 = vmatpush.bf16.msra.mxu1 %v14879_v48  ;;  %5887 = vmatpush.bf16.msra.mxu3 %v14880_v42  ;;  %v14888_v48 = vld [vmem:[#allocation193_spill] sm:$0xff]  ;;  %v14889_v42 = vld [vmem:[#allocation198_spill] sm:$0xff] }
 0x728   : > { %5850 = vmatpush.bf16.msra.mxu0 %v14881_v1  ;;  %5876 = vmatpush.bf16.msra.mxu2 %v14882_v4  ;;  %v5580_v27 = vpop.f32.mrf.mxu3  ;;  %v14890_v1 = vld [vmem:[#allocation200_spill] sm:$0xff] }
 0x729   : > { %v14892_v4 = vld [vmem:[#allocation204_spill] sm:$0xff] }
 0x72a   : > { %5862 = vmatpush.bf16.msra.mxu1 %v14883_v8  ;;  %5888 = vmatpush.bf16.msra.mxu3 %v14884_v17  ;;  %v14895_v8 = vld [vmem:[#allocation206_spill] sm:$0xff]  ;;  %v14896_v17 = vld [vmem:[#allocation208_spill] sm:$0xff] }
 0x72c   : > { %5851 = vmatpush.bf16.msra.mxu0 %v14885_v7  ;;  %5877 = vmatpush.bf16.msra.mxu2 %v14886_v14  ;;  %v14897_v7 = vld [vmem:[#allocation199_spill] sm:$0xff]  ;;  %v14898_v14 = vld [vmem:[#allocation201_spill] sm:$0xff] }
 0x72e   : > { %5863 = vmatpush.bf16.msra.mxu1 %v14887_v11  ;;  %5889 = vmatpush.bf16.msra.mxu3 %v14888_v48  ;;  %v14899_v11 = vld [vmem:[#allocation203_spill] sm:$0xff]  ;;  %v14900_v48 = vld [vmem:[#allocation205_spill] sm:$0xff] }
 0x730   : > { %5852 = vmatpush.bf16.msra.mxu0 %v14889_v42  ;;  %5878 = vmatpush.bf16.msra.mxu2 %v14890_v1  ;;  %v5646_v27 = vpop.f32.mrf.mxu0  ;;  %v14901_v42 = vld [vmem:[#allocation210_spill] sm:$0xff]  ;;  %v14902_v1 = vld [vmem:[#allocation212_spill] sm:$0xff] }
 0x732   : > { %5864 = vmatpush.bf16.msra.mxu1 %v14893_v38  ;;  %5890 = vmatpush.bf16.msra.mxu3 %v14894_v6  ;;  %v14905_v38 = vld [vmem:[#allocation214_spill] sm:$0xff]  ;;  %v14906_v6 = vld [vmem:[#allocation216_spill] sm:$0xff] }
 0x733   : > { %5853 = vmatmul.bf16.vlgmr.msra.gmra.mxu0 %v12282_v47  ;;  %5879 = vmatmul.bf16.vlgmr.msra.gmra.mxu2 %v12282_v47 }
 0x734   : > { %5897 = vmatpush.bf16.msrb.mxu0 %v14891_v18  ;;  %5923 = vmatpush.bf16.msrb.mxu2 %v14892_v4  ;;  %v14903_v18 = vld [vmem:[#allocation207_spill] sm:$0xff]  ;;  %v14904_v4 = vld [vmem:[#allocation209_spill] sm:$0xff] }
 0x736   : > { %5865 = vmatpush.bf16.msra.mxu1 %v14897_v7  ;;  %5891 = vmatpush.bf16.msra.mxu3 %v14898_v14  ;;  %v14907_v7 = vld [vmem:[#allocation211_spill] sm:$0xff]  ;;  %v14908_v14 = vld [vmem:[#allocation213_spill] sm:$0xff] }
 0x738   : > { %5898 = vmatpush.bf16.msrb.mxu0 %v14895_v8  ;;  %5924 = vmatpush.bf16.msrb.mxu2 %v14896_v17  ;;  %v5659_v8 = vpop.f32.mrf.mxu1  ;;  %v5672_v17 = vpop.f32.mrf.mxu2 }
 0x739   : > { %5866 = vmatmul.bf16.vlgmr.msra.gmra.mxu1 %v12296_v59  ;;  %5892 = vmatmul.bf16.vlgmr.msra.gmra.mxu3 %v12296_v59 }
 0x73a   : > { %5910 = vmatpush.bf16.msrb.mxu1 %v14899_v11  ;;  %5936 = vmatpush.bf16.msrb.mxu3 %v14900_v48  ;;  %v5660_v11 = vadd.f32 %v5659_v8, %v5646_v27  ;;  %v5648_v48 = vpop.f32.mrf.mxu0  ;;  %v14914_v27 = vld [vmem:[#allocation221_spill] sm:$0xff]  ;;  %v14916_v8 = vld [vmem:[#allocation231_spill] sm:$0xff] }
 0x73b   : > { %v14918_v48 = vld [vmem:[#allocation227_spill] sm:$0xff] }
 0x73c   : > { %5899 = vmatpush.bf16.msrb.mxu0 %v14901_v42  ;;  %5925 = vmatpush.bf16.msrb.mxu2 %v14902_v1  ;;  %6307 = vst [vmem:[#allocation3 + $0x30] sm:$0xff] %v5660_v11  ;;  %v14909_v42 = vld [vmem:[#allocation220_spill] sm:$0xff]  ;;  %v14910_v1 = vld [vmem:[#allocation215_spill] sm:$0xff]  ;;  %v14917_v11 = vld [vmem:[#allocation225_spill] sm:$0xff] }
 0x73e   : > { %5911 = vmatpush.bf16.msrb.mxu1 %v14903_v18  ;;  %5937 = vmatpush.bf16.msrb.mxu3 %v14904_v4  ;;  %v14911_v18 = vld [vmem:[#allocation217_spill] sm:$0xff]  ;;  %v5685_v4 = vpop.f32.mrf.mxu3 }
 0x740   : > { %5900 = vmatpush.bf16.msrb.mxu0 %v14905_v38  ;;  %5926 = vmatpush.bf16.msrb.mxu2 %v14906_v6  ;;  %v5686_v38 = vadd.f32 %v5685_v4, %v5672_v17  ;;  %v14912_v6 = vld [vmem:[#allocation226_spill] sm:$0xff]  ;;  %v5674_v23 = vpop.f32.mrf.mxu2  ;;  %v14924_v4 = vld [vmem:[#allocation232_spill] sm:$0xff] }
 0x741   : > { %v14922_v23 = vld [vmem:[#allocation242_spill] sm:$0xff] }
 0x742   : > { %5912 = vmatpush.bf16.msrb.mxu1 %v14907_v7  ;;  %5938 = vmatpush.bf16.msrb.mxu3 %v14908_v14  ;;  %v5661_v7 = vpop.f32.mrf.mxu1  ;;  %v14913_v14 = vld [vmem:[#allocation219_spill] sm:$0xff]  ;;  %6308 = vst [vmem:[#allocation3] sm:$0xff] %v5686_v38  ;;  %v14925_v38 = vld [vmem:[#allocation244_spill] sm:$0xff] }
 0x743   : > { %v14927_v7 = vld [vmem:[#allocation235_spill] sm:$0xff] }
 0x744   : > { %5901 = vmatpush.bf16.msrb.mxu0 %v14165_v10  ;;  %5927 = vmatpush.bf16.msrb.mxu2 %v14909_v42  ;;  %v14915_v10 = vld [vmem:[#allocation228_spill] sm:$0xff]  ;;  %v14919_v42 = vld [vmem:[#allocation234_spill] sm:$0xff] }
 0x746   : > { %5913 = vmatpush.bf16.msrb.mxu1 %v14910_v1  ;;  %5939 = vmatpush.bf16.msrb.mxu3 %v14911_v18  ;;  %v5687_v17 = vpop.f32.mrf.mxu3  ;;  %v14921_v1 = vld [vmem:[#allocation240_spill] sm:$0xff]  ;;  %v14923_v18 = vld [vmem:[#allocation229_spill] sm:$0xff] }
 0x747   : > { %v14933_v17 = vld [vmem:[#allocation245_spill] sm:$0xff] }
 0x748   : > { %5902 = vmatpush.bf16.msrb.mxu0 %v14541_v21  ;;  %5928 = vmatpush.bf16.msrb.mxu2 %v14912_v6  ;;  %v14920_v21 = vld [vmem:[#allocation237_spill] sm:$0xff]  ;;  %v14926_v6 = vld [vmem:[#allocation247_spill] sm:$0xff] }
 0x74a   : > { %5914 = vmatpush.bf16.msrb.mxu1 %v14913_v14  ;;  %5940 = vmatpush.bf16.msrb.mxu3 %v14914_v27  ;;  %v14928_v14 = vld [vmem:[#allocation238_spill] sm:$0xff]  ;;  %v14929_v27 = vld [vmem:[#allocation241_spill] sm:$0xff] }
 0x74c   : > { %5903 = vmatpush.bf16.msrb.mxu0 %v14915_v10  ;;  %5929 = vmatpush.bf16.msrb.mxu2 %v14916_v8  ;;  %v14930_v10 = vld [vmem:[#allocation243_spill] sm:$0xff] }
 0x74e   : > { %5915 = vmatpush.bf16.msrb.mxu1 %v14917_v11  ;;  %5941 = vmatpush.bf16.msrb.mxu3 %v14918_v48  ;;  %v14931_v11 = vld [vmem:[#allocation250_spill] sm:$0xff]  ;;  %v14932_v48 = vld [vmem:[#allocation252_spill] sm:$0xff] }
 0x750   : > { %5904 = vmatpush.bf16.msrb.mxu0 %v14919_v42  ;;  %5930 = vmatpush.bf16.msrb.mxu2 %v14920_v21  ;;  %v5698_v8 = vpop.f32.mrf.mxu0  ;;  %v14934_v42 = vld [vmem:[#allocation248_spill] sm:$0xff]  ;;  %v14935_v21 = vld [vmem:[#allocation254_spill] sm:$0xff] }
 0x752   : > { %5916 = vmatpush.bf16.msrb.mxu1 %v14923_v18  ;;  %5942 = vmatpush.bf16.msrb.mxu3 %v14924_v4  ;;  %v14937_v4 = vld [vmem:[#allocation251_spill] sm:$0xff] }
 0x753   : > { %5905 = vmatmul.bf16.vlgmr.msrb.gmra.mxu0 %v12282_v47  ;;  %5931 = vmatmul.bf16.vlgmr.msrb.gmra.mxu2 %v12282_v47 }
 0x754   : > { %5949 = vmatpush.bf16.msra.mxu0 %v14921_v1  ;;  %5975 = vmatpush.bf16.msra.mxu2 %v14922_v23  ;;  %v14936_v1 = vld [vmem:[#allocation256_spill] sm:$0xff] }
 0x756   : > { %5917 = vmatpush.bf16.msrb.mxu1 %v14927_v7  ;;  %5943 = vmatpush.bf16.msrb.mxu3 %v14928_v14  ;;  %v5711_v23 = vpop.f32.mrf.mxu1  ;;  %v5724_v18 = vpop.f32.mrf.mxu2  ;;  %v14939_v14 = vld [vmem:[#allocation258_spill] sm:$0xff] }
 0x758   : > { %5950 = vmatpush.bf16.msra.mxu0 %v14925_v38  ;;  %5976 = vmatpush.bf16.msra.mxu2 %v14926_v6  ;;  %v14938_v38 = vld [vmem:[#allocation253_spill] sm:$0xff]  ;;  %v5712_v6 = vadd.f32 %v5711_v23, %v5698_v8  ;;  %v5700_v7 = vpop.f32.mrf.mxu0  ;;  %v14947_v23 = vld [vmem:[#allocation266_spill] sm:$0xff] }
 0x759   : > { %5918 = vmatmul.bf16.vlgmr.msrb.gmra.mxu1 %v12296_v59  ;;  %5944 = vmatmul.bf16.vlgmr.msrb.gmra.mxu3 %v12296_v59  ;;  %v14946_v8 = vld [vmem:[#allocation261_spill] sm:$0xff]  ;;  %v14949_v7 = vld [vmem:[#allocation263_spill] sm:$0xff] }
 0x75a   : > { %5962 = vmatpush.bf16.msra.mxu1 %v14929_v27  ;;  %5988 = vmatpush.bf16.msra.mxu3 %v14930_v10  ;;  %6309 = vst [vmem:[#allocation3 + $0x18] sm:$0xff] %v5712_v6  ;;  %v14940_v27 = vld [vmem:[#allocation260_spill] sm:$0xff]  ;;  %v14941_v10 = vld [vmem:[#allocation255_spill] sm:$0xff] }
 0x75b   : > { %v14948_v6 = vld [vmem:[#allocation268_spill] sm:$0xff] }
 0x75c   : > { %5951 = vmatpush.bf16.msra.mxu0 %v14931_v11  ;;  %5977 = vmatpush.bf16.msra.mxu2 %v14932_v48  ;;  %v14942_v11 = vld [vmem:[#allocation257_spill] sm:$0xff]  ;;  %v5737_v48 = vpop.f32.mrf.mxu3 }
 0x75e   : > { %5963 = vmatpush.bf16.msra.mxu1 %v14933_v17  ;;  %5989 = vmatpush.bf16.msra.mxu3 %v14934_v42  ;;  %v5738_v17 = vadd.f32 %v5737_v48, %v5724_v18  ;;  %v14943_v42 = vld [vmem:[#allocation262_spill] sm:$0xff]  ;;  %v14954_v48 = vld [vmem:[#allocation276_spill] sm:$0xff] }
 0x760   : > { %5952 = vmatpush.bf16.msra.mxu0 %v14935_v21  ;;  %5978 = vmatpush.bf16.msra.mxu2 %v14936_v1  ;;  %v14944_v21 = vld [vmem:[#allocation264_spill] sm:$0xff]  ;;  %v5713_v1 = vpop.f32.mrf.mxu1  ;;  %6310 = vst [vmem:[#allocation3 + $0x10] sm:$0xff] %v5738_v17  ;;  %v14956_v17 = vld [vmem:[#allocation269_spill] sm:$0xff] }
 0x761   : > { %v14958_v1 = vld [vmem:[#allocation280_spill] sm:$0xff] }
 0x762   : > { %5964 = vmatpush.bf16.msra.mxu1 %v14937_v4  ;;  %5990 = vmatpush.bf16.msra.mxu3 %v14938_v38  ;;  %v5726_v4 = vpop.f32.mrf.mxu2  ;;  %v14945_v38 = vld [vmem:[#allocation259_spill] sm:$0xff] }
 0x763   : > { %v14959_v4 = vld [vmem:[#allocation271_spill] sm:$0xff] }
 0x764   : > { %5953 = vmatpush.bf16.msra.mxu0 %v14939_v14  ;;  %5979 = vmatpush.bf16.msra.mxu2 %v14940_v27  ;;  %v14950_v14 = vld [vmem:[#allocation265_spill] sm:$0xff]  ;;  %v5739_v18 = vpop.f32.mrf.mxu3  ;;  %v14951_v27 = vld [vmem:[#allocation270_spill] sm:$0xff] }
 0x765   : > { %v14965_v18 = vld [vmem:[#allocation279_spill] sm:$0xff] }
 0x766   : > { %5965 = vmatpush.bf16.msra.mxu1 %v14941_v10  ;;  %5991 = vmatpush.bf16.msra.mxu3 %v14942_v11  ;;  %v14952_v10 = vld [vmem:[#allocation272_spill] sm:$0xff]  ;;  %v14953_v11 = vld [vmem:[#allocation274_spill] sm:$0xff] }
 0x768   : > { %5954 = vmatpush.bf16.msra.mxu0 %v14943_v42  ;;  %5980 = vmatpush.bf16.msra.mxu2 %v14944_v21  ;;  %v14955_v42 = vld [vmem:[#allocation267_spill] sm:$0xff]  ;;  %v14957_v21 = vld [vmem:[#allocation278_spill] sm:$0xff] }
 0x76a   : > { %5966 = vmatpush.bf16.msra.mxu1 %v14945_v38  ;;  %5992 = vmatpush.bf16.msra.mxu3 %v14946_v8  ;;  %v14960_v38 = vld [vmem:[#allocation273_spill] sm:$0xff]  ;;  %v14961_v8 = vld [vmem:[#allocation275_spill] sm:$0xff] }
 0x76c   : > { %5955 = vmatpush.bf16.msra.mxu0 %v14947_v23  ;;  %5981 = vmatpush.bf16.msra.mxu2 %v14948_v6  ;;  %v14962_v23 = vld [vmem:[#allocation277_spill] sm:$0xff] }
 0x76e   : > { %5967 = vmatpush.bf16.msra.mxu1 %v14949_v7  ;;  %5993 = vmatpush.bf16.msra.mxu3 %v14950_v14  ;;  %v14963_v7 = vld [vmem:[#allocation282_spill] sm:$0xff]  ;;  %v14964_v14 = vld [vmem:[#allocation284_spill] sm:$0xff] }
 0x770   : > { %5956 = vmatpush.bf16.msra.mxu0 %v14951_v27  ;;  %5982 = vmatpush.bf16.msra.mxu2 %v14952_v10  ;;  %v5750_v6 = vpop.f32.mrf.mxu0  ;;  %v14966_v27 = vld [vmem:[#allocation281_spill] sm:$0xff]  ;;  %v14967_v10 = vld [vmem:[#allocation286_spill] sm:$0xff] }
 0x772   : > { %5968 = vmatpush.bf16.msra.mxu1 %v14955_v42  ;;  %5994 = vmatpush.bf16.msra.mxu3 %v14956_v17  ;;  %v14969_v17 = vld [vmem:[#allocation283_spill] sm:$0xff] }
 0x773   : > { %5957 = vmatmul.bf16.vlgmr.msra.gmra.mxu0 %v12282_v47  ;;  %5983 = vmatmul.bf16.vlgmr.msra.gmra.mxu2 %v12282_v47 }
 0x774   : > { %6001 = vmatpush.bf16.msrb.mxu0 %v14953_v11  ;;  %6027 = vmatpush.bf16.msrb.mxu2 %v14954_v48  ;;  %v14968_v11 = vld [vmem:[#allocation288_spill] sm:$0xff] }
 0x776   : > { %5969 = vmatpush.bf16.msra.mxu1 %v14959_v4  ;;  %5995 = vmatpush.bf16.msra.mxu3 %v14960_v38  ;;  %v5763_v48 = vpop.f32.mrf.mxu1  ;;  %v5776_v42 = vpop.f32.mrf.mxu2  ;;  %v14971_v38 = vld [vmem:[#allocation290_spill] sm:$0xff] }
 0x778   : > { %6002 = vmatpush.bf16.msrb.mxu0 %v14957_v21  ;;  %6028 = vmatpush.bf16.msrb.mxu2 %v14958_v1  ;;  %v14970_v21 = vld [vmem:[#allocation285_spill] sm:$0xff]  ;;  %v5764_v1 = vadd.f32 %v5763_v48, %v5750_v6  ;;  %v5752_v4 = vpop.f32.mrf.mxu0  ;;  %v14979_v48 = vld [vmem:[#allocation298_spill] sm:$0xff] }
 0x779   : > { %5970 = vmatmul.bf16.vlgmr.msra.gmra.mxu1 %v12296_v59  ;;  %5996 = vmatmul.bf16.vlgmr.msra.gmra.mxu3 %v12296_v59  ;;  %v14978_v6 = vld [vmem:[#allocation293_spill] sm:$0xff]  ;;  %v14981_v4 = vld [vmem:[#allocation295_spill] sm:$0xff] }
 0x77a   : > { %6014 = vmatpush.bf16.msrb.mxu1 %v14961_v8  ;;  %6040 = vmatpush.bf16.msrb.mxu3 %v14962_v23  ;;  %6311 = vst [vmem:[#allocation3 + $0x8] sm:$0xff] %v5764_v1  ;;  %v14972_v8 = vld [vmem:[#allocation292_spill] sm:$0xff]  ;;  %v14973_v23 = vld [vmem:[#allocation287_spill] sm:$0xff] }
 0x77b   : > { %v14980_v1 = vld [vmem:[#allocation300_spill] sm:$0xff] }
 0x77c   : > { %6003 = vmatpush.bf16.msrb.mxu0 %v14963_v7  ;;  %6029 = vmatpush.bf16.msrb.mxu2 %v14964_v14  ;;  %v14974_v7 = vld [vmem:[#allocation289_spill] sm:$0xff]  ;;  %v5789_v14 = vpop.f32.mrf.mxu3 }
 0x77e   : > { %6015 = vmatpush.bf16.msrb.mxu1 %v14965_v18  ;;  %6041 = vmatpush.bf16.msrb.mxu3 %v14966_v27  ;;  %v5790_v18 = vadd.f32 %v5789_v14, %v5776_v42  ;;  %v14975_v27 = vld [vmem:[#allocation294_spill] sm:$0xff]  ;;  %v14986_v14 = vld [vmem:[#allocation301_spill] sm:$0xff] }
 0x780   : > { %6004 = vmatpush.bf16.msrb.mxu0 %v14967_v10  ;;  %6030 = vmatpush.bf16.msrb.mxu2 %v14968_v11  ;;  %v14976_v10 = vld [vmem:[#allocation296_spill] sm:$0xff]  ;;  %v5765_v11 = vpop.f32.mrf.mxu1  ;;  %6312 = vst [vmem:[#allocation3 + $0x20] sm:$0xff] %v5790_v18  ;;  %v14988_v18 = vld [vmem:[#allocation307_spill] sm:$0xff] }
 0x781   : > { %v14990_v11 = vld [vmem:[#allocation305_spill] sm:$0xff] }
 0x782   : > { %6016 = vmatpush.bf16.msrb.mxu1 %v14969_v17  ;;  %6042 = vmatpush.bf16.msrb.mxu3 %v14970_v21  ;;  %v5778_v17 = vpop.f32.mrf.mxu2  ;;  %v14977_v21 = vld [vmem:[#allocation291_spill] sm:$0xff] }
 0x783   : > { %v14991_v17 = vld [vmem:[#allocation308_spill] sm:$0xff] }
 0x784   : > { %6005 = vmatpush.bf16.msrb.mxu0 %v14971_v38  ;;  %6031 = vmatpush.bf16.msrb.mxu2 %v14972_v8  ;;  %v14982_v38 = vld [vmem:[#allocation297_spill] sm:$0xff]  ;;  %v5791_v42 = vpop.f32.mrf.mxu3  ;;  %v14983_v8 = vld [vmem:[#allocation302_spill] sm:$0xff] }
 0x785   : > { %v14998_v42 = vld [vmem:[#allocation315_spill] sm:$0xff] }
 0x786   : > { %6017 = vmatpush.bf16.msrb.mxu1 %v14973_v23  ;;  %6043 = vmatpush.bf16.msrb.mxu3 %v14974_v7  ;;  %v14984_v23 = vld [vmem:[#allocation304_spill] sm:$0xff]  ;;  %v14985_v7 = vld [vmem:[#allocation299_spill] sm:$0xff] }
 0x788   : > { %6006 = vmatpush.bf16.msrb.mxu0 %v14975_v27  ;;  %6032 = vmatpush.bf16.msrb.mxu2 %v14976_v10  ;;  %v14987_v27 = vld [vmem:[#allocation306_spill] sm:$0xff]  ;;  %v14989_v10 = vld [vmem:[#allocation303_spill] sm:$0xff] }
 0x78a   : > { %6018 = vmatpush.bf16.msrb.mxu1 %v14977_v21  ;;  %6044 = vmatpush.bf16.msrb.mxu3 %v14978_v6  ;;  %v14992_v21 = vld [vmem:[#allocation309_spill] sm:$0xff]  ;;  %v14993_v6 = vld [vmem:[#allocation310_spill] sm:$0xff] }
 0x78c   : > { %6007 = vmatpush.bf16.msrb.mxu0 %v14979_v48  ;;  %6033 = vmatpush.bf16.msrb.mxu2 %v14980_v1  ;;  %v14994_v48 = vld [vmem:[#allocation311_spill] sm:$0xff] }
 0x78e   : > { %6019 = vmatpush.bf16.msrb.mxu1 %v14981_v4  ;;  %6045 = vmatpush.bf16.msrb.mxu3 %v14982_v38  ;;  %v14995_v4 = vld [vmem:[#allocation312_spill] sm:$0xff]  ;;  %v14997_v38 = vld [vmem:[#allocation314_spill] sm:$0xff] }
 0x790   : > { %6008 = vmatpush.bf16.msrb.mxu0 %v14983_v8  ;;  %6034 = vmatpush.bf16.msrb.mxu2 %v14984_v23  ;;  %v5802_v1 = vpop.f32.mrf.mxu0 }
 0x792   : > { %6020 = vmatpush.bf16.msrb.mxu1 %v14985_v7  ;;  %6046 = vmatpush.bf16.msrb.mxu3 %v14986_v14  ;;  %v14999_v7 = vld [vmem:[#allocation316_spill] sm:$0xff]  ;;  %v15000_v14 = vld [vmem:[#allocation317_spill] sm:$0xff] }
 0x793   : > { %6009 = vmatmul.bf16.vlgmr.msrb.gmra.mxu0 %v12282_v47  ;;  %6035 = vmatmul.bf16.vlgmr.msrb.gmra.mxu2 %v12282_v47  ;;  %v14996_v47 = vld [vmem:[#allocation313_spill] sm:$0xff] }
 0x794   : > { %6099 = vmatpush.bf16.msra.mxu0 %v14987_v27  ;;  %6125 = vmatpush.bf16.msra.mxu2 %v14988_v18  ;;  %v15001_v18 = vld [vmem:[#allocation319_spill] sm:$0xff] }
 0x796   : > { %6021 = vmatpush.bf16.msrb.mxu1 %v14989_v10  ;;  %6047 = vmatpush.bf16.msrb.mxu3 %v14990_v11  ;;  %v5815_v8 = vpop.f32.mrf.mxu1  ;;  %v5828_v23 = vpop.f32.mrf.mxu2  ;;  %v15002_v10 = vld [vmem:[#allocation320_spill] sm:$0xff]  ;;  %v15003_v11 = vld [vmem:[#allocation321_spill] sm:$0xff] }
 0x797   : > { %v5816_v27 = vadd.f32 %v5815_v8, %v5802_v1  ;;  %v15006_v1 = vld [vmem:[#allocation325_spill] sm:$0xff] }
 0x798   : > { %6100 = vmatpush.bf16.msra.mxu0 %v14991_v17  ;;  %6126 = vmatpush.bf16.msra.mxu2 %v14992_v21  ;;  %v15004_v17 = vld [vmem:[#allocation322_spill] sm:$0xff]  ;;  %v15005_v21 = vld [vmem:[#allocation323_spill] sm:$0xff]  ;;  %v15010_v8 = vld [vmem:[#allocation329_spill] sm:$0xff] }
 0x799   : > { %6022 = vmatmul.bf16.vlgmr.msrb.gmra.mxu1 %v12296_v59  ;;  %6048 = vmatmul.bf16.vlgmr.msrb.gmra.mxu3 %v12296_v59  ;;  %v5804_v59 = vpop.f32.mrf.mxu0  ;;  %6313 = vst [vmem:[#allocation3 + $0x28] sm:$0xff] %v5816_v27  ;;  %v15013_v27 = vld [vmem:[#allocation332_spill] sm:$0xff] }
 0x79a   : > { %6112 = vmatpush.bf16.msra.mxu1 %v14993_v6  ;;  %6138 = vmatpush.bf16.msra.mxu3 %v14994_v48  ;;  %v15016_v59 = vld [vmem:[#allocation335_spill] sm:$0xff] }
 0x79c   : > { %6101 = vmatpush.bf16.msra.mxu0 %v14995_v4  ;;  %6127 = vmatpush.bf16.msra.mxu2 %v14996_v47  ;;  %v5841_v6 = vpop.f32.mrf.mxu3 }
 0x79d   : > { %v5842_v48 = vadd.f32 %v5841_v6, %v5828_v23  ;;  %v15021_v6 = vld [vmem:[#allocation340_spill] sm:$0xff] }
 0x79e   : > { %6113 = vmatpush.bf16.msra.mxu1 %v14997_v38  ;;  %6139 = vmatpush.bf16.msra.mxu3 %v14998_v42  ;;  %v5817_v4 = vpop.f32.mrf.mxu1  ;;  %v5830_v47 = vpop.f32.mrf.mxu2  ;;  %v15008_v38 = vld [vmem:[#allocation327_spill] sm:$0xff]  ;;  %v15009_v42 = vld [vmem:[#allocation328_spill] sm:$0xff] }
 0x79f   : > { %6314 = vst [vmem:[#allocation3 + $0x38] sm:$0xff] %v5842_v48  ;;  %v15022_v48 = vld [vmem:[#allocation341_spill] sm:$0xff]  ;;  %v15023_v4 = vld [vmem:[#allocation342_spill] sm:$0xff]  ;;  %v15024_v47 = vld [vmem:[#allocation343_spill] sm:$0xff] }
 0x7a0   : > { %6102 = vmatpush.bf16.msra.mxu0 %v14999_v7  ;;  %6128 = vmatpush.bf16.msra.mxu2 %v15000_v14  ;;  %v15011_v7 = vld [vmem:[#allocation330_spill] sm:$0xff]  ;;  %v15012_v14 = vld [vmem:[#allocation331_spill] sm:$0xff] }
 0x7a2   : > { %6114 = vmatpush.bf16.msra.mxu1 %v14633_v5  ;;  %6140 = vmatpush.bf16.msra.mxu3 %v15001_v18  ;;  %v15007_v5 = vld [vmem:[#allocation326_spill] sm:$0xff]  ;;  %v15014_v18 = vld [vmem:[#allocation333_spill] sm:$0xff] }
 0x7a4   : > { %6103 = vmatpush.bf16.msra.mxu0 %v15002_v10  ;;  %6129 = vmatpush.bf16.msra.mxu2 %v15003_v11  ;;  %v5843_v23 = vpop.f32.mrf.mxu3  ;;  %v15017_v10 = vld [vmem:[#allocation336_spill] sm:$0xff]  ;;  %v15018_v11 = vld [vmem:[#allocation337_spill] sm:$0xff] }
 0x7a6   : > { %6115 = vmatpush.bf16.msra.mxu1 %v15004_v17  ;;  %6141 = vmatpush.bf16.msra.mxu3 %v15005_v21  ;;  %v15019_v17 = vld [vmem:[#allocation338_spill] sm:$0xff]  ;;  %v15020_v21 = vld [vmem:[#allocation339_spill] sm:$0xff] }
 0x7a8   : > { %6104 = vmatpush.bf16.msra.mxu0 %v14642_v57  ;;  %6130 = vmatpush.bf16.msra.mxu2 %v15006_v1  ;;  %v15015_v57 = vld [vmem:[#allocation334_spill] sm:$0xff] }
 0x7aa   : > { %6116 = vmatpush.bf16.msra.mxu1 %v15007_v5  ;;  %6142 = vmatpush.bf16.msra.mxu3 %v15008_v38  ;;  %v15025_v5 = vld [vmem:[#allocation344_spill] sm:$0xff]  ;;  %v15026_v38 = vld [vmem:[#allocation345_spill] sm:$0xff] }
 0x7ac   : > { %6105 = vmatpush.bf16.msra.mxu0 %v15009_v42  ;;  %6131 = vmatpush.bf16.msra.mxu2 %v15010_v8  ;;  %v15027_v42 = vld [vmem:[#allocation346_spill] sm:$0xff]  ;;  %v15028_v8 = vld [vmem:[#allocation347_spill] sm:$0xff] }
 0x7ae   : > { %6117 = vmatpush.bf16.msra.mxu1 %v15011_v7  ;;  %6143 = vmatpush.bf16.msra.mxu3 %v15012_v14  ;;  %v15029_v7 = vld [vmem:[#allocation348_spill] sm:$0xff]  ;;  %v15030_v14 = vld [vmem:[#allocation349_spill] sm:$0xff] }
 0x7b0   : > { %6106 = vmatpush.bf16.msra.mxu0 %v15013_v27  ;;  %6132 = vmatpush.bf16.msra.mxu2 %v15014_v18  ;;  %v5854_v1 = vpop.f32.mrf.mxu0 }
 0x7b2   : > { %6118 = vmatpush.bf16.msra.mxu1 %v15017_v10  ;;  %6144 = vmatpush.bf16.msra.mxu3 %v15018_v11 }
 0x7b4   : > { %6151 = vmatpush.bf16.msrb.mxu0 %v15015_v57  ;;  %6177 = vmatpush.bf16.msrb.mxu2 %v15016_v59  ;;  %v15031_v57 = vld [vmem:[#allocation350_spill] sm:$0xff]  ;;  %v15032_v59 = vld [vmem:[#allocation351_spill] sm:$0xff] }
 0x7b6   : > { %6119 = vmatpush.bf16.msra.mxu1 %v15021_v6  ;;  %6145 = vmatpush.bf16.msra.mxu3 %v15022_v48  ;;  %v5867_v23 = vpop.f32.mrf.mxu1  ;;  %v5880_v27 = vpop.f32.mrf.mxu2  ;;  %v15035_v6 = vld [vmem:[#allocation354_spill] sm:$0xff]  ;;  %v15036_v48 = vld [vmem:[#allocation355_spill] sm:$0xff] }
 0x7b7   : > { %v5868_v18 = vadd.f32 %v5867_v23, %v5854_v1  ;;  %v15038_v1 = vld [vmem:[#allocation357_spill] sm:$0xff] }
 0x7b8   : > { %6152 = vmatpush.bf16.msrb.mxu0 %v15019_v17  ;;  %6178 = vmatpush.bf16.msrb.mxu2 %v15020_v21  ;;  %v5856_v10 = vpop.f32.mrf.mxu0  ;;  %v15033_v17 = vld [vmem:[#allocation352_spill] sm:$0xff]  ;;  %v15034_v21 = vld [vmem:[#allocation353_spill] sm:$0xff] }
 0x7b9   : > { %v6053_v11 = vadd.f32 %v5868_v18, %v12345_v45  ;;  %v15040_v45 = vld [vmem:[#allocation359_spill] sm:$0xff]  ;;  %v15042_v23 = vld [vmem:[#allocation361_spill] sm:$0xff]  ;;  %v15043_v18 = vld [vmem:[#allocation362_spill] sm:$0xff] }
 0x7ba   : > { %6164 = vmatpush.bf16.msrb.mxu1 %v15023_v4  ;;  %6190 = vmatpush.bf16.msrb.mxu3 %v15024_v47  ;;  %v15046_v10 = vld [vmem:[#allocation365_spill] sm:$0xff] }
 0x7bb   : > { %v6061_v24 = vmul.f32 0.5, %v6053_v11 }
 0x7bc   : > { %6153 = vmatpush.bf16.msrb.mxu0 %v15025_v5  ;;  %6179 = vmatpush.bf16.msrb.mxu2 %v15026_v38  ;;  %v5893_v4 = vpop.f32.mrf.mxu3  ;;  %v15037_v5 = vld [vmem:[#allocation356_spill] sm:$0xff] }
 0x7bd   : > { %v5894_v47 = vadd.f32 %v5893_v4, %v5880_v27 }
 0x7be   : > { %6165 = vmatpush.bf16.msrb.mxu1 %v15027_v42  ;;  %6191 = vmatpush.bf16.msrb.mxu3 %v15028_v8  ;;  %v5869_v38 = vpop.f32.mrf.mxu1  ;;  %v5882_v42 = vpop.f32.mrf.mxu2 }
 0x7bf   : > { %v6054_v8 = vadd.f32 %v5894_v47, %v12354_v39  ;;  %v15048_v39 = vld [vmem:[#allocation367_spill] sm:$0xff] }
 0x7c0   : > { %6154 = vmatpush.bf16.msrb.mxu0 %v15029_v7  ;;  %6180 = vmatpush.bf16.msrb.mxu2 %v15030_v14  ;;  %v15039_v7 = vld [vmem:[#allocation358_spill] sm:$0xff]  ;;  %v15041_v14 = vld [vmem:[#allocation360_spill] sm:$0xff] }
 0x7c1   : > { %v6062_v25 = vmul.f32 0.5, %v6054_v8 }
 0x7c2   : > { %6166 = vmatpush.bf16.msrb.mxu1 %v15031_v57  ;;  %6192 = vmatpush.bf16.msrb.mxu3 %v15032_v59  ;;  %v15044_v57 = vld [vmem:[#allocation363_spill] sm:$0xff]  ;;  %v15045_v59 = vld [vmem:[#allocation364_spill] sm:$0xff] }
 0x7c4   : > { %6155 = vmatpush.bf16.msrb.mxu0 %v15033_v17  ;;  %6181 = vmatpush.bf16.msrb.mxu2 %v15034_v21  ;;  %v5895_v27 = vpop.f32.mrf.mxu3  ;;  %v15047_v17 = vld [vmem:[#allocation366_spill] sm:$0xff]  ;;  %v15049_v21 = vld [vmem:[#allocation368_spill] sm:$0xff] }
 0x7c6   : > { %6167 = vmatpush.bf16.msrb.mxu1 %v15035_v6  ;;  %6193 = vmatpush.bf16.msrb.mxu3 %v15036_v48  ;;  %v15050_v6 = vld [vmem:[#allocation369_spill] sm:$0xff] }
 0x7c8   : > { %6156 = vmatpush.bf16.msrb.mxu0 %v15037_v5  ;;  %6182 = vmatpush.bf16.msrb.mxu2 %v15038_v1 }
 0x7ca   : > { %6168 = vmatpush.bf16.msrb.mxu1 %v15039_v7  ;;  %6194 = vmatpush.bf16.msrb.mxu3 %v15040_v45 }
 0x7cc   : > { %6157 = vmatpush.bf16.msrb.mxu0 %v15041_v14  ;;  %6183 = vmatpush.bf16.msrb.mxu2 %v15042_v23 }
 0x7ce   : > { %6169 = vmatpush.bf16.msrb.mxu1 %v15043_v18  ;;  %6195 = vmatpush.bf16.msrb.mxu3 %v15044_v57 }
 0x7d0   : > { %6158 = vmatpush.bf16.msrb.mxu0 %v15045_v59  ;;  %6184 = vmatpush.bf16.msrb.mxu2 %v15046_v10  ;;  %v5906_v48 = vpop.f32.mrf.mxu0 }
 0x7d2   : > { %6170 = vmatpush.bf16.msrb.mxu1 %v15047_v17  ;;  %6196 = vmatpush.bf16.msrb.mxu3 %v15048_v39 }
 0x7d6   : > { %6171 = vmatpush.bf16.msrb.mxu1 %v15049_v21  ;;  %6197 = vmatpush.bf16.msrb.mxu3 %v15050_v6  ;;  %v5919_v4 = vpop.f32.mrf.mxu1  ;;  %v5932_v47 = vpop.f32.mrf.mxu2 }
 0x7d7   : > { %v5920_v10 = vadd.f32 %v5919_v4, %v5906_v48 }
 0x7d8   : > { %v5908_v5 = vpop.f32.mrf.mxu0 }
 0x7d9   : > { %v6055_v39 = vadd.f32 %v5920_v10, %v12367_v51 }
 0x7db   : > { %v6063_v6 = vmul.f32 0.5, %v6055_v39 }
 0x7dc   : > { %v5945_v1 = vpop.f32.mrf.mxu3 }
 0x7dd   : > { %v5946_v21 = vadd.f32 %v5945_v1, %v5932_v47  ;;  %9241 = vtanh.f32 %v6063_v6 }
 0x7de   : > { %v5921_v38 = vpop.f32.mrf.mxu1  ;;  %v5934_v42 = vpop.f32.mrf.mxu2  ;;  %9243 = vtanh.f32 %v6061_v24 }
 0x7df   : > { %v6056_v5 = vadd.f32 %v5946_v21, %v12380_v37 }
 0x7e4   : > { %v5947_v7 = vpop.f32.mrf.mxu3 }
 0x7e5   : > { %v6064_v7 = vmul.f32 0.5, %v6056_v5 }
 0x7e7   : > { %9245 = vtanh.f32 %v6064_v7 }
 0x7e8   : > { %9247 = vtanh.f32 %v6062_v25 }
 0x7f0   : > { %v5958_v45 = vpop.f32.mrf.mxu0 }
 0x7f6   : > { %v5971_v14 = vpop.f32.mrf.mxu1  ;;  %v5984_v23 = vpop.f32.mrf.mxu2 }
 0x7f7   : > { %v5972_v42 = vadd.f32 %v5971_v14, %v5958_v45 }
 0x7f8   : > { %v5960_v18 = vpop.f32.mrf.mxu0 }
 0x7f9   : > { %v6057_v18 = vadd.f32 %v5972_v42, %v12395_v20 }
 0x7fb   : > { %v6065_v1 = vmul.f32 0.5, %v6057_v18 }
 0x7fc   : > { %v5997_v57 = vpop.f32.mrf.mxu3 }
 0x7fe   : > { %v5973_v27 = vpop.f32.mrf.mxu1  ;;  %v5986_v59 = vpop.f32.mrf.mxu2 }
 0x7ff   : > { %v9242_v27 = vpop.eup %9241  ;;  %v5998_v59 = vadd.f32 %v5997_v57, %v5984_v23 }
 0x800   : > { %v9244_v51 = vpop.eup %9243  ;;  %v6075_v37 = vadd.f32 1.0, %v9242_v27 }
 0x801   : > { %v6073_v45 = vadd.f32 1.0, %v9244_v51  ;;  %v6058_v24 = vadd.f32 %v5998_v59, %v12406_v30  ;;  %v9246_v14 = vpop.eup %9245 }
 0x802   : > { %v6081_v10 = vmul.f32 0.5, %v6075_v37  ;;  %v6076_v39 = vadd.f32 1.0, %v9246_v14 }
 0x803   : > { %v6079_v25 = vmul.f32 0.5, %v6073_v45 }
 0x804   : > { %v5999_v17 = vpop.f32.mrf.mxu3  ;;  %v6087_v5 = vmul.f32 %v6081_v10, %v12161_v36  ;;  %v6082_v42 = vmul.f32 0.5, %v6076_v39  ;;  %v15083_v10 = vld [vmem:[#allocation435_spill] sm:$0xff] }
 0x810   : > { %v6010_v38 = vpop.f32.mrf.mxu0 }
 0x816   : > { %v6023_v53 = vpop.f32.mrf.mxu1  ;;  %v6036_v4 = vpop.f32.mrf.mxu2 }
 0x817   : > { %v6024_v48 = vadd.f32 %v6023_v53, %v6010_v38  ;;  %v9248_v53 = vpop.eup %9247 }
 0x818   : > { %v6012_v47 = vpop.f32.mrf.mxu0  ;;  %v6074_v6 = vadd.f32 1.0, %v9248_v53  ;;  %v15084_v53 = vld [vmem:[#allocation436_spill] sm:$0xff] }
 0x819   : > { %v6059_v11 = vadd.f32 %v6024_v48, %v12437_v16  ;;  %v6066_v16 = vmul.f32 0.5, %v6058_v24 }
 0x81a   : > { %v6080_v27 = vmul.f32 0.5, %v6074_v6 }
 0x81b   : > { %9249 = vtanh.f32 %v6059_v11 }
 0x81c   : > { %v6049_v8 = vpop.f32.mrf.mxu3  ;;  %9251 = vtanh.f32 %v6065_v1 }
 0x81d   : > { %v6050_v20 = vadd.f32 %v6049_v8, %v6036_v4  ;;  %v6088_v4 = vmul.f32 %v6082_v42, %v12165_v46 }
 0x81e   : > { %v6025_v17 = vpop.f32.mrf.mxu1  ;;  %v6038_v57 = vpop.f32.mrf.mxu2 }
 0x81f   : > { %v6060_v23 = vadd.f32 %v6050_v20, %v12444_v26  ;;  %v15082_v20 = vld [vmem:[#allocation434_spill] sm:$0xff] }
 0x821   : > { %v9250_v21 = vpop.eup %9249  ;;  %9253 = vtanh.f32 %v6060_v23 }
 0x822   : > { %v6089_v38 = vmul.f32 %v9250_v21, %v6079_v25  ;;  %v9252_v30 = vpop.eup %9251  ;;  %9255 = vtanh.f32 %v6066_v16  ;;  %v15085_v21 = vld [vmem:[#allocation437_spill] sm:$0xff] }
 0x823   : > { %v6077_v26 = vadd.f32 1.0, %v9252_v30 }
 0x824   : > { %v6091_v7 = vadd.f32 %v6089_v38, %v6087_v5  ;;  %v6051_v18 = vpop.f32.mrf.mxu3 }
 0x825   : > { %v6083_v47 = vmul.f32 0.5, %v6077_v26 }
 0x826   : > { %9257 = vtanh.f32 %v6091_v7  ;;  %6327 = vst [vmem:[#allocation7 + $0x8] sm:$0xff] %v6091_v7 }
 0x827   : > { %v9254_v48 = vpop.eup %9253 }
 0x828   : > { %v6090_v59 = vmul.f32 %v9254_v48, %v6080_v27  ;;  %v9256_v51 = vpop.eup %9255  ;;  %v15086_v27 = vld [vmem:[#allocation438_spill] sm:$0xff] }
 0x829   : > { %v6078_v36 = vadd.f32 1.0, %v9256_v51 }
 0x82a   : > { %v6092_v11 = vadd.f32 %v6090_v59, %v6088_v4 }
 0x82b   : > { %v6084_v24 = vmul.f32 0.5, %v6078_v36 }
 0x82c   : > { %v9258_v37 = vpop.eup %9257  ;;  %9259 = vtanh.f32 %v6092_v11  ;;  %6328 = vst [vmem:[#allocation7] sm:$0xff] %v6092_v11  ;;  %v15087_v11 = vld [vmem:[#allocation439_spill] sm:$0xff] }
 0x82d   : > { %v6095_v1 = vmul.f32 %v9258_v37, %v6083_v47 }
 0x82f   : > { %v12646_v45 = vpack.c.bf16 %v6095_v1, %v6095_v1 }
 0x831   : > { %6107 = vmatmul.bf16.vlgmr.msra.gmra.mxu0 %v12646_v45  ;;  %6133 = vmatmul.bf16.vlgmr.msra.gmra.mxu2 %v12646_v45 }
 0x832   : > { %v9260_v8 = vpop.eup %9259  ;;  %6203 = vmatpush.bf16.msra.mxu0 %v14309_v3  ;;  %6229 = vmatpush.bf16.msra.mxu2 %v14310_v41  ;;  %v15051_v3 = vld [vmem:[#allocation403_spill] sm:$0xff]  ;;  %v15052_v41 = vld [vmem:[#allocation404_spill] sm:$0xff] }
 0x833   : > { %v6096_v46 = vmul.f32 %v9260_v8, %v6084_v24 }
 0x835   : > { %v12652_v14 = vpack.c.bf16 %v6096_v46, %v6096_v46 }
 0x836   : > { %6204 = vmatpush.bf16.msra.mxu0 %v14311_v61  ;;  %6230 = vmatpush.bf16.msra.mxu2 %v14312_v19  ;;  %v15053_v61 = vld [vmem:[#allocation405_spill] sm:$0xff]  ;;  %v15054_v19 = vld [vmem:[#allocation406_spill] sm:$0xff] }
 0x837   : > { %6120 = vmatmul.bf16.vlgmr.msra.gmra.mxu1 %v12652_v14  ;;  %6146 = vmatmul.bf16.vlgmr.msra.gmra.mxu3 %v12652_v14 }
 0x838   : > { %6216 = vmatpush.bf16.msra.mxu1 %v14313_v56  ;;  %6242 = vmatpush.bf16.msra.mxu3 %v14314_v28  ;;  %v15055_v56 = vld [vmem:[#allocation407_spill] sm:$0xff]  ;;  %v15056_v28 = vld [vmem:[#allocation408_spill] sm:$0xff] }
 0x83a   : > { %6205 = vmatpush.bf16.msra.mxu0 %v14315_v13  ;;  %6231 = vmatpush.bf16.msra.mxu2 %v14316_v12  ;;  %v15057_v13 = vld [vmem:[#allocation409_spill] sm:$0xff]  ;;  %v15058_v12 = vld [vmem:[#allocation410_spill] sm:$0xff] }
 0x83c   : > { %6217 = vmatpush.bf16.msra.mxu1 %v14317_v54  ;;  %6243 = vmatpush.bf16.msra.mxu3 %v14318_v58  ;;  %v15059_v54 = vld [vmem:[#allocation411_spill] sm:$0xff]  ;;  %v15060_v58 = vld [vmem:[#allocation412_spill] sm:$0xff] }
 0x83e   : > { %6206 = vmatpush.bf16.msra.mxu0 %v14319_v55  ;;  %6232 = vmatpush.bf16.msra.mxu2 %v14320_v29  ;;  %v15061_v55 = vld [vmem:[#allocation413_spill] sm:$0xff]  ;;  %v15062_v29 = vld [vmem:[#allocation414_spill] sm:$0xff] }
 0x840   : > { %6218 = vmatpush.bf16.msra.mxu1 %v14321_v31  ;;  %6244 = vmatpush.bf16.msra.mxu3 %v14322_v40  ;;  %v15063_v31 = vld [vmem:[#allocation415_spill] sm:$0xff]  ;;  %v15064_v40 = vld [vmem:[#allocation416_spill] sm:$0xff] }
 0x841   : > { %6159 = vmatmul.bf16.vlgmr.msrb.gmra.mxu0 %v12646_v45  ;;  %6185 = vmatmul.bf16.vlgmr.msrb.gmra.mxu2 %v12646_v45 }
 0x842   : > { %6207 = vmatpush.bf16.msra.mxu0 %v14323_v9  ;;  %6233 = vmatpush.bf16.msra.mxu2 %v14324_v44  ;;  %v15065_v9 = vld [vmem:[#allocation417_spill] sm:$0xff]  ;;  %v15066_v44 = vld [vmem:[#allocation418_spill] sm:$0xff] }
 0x844   : > { %6219 = vmatpush.bf16.msra.mxu1 %v14325_v34  ;;  %6245 = vmatpush.bf16.msra.mxu3 %v14688_v32  ;;  %v15067_v34 = vld [vmem:[#allocation419_spill] sm:$0xff]  ;;  %v15069_v32 = vld [vmem:[#allocation421_spill] sm:$0xff] }
 0x846   : > { %6208 = vmatpush.bf16.msra.mxu0 %v14689_v22  ;;  %6234 = vmatpush.bf16.msra.mxu2 %v14690_v33  ;;  %v15070_v22 = vld [vmem:[#allocation422_spill] sm:$0xff]  ;;  %v15071_v33 = vld [vmem:[#allocation423_spill] sm:$0xff] }
 0x847   : > { %6172 = vmatmul.bf16.vlgmr.msrb.gmra.mxu1 %v12652_v14  ;;  %6198 = vmatmul.bf16.vlgmr.msrb.gmra.mxu3 %v12652_v14 }
 0x848   : > { %6220 = vmatpush.bf16.msra.mxu1 %v14329_v50  ;;  %6246 = vmatpush.bf16.msra.mxu3 %v14691_v0  ;;  %v15068_v50 = vld [vmem:[#allocation420_spill] sm:$0xff] }
 0x849   : > { %v15072_v0 = vld [vmem:[#allocation424_spill] sm:$0xff] }
 0x84a   : > { %6209 = vmatpush.bf16.msra.mxu0 %v14692_v63  ;;  %6235 = vmatpush.bf16.msra.mxu2 %v14693_v15  ;;  %v15073_v63 = vld [vmem:[#allocation425_spill] sm:$0xff]  ;;  %v15074_v15 = vld [vmem:[#allocation426_spill] sm:$0xff] }
 0x84c   : > { %6221 = vmatpush.bf16.msra.mxu1 %v14694_v43  ;;  %6247 = vmatpush.bf16.msra.mxu3 %v14695_v2  ;;  %v15075_v43 = vld [vmem:[#allocation427_spill] sm:$0xff]  ;;  %v15076_v2 = vld [vmem:[#allocation428_spill] sm:$0xff] }
 0x84e   : > { %6210 = vmatpush.bf16.msra.mxu0 %v14696_v60  ;;  %6236 = vmatpush.bf16.msra.mxu2 %v14697_v52  ;;  %v15077_v60 = vld [vmem:[#allocation429_spill] sm:$0xff]  ;;  %v15078_v52 = vld [vmem:[#allocation430_spill] sm:$0xff] }
 0x850   : > { %6222 = vmatpush.bf16.msra.mxu1 %v14700_v35  ;;  %6248 = vmatpush.bf16.msra.mxu3 %v15051_v3  ;;  %v15081_v35 = vld [vmem:[#allocation433_spill] sm:$0xff]  ;;  %v15088_v3 = vld [vmem:[#allocation440_spill] sm:$0xff] }
 0x851   : > { %6211 = vmatmul.bf16.vlgmr.msra.gmra.mxu0 %v12646_v45  ;;  %6237 = vmatmul.bf16.vlgmr.msra.gmra.mxu2 %v12646_v45 }
 0x852   : > { %6255 = vmatpush.bf16.msrb.mxu0 %v14698_v62  ;;  %6281 = vmatpush.bf16.msrb.mxu2 %v14699_v49  ;;  %v15079_v62 = vld [vmem:[#allocation431_spill] sm:$0xff]  ;;  %v15080_v49 = vld [vmem:[#allocation432_spill] sm:$0xff] }
 0x854   : > { %6223 = vmatpush.bf16.msra.mxu1 %v15054_v19  ;;  %6249 = vmatpush.bf16.msra.mxu3 %v15055_v56 }
 0x856   : > { %6256 = vmatpush.bf16.msrb.mxu0 %v15052_v41  ;;  %6282 = vmatpush.bf16.msrb.mxu2 %v15053_v61 }
 0x857   : > { %6224 = vmatmul.bf16.vlgmr.msra.gmra.mxu1 %v12652_v14  ;;  %6250 = vmatmul.bf16.vlgmr.msra.gmra.mxu3 %v12652_v14 }
 0x858   : > { %6268 = vmatpush.bf16.msrb.mxu1 %v15056_v28  ;;  %6294 = vmatpush.bf16.msrb.mxu3 %v15057_v13  ;;  %v15089_v13 = vld [vmem:[#allocation441_spill] sm:$0xff] }
 0x85a   : > { %6257 = vmatpush.bf16.msrb.mxu0 %v15058_v12  ;;  %6283 = vmatpush.bf16.msrb.mxu2 %v15059_v54 }
 0x85c   : > { %6269 = vmatpush.bf16.msrb.mxu1 %v15060_v58  ;;  %6295 = vmatpush.bf16.msrb.mxu3 %v15061_v55 }
 0x85e   : > { %6258 = vmatpush.bf16.msrb.mxu0 %v15062_v29  ;;  %6284 = vmatpush.bf16.msrb.mxu2 %v15063_v31 }
 0x860   : > { %6270 = vmatpush.bf16.msrb.mxu1 %v15064_v40  ;;  %6296 = vmatpush.bf16.msrb.mxu3 %v15065_v9  ;;  %v15090_v9 = vld [vmem:[#allocation442_spill] sm:$0xff] }
 0x862   : > { %6259 = vmatpush.bf16.msrb.mxu0 %v15066_v44  ;;  %6285 = vmatpush.bf16.msrb.mxu2 %v15067_v34 }
 0x864   : > { %6271 = vmatpush.bf16.msrb.mxu1 %v15068_v50  ;;  %6297 = vmatpush.bf16.msrb.mxu3 %v15069_v32 }
 0x866   : > { %6260 = vmatpush.bf16.msrb.mxu0 %v15070_v22  ;;  %6286 = vmatpush.bf16.msrb.mxu2 %v15071_v33  ;;  %v15091_v33 = vld [vmem:[#allocation443_spill] sm:$0xff] }
 0x868   : > { %6272 = vmatpush.bf16.msrb.mxu1 %v15072_v0  ;;  %6298 = vmatpush.bf16.msrb.mxu3 %v15073_v63 }
 0x86a   : > { %6261 = vmatpush.bf16.msrb.mxu0 %v15074_v15  ;;  %6287 = vmatpush.bf16.msrb.mxu2 %v15075_v43 }
 0x86c   : > { %6273 = vmatpush.bf16.msrb.mxu1 %v15076_v2  ;;  %6299 = vmatpush.bf16.msrb.mxu3 %v15077_v60 }
 0x86e   : > { %6262 = vmatpush.bf16.msrb.mxu0 %v15078_v52  ;;  %6288 = vmatpush.bf16.msrb.mxu2 %v15079_v62 }
 0x870   : > { %6274 = vmatpush.bf16.msrb.mxu1 %v15080_v49  ;;  %6300 = vmatpush.bf16.msrb.mxu3 %v15081_v35 }
 0x871   : > { %6263 = vmatmul.bf16.vlgmr.msrb.gmra.mxu0 %v12646_v45  ;;  %6289 = vmatmul.bf16.vlgmr.msrb.gmra.mxu2 %v12646_v45 }
 0x874   : > { %6275 = vmatpush.bf16.msrb.mxu1 %v15082_v20  ;;  %6301 = vmatpush.bf16.msrb.mxu3 %v15083_v10 }
 0x877   : > { %6276 = vmatmul.bf16.vlgmr.msrb.gmra.mxu1 %v12652_v14  ;;  %6302 = vmatmul.bf16.vlgmr.msrb.gmra.mxu3 %v12652_v14 }
 0x8ae   : > { %v6108_v17 = vpop.f32.mrf.mxu0 }
 0x8af   : > { %v6109_v23 = vadd.f32 %v6108_v17, %v15084_v53 }
 0x8b4   : > { %v6121_v57 = vpop.f32.mrf.mxu1  ;;  %v6134_v25 = vpop.f32.mrf.mxu2 }
 0x8b5   : > { %v6122_v39 = vadd.f32 %v6121_v57, %v6109_v23  ;;  %v6135_v6 = vadd.f32 %v6134_v25, %v15085_v21 }
 0x8b6   : > { %v6110_v16 = vpop.f32.mrf.mxu0 }
 0x8b7   : > { %6315 = vst [vmem:[#allocation4] sm:$0xff] %v6122_v39 }
 0x8ba   : > { %v6147_v5 = vpop.f32.mrf.mxu3 }
 0x8bb   : > { %v6148_v38 = vadd.f32 %v6147_v5, %v6135_v6 }
 0x8bc   : > { %v6123_v30 = vpop.f32.mrf.mxu1  ;;  %v6136_v42 = vpop.f32.mrf.mxu2 }
 0x8bd   : > { %6316 = vst [vmem:[#allocation4 + $0x18] sm:$0xff] %v6148_v38 }
 0x8be   : > { %v6160_v7 = vpop.f32.mrf.mxu0 }
 0x8bf   : > { %v6161_v48 = vadd.f32 %v6160_v7, %v15086_v27 }
 0x8c2   : > { %v6149_v18 = vpop.f32.mrf.mxu3 }
 0x8c4   : > { %v6173_v26 = vpop.f32.mrf.mxu1  ;;  %v6186_v4 = vpop.f32.mrf.mxu2 }
 0x8c5   : > { %v6174_v59 = vadd.f32 %v6173_v26, %v6161_v48  ;;  %v6187_v47 = vadd.f32 %v6186_v4, %v15087_v11 }
 0x8c6   : > { %v6162_v51 = vpop.f32.mrf.mxu0 }
 0x8c7   : > { %6317 = vst [vmem:[#allocation4 + $0x10] sm:$0xff] %v6174_v59 }
 0x8ca   : > { %v6199_v37 = vpop.f32.mrf.mxu3 }
 0x8cb   : > { %v6200_v36 = vadd.f32 %v6199_v37, %v6187_v47 }
 0x8cc   : > { %v6175_v1 = vpop.f32.mrf.mxu1  ;;  %v6188_v24 = vpop.f32.mrf.mxu2 }
 0x8cd   : > { %6318 = vst [vmem:[#allocation4 + $0x20] sm:$0xff] %v6200_v36 }
 0x8ce   : > { %v6212_v8 = vpop.f32.mrf.mxu0 }
 0x8cf   : > { %v6213_v41 = vadd.f32 %v6212_v8, %v15088_v3 }
 0x8d2   : > { %v6201_v46 = vpop.f32.mrf.mxu3 }
 0x8d4   : > { %v6238_v61 = vpop.f32.mrf.mxu2  ;;  %v6225_v19 = vpop.f32.mrf.mxu1 }
 0x8d5   : > { %v6226_v56 = vadd.f32 %v6225_v19, %v6213_v41  ;;  %v6239_v12 = vadd.f32 %v6238_v61, %v15089_v13 }
 0x8d6   : > { %v6214_v28 = vpop.f32.mrf.mxu0 }
 0x8d7   : > { %6319 = vst [vmem:[#allocation4 + $0x28] sm:$0xff] %v6226_v56 }
 0x8da   : > { %v6251_v54 = vpop.f32.mrf.mxu3 }
 0x8db   : > { %v6252_v58 = vadd.f32 %v6251_v54, %v6239_v12 }
 0x8dc   : > { %v6240_v55 = vpop.f32.mrf.mxu2  ;;  %v6227_v29 = vpop.f32.mrf.mxu1 }
 0x8dd   : > { %6320 = vst [vmem:[#allocation4 + $0x8] sm:$0xff] %v6252_v58 }
 0x8e2   : > { %v6253_v31 = vpop.f32.mrf.mxu3 }
 0x8ee   : > { %v6264_v40 = vpop.f32.mrf.mxu0 }
 0x8ef   : > { %v6265_v44 = vadd.f32 %v6264_v40, %v15090_v9 }
 0x8f4   : > { %v6277_v34 = vpop.f32.mrf.mxu1  ;;  %v6290_v50 = vpop.f32.mrf.mxu2 }
 0x8f5   : > { %v6278_v32 = vadd.f32 %v6277_v34, %v6265_v44  ;;  %v6291_v0 = vadd.f32 %v6290_v50, %v15091_v33 }
 0x8f6   : > { %v6266_v22 = vpop.f32.mrf.mxu0 }
 0x8f7   : > { %6321 = vst [vmem:[#allocation4 + $0x30] sm:$0xff] %v6278_v32 }
 0x8fa   : > { %v6303_v63 = vpop.f32.mrf.mxu3 }
 0x8fb   : > { %v6304_v15 = vadd.f32 %v6303_v63, %v6291_v0 }
 0x8fc   : > { %v6279_v43 = vpop.f32.mrf.mxu1  ;;  %v6292_v2 = vpop.f32.mrf.mxu2 }
 0x8fd   : > { %6322 = vst [vmem:[#allocation4 + $0x38] sm:$0xff] %v6304_v15 }
 0x8fe   : > { %6332 = sbr.rel (%p8436_p1) target bundleno = 2474 (0x9aa), region = 88 }
 0x902   : > { %v6305_v60 = vpop.f32.mrf.mxu3 }
 0x903   : > { %v8961_v52 = vld [vmem:[#allocation19 + $0x38] sm:$0xff]  ;;  %v8960_v49 = vld [vmem:[#allocation19 + $0x30] sm:$0xff]  ;;  %v8959_v20 = vld [vmem:[#allocation19 + $0x28] sm:$0xff] }
 0x904   : > { %v8969_v62 = vld [vmem:[#allocation19 + $0x78] sm:$0xff]  ;;  %6465 = vmatpush.bf16.msra.mxu0 %v8961_v52  ;;  %v8968_v35 = vld [vmem:[#allocation19 + $0x70] sm:$0xff]  ;;  %v8967_v10 = vld [vmem:[#allocation19 + $0x68] sm:$0xff] }
 0x905   : > { %6478 = vmatpush.bf16.msra.mxu1 %v8969_v62  ;;  %v8958_v17 = vld [vmem:[#allocation19 + $0x20] sm:$0xff]  ;;  %v8957_v23 = vld [vmem:[#allocation19 + $0x18] sm:$0xff]  ;;  %v8956_v25 = vld [vmem:[#allocation19 + $0x10] sm:$0xff] }
 0x906   : > { %v8966_v53 = vld [vmem:[#allocation19 + $0x60] sm:$0xff]  ;;  %v8965_v57 = vld [vmem:[#allocation19 + $0x58] sm:$0xff]  ;;  %v8964_v39 = vld [vmem:[#allocation19 + $0x50] sm:$0xff] }
 0x907   : > { %v8955_v16 = vld [vmem:[#allocation19 + $0x8] sm:$0xff]  ;;  %v8954_v6 = vld [vmem:[#allocation19] sm:$0xff]  ;;  %v9261_v38 = vld [vmem:[%s12774_s7] ss:$0 sm:$0xff] }
 0x908   : > { %6466 = vmatpush.bf16.msra.mxu0 %v8960_v49  ;;  %v8963_v21 = vld [vmem:[#allocation19 + $0x48] sm:$0xff]  ;;  %v8962_v5 = vld [vmem:[#allocation19 + $0x40] sm:$0xff] }
 0x909   : > { %6479 = vmatpush.bf16.msra.mxu1 %v8968_v35 }
 0x90c   : > { %6467 = vmatpush.bf16.msra.mxu0 %v8959_v20 }
 0x90d   : > { %6480 = vmatpush.bf16.msra.mxu1 %v8967_v10 }
 0x910   : > { %6468 = vmatpush.bf16.msra.mxu0 %v8958_v17 }
 0x911   : > { %6481 = vmatpush.bf16.msra.mxu1 %v8966_v53 }
 0x914   : > { %6469 = vmatpush.bf16.msra.mxu0 %v8957_v23 }
 0x915   : > { %6482 = vmatpush.bf16.msra.mxu1 %v8965_v57 }
 0x918   : > { %6470 = vmatpush.bf16.msra.mxu0 %v8956_v25 }
 0x919   : > { %6483 = vmatpush.bf16.msra.mxu1 %v8964_v39 }
 0x91c   : > { %6471 = vmatpush.bf16.msra.mxu0 %v8955_v16 }
 0x91d   : > { %6484 = vmatpush.bf16.msra.mxu1 %v8963_v21 }
 0x920   : > { %6472 = vmatpush.bf16.msra.mxu0 %v8954_v6 }
 0x921   : > { %6485 = vmatpush.bf16.msra.mxu1 %v8962_v5 }
 0x923   : > { %6473 = vmatmul.bf16.vlgmr.msra.gmra.mxu0 %v12646_v45 }
 0x924   : > { %6486 = vmatmul.bf16.vlgmr.msra.gmra.mxu1 %v12652_v14 }
 0x9a0   : > { %v6474_v30 = vpop.f32.mrf.mxu0 }
 0x9a1   : > { %v6487_v42 = vpop.f32.mrf.mxu1  ;;  %v6475_v7 = vadd.f32 %v9261_v38, %v6474_v30 }
 0x9a3   : > { %v6488_v18 = vadd.f32 %v6487_v42, %v6475_v7 }
 0x9a5   : > { %6491 = vst [vmem:[#allocation20] sm:$0xff] %v6488_v18 }
 0x9a8   : > { %v6476_v27 = vpop.f32.mrf.mxu0 }
 0x9a9   : > { %v6489_v48 = vpop.f32.mrf.mxu1 }
 0x9aa PF: > { %s15092_s16 = sadd.s32 4294967295, %s9566_s10   ;;  %s15093_s14 = sld [smem:[#allocation446_spill]] }
 0x9ab   : > { %p9036_p3 = scmp.eq.s32.totalorder %s15092_s16, 1  ;;  %s9582_s8 = smov [#allocation20]  }
 0x9ac   : > { %s6500_s1 = sshll.u32 %s9582_s8, 4  ;;  %s6501_s1 = int_to_ptr.vmem [resolvable:$true] %s6500_s1 }
 0x9b0   : > { %s6502_s13 = sshll.u32 %s15093_s14, 4  ;;  %s6503_s13 = int_to_ptr.hbm [resolvable:$true] %s6502_s13 }
 0x9b1   : > { %8997 = dma.vmem_to_hbm [thread:$0]  (%p9036_p3), %s6501_s1, 128, %s6503_s13, [#allocation10]  }
 0x9b2   : > { %9541 = dma.done.wait (%p9036_p3), [#allocation10], 128  }
 0x9b3   : > { %9543 = vsyncadd (%p9036_p3), [#allocation10], 4294967168 }
 0x9b4 PF: > { %s25_s10 = sadd.s32 1, %s9566_s10   ;;  %s15094_s27 = smov %s9550_s28 }
 0x9b5   : > { %p22_p4 = scmp.ge.s32.totalorder %s25_s10, 4   ;;  %s15095_s28 = smov %s9554_s29 }
 0x9b6   : > { %s15096_s29 = smov %s9740_s26  ;;  %s15097_s30 = smov %s9562_s9 }
 0x9b7   : > { %s15098_s9 = smov %s15100_s18  ;;  %24 = sbr.rel (!%p22_p4) target bundleno = 12 (0xc), region = 125 }
 0x9bc   :  { %6516 = vsyncpa [#allocation9], 1 }
 0x9bd   :  { %6518 = vsyncpa [#allocation9 + $0x1], 1 }
 0x9be   :  { %6519 = vsyncpa [#allocation12], 1 }
 0x9bf   :  { %6520 = vsyncpa [#allocation15], 1 }
 0x9c0   :  { %6521 = vsyncpa [#allocation18], 1 }
 0x9c1   :  { %6522 = vsyncpa [#allocation10], 1 }
 0x9c2   :  { %6524 = vsyncpa [#allocation10 + $0x1], 1 }

</bundles_post_ra>
